<compile_context>
chip_gen: v6e
topology: v6e:2x2x1
jax: 0.10.0
libtpu: 0.0.40
codegen_flags: <defaults>
</compile_context>

<pallas_src>
import jax
import jax.numpy as jnp
from jax.experimental import pallas as pl
from jax.experimental.pallas import tpu as pltpu


_LANE = 128   # f32 lane width
_SUB = 8      # f32 sublane count


# ------------------------------- helpers --------------------------------------

def _ceil_to(n, m):
    return ((n + m - 1) // m) * m


def _pad_axis(a, axis, target):
    pad = target - a.shape[axis]
    if pad <= 0:
        return a
    widths = [(0, 0)] * a.ndim
    widths[axis] = (0, pad)
    return jnp.pad(a, widths)


def _pad_gate_cols(w, H, Hp):
    """Pad the (..., 3H) gate axis per-gate to (..., 3Hp) with zeros."""
    parts = [_pad_axis(w[..., g * H:(g + 1) * H], -1, Hp) for g in range(3)]
    return jnp.concatenate(parts, axis=-1)


def _derive_vmem_limit():
    """Per-chip VMEM budget (~3/4 of physical) instead of a hardcoded 64 MiB
    that would starve v7x (64 MiB/TC); v5e/v6e get up to ~96 MiB."""
    try:
        return int(pltpu.get_tpu_info().vmem_capacity_bytes * 3 // 4)
    except Exception:
        return None   # fall back to the compiler default (plenty at these sizes)


# -------------------------- fused wavefront kernel ----------------------------

def _make_wavefront_kernel(num_layers, S, Bb, Hp, Dp0, Op):
    G = 3 * Hp

    def kernel(*refs):
        x_ref = refs[0]
        layer_refs = refs[1:1 + 4 * num_layers]
        w_lin_ref = refs[1 + 4 * num_layers]
        b_lin_ref = refs[2 + 4 * num_layers]
        out_ref = refs[3 + 4 * num_layers]
        gi0_ref = refs[4 + 4 * num_layers]      # (S, Bb, 3Hp) scratch
        hseq_ref = refs[5 + 4 * num_layers]     # (S, Bb, Hp)  scratch (last layer)

        wih, whh, bih_eff, bhh_n_b = [], [], [], []
        for l in range(num_layers):
            wih.append(layer_refs[4 * l + 0][...])        # (Dp, 3Hp)
            whh.append(layer_refs[4 * l + 1][...])        # (Hp, 3Hp)
            bih_eff.append(layer_refs[4 * l + 2][...])    # (1, 3Hp)  (bih + bhh_rz)
            # hoist the (1,Hp)->(Bb,Hp) broadcast of the n-gate bhh out of the loop
            bhh_n_b.append(jnp.broadcast_to(layer_refs[4 * l + 3][...], (Bb, Hp)))

        # ---- layer-0 input GEMM hoisted over ALL timesteps (off the chain) ----
        x2 = x_ref[...].reshape(S * Bb, Dp0)
        gi0 = jnp.dot(x2, wih[0], preferred_element_type=jnp.float32) + bih_eff[0]
        gi0_ref[...] = gi0.reshape(S, Bb, G)

        def cell(gi, h, l):
            gh = jnp.dot(h, whh[l], preferred_element_type=jnp.float32)
            # 128-lane-aligned gate slices (PyTorch order r, z, n)
            r = jax.nn.sigmoid(gi[:, 0:Hp] + gh[:, 0:Hp])
            z = jax.nn.sigmoid(gi[:, Hp:2 * Hp] + gh[:, Hp:2 * Hp])
            n = jnp.tanh(gi[:, 2 * Hp:] + r * (gh[:, 2 * Hp:] + bhh_n_b[l]))
            return (1.0 - z) * n + z * h

        def macro_step(u, hs, active):
            # Wavefront macro-step: layer l handles timestep (u - l).  All
            # active layers read only the start-of-step carry `hs`, so their
            # matmuls are mutually independent (MXU overlap across layers).
            new_hs = list(hs)
            for l in range(num_layers):
                if not active[l]:
                    continue
                if l == 0:
                    gi = gi0_ref[u]                                    # (Bb, 3Hp)
                else:
                    gi = jnp.dot(hs[l - 1], wih[l],
                                 preferred_element_type=jnp.float32) + bih_eff[l]
                h_new = cell(gi, hs[l], l)
                new_hs[l] = h_new
                if l == num_layers - 1:
                    hseq_ref[u - l] = h_new
            return tuple(new_hs)

        hs = tuple(jnp.zeros((Bb, Hp), jnp.float32) for _ in range(num_layers))

        # prologue: layers spin up one per macro-step
        for u in range(num_layers - 1):
            hs = macro_step(u, hs, tuple(l <= u for l in range(num_layers)))

        # steady state: all layers active; capped unroll (per review)
        n_steady = S - (num_layers - 1)
        if n_steady > 0:
            all_active = (True,) * num_layers
            hs = jax.lax.fori_loop(
                num_layers - 1, S,
                lambda u, c: macro_step(u, c, all_active),
                hs, unroll=min(8, n_steady))

        # epilogue: trailing layers drain
        for u in range(S, S + num_layers - 1):
            hs = macro_step(u, hs,
                            tuple(0 <= u - l < S for l in range(num_layers)))

        # ---- final Linear: one lane-dense (S*Bb, Hp) @ (Hp, Op) GEMM ----
        h2 = hseq_ref[...].reshape(S * Bb, Hp)
        y = jnp.dot(h2, w_lin_ref[...], preferred_element_type=jnp.float32)
        y = y + b_lin_ref[...]
        out_ref[...] = y.reshape(S, Bb, Op)

    return kernel


# ------------------------- host-side param preparation ------------------------

def prepare_params(params):
    """Pad to (8,128)-friendly shapes and fold biases ONCE (hoisted out of the
    per-call path).  Returns a pytree of device arrays used by the kernel."""
    H = params["gru_layers"][0]["whh_t"].shape[0]
    Hp = _ceil_to(H, _LANE)
    O = params["w_lin_t"].shape[1]
    Op = _ceil_to(O, _LANE)

    layers = []
    for layer in params["gru_layers"]:
        wih, whh = layer["wih_t"], layer["whh_t"]
        bih, bhh = layer["bih"], layer["bhh"]
        d_in = wih.shape[0]
        # Fold bhh of the r,z gates into the input bias; the n-gate bhh must
        # stay inside the r*(...) term so it is passed separately.
        bih_eff = bih + jnp.concatenate(
            [bhh[:, :2 * H], jnp.zeros_like(bhh[:, 2 * H:])], axis=-1)
        layers.append(dict(
            wih=_pad_axis(_pad_gate_cols(wih, H, Hp), 0, _ceil_to(d_in, _LANE)),
            whh=_pad_axis(_pad_gate_cols(whh, H, Hp), 0, Hp),
            bih_eff=_pad_gate_cols(bih_eff, H, Hp),
            bhh_n=_pad_axis(bhh[:, 2 * H:], -1, Hp),
        ))
    return dict(
        layers=layers,
        w_lin=_pad_axis(_pad_axis(params["w_lin_t"], 0, Hp), 1, Op),
        b_lin=_pad_axis(params["b_lin"], 1, Op),
    )


# ------------------------------ host wrapper ----------------------------------

def gru_model_forward(x, prepped, output_dim):
    """x: (B, S, input_size) batch-first; returns (B, S, output_dim)."""
    x = x.astype(jnp.float32)
    B, S, _ = x.shape
    layers = prepped["layers"]
    num_layers = len(layers)
    assert S >= num_layers, "wavefront schedule assumes seq_len >= num_layers"

    Hp = layers[0]["whh"].shape[0]
    Dp0 = layers[0]["wih"].shape[0]
    Op = prepped["w_lin"].shape[1]

    # Batch grid axis: up to 2 blocks so v7x's two TensorCores each take half
    # the batch (dimension_semantics=("parallel",)); single block otherwise.
    if B > _SUB:
        n_blk = 2
        Bp = _ceil_to(B, 2 * _SUB)
        Bb = Bp // 2
    else:
        n_blk = 1
        Bp = _ceil_to(B, _SUB)
        Bb = Bp

    # time-major, zero-padded input: (S, Bp, Dp0)
    x_tm = jnp.transpose(x, (1, 0, 2))
    x_tm = _pad_axis(_pad_axis(x_tm, 1, Bp), 2, Dp0)

    flat = [x_tm]
    for layer in layers:
        flat += [layer["wih"], layer["whh"], layer["bih_eff"], layer["bhh_n"]]
    flat += [prepped["w_lin"], prepped["b_lin"]]

    def _full_spec(a):
        nd = a.ndim
        return pl.BlockSpec(a.shape, lambda b, _nd=nd: (0,) * _nd)

    in_specs = [pl.BlockSpec((S, Bb, Dp0), lambda b: (0, b, 0))]
    in_specs += [_full_spec(a) for a in flat[1:]]
    out_spec = pl.BlockSpec((S, Bb, Op), lambda b: (0, b, 0))

    kernel = _make_wavefront_kernel(num_layers, S, Bb, Hp, Dp0, Op)

    out_tm = pl.pallas_call(
        kernel,
        out_shape=jax.ShapeDtypeStruct((S, Bp, Op), jnp.float32),
        grid=(n_blk,),
        in_specs=in_specs,
        out_specs=out_spec,
        scratch_shapes=[
            pltpu.VMEM((S, Bb, 3 * Hp), jnp.float32),   # precomputed layer-0 gi
            pltpu.VMEM((S, Bb, Hp), jnp.float32),       # last-layer hidden seq
        ],
        compiler_params=pltpu.CompilerParams(
            dimension_semantics=("parallel",),
            vmem_limit_bytes=_derive_vmem_limit(),
        ),
    )(*flat)

    return jnp.transpose(out_tm[:, :B, :output_dim], (1, 0, 2))


# --------------------------- pure-JAX reference --------------------------------

def gru_model_reference(x, params):
    B = x.shape[0]
    h_seq = jnp.transpose(x, (1, 0, 2)).astype(jnp.float32)
    for layer in params["gru_layers"]:
        H = layer["whh_t"].shape[0]
        wih, whh = layer["wih_t"], layer["whh_t"]
        bih, bhh = layer["bih"], layer["bhh"]

        def step(h, x_t, wih=wih, whh=whh, bih=bih, bhh=bhh, H=H):
            gi = x_t @ wih + bih
            gh = h @ whh + bhh
            r = jax.nn.sigmoid(gi[:, :H] + gh[:, :H])
            z = jax.nn.sigmoid(gi[:, H:2 * H] + gh[:, H:2 * H])
            n = jnp.tanh(gi[:, 2 * H:] + r * gh[:, 2 * H:])
            h_new = (1.0 - z) * n + z * h
            return h_new, h_new

        _, h_seq = jax.lax.scan(step, jnp.zeros((B, H), jnp.float32), h_seq)
    y = jnp.einsum("sbh,ho->sbo", h_seq, params["w_lin_t"]) + params["b_lin"]
    return jnp.transpose(y, (1, 0, 2))


# ------------------------------ param init -------------------------------------

def init_params(key, input_size, hidden_size, num_layers, output_dim):
    """PyTorch-style init: U(-1/sqrt(H), 1/sqrt(H)); weights stored transposed."""
    k = 1.0 / jnp.sqrt(jnp.float32(hidden_size))
    layers = []
    for layer_idx in range(num_layers):
        d_in = input_size if layer_idx == 0 else hidden_size
        key, k1, k2, k3, k4 = jax.random.split(key, 5)
        layers.append(dict(
            wih_t=jax.random.uniform(k1, (d_in, 3 * hidden_size), jnp.float32, -k, k),
            whh_t=jax.random.uniform(k2, (hidden_size, 3 * hidden_size), jnp.float32, -k, k),
            bih=jax.random.uniform(k3, (1, 3 * hidden_size), jnp.float32, -k, k),
            bhh=jax.random.uniform(k4, (1, 3 * hidden_size), jnp.float32, -k, k),
        ))
    key, k5, k6 = jax.random.split(key, 3)
    return dict(
        gru_layers=layers,
        w_lin_t=jax.random.uniform(k5, (hidden_size, output_dim), jnp.float32, -k, k),
        b_lin=jax.random.uniform(k6, (1, output_dim), jnp.float32, -k, k),
    )


# ---------------------------------- main ----------------------------------------

if __name__ == "__main__":
    B, S = 2, 8
    input_size, hidden_size_, num_layers_, output_dim_ = 16, 32, 2, 1

    key = jax.random.PRNGKey(0)
    key, pkey, xkey = jax.random.split(key, 3)
    params = init_params(pkey, input_size, hidden_size_, num_layers_, output_dim_)
    x = jax.random.normal(xkey, (B, S, input_size), jnp.float32)

    # Padding / bias folding hoisted out of the per-call path (done once).
    prepped = prepare_params(params)

    fwd = jax.jit(gru_model_forward, static_argnums=(2,))
    out = jax.block_until_ready(fwd(x, prepped, output_dim_))
    ref = jax.block_until_ready(gru_model_reference(x, params))

    assert out.shape == (B, S, output_dim_), out.shape
    assert jnp.allclose(out, ref, atol=1e-4, rtol=1e-4), (
        "Pallas GRU output mismatch vs JAX reference"
    )
    print("KERNEL_OK")
</pallas_src>

<mosaic_0001>
module attributes {stable_mosaic.version = 11 : i64} {
  func.func @kernel(%arg0: i32, %arg1: memref<8x8x128xf32, #tpu.memory_space<vmem>>, %arg2: memref<128x384xf32, #tpu.memory_space<vmem>>, %arg3: memref<128x384xf32, #tpu.memory_space<vmem>>, %arg4: memref<1x384xf32, #tpu.memory_space<vmem>>, %arg5: memref<1x128xf32, #tpu.memory_space<vmem>>, %arg6: memref<128x384xf32, #tpu.memory_space<vmem>>, %arg7: memref<128x384xf32, #tpu.memory_space<vmem>>, %arg8: memref<1x384xf32, #tpu.memory_space<vmem>>, %arg9: memref<1x128xf32, #tpu.memory_space<vmem>>, %arg10: memref<128x128xf32, #tpu.memory_space<vmem>>, %arg11: memref<1x128xf32, #tpu.memory_space<vmem>>, %arg12: memref<8x8x128xf32, #tpu.memory_space<vmem>>, %arg13: memref<8x8x384xf32, #tpu.memory_space<vmem>>, %arg14: memref<8x8x128xf32, #tpu.memory_space<vmem>>) attributes {dimension_semantics = [#tpu.dimension_semantics<parallel>], iteration_bounds = array<i64: 1>, scalar_prefetch = 0 : i64, scratch_operands = 2 : i64, tpu.core_type = #tpu.core_type<tc>, window_params = [{transform_indices = @transform_0, window_bounds = array<i64: 8, 8, 128>}, {pipeline_mode = #tpu.pipeline_mode<synchronous>, transform_indices = @transform_1, window_bounds = array<i64: 128, 384>}, {pipeline_mode = #tpu.pipeline_mode<synchronous>, transform_indices = @transform_2, window_bounds = array<i64: 128, 384>}, {pipeline_mode = #tpu.pipeline_mode<synchronous>, transform_indices = @transform_3, window_bounds = array<i64: 1, 384>}, {pipeline_mode = #tpu.pipeline_mode<synchronous>, transform_indices = @transform_4, window_bounds = array<i64: 1, 128>}, {pipeline_mode = #tpu.pipeline_mode<synchronous>, transform_indices = @transform_5, window_bounds = array<i64: 128, 384>}, {pipeline_mode = #tpu.pipeline_mode<synchronous>, transform_indices = @transform_6, window_bounds = array<i64: 128, 384>}, {pipeline_mode = #tpu.pipeline_mode<synchronous>, transform_indices = @transform_7, window_bounds = array<i64: 1, 384>}, {pipeline_mode = #tpu.pipeline_mode<synchronous>, transform_indices = @transform_8, window_bounds = array<i64: 1, 128>}, {pipeline_mode = #tpu.pipeline_mode<synchronous>, transform_indices = @transform_9, window_bounds = array<i64: 128, 128>}, {pipeline_mode = #tpu.pipeline_mode<synchronous>, transform_indices = @transform_10, window_bounds = array<i64: 1, 128>}, {transform_indices = @transform_11, window_bounds = array<i64: 8, 8, 128>}]} {
    %c0 = arith.constant 0 : index
    %c0_0 = arith.constant 0 : index
    %0 = vector.load %arg2[%c0, %c0_0] : memref<128x384xf32, #tpu.memory_space<vmem>>, vector<128x384xf32>
    %c0_1 = arith.constant 0 : index
    %c0_2 = arith.constant 0 : index
    %1 = vector.load %arg3[%c0_1, %c0_2] : memref<128x384xf32, #tpu.memory_space<vmem>>, vector<128x384xf32>
    %c0_3 = arith.constant 0 : index
    %c0_4 = arith.constant 0 : index
    %2 = vector.load %arg4[%c0_3, %c0_4] : memref<1x384xf32, #tpu.memory_space<vmem>>, vector<1x384xf32>
    %c0_5 = arith.constant 0 : index
    %c0_6 = arith.constant 0 : index
    %3 = vector.load %arg5[%c0_5, %c0_6] : memref<1x128xf32, #tpu.memory_space<vmem>>, vector<1x128xf32>
    %4 = vector.shape_cast %3 : vector<1x128xf32> to vector<1x128xf32>
    %5 = vector.broadcast %4 : vector<1x128xf32> to vector<8x128xf32>
    %c0_7 = arith.constant 0 : index
    %c0_8 = arith.constant 0 : index
    %6 = vector.load %arg6[%c0_7, %c0_8] : memref<128x384xf32, #tpu.memory_space<vmem>>, vector<128x384xf32>
    %c0_9 = arith.constant 0 : index
    %c0_10 = arith.constant 0 : index
    %7 = vector.load %arg7[%c0_9, %c0_10] : memref<128x384xf32, #tpu.memory_space<vmem>>, vector<128x384xf32>
    %c0_11 = arith.constant 0 : index
    %c0_12 = arith.constant 0 : index
    %8 = vector.load %arg8[%c0_11, %c0_12] : memref<1x384xf32, #tpu.memory_space<vmem>>, vector<1x384xf32>
    %c0_13 = arith.constant 0 : index
    %c0_14 = arith.constant 0 : index
    %9 = vector.load %arg9[%c0_13, %c0_14] : memref<1x128xf32, #tpu.memory_space<vmem>>, vector<1x128xf32>
    %10 = vector.shape_cast %9 : vector<1x128xf32> to vector<1x128xf32>
    %11 = vector.broadcast %10 : vector<1x128xf32> to vector<8x128xf32>
    %c0_15 = arith.constant 0 : index
    %c0_16 = arith.constant 0 : index
    %c0_17 = arith.constant 0 : index
    %12 = vector.load %arg1[%c0_15, %c0_16, %c0_17] : memref<8x8x128xf32, #tpu.memory_space<vmem>>, vector<8x8x128xf32>
    %13 = vector.shape_cast %12 : vector<8x8x128xf32> to vector<64x128xf32>
    %cst = arith.constant dense<0.000000e+00> : vector<64x384xf32>
    %14 = tpu.matmul %13, %0, %cst {dimension_numbers = #tpu.dot_dimension_numbers<[1], [0], [0], [1], [0, 0, 1, 1], [], []>} : vector<64x128xf32>, vector<128x384xf32>, vector<64x384xf32> -> vector<64x384xf32>
    %15 = vector.broadcast %2 : vector<1x384xf32> to vector<64x384xf32>
    %16 = arith.addf %14, %15 : vector<64x384xf32>
    %17 = vector.shape_cast %16 : vector<64x384xf32> to vector<8x8x384xf32>
    %c0_18 = arith.constant 0 : index
    %c0_19 = arith.constant 0 : index
    %c0_20 = arith.constant 0 : index
    %18 = vector.load %arg13[%c0_18, %c0_19, %c0_20] : memref<8x8x384xf32, #tpu.memory_space<vmem>>, vector<8x8x384xf32>
    tpu.vector_store %arg13[%c0_18, %c0_19, %c0_20], %17 {strides = array<i32>} : memref<8x8x384xf32, #tpu.memory_space<vmem>>, vector<8x8x384xf32>,
    %cst_21 = arith.constant 0.000000e+00 : f32
    %19 = vector.broadcast %cst_21 : f32 to vector<8x128xf32>
    %cst_22 = arith.constant 0.000000e+00 : f32
    %20 = vector.broadcast %cst_22 : f32 to vector<8x128xf32>
    %c0_23 = arith.constant 0 : index
    %c0_24 = arith.constant 0 : index
    %c0_25 = arith.constant 0 : index
    %21 = vector.load %arg13[%c0_23, %c0_24, %c0_25] : memref<8x8x384xf32, #tpu.memory_space<vmem>>, vector<1x8x384xf32>
    %22 = vector.shape_cast %21 : vector<1x8x384xf32> to vector<8x384xf32>
    %cst_26 = arith.constant dense<0.000000e+00> : vector<8x384xf32>
    %23 = tpu.matmul %19, %1, %cst_26 {dimension_numbers = #tpu.dot_dimension_numbers<[1], [0], [0], [1], [0, 0, 1, 1], [], []>} : vector<8x128xf32>, vector<128x384xf32>, vector<8x384xf32> -> vector<8x384xf32>
    %24 = vector.extract_strided_slice %22 {offsets = [0, 0], sizes = [8, 128], strides = [1, 1]} : vector<8x384xf32> to vector<8x128xf32>
    %25 = vector.extract_strided_slice %23 {offsets = [0, 0], sizes = [8, 128], strides = [1, 1]} : vector<8x384xf32> to vector<8x128xf32>
    %26 = arith.addf %24, %25 : vector<8x128xf32>
    %27 = arith.negf %26 : vector<8x128xf32>
    %28 = math.exp %27 : vector<8x128xf32>
    %cst_27 = arith.constant 1.000000e+00 : f32
    %29 = vector.broadcast %cst_27 : f32 to vector<8x128xf32>
    %30 = arith.addf %29, %28 : vector<8x128xf32>
    %31 = arith.divf %29, %30 : vector<8x128xf32>
    %32 = vector.extract_strided_slice %22 {offsets = [0, 128], sizes = [8, 128], strides = [1, 1]} : vector<8x384xf32> to vector<8x128xf32>
    %33 = vector.extract_strided_slice %23 {offsets = [0, 128], sizes = [8, 128], strides = [1, 1]} : vector<8x384xf32> to vector<8x128xf32>
    %34 = arith.addf %32, %33 : vector<8x128xf32>
    %35 = arith.negf %34 : vector<8x128xf32>
    %36 = math.exp %35 : vector<8x128xf32>
    %cst_28 = arith.constant 1.000000e+00 : f32
    %37 = vector.broadcast %cst_28 : f32 to vector<8x128xf32>
    %38 = arith.addf %37, %36 : vector<8x128xf32>
    %39 = arith.divf %37, %38 : vector<8x128xf32>
    %40 = vector.extract_strided_slice %22 {offsets = [0, 256], sizes = [8, 128], strides = [1, 1]} : vector<8x384xf32> to vector<8x128xf32>
    %41 = vector.extract_strided_slice %23 {offsets = [0, 256], sizes = [8, 128], strides = [1, 1]} : vector<8x384xf32> to vector<8x128xf32>
    %42 = arith.addf %41, %5 : vector<8x128xf32>
    %43 = arith.mulf %31, %42 : vector<8x128xf32>
    %44 = arith.addf %40, %43 : vector<8x128xf32>
    %45 = math.tanh %44 : vector<8x128xf32>
    %cst_29 = arith.constant 1.000000e+00 : f32
    %46 = vector.broadcast %cst_29 : f32 to vector<8x128xf32>
    %47 = arith.subf %46, %39 : vector<8x128xf32>
    %48 = arith.mulf %47, %45 : vector<8x128xf32>
    %49 = arith.mulf %39, %19 : vector<8x128xf32>
    %50 = arith.addf %48, %49 : vector<8x128xf32>
    %c1_i32 = arith.constant 1 : i32
    %51 = arith.index_cast %c1_i32 : i32 to index
    %c0_30 = arith.constant 0 : index
    %c0_31 = arith.constant 0 : index
    %52 = vector.load %arg13[%51, %c0_30, %c0_31] : memref<8x8x384xf32, #tpu.memory_space<vmem>>, vector<1x8x384xf32>
    %53 = vector.shape_cast %52 : vector<1x8x384xf32> to vector<8x384xf32>
    %cst_32 = arith.constant dense<0.000000e+00> : vector<8x384xf32>
    %54 = tpu.matmul %50, %1, %cst_32 {dimension_numbers = #tpu.dot_dimension_numbers<[1], [0], [0], [1], [0, 0, 1, 1], [], []>} : vector<8x128xf32>, vector<128x384xf32>, vector<8x384xf32> -> vector<8x384xf32>
    %55 = vector.extract_strided_slice %53 {offsets = [0, 0], sizes = [8, 128], strides = [1, 1]} : vector<8x384xf32> to vector<8x128xf32>
    %56 = vector.extract_strided_slice %54 {offsets = [0, 0], sizes = [8, 128], strides = [1, 1]} : vector<8x384xf32> to vector<8x128xf32>
    %57 = arith.addf %55, %56 : vector<8x128xf32>
    %58 = arith.negf %57 : vector<8x128xf32>
    %59 = math.exp %58 : vector<8x128xf32>
    %cst_33 = arith.constant 1.000000e+00 : f32
    %60 = vector.broadcast %cst_33 : f32 to vector<8x128xf32>
    %61 = arith.addf %60, %59 : vector<8x128xf32>
    %62 = arith.divf %60, %61 : vector<8x128xf32>
    %63 = vector.extract_strided_slice %53 {offsets = [0, 128], sizes = [8, 128], strides = [1, 1]} : vector<8x384xf32> to vector<8x128xf32>
    %64 = vector.extract_strided_slice %54 {offsets = [0, 128], sizes = [8, 128], strides = [1, 1]} : vector<8x384xf32> to vector<8x128xf32>
    %65 = arith.addf %63, %64 : vector<8x128xf32>
    %66 = arith.negf %65 : vector<8x128xf32>
    %67 = math.exp %66 : vector<8x128xf32>
    %cst_34 = arith.constant 1.000000e+00 : f32
    %68 = vector.broadcast %cst_34 : f32 to vector<8x128xf32>
    %69 = arith.addf %68, %67 : vector<8x128xf32>
    %70 = arith.divf %68, %69 : vector<8x128xf32>
    %71 = vector.extract_strided_slice %53 {offsets = [0, 256], sizes = [8, 128], strides = [1, 1]} : vector<8x384xf32> to vector<8x128xf32>
    %72 = vector.extract_strided_slice %54 {offsets = [0, 256], sizes = [8, 128], strides = [1, 1]} : vector<8x384xf32> to vector<8x128xf32>
    %73 = arith.addf %72, %5 : vector<8x128xf32>
    %74 = arith.mulf %62, %73 : vector<8x128xf32>
    %75 = arith.addf %71, %74 : vector<8x128xf32>
    %76 = math.tanh %75 : vector<8x128xf32>
    %cst_35 = arith.constant 1.000000e+00 : f32
    %77 = vector.broadcast %cst_35 : f32 to vector<8x128xf32>
    %78 = arith.subf %77, %70 : vector<8x128xf32>
    %79 = arith.mulf %78, %76 : vector<8x128xf32>
    %80 = arith.mulf %70, %50 : vector<8x128xf32>
    %81 = arith.addf %79, %80 : vector<8x128xf32>
    %cst_36 = arith.constant dense<0.000000e+00> : vector<8x384xf32>
    %82 = tpu.matmul %50, %6, %cst_36 {dimension_numbers = #tpu.dot_dimension_numbers<[1], [0], [0], [1], [0, 0, 1, 1], [], []>} : vector<8x128xf32>, vector<128x384xf32>, vector<8x384xf32> -> vector<8x384xf32>
    %83 = vector.broadcast %8 : vector<1x384xf32> to vector<8x384xf32>
    %84 = arith.addf %82, %83 : vector<8x384xf32>
    %cst_37 = arith.constant dense<0.000000e+00> : vector<8x384xf32>
    %85 = tpu.matmul %20, %7, %cst_37 {dimension_numbers = #tpu.dot_dimension_numbers<[1], [0], [0], [1], [0, 0, 1, 1], [], []>} : vector<8x128xf32>, vector<128x384xf32>, vector<8x384xf32> -> vector<8x384xf32>
    %86 = vector.extract_strided_slice %84 {offsets = [0, 0], sizes = [8, 128], strides = [1, 1]} : vector<8x384xf32> to vector<8x128xf32>
    %87 = vector.extract_strided_slice %85 {offsets = [0, 0], sizes = [8, 128], strides = [1, 1]} : vector<8x384xf32> to vector<8x128xf32>
    %88 = arith.addf %86, %87 : vector<8x128xf32>
    %89 = arith.negf %88 : vector<8x128xf32>
    %90 = math.exp %89 : vector<8x128xf32>
    %cst_38 = arith.constant 1.000000e+00 : f32
    %91 = vector.broadcast %cst_38 : f32 to vector<8x128xf32>
    %92 = arith.addf %91, %90 : vector<8x128xf32>
    %93 = arith.divf %91, %92 : vector<8x128xf32>
    %94 = vector.extract_strided_slice %84 {offsets = [0, 128], sizes = [8, 128], strides = [1, 1]} : vector<8x384xf32> to vector<8x128xf32>
    %95 = vector.extract_strided_slice %85 {offsets = [0, 128], sizes = [8, 128], strides = [1, 1]} : vector<8x384xf32> to vector<8x128xf32>
    %96 = arith.addf %94, %95 : vector<8x128xf32>
    %97 = arith.negf %96 : vector<8x128xf32>
    %98 = math.exp %97 : vector<8x128xf32>
    %cst_39 = arith.constant 1.000000e+00 : f32
    %99 = vector.broadcast %cst_39 : f32 to vector<8x128xf32>
    %100 = arith.addf %99, %98 : vector<8x128xf32>
    %101 = arith.divf %99, %100 : vector<8x128xf32>
    %102 = vector.extract_strided_slice %84 {offsets = [0, 256], sizes = [8, 128], strides = [1, 1]} : vector<8x384xf32> to vector<8x128xf32>
    %103 = vector.extract_strided_slice %85 {offsets = [0, 256], sizes = [8, 128], strides = [1, 1]} : vector<8x384xf32> to vector<8x128xf32>
    %104 = arith.addf %103, %11 : vector<8x128xf32>
    %105 = arith.mulf %93, %104 : vector<8x128xf32>
    %106 = arith.addf %102, %105 : vector<8x128xf32>
    %107 = math.tanh %106 : vector<8x128xf32>
    %cst_40 = arith.constant 1.000000e+00 : f32
    %108 = vector.broadcast %cst_40 : f32 to vector<8x128xf32>
    %109 = arith.subf %108, %101 : vector<8x128xf32>
    %110 = arith.mulf %109, %107 : vector<8x128xf32>
    %111 = arith.mulf %101, %20 : vector<8x128xf32>
    %112 = arith.addf %110, %111 : vector<8x128xf32>
    %c1_i32_41 = arith.constant 1 : i32
    %113 = arith.subi %c1_i32, %c1_i32_41 : i32
    %114 = arith.index_cast %113 : i32 to index
    %c0_42 = arith.constant 0 : index
    %c0_43 = arith.constant 0 : index
    %115 = vector.load %arg14[%114, %c0_42, %c0_43] : memref<8x8x128xf32, #tpu.memory_space<vmem>>, vector<1x8x128xf32>
    %116 = vector.shape_cast %115 : vector<1x8x128xf32> to vector<8x128xf32>
    %117 = vector.shape_cast %112 : vector<8x128xf32> to vector<1x8x128xf32>
    tpu.vector_store %arg14[%114, %c0_42, %c0_43], %117 {strides = array<i32>} : memref<8x8x128xf32, #tpu.memory_space<vmem>>, vector<1x8x128xf32>,
    %c2_i32 = arith.constant 2 : i32
    %118 = arith.index_cast %c2_i32 : i32 to index
    %c0_44 = arith.constant 0 : index
    %c0_45 = arith.constant 0 : index
    %119 = vector.load %arg13[%118, %c0_44, %c0_45] : memref<8x8x384xf32, #tpu.memory_space<vmem>>, vector<1x8x384xf32>
    %120 = vector.shape_cast %119 : vector<1x8x384xf32> to vector<8x384xf32>
    %cst_46 = arith.constant dense<0.000000e+00> : vector<8x384xf32>
    %121 = tpu.matmul %81, %1, %cst_46 {dimension_numbers = #tpu.dot_dimension_numbers<[1], [0], [0], [1], [0, 0, 1, 1], [], []>} : vector<8x128xf32>, vector<128x384xf32>, vector<8x384xf32> -> vector<8x384xf32>
    %122 = vector.extract_strided_slice %120 {offsets = [0, 0], sizes = [8, 128], strides = [1, 1]} : vector<8x384xf32> to vector<8x128xf32>
    %123 = vector.extract_strided_slice %121 {offsets = [0, 0], sizes = [8, 128], strides = [1, 1]} : vector<8x384xf32> to vector<8x128xf32>
    %124 = arith.addf %122, %123 : vector<8x128xf32>
    %125 = arith.negf %124 : vector<8x128xf32>
    %126 = math.exp %125 : vector<8x128xf32>
    %cst_47 = arith.constant 1.000000e+00 : f32
    %127 = vector.broadcast %cst_47 : f32 to vector<8x128xf32>
    %128 = arith.addf %127, %126 : vector<8x128xf32>
    %129 = arith.divf %127, %128 : vector<8x128xf32>
    %130 = vector.extract_strided_slice %120 {offsets = [0, 128], sizes = [8, 128], strides = [1, 1]} : vector<8x384xf32> to vector<8x128xf32>
    %131 = vector.extract_strided_slice %121 {offsets = [0, 128], sizes = [8, 128], strides = [1, 1]} : vector<8x384xf32> to vector<8x128xf32>
    %132 = arith.addf %130, %131 : vector<8x128xf32>
    %133 = arith.negf %132 : vector<8x128xf32>
    %134 = math.exp %133 : vector<8x128xf32>
    %cst_48 = arith.constant 1.000000e+00 : f32
    %135 = vector.broadcast %cst_48 : f32 to vector<8x128xf32>
    %136 = arith.addf %135, %134 : vector<8x128xf32>
    %137 = arith.divf %135, %136 : vector<8x128xf32>
    %138 = vector.extract_strided_slice %120 {offsets = [0, 256], sizes = [8, 128], strides = [1, 1]} : vector<8x384xf32> to vector<8x128xf32>
    %139 = vector.extract_strided_slice %121 {offsets = [0, 256], sizes = [8, 128], strides = [1, 1]} : vector<8x384xf32> to vector<8x128xf32>
    %140 = arith.addf %139, %5 : vector<8x128xf32>
    %141 = arith.mulf %129, %140 : vector<8x128xf32>
    %142 = arith.addf %138, %141 : vector<8x128xf32>
    %143 = math.tanh %142 : vector<8x128xf32>
    %cst_49 = arith.constant 1.000000e+00 : f32
    %144 = vector.broadcast %cst_49 : f32 to vector<8x128xf32>
    %145 = arith.subf %144, %137 : vector<8x128xf32>
    %146 = arith.mulf %145, %143 : vector<8x128xf32>
    %147 = arith.mulf %137, %81 : vector<8x128xf32>
    %148 = arith.addf %146, %147 : vector<8x128xf32>
    %cst_50 = arith.constant dense<0.000000e+00> : vector<8x384xf32>
    %149 = tpu.matmul %81, %6, %cst_50 {dimension_numbers = #tpu.dot_dimension_numbers<[1], [0], [0], [1], [0, 0, 1, 1], [], []>} : vector<8x128xf32>, vector<128x384xf32>, vector<8x384xf32> -> vector<8x384xf32>
    %150 = vector.broadcast %8 : vector<1x384xf32> to vector<8x384xf32>
    %151 = arith.addf %149, %150 : vector<8x384xf32>
    %cst_51 = arith.constant dense<0.000000e+00> : vector<8x384xf32>
    %152 = tpu.matmul %112, %7, %cst_51 {dimension_numbers = #tpu.dot_dimension_numbers<[1], [0], [0], [1], [0, 0, 1, 1], [], []>} : vector<8x128xf32>, vector<128x384xf32>, vector<8x384xf32> -> vector<8x384xf32>
    %153 = vector.extract_strided_slice %151 {offsets = [0, 0], sizes = [8, 128], strides = [1, 1]} : vector<8x384xf32> to vector<8x128xf32>
    %154 = vector.extract_strided_slice %152 {offsets = [0, 0], sizes = [8, 128], strides = [1, 1]} : vector<8x384xf32> to vector<8x128xf32>
    %155 = arith.addf %153, %154 : vector<8x128xf32>
    %156 = arith.negf %155 : vector<8x128xf32>
    %157 = math.exp %156 : vector<8x128xf32>
    %cst_52 = arith.constant 1.000000e+00 : f32
    %158 = vector.broadcast %cst_52 : f32 to vector<8x128xf32>
    %159 = arith.addf %158, %157 : vector<8x128xf32>
    %160 = arith.divf %158, %159 : vector<8x128xf32>
    %161 = vector.extract_strided_slice %151 {offsets = [0, 128], sizes = [8, 128], strides = [1, 1]} : vector<8x384xf32> to vector<8x128xf32>
    %162 = vector.extract_strided_slice %152 {offsets = [0, 128], sizes = [8, 128], strides = [1, 1]} : vector<8x384xf32> to vector<8x128xf32>
    %163 = arith.addf %161, %162 : vector<8x128xf32>
    %164 = arith.negf %163 : vector<8x128xf32>
    %165 = math.exp %164 : vector<8x128xf32>
    %cst_53 = arith.constant 1.000000e+00 : f32
    %166 = vector.broadcast %cst_53 : f32 to vector<8x128xf32>
    %167 = arith.addf %166, %165 : vector<8x128xf32>
    %168 = arith.divf %166, %167 : vector<8x128xf32>
    %169 = vector.extract_strided_slice %151 {offsets = [0, 256], sizes = [8, 128], strides = [1, 1]} : vector<8x384xf32> to vector<8x128xf32>
    %170 = vector.extract_strided_slice %152 {offsets = [0, 256], sizes = [8, 128], strides = [1, 1]} : vector<8x384xf32> to vector<8x128xf32>
    %171 = arith.addf %170, %11 : vector<8x128xf32>
    %172 = arith.mulf %160, %171 : vector<8x128xf32>
    %173 = arith.addf %169, %172 : vector<8x128xf32>
    %174 = math.tanh %173 : vector<8x128xf32>
    %cst_54 = arith.constant 1.000000e+00 : f32
    %175 = vector.broadcast %cst_54 : f32 to vector<8x128xf32>
    %176 = arith.subf %175, %168 : vector<8x128xf32>
    %177 = arith.mulf %176, %174 : vector<8x128xf32>
    %178 = arith.mulf %168, %112 : vector<8x128xf32>
    %179 = arith.addf %177, %178 : vector<8x128xf32>
    %c1_i32_55 = arith.constant 1 : i32
    %180 = arith.subi %c2_i32, %c1_i32_55 : i32
    %181 = arith.index_cast %180 : i32 to index
    %c0_56 = arith.constant 0 : index
    %c0_57 = arith.constant 0 : index
    %182 = vector.load %arg14[%181, %c0_56, %c0_57] : memref<8x8x128xf32, #tpu.memory_space<vmem>>, vector<1x8x128xf32>
    %183 = vector.shape_cast %182 : vector<1x8x128xf32> to vector<8x128xf32>
    %184 = vector.shape_cast %179 : vector<8x128xf32> to vector<1x8x128xf32>
    tpu.vector_store %arg14[%181, %c0_56, %c0_57], %184 {strides = array<i32>} : memref<8x8x128xf32, #tpu.memory_space<vmem>>, vector<1x8x128xf32>,
    %c3_i32 = arith.constant 3 : i32
    %185 = arith.index_cast %c3_i32 : i32 to index
    %c0_58 = arith.constant 0 : index
    %c0_59 = arith.constant 0 : index
    %186 = vector.load %arg13[%185, %c0_58, %c0_59] : memref<8x8x384xf32, #tpu.memory_space<vmem>>, vector<1x8x384xf32>
    %187 = vector.shape_cast %186 : vector<1x8x384xf32> to vector<8x384xf32>
    %cst_60 = arith.constant dense<0.000000e+00> : vector<8x384xf32>
    %188 = tpu.matmul %148, %1, %cst_60 {dimension_numbers = #tpu.dot_dimension_numbers<[1], [0], [0], [1], [0, 0, 1, 1], [], []>} : vector<8x128xf32>, vector<128x384xf32>, vector<8x384xf32> -> vector<8x384xf32>
    %189 = vector.extract_strided_slice %187 {offsets = [0, 0], sizes = [8, 128], strides = [1, 1]} : vector<8x384xf32> to vector<8x128xf32>
    %190 = vector.extract_strided_slice %188 {offsets = [0, 0], sizes = [8, 128], strides = [1, 1]} : vector<8x384xf32> to vector<8x128xf32>
    %191 = arith.addf %189, %190 : vector<8x128xf32>
    %192 = arith.negf %191 : vector<8x128xf32>
    %193 = math.exp %192 : vector<8x128xf32>
    %cst_61 = arith.constant 1.000000e+00 : f32
    %194 = vector.broadcast %cst_61 : f32 to vector<8x128xf32>
    %195 = arith.addf %194, %193 : vector<8x128xf32>
    %196 = arith.divf %194, %195 : vector<8x128xf32>
    %197 = vector.extract_strided_slice %187 {offsets = [0, 128], sizes = [8, 128], strides = [1, 1]} : vector<8x384xf32> to vector<8x128xf32>
    %198 = vector.extract_strided_slice %188 {offsets = [0, 128], sizes = [8, 128], strides = [1, 1]} : vector<8x384xf32> to vector<8x128xf32>
    %199 = arith.addf %197, %198 : vector<8x128xf32>
    %200 = arith.negf %199 : vector<8x128xf32>
    %201 = math.exp %200 : vector<8x128xf32>
    %cst_62 = arith.constant 1.000000e+00 : f32
    %202 = vector.broadcast %cst_62 : f32 to vector<8x128xf32>
    %203 = arith.addf %202, %201 : vector<8x128xf32>
    %204 = arith.divf %202, %203 : vector<8x128xf32>
    %205 = vector.extract_strided_slice %187 {offsets = [0, 256], sizes = [8, 128], strides = [1, 1]} : vector<8x384xf32> to vector<8x128xf32>
    %206 = vector.extract_strided_slice %188 {offsets = [0, 256], sizes = [8, 128], strides = [1, 1]} : vector<8x384xf32> to vector<8x128xf32>
    %207 = arith.addf %206, %5 : vector<8x128xf32>
    %208 = arith.mulf %196, %207 : vector<8x128xf32>
    %209 = arith.addf %205, %208 : vector<8x128xf32>
    %210 = math.tanh %209 : vector<8x128xf32>
    %cst_63 = arith.constant 1.000000e+00 : f32
    %211 = vector.broadcast %cst_63 : f32 to vector<8x128xf32>
    %212 = arith.subf %211, %204 : vector<8x128xf32>
    %213 = arith.mulf %212, %210 : vector<8x128xf32>
    %214 = arith.mulf %204, %148 : vector<8x128xf32>
    %215 = arith.addf %213, %214 : vector<8x128xf32>
    %cst_64 = arith.constant dense<0.000000e+00> : vector<8x384xf32>
    %216 = tpu.matmul %148, %6, %cst_64 {dimension_numbers = #tpu.dot_dimension_numbers<[1], [0], [0], [1], [0, 0, 1, 1], [], []>} : vector<8x128xf32>, vector<128x384xf32>, vector<8x384xf32> -> vector<8x384xf32>
    %217 = vector.broadcast %8 : vector<1x384xf32> to vector<8x384xf32>
    %218 = arith.addf %216, %217 : vector<8x384xf32>
    %cst_65 = arith.constant dense<0.000000e+00> : vector<8x384xf32>
    %219 = tpu.matmul %179, %7, %cst_65 {dimension_numbers = #tpu.dot_dimension_numbers<[1], [0], [0], [1], [0, 0, 1, 1], [], []>} : vector<8x128xf32>, vector<128x384xf32>, vector<8x384xf32> -> vector<8x384xf32>
    %220 = vector.extract_strided_slice %218 {offsets = [0, 0], sizes = [8, 128], strides = [1, 1]} : vector<8x384xf32> to vector<8x128xf32>
    %221 = vector.extract_strided_slice %219 {offsets = [0, 0], sizes = [8, 128], strides = [1, 1]} : vector<8x384xf32> to vector<8x128xf32>
    %222 = arith.addf %220, %221 : vector<8x128xf32>
    %223 = arith.negf %222 : vector<8x128xf32>
    %224 = math.exp %223 : vector<8x128xf32>
    %cst_66 = arith.constant 1.000000e+00 : f32
    %225 = vector.broadcast %cst_66 : f32 to vector<8x128xf32>
    %226 = arith.addf %225, %224 : vector<8x128xf32>
    %227 = arith.divf %225, %226 : vector<8x128xf32>
    %228 = vector.extract_strided_slice %218 {offsets = [0, 128], sizes = [8, 128], strides = [1, 1]} : vector<8x384xf32> to vector<8x128xf32>
    %229 = vector.extract_strided_slice %219 {offsets = [0, 128], sizes = [8, 128], strides = [1, 1]} : vector<8x384xf32> to vector<8x128xf32>
    %230 = arith.addf %228, %229 : vector<8x128xf32>
    %231 = arith.negf %230 : vector<8x128xf32>
    %232 = math.exp %231 : vector<8x128xf32>
    %cst_67 = arith.constant 1.000000e+00 : f32
    %233 = vector.broadcast %cst_67 : f32 to vector<8x128xf32>
    %234 = arith.addf %233, %232 : vector<8x128xf32>
    %235 = arith.divf %233, %234 : vector<8x128xf32>
    %236 = vector.extract_strided_slice %218 {offsets = [0, 256], sizes = [8, 128], strides = [1, 1]} : vector<8x384xf32> to vector<8x128xf32>
    %237 = vector.extract_strided_slice %219 {offsets = [0, 256], sizes = [8, 128], strides = [1, 1]} : vector<8x384xf32> to vector<8x128xf32>
    %238 = arith.addf %237, %11 : vector<8x128xf32>
    %239 = arith.mulf %227, %238 : vector<8x128xf32>
    %240 = arith.addf %236, %239 : vector<8x128xf32>
    %241 = math.tanh %240 : vector<8x128xf32>
    %cst_68 = arith.constant 1.000000e+00 : f32
    %242 = vector.broadcast %cst_68 : f32 to vector<8x128xf32>
    %243 = arith.subf %242, %235 : vector<8x128xf32>
    %244 = arith.mulf %243, %241 : vector<8x128xf32>
    %245 = arith.mulf %235, %179 : vector<8x128xf32>
    %246 = arith.addf %244, %245 : vector<8x128xf32>
    %c1_i32_69 = arith.constant 1 : i32
    %247 = arith.subi %c3_i32, %c1_i32_69 : i32
    %248 = arith.index_cast %247 : i32 to index
    %c0_70 = arith.constant 0 : index
    %c0_71 = arith.constant 0 : index
    %249 = vector.load %arg14[%248, %c0_70, %c0_71] : memref<8x8x128xf32, #tpu.memory_space<vmem>>, vector<1x8x128xf32>
    %250 = vector.shape_cast %249 : vector<1x8x128xf32> to vector<8x128xf32>
    %251 = vector.shape_cast %246 : vector<8x128xf32> to vector<1x8x128xf32>
    tpu.vector_store %arg14[%248, %c0_70, %c0_71], %251 {strides = array<i32>} : memref<8x8x128xf32, #tpu.memory_space<vmem>>, vector<1x8x128xf32>,
    %c4_i32 = arith.constant 4 : i32
    %252 = arith.index_cast %c4_i32 : i32 to index
    %c0_72 = arith.constant 0 : index
    %c0_73 = arith.constant 0 : index
    %253 = vector.load %arg13[%252, %c0_72, %c0_73] : memref<8x8x384xf32, #tpu.memory_space<vmem>>, vector<1x8x384xf32>
    %254 = vector.shape_cast %253 : vector<1x8x384xf32> to vector<8x384xf32>
    %cst_74 = arith.constant dense<0.000000e+00> : vector<8x384xf32>
    %255 = tpu.matmul %215, %1, %cst_74 {dimension_numbers = #tpu.dot_dimension_numbers<[1], [0], [0], [1], [0, 0, 1, 1], [], []>} : vector<8x128xf32>, vector<128x384xf32>, vector<8x384xf32> -> vector<8x384xf32>
    %256 = vector.extract_strided_slice %254 {offsets = [0, 0], sizes = [8, 128], strides = [1, 1]} : vector<8x384xf32> to vector<8x128xf32>
    %257 = vector.extract_strided_slice %255 {offsets = [0, 0], sizes = [8, 128], strides = [1, 1]} : vector<8x384xf32> to vector<8x128xf32>
    %258 = arith.addf %256, %257 : vector<8x128xf32>
    %259 = arith.negf %258 : vector<8x128xf32>
    %260 = math.exp %259 : vector<8x128xf32>
    %cst_75 = arith.constant 1.000000e+00 : f32
    %261 = vector.broadcast %cst_75 : f32 to vector<8x128xf32>
    %262 = arith.addf %261, %260 : vector<8x128xf32>
    %263 = arith.divf %261, %262 : vector<8x128xf32>
    %264 = vector.extract_strided_slice %254 {offsets = [0, 128], sizes = [8, 128], strides = [1, 1]} : vector<8x384xf32> to vector<8x128xf32>
    %265 = vector.extract_strided_slice %255 {offsets = [0, 128], sizes = [8, 128], strides = [1, 1]} : vector<8x384xf32> to vector<8x128xf32>
    %266 = arith.addf %264, %265 : vector<8x128xf32>
    %267 = arith.negf %266 : vector<8x128xf32>
    %268 = math.exp %267 : vector<8x128xf32>
    %cst_76 = arith.constant 1.000000e+00 : f32
    %269 = vector.broadcast %cst_76 : f32 to vector<8x128xf32>
    %270 = arith.addf %269, %268 : vector<8x128xf32>
    %271 = arith.divf %269, %270 : vector<8x128xf32>
    %272 = vector.extract_strided_slice %254 {offsets = [0, 256], sizes = [8, 128], strides = [1, 1]} : vector<8x384xf32> to vector<8x128xf32>
    %273 = vector.extract_strided_slice %255 {offsets = [0, 256], sizes = [8, 128], strides = [1, 1]} : vector<8x384xf32> to vector<8x128xf32>
    %274 = arith.addf %273, %5 : vector<8x128xf32>
    %275 = arith.mulf %263, %274 : vector<8x128xf32>
    %276 = arith.addf %272, %275 : vector<8x128xf32>
    %277 = math.tanh %276 : vector<8x128xf32>
    %cst_77 = arith.constant 1.000000e+00 : f32
    %278 = vector.broadcast %cst_77 : f32 to vector<8x128xf32>
    %279 = arith.subf %278, %271 : vector<8x128xf32>
    %280 = arith.mulf %279, %277 : vector<8x128xf32>
    %281 = arith.mulf %271, %215 : vector<8x128xf32>
    %282 = arith.addf %280, %281 : vector<8x128xf32>
    %cst_78 = arith.constant dense<0.000000e+00> : vector<8x384xf32>
    %283 = tpu.matmul %215, %6, %cst_78 {dimension_numbers = #tpu.dot_dimension_numbers<[1], [0], [0], [1], [0, 0, 1, 1], [], []>} : vector<8x128xf32>, vector<128x384xf32>, vector<8x384xf32> -> vector<8x384xf32>
    %284 = vector.broadcast %8 : vector<1x384xf32> to vector<8x384xf32>
    %285 = arith.addf %283, %284 : vector<8x384xf32>
    %cst_79 = arith.constant dense<0.000000e+00> : vector<8x384xf32>
    %286 = tpu.matmul %246, %7, %cst_79 {dimension_numbers = #tpu.dot_dimension_numbers<[1], [0], [0], [1], [0, 0, 1, 1], [], []>} : vector<8x128xf32>, vector<128x384xf32>, vector<8x384xf32> -> vector<8x384xf32>
    %287 = vector.extract_strided_slice %285 {offsets = [0, 0], sizes = [8, 128], strides = [1, 1]} : vector<8x384xf32> to vector<8x128xf32>
    %288 = vector.extract_strided_slice %286 {offsets = [0, 0], sizes = [8, 128], strides = [1, 1]} : vector<8x384xf32> to vector<8x128xf32>
    %289 = arith.addf %287, %288 : vector<8x128xf32>
    %290 = arith.negf %289 : vector<8x128xf32>
    %291 = math.exp %290 : vector<8x128xf32>
    %cst_80 = arith.constant 1.000000e+00 : f32
    %292 = vector.broadcast %cst_80 : f32 to vector<8x128xf32>
    %293 = arith.addf %292, %291 : vector<8x128xf32>
    %294 = arith.divf %292, %293 : vector<8x128xf32>
    %295 = vector.extract_strided_slice %285 {offsets = [0, 128], sizes = [8, 128], strides = [1, 1]} : vector<8x384xf32> to vector<8x128xf32>
    %296 = vector.extract_strided_slice %286 {offsets = [0, 128], sizes = [8, 128], strides = [1, 1]} : vector<8x384xf32> to vector<8x128xf32>
    %297 = arith.addf %295, %296 : vector<8x128xf32>
    %298 = arith.negf %297 : vector<8x128xf32>
    %299 = math.exp %298 : vector<8x128xf32>
    %cst_81 = arith.constant 1.000000e+00 : f32
    %300 = vector.broadcast %cst_81 : f32 to vector<8x128xf32>
    %301 = arith.addf %300, %299 : vector<8x128xf32>
    %302 = arith.divf %300, %301 : vector<8x128xf32>
    %303 = vector.extract_strided_slice %285 {offsets = [0, 256], sizes = [8, 128], strides = [1, 1]} : vector<8x384xf32> to vector<8x128xf32>
    %304 = vector.extract_strided_slice %286 {offsets = [0, 256], sizes = [8, 128], strides = [1, 1]} : vector<8x384xf32> to vector<8x128xf32>
    %305 = arith.addf %304, %11 : vector<8x128xf32>
    %306 = arith.mulf %294, %305 : vector<8x128xf32>
    %307 = arith.addf %303, %306 : vector<8x128xf32>
    %308 = math.tanh %307 : vector<8x128xf32>
    %cst_82 = arith.constant 1.000000e+00 : f32
    %309 = vector.broadcast %cst_82 : f32 to vector<8x128xf32>
    %310 = arith.subf %309, %302 : vector<8x128xf32>
    %311 = arith.mulf %310, %308 : vector<8x128xf32>
    %312 = arith.mulf %302, %246 : vector<8x128xf32>
    %313 = arith.addf %311, %312 : vector<8x128xf32>
    %c1_i32_83 = arith.constant 1 : i32
    %314 = arith.subi %c4_i32, %c1_i32_83 : i32
    %315 = arith.index_cast %314 : i32 to index
    %c0_84 = arith.constant 0 : index
    %c0_85 = arith.constant 0 : index
    %316 = vector.load %arg14[%315, %c0_84, %c0_85] : memref<8x8x128xf32, #tpu.memory_space<vmem>>, vector<1x8x128xf32>
    %317 = vector.shape_cast %316 : vector<1x8x128xf32> to vector<8x128xf32>
    %318 = vector.shape_cast %313 : vector<8x128xf32> to vector<1x8x128xf32>
    tpu.vector_store %arg14[%315, %c0_84, %c0_85], %318 {strides = array<i32>} : memref<8x8x128xf32, #tpu.memory_space<vmem>>, vector<1x8x128xf32>,
    %c5_i32 = arith.constant 5 : i32
    %319 = arith.index_cast %c5_i32 : i32 to index
    %c0_86 = arith.constant 0 : index
    %c0_87 = arith.constant 0 : index
    %320 = vector.load %arg13[%319, %c0_86, %c0_87] : memref<8x8x384xf32, #tpu.memory_space<vmem>>, vector<1x8x384xf32>
    %321 = vector.shape_cast %320 : vector<1x8x384xf32> to vector<8x384xf32>
    %cst_88 = arith.constant dense<0.000000e+00> : vector<8x384xf32>
    %322 = tpu.matmul %282, %1, %cst_88 {dimension_numbers = #tpu.dot_dimension_numbers<[1], [0], [0], [1], [0, 0, 1, 1], [], []>} : vector<8x128xf32>, vector<128x384xf32>, vector<8x384xf32> -> vector<8x384xf32>
    %323 = vector.extract_strided_slice %321 {offsets = [0, 0], sizes = [8, 128], strides = [1, 1]} : vector<8x384xf32> to vector<8x128xf32>
    %324 = vector.extract_strided_slice %322 {offsets = [0, 0], sizes = [8, 128], strides = [1, 1]} : vector<8x384xf32> to vector<8x128xf32>
    %325 = arith.addf %323, %324 : vector<8x128xf32>
    %326 = arith.negf %325 : vector<8x128xf32>
    %327 = math.exp %326 : vector<8x128xf32>
    %cst_89 = arith.constant 1.000000e+00 : f32
    %328 = vector.broadcast %cst_89 : f32 to vector<8x128xf32>
    %329 = arith.addf %328, %327 : vector<8x128xf32>
    %330 = arith.divf %328, %329 : vector<8x128xf32>
    %331 = vector.extract_strided_slice %321 {offsets = [0, 128], sizes = [8, 128], strides = [1, 1]} : vector<8x384xf32> to vector<8x128xf32>
    %332 = vector.extract_strided_slice %322 {offsets = [0, 128], sizes = [8, 128], strides = [1, 1]} : vector<8x384xf32> to vector<8x128xf32>
    %333 = arith.addf %331, %332 : vector<8x128xf32>
    %334 = arith.negf %333 : vector<8x128xf32>
    %335 = math.exp %334 : vector<8x128xf32>
    %cst_90 = arith.constant 1.000000e+00 : f32
    %336 = vector.broadcast %cst_90 : f32 to vector<8x128xf32>
    %337 = arith.addf %336, %335 : vector<8x128xf32>
    %338 = arith.divf %336, %337 : vector<8x128xf32>
    %339 = vector.extract_strided_slice %321 {offsets = [0, 256], sizes = [8, 128], strides = [1, 1]} : vector<8x384xf32> to vector<8x128xf32>
    %340 = vector.extract_strided_slice %322 {offsets = [0, 256], sizes = [8, 128], strides = [1, 1]} : vector<8x384xf32> to vector<8x128xf32>
    %341 = arith.addf %340, %5 : vector<8x128xf32>
    %342 = arith.mulf %330, %341 : vector<8x128xf32>
    %343 = arith.addf %339, %342 : vector<8x128xf32>
    %344 = math.tanh %343 : vector<8x128xf32>
    %cst_91 = arith.constant 1.000000e+00 : f32
    %345 = vector.broadcast %cst_91 : f32 to vector<8x128xf32>
    %346 = arith.subf %345, %338 : vector<8x128xf32>
    %347 = arith.mulf %346, %344 : vector<8x128xf32>
    %348 = arith.mulf %338, %282 : vector<8x128xf32>
    %349 = arith.addf %347, %348 : vector<8x128xf32>
    %cst_92 = arith.constant dense<0.000000e+00> : vector<8x384xf32>
    %350 = tpu.matmul %282, %6, %cst_92 {dimension_numbers = #tpu.dot_dimension_numbers<[1], [0], [0], [1], [0, 0, 1, 1], [], []>} : vector<8x128xf32>, vector<128x384xf32>, vector<8x384xf32> -> vector<8x384xf32>
    %351 = vector.broadcast %8 : vector<1x384xf32> to vector<8x384xf32>
    %352 = arith.addf %350, %351 : vector<8x384xf32>
    %cst_93 = arith.constant dense<0.000000e+00> : vector<8x384xf32>
    %353 = tpu.matmul %313, %7, %cst_93 {dimension_numbers = #tpu.dot_dimension_numbers<[1], [0], [0], [1], [0, 0, 1, 1], [], []>} : vector<8x128xf32>, vector<128x384xf32>, vector<8x384xf32> -> vector<8x384xf32>
    %354 = vector.extract_strided_slice %352 {offsets = [0, 0], sizes = [8, 128], strides = [1, 1]} : vector<8x384xf32> to vector<8x128xf32>
    %355 = vector.extract_strided_slice %353 {offsets = [0, 0], sizes = [8, 128], strides = [1, 1]} : vector<8x384xf32> to vector<8x128xf32>
    %356 = arith.addf %354, %355 : vector<8x128xf32>
    %357 = arith.negf %356 : vector<8x128xf32>
    %358 = math.exp %357 : vector<8x128xf32>
    %cst_94 = arith.constant 1.000000e+00 : f32
    %359 = vector.broadcast %cst_94 : f32 to vector<8x128xf32>
    %360 = arith.addf %359, %358 : vector<8x128xf32>
    %361 = arith.divf %359, %360 : vector<8x128xf32>
    %362 = vector.extract_strided_slice %352 {offsets = [0, 128], sizes = [8, 128], strides = [1, 1]} : vector<8x384xf32> to vector<8x128xf32>
    %363 = vector.extract_strided_slice %353 {offsets = [0, 128], sizes = [8, 128], strides = [1, 1]} : vector<8x384xf32> to vector<8x128xf32>
    %364 = arith.addf %362, %363 : vector<8x128xf32>
    %365 = arith.negf %364 : vector<8x128xf32>
    %366 = math.exp %365 : vector<8x128xf32>
    %cst_95 = arith.constant 1.000000e+00 : f32
    %367 = vector.broadcast %cst_95 : f32 to vector<8x128xf32>
    %368 = arith.addf %367, %366 : vector<8x128xf32>
    %369 = arith.divf %367, %368 : vector<8x128xf32>
    %370 = vector.extract_strided_slice %352 {offsets = [0, 256], sizes = [8, 128], strides = [1, 1]} : vector<8x384xf32> to vector<8x128xf32>
    %371 = vector.extract_strided_slice %353 {offsets = [0, 256], sizes = [8, 128], strides = [1, 1]} : vector<8x384xf32> to vector<8x128xf32>
    %372 = arith.addf %371, %11 : vector<8x128xf32>
    %373 = arith.mulf %361, %372 : vector<8x128xf32>
    %374 = arith.addf %370, %373 : vector<8x128xf32>
    %375 = math.tanh %374 : vector<8x128xf32>
    %cst_96 = arith.constant 1.000000e+00 : f32
    %376 = vector.broadcast %cst_96 : f32 to vector<8x128xf32>
    %377 = arith.subf %376, %369 : vector<8x128xf32>
    %378 = arith.mulf %377, %375 : vector<8x128xf32>
    %379 = arith.mulf %369, %313 : vector<8x128xf32>
    %380 = arith.addf %378, %379 : vector<8x128xf32>
    %c1_i32_97 = arith.constant 1 : i32
    %381 = arith.subi %c5_i32, %c1_i32_97 : i32
    %382 = arith.index_cast %381 : i32 to index
    %c0_98 = arith.constant 0 : index
    %c0_99 = arith.constant 0 : index
    %383 = vector.load %arg14[%382, %c0_98, %c0_99] : memref<8x8x128xf32, #tpu.memory_space<vmem>>, vector<1x8x128xf32>
    %384 = vector.shape_cast %383 : vector<1x8x128xf32> to vector<8x128xf32>
    %385 = vector.shape_cast %380 : vector<8x128xf32> to vector<1x8x128xf32>
    tpu.vector_store %arg14[%382, %c0_98, %c0_99], %385 {strides = array<i32>} : memref<8x8x128xf32, #tpu.memory_space<vmem>>, vector<1x8x128xf32>,
    %c6_i32 = arith.constant 6 : i32
    %386 = arith.index_cast %c6_i32 : i32 to index
    %c0_100 = arith.constant 0 : index
    %c0_101 = arith.constant 0 : index
    %387 = vector.load %arg13[%386, %c0_100, %c0_101] : memref<8x8x384xf32, #tpu.memory_space<vmem>>, vector<1x8x384xf32>
    %388 = vector.shape_cast %387 : vector<1x8x384xf32> to vector<8x384xf32>
    %cst_102 = arith.constant dense<0.000000e+00> : vector<8x384xf32>
    %389 = tpu.matmul %349, %1, %cst_102 {dimension_numbers = #tpu.dot_dimension_numbers<[1], [0], [0], [1], [0, 0, 1, 1], [], []>} : vector<8x128xf32>, vector<128x384xf32>, vector<8x384xf32> -> vector<8x384xf32>
    %390 = vector.extract_strided_slice %388 {offsets = [0, 0], sizes = [8, 128], strides = [1, 1]} : vector<8x384xf32> to vector<8x128xf32>
    %391 = vector.extract_strided_slice %389 {offsets = [0, 0], sizes = [8, 128], strides = [1, 1]} : vector<8x384xf32> to vector<8x128xf32>
    %392 = arith.addf %390, %391 : vector<8x128xf32>
    %393 = arith.negf %392 : vector<8x128xf32>
    %394 = math.exp %393 : vector<8x128xf32>
    %cst_103 = arith.constant 1.000000e+00 : f32
    %395 = vector.broadcast %cst_103 : f32 to vector<8x128xf32>
    %396 = arith.addf %395, %394 : vector<8x128xf32>
    %397 = arith.divf %395, %396 : vector<8x128xf32>
    %398 = vector.extract_strided_slice %388 {offsets = [0, 128], sizes = [8, 128], strides = [1, 1]} : vector<8x384xf32> to vector<8x128xf32>
    %399 = vector.extract_strided_slice %389 {offsets = [0, 128], sizes = [8, 128], strides = [1, 1]} : vector<8x384xf32> to vector<8x128xf32>
    %400 = arith.addf %398, %399 : vector<8x128xf32>
    %401 = arith.negf %400 : vector<8x128xf32>
    %402 = math.exp %401 : vector<8x128xf32>
    %cst_104 = arith.constant 1.000000e+00 : f32
    %403 = vector.broadcast %cst_104 : f32 to vector<8x128xf32>
    %404 = arith.addf %403, %402 : vector<8x128xf32>
    %405 = arith.divf %403, %404 : vector<8x128xf32>
    %406 = vector.extract_strided_slice %388 {offsets = [0, 256], sizes = [8, 128], strides = [1, 1]} : vector<8x384xf32> to vector<8x128xf32>
    %407 = vector.extract_strided_slice %389 {offsets = [0, 256], sizes = [8, 128], strides = [1, 1]} : vector<8x384xf32> to vector<8x128xf32>
    %408 = arith.addf %407, %5 : vector<8x128xf32>
    %409 = arith.mulf %397, %408 : vector<8x128xf32>
    %410 = arith.addf %406, %409 : vector<8x128xf32>
    %411 = math.tanh %410 : vector<8x128xf32>
    %cst_105 = arith.constant 1.000000e+00 : f32
    %412 = vector.broadcast %cst_105 : f32 to vector<8x128xf32>
    %413 = arith.subf %412, %405 : vector<8x128xf32>
    %414 = arith.mulf %413, %411 : vector<8x128xf32>
    %415 = arith.mulf %405, %349 : vector<8x128xf32>
    %416 = arith.addf %414, %415 : vector<8x128xf32>
    %cst_106 = arith.constant dense<0.000000e+00> : vector<8x384xf32>
    %417 = tpu.matmul %349, %6, %cst_106 {dimension_numbers = #tpu.dot_dimension_numbers<[1], [0], [0], [1], [0, 0, 1, 1], [], []>} : vector<8x128xf32>, vector<128x384xf32>, vector<8x384xf32> -> vector<8x384xf32>
    %418 = vector.broadcast %8 : vector<1x384xf32> to vector<8x384xf32>
    %419 = arith.addf %417, %418 : vector<8x384xf32>
    %cst_107 = arith.constant dense<0.000000e+00> : vector<8x384xf32>
    %420 = tpu.matmul %380, %7, %cst_107 {dimension_numbers = #tpu.dot_dimension_numbers<[1], [0], [0], [1], [0, 0, 1, 1], [], []>} : vector<8x128xf32>, vector<128x384xf32>, vector<8x384xf32> -> vector<8x384xf32>
    %421 = vector.extract_strided_slice %419 {offsets = [0, 0], sizes = [8, 128], strides = [1, 1]} : vector<8x384xf32> to vector<8x128xf32>
    %422 = vector.extract_strided_slice %420 {offsets = [0, 0], sizes = [8, 128], strides = [1, 1]} : vector<8x384xf32> to vector<8x128xf32>
    %423 = arith.addf %421, %422 : vector<8x128xf32>
    %424 = arith.negf %423 : vector<8x128xf32>
    %425 = math.exp %424 : vector<8x128xf32>
    %cst_108 = arith.constant 1.000000e+00 : f32
    %426 = vector.broadcast %cst_108 : f32 to vector<8x128xf32>
    %427 = arith.addf %426, %425 : vector<8x128xf32>
    %428 = arith.divf %426, %427 : vector<8x128xf32>
    %429 = vector.extract_strided_slice %419 {offsets = [0, 128], sizes = [8, 128], strides = [1, 1]} : vector<8x384xf32> to vector<8x128xf32>
    %430 = vector.extract_strided_slice %420 {offsets = [0, 128], sizes = [8, 128], strides = [1, 1]} : vector<8x384xf32> to vector<8x128xf32>
    %431 = arith.addf %429, %430 : vector<8x128xf32>
    %432 = arith.negf %431 : vector<8x128xf32>
    %433 = math.exp %432 : vector<8x128xf32>
    %cst_109 = arith.constant 1.000000e+00 : f32
    %434 = vector.broadcast %cst_109 : f32 to vector<8x128xf32>
    %435 = arith.addf %434, %433 : vector<8x128xf32>
    %436 = arith.divf %434, %435 : vector<8x128xf32>
    %437 = vector.extract_strided_slice %419 {offsets = [0, 256], sizes = [8, 128], strides = [1, 1]} : vector<8x384xf32> to vector<8x128xf32>
    %438 = vector.extract_strided_slice %420 {offsets = [0, 256], sizes = [8, 128], strides = [1, 1]} : vector<8x384xf32> to vector<8x128xf32>
    %439 = arith.addf %438, %11 : vector<8x128xf32>
    %440 = arith.mulf %428, %439 : vector<8x128xf32>
    %441 = arith.addf %437, %440 : vector<8x128xf32>
    %442 = math.tanh %441 : vector<8x128xf32>
    %cst_110 = arith.constant 1.000000e+00 : f32
    %443 = vector.broadcast %cst_110 : f32 to vector<8x128xf32>
    %444 = arith.subf %443, %436 : vector<8x128xf32>
    %445 = arith.mulf %444, %442 : vector<8x128xf32>
    %446 = arith.mulf %436, %380 : vector<8x128xf32>
    %447 = arith.addf %445, %446 : vector<8x128xf32>
    %c1_i32_111 = arith.constant 1 : i32
    %448 = arith.subi %c6_i32, %c1_i32_111 : i32
    %449 = arith.index_cast %448 : i32 to index
    %c0_112 = arith.constant 0 : index
    %c0_113 = arith.constant 0 : index
    %450 = vector.load %arg14[%449, %c0_112, %c0_113] : memref<8x8x128xf32, #tpu.memory_space<vmem>>, vector<1x8x128xf32>
    %451 = vector.shape_cast %450 : vector<1x8x128xf32> to vector<8x128xf32>
    %452 = vector.shape_cast %447 : vector<8x128xf32> to vector<1x8x128xf32>
    tpu.vector_store %arg14[%449, %c0_112, %c0_113], %452 {strides = array<i32>} : memref<8x8x128xf32, #tpu.memory_space<vmem>>, vector<1x8x128xf32>,
    %c7_i32 = arith.constant 7 : i32
    %453 = arith.index_cast %c7_i32 : i32 to index
    %c0_114 = arith.constant 0 : index
    %c0_115 = arith.constant 0 : index
    %454 = vector.load %arg13[%453, %c0_114, %c0_115] : memref<8x8x384xf32, #tpu.memory_space<vmem>>, vector<1x8x384xf32>
    %455 = vector.shape_cast %454 : vector<1x8x384xf32> to vector<8x384xf32>
    %cst_116 = arith.constant dense<0.000000e+00> : vector<8x384xf32>
    %456 = tpu.matmul %416, %1, %cst_116 {dimension_numbers = #tpu.dot_dimension_numbers<[1], [0], [0], [1], [0, 0, 1, 1], [], []>} : vector<8x128xf32>, vector<128x384xf32>, vector<8x384xf32> -> vector<8x384xf32>
    %457 = vector.extract_strided_slice %455 {offsets = [0, 0], sizes = [8, 128], strides = [1, 1]} : vector<8x384xf32> to vector<8x128xf32>
    %458 = vector.extract_strided_slice %456 {offsets = [0, 0], sizes = [8, 128], strides = [1, 1]} : vector<8x384xf32> to vector<8x128xf32>
    %459 = arith.addf %457, %458 : vector<8x128xf32>
    %460 = arith.negf %459 : vector<8x128xf32>
    %461 = math.exp %460 : vector<8x128xf32>
    %cst_117 = arith.constant 1.000000e+00 : f32
    %462 = vector.broadcast %cst_117 : f32 to vector<8x128xf32>
    %463 = arith.addf %462, %461 : vector<8x128xf32>
    %464 = arith.divf %462, %463 : vector<8x128xf32>
    %465 = vector.extract_strided_slice %455 {offsets = [0, 128], sizes = [8, 128], strides = [1, 1]} : vector<8x384xf32> to vector<8x128xf32>
    %466 = vector.extract_strided_slice %456 {offsets = [0, 128], sizes = [8, 128], strides = [1, 1]} : vector<8x384xf32> to vector<8x128xf32>
    %467 = arith.addf %465, %466 : vector<8x128xf32>
    %468 = arith.negf %467 : vector<8x128xf32>
    %469 = math.exp %468 : vector<8x128xf32>
    %cst_118 = arith.constant 1.000000e+00 : f32
    %470 = vector.broadcast %cst_118 : f32 to vector<8x128xf32>
    %471 = arith.addf %470, %469 : vector<8x128xf32>
    %472 = arith.divf %470, %471 : vector<8x128xf32>
    %473 = vector.extract_strided_slice %455 {offsets = [0, 256], sizes = [8, 128], strides = [1, 1]} : vector<8x384xf32> to vector<8x128xf32>
    %474 = vector.extract_strided_slice %456 {offsets = [0, 256], sizes = [8, 128], strides = [1, 1]} : vector<8x384xf32> to vector<8x128xf32>
    %475 = arith.addf %474, %5 : vector<8x128xf32>
    %476 = arith.mulf %464, %475 : vector<8x128xf32>
    %477 = arith.addf %473, %476 : vector<8x128xf32>
    %478 = math.tanh %477 : vector<8x128xf32>
    %cst_119 = arith.constant 1.000000e+00 : f32
    %479 = vector.broadcast %cst_119 : f32 to vector<8x128xf32>
    %480 = arith.subf %479, %472 : vector<8x128xf32>
    %481 = arith.mulf %480, %478 : vector<8x128xf32>
    %482 = arith.mulf %472, %416 : vector<8x128xf32>
    %483 = arith.addf %481, %482 : vector<8x128xf32>
    %cst_120 = arith.constant dense<0.000000e+00> : vector<8x384xf32>
    %484 = tpu.matmul %416, %6, %cst_120 {dimension_numbers = #tpu.dot_dimension_numbers<[1], [0], [0], [1], [0, 0, 1, 1], [], []>} : vector<8x128xf32>, vector<128x384xf32>, vector<8x384xf32> -> vector<8x384xf32>
    %485 = vector.broadcast %8 : vector<1x384xf32> to vector<8x384xf32>
    %486 = arith.addf %484, %485 : vector<8x384xf32>
    %cst_121 = arith.constant dense<0.000000e+00> : vector<8x384xf32>
    %487 = tpu.matmul %447, %7, %cst_121 {dimension_numbers = #tpu.dot_dimension_numbers<[1], [0], [0], [1], [0, 0, 1, 1], [], []>} : vector<8x128xf32>, vector<128x384xf32>, vector<8x384xf32> -> vector<8x384xf32>
    %488 = vector.extract_strided_slice %486 {offsets = [0, 0], sizes = [8, 128], strides = [1, 1]} : vector<8x384xf32> to vector<8x128xf32>
    %489 = vector.extract_strided_slice %487 {offsets = [0, 0], sizes = [8, 128], strides = [1, 1]} : vector<8x384xf32> to vector<8x128xf32>
    %490 = arith.addf %488, %489 : vector<8x128xf32>
    %491 = arith.negf %490 : vector<8x128xf32>
    %492 = math.exp %491 : vector<8x128xf32>
    %cst_122 = arith.constant 1.000000e+00 : f32
    %493 = vector.broadcast %cst_122 : f32 to vector<8x128xf32>
    %494 = arith.addf %493, %492 : vector<8x128xf32>
    %495 = arith.divf %493, %494 : vector<8x128xf32>
    %496 = vector.extract_strided_slice %486 {offsets = [0, 128], sizes = [8, 128], strides = [1, 1]} : vector<8x384xf32> to vector<8x128xf32>
    %497 = vector.extract_strided_slice %487 {offsets = [0, 128], sizes = [8, 128], strides = [1, 1]} : vector<8x384xf32> to vector<8x128xf32>
    %498 = arith.addf %496, %497 : vector<8x128xf32>
    %499 = arith.negf %498 : vector<8x128xf32>
    %500 = math.exp %499 : vector<8x128xf32>
    %cst_123 = arith.constant 1.000000e+00 : f32
    %501 = vector.broadcast %cst_123 : f32 to vector<8x128xf32>
    %502 = arith.addf %501, %500 : vector<8x128xf32>
    %503 = arith.divf %501, %502 : vector<8x128xf32>
    %504 = vector.extract_strided_slice %486 {offsets = [0, 256], sizes = [8, 128], strides = [1, 1]} : vector<8x384xf32> to vector<8x128xf32>
    %505 = vector.extract_strided_slice %487 {offsets = [0, 256], sizes = [8, 128], strides = [1, 1]} : vector<8x384xf32> to vector<8x128xf32>
    %506 = arith.addf %505, %11 : vector<8x128xf32>
    %507 = arith.mulf %495, %506 : vector<8x128xf32>
    %508 = arith.addf %504, %507 : vector<8x128xf32>
    %509 = math.tanh %508 : vector<8x128xf32>
    %cst_124 = arith.constant 1.000000e+00 : f32
    %510 = vector.broadcast %cst_124 : f32 to vector<8x128xf32>
    %511 = arith.subf %510, %503 : vector<8x128xf32>
    %512 = arith.mulf %511, %509 : vector<8x128xf32>
    %513 = arith.mulf %503, %447 : vector<8x128xf32>
    %514 = arith.addf %512, %513 : vector<8x128xf32>
    %c1_i32_125 = arith.constant 1 : i32
    %515 = arith.subi %c7_i32, %c1_i32_125 : i32
    %516 = arith.index_cast %515 : i32 to index
    %c0_126 = arith.constant 0 : index
    %c0_127 = arith.constant 0 : index
    %517 = vector.load %arg14[%516, %c0_126, %c0_127] : memref<8x8x128xf32, #tpu.memory_space<vmem>>, vector<1x8x128xf32>
    %518 = vector.shape_cast %517 : vector<1x8x128xf32> to vector<8x128xf32>
    %519 = vector.shape_cast %514 : vector<8x128xf32> to vector<1x8x128xf32>
    tpu.vector_store %arg14[%516, %c0_126, %c0_127], %519 {strides = array<i32>} : memref<8x8x128xf32, #tpu.memory_space<vmem>>, vector<1x8x128xf32>,
    %c7_i32_128 = arith.constant 7 : i32
    %cst_129 = arith.constant dense<0.000000e+00> : vector<8x384xf32>
    %520 = tpu.matmul %483, %6, %cst_129 {dimension_numbers = #tpu.dot_dimension_numbers<[1], [0], [0], [1], [0, 0, 1, 1], [], []>} : vector<8x128xf32>, vector<128x384xf32>, vector<8x384xf32> -> vector<8x384xf32>
    %521 = vector.broadcast %8 : vector<1x384xf32> to vector<8x384xf32>
    %522 = arith.addf %520, %521 : vector<8x384xf32>
    %cst_130 = arith.constant dense<0.000000e+00> : vector<8x384xf32>
    %523 = tpu.matmul %514, %7, %cst_130 {dimension_numbers = #tpu.dot_dimension_numbers<[1], [0], [0], [1], [0, 0, 1, 1], [], []>} : vector<8x128xf32>, vector<128x384xf32>, vector<8x384xf32> -> vector<8x384xf32>
    %524 = vector.extract_strided_slice %522 {offsets = [0, 0], sizes = [8, 128], strides = [1, 1]} : vector<8x384xf32> to vector<8x128xf32>
    %525 = vector.extract_strided_slice %523 {offsets = [0, 0], sizes = [8, 128], strides = [1, 1]} : vector<8x384xf32> to vector<8x128xf32>
    %526 = arith.addf %524, %525 : vector<8x128xf32>
    %527 = arith.negf %526 : vector<8x128xf32>
    %528 = math.exp %527 : vector<8x128xf32>
    %cst_131 = arith.constant 1.000000e+00 : f32
    %529 = vector.broadcast %cst_131 : f32 to vector<8x128xf32>
    %530 = arith.addf %529, %528 : vector<8x128xf32>
    %531 = arith.divf %529, %530 : vector<8x128xf32>
    %532 = vector.extract_strided_slice %522 {offsets = [0, 128], sizes = [8, 128], strides = [1, 1]} : vector<8x384xf32> to vector<8x128xf32>
    %533 = vector.extract_strided_slice %523 {offsets = [0, 128], sizes = [8, 128], strides = [1, 1]} : vector<8x384xf32> to vector<8x128xf32>
    %534 = arith.addf %532, %533 : vector<8x128xf32>
    %535 = arith.negf %534 : vector<8x128xf32>
    %536 = math.exp %535 : vector<8x128xf32>
    %cst_132 = arith.constant 1.000000e+00 : f32
    %537 = vector.broadcast %cst_132 : f32 to vector<8x128xf32>
    %538 = arith.addf %537, %536 : vector<8x128xf32>
    %539 = arith.divf %537, %538 : vector<8x128xf32>
    %540 = vector.extract_strided_slice %522 {offsets = [0, 256], sizes = [8, 128], strides = [1, 1]} : vector<8x384xf32> to vector<8x128xf32>
    %541 = vector.extract_strided_slice %523 {offsets = [0, 256], sizes = [8, 128], strides = [1, 1]} : vector<8x384xf32> to vector<8x128xf32>
    %542 = arith.addf %541, %11 : vector<8x128xf32>
    %543 = arith.mulf %531, %542 : vector<8x128xf32>
    %544 = arith.addf %540, %543 : vector<8x128xf32>
    %545 = math.tanh %544 : vector<8x128xf32>
    %cst_133 = arith.constant 1.000000e+00 : f32
    %546 = vector.broadcast %cst_133 : f32 to vector<8x128xf32>
    %547 = arith.subf %546, %539 : vector<8x128xf32>
    %548 = arith.mulf %547, %545 : vector<8x128xf32>
    %549 = arith.mulf %539, %514 : vector<8x128xf32>
    %550 = arith.addf %548, %549 : vector<8x128xf32>
    %c7 = arith.constant 7 : index
    %c0_134 = arith.constant 0 : index
    %c0_135 = arith.constant 0 : index
    %551 = vector.load %arg14[%c7, %c0_134, %c0_135] : memref<8x8x128xf32, #tpu.memory_space<vmem>>, vector<1x8x128xf32>
    %552 = vector.shape_cast %551 : vector<1x8x128xf32> to vector<8x128xf32>
    %553 = vector.shape_cast %550 : vector<8x128xf32> to vector<1x8x128xf32>
    tpu.vector_store %arg14[%c7, %c0_134, %c0_135], %553 {strides = array<i32>} : memref<8x8x128xf32, #tpu.memory_space<vmem>>, vector<1x8x128xf32>,
    %c0_136 = arith.constant 0 : index
    %c0_137 = arith.constant 0 : index
    %c0_138 = arith.constant 0 : index
    %554 = vector.load %arg14[%c0_136, %c0_137, %c0_138] : memref<8x8x128xf32, #tpu.memory_space<vmem>>, vector<8x8x128xf32>
    %555 = vector.shape_cast %554 : vector<8x8x128xf32> to vector<64x128xf32>
    %c0_139 = arith.constant 0 : index
    %c0_140 = arith.constant 0 : index
    %556 = vector.load %arg10[%c0_139, %c0_140] : memref<128x128xf32, #tpu.memory_space<vmem>>, vector<128x128xf32>
    %cst_141 = arith.constant dense<0.000000e+00> : vector<64x128xf32>
    %557 = tpu.matmul %555, %556, %cst_141 {dimension_numbers = #tpu.dot_dimension_numbers<[1], [0], [0], [1], [0, 0, 1, 1], [], []>} : vector<64x128xf32>, vector<128x128xf32>, vector<64x128xf32> -> vector<64x128xf32>
    %c0_142 = arith.constant 0 : index
    %c0_143 = arith.constant 0 : index
    %558 = vector.load %arg11[%c0_142, %c0_143] : memref<1x128xf32, #tpu.memory_space<vmem>>, vector<1x128xf32>
    %559 = vector.broadcast %558 : vector<1x128xf32> to vector<64x128xf32>
    %560 = arith.addf %557, %559 : vector<64x128xf32>
    %561 = vector.shape_cast %560 : vector<64x128xf32> to vector<8x8x128xf32>
    %c0_144 = arith.constant 0 : index
    %c0_145 = arith.constant 0 : index
    %c0_146 = arith.constant 0 : index
    %562 = vector.load %arg12[%c0_144, %c0_145, %c0_146] : memref<8x8x128xf32, #tpu.memory_space<vmem>>, vector<8x8x128xf32>
    tpu.vector_store %arg12[%c0_144, %c0_145, %c0_146], %561 {strides = array<i32>} : memref<8x8x128xf32, #tpu.memory_space<vmem>>, vector<8x8x128xf32>,
    return
  }
  func.func @transform_0(%arg0: i32) -> (i32, i32, i32) {
    %c0_i32 = arith.constant 0 : i32
    %c0_i32_0 = arith.constant 0 : i32
    %c0_i32_1 = arith.constant 0 : i32
    return %c0_i32, %arg0, %c0_i32_0 : i32, i32, i32
  }
  func.func @transform_1(%arg0: i32) -> (i32, i32) {
    %c0_i32 = arith.constant 0 : i32
    %c0_i32_0 = arith.constant 0 : i32
    %c0_i32_1 = arith.constant 0 : i32
    return %c0_i32, %c0_i32_0 : i32, i32
  }
  func.func @transform_2(%arg0: i32) -> (i32, i32) {
    %c0_i32 = arith.constant 0 : i32
    %c0_i32_0 = arith.constant 0 : i32
    %c0_i32_1 = arith.constant 0 : i32
    return %c0_i32, %c0_i32_0 : i32, i32
  }
  func.func @transform_3(%arg0: i32) -> (i32, i32) {
    %c0_i32 = arith.constant 0 : i32
    %c0_i32_0 = arith.constant 0 : i32
    %c0_i32_1 = arith.constant 0 : i32
    return %c0_i32, %c0_i32_0 : i32, i32
  }
  func.func @transform_4(%arg0: i32) -> (i32, i32) {
    %c0_i32 = arith.constant 0 : i32
    %c0_i32_0 = arith.constant 0 : i32
    %c0_i32_1 = arith.constant 0 : i32
    return %c0_i32, %c0_i32_0 : i32, i32
  }
  func.func @transform_5(%arg0: i32) -> (i32, i32) {
    %c0_i32 = arith.constant 0 : i32
    %c0_i32_0 = arith.constant 0 : i32
    %c0_i32_1 = arith.constant 0 : i32
    return %c0_i32, %c0_i32_0 : i32, i32
  }
  func.func @transform_6(%arg0: i32) -> (i32, i32) {
    %c0_i32 = arith.constant 0 : i32
    %c0_i32_0 = arith.constant 0 : i32
    %c0_i32_1 = arith.constant 0 : i32
    return %c0_i32, %c0_i32_0 : i32, i32
  }
  func.func @transform_7(%arg0: i32) -> (i32, i32) {
    %c0_i32 = arith.constant 0 : i32
    %c0_i32_0 = arith.constant 0 : i32
    %c0_i32_1 = arith.constant 0 : i32
    return %c0_i32, %c0_i32_0 : i32, i32
  }
  func.func @transform_8(%arg0: i32) -> (i32, i32) {
    %c0_i32 = arith.constant 0 : i32
    %c0_i32_0 = arith.constant 0 : i32
    %c0_i32_1 = arith.constant 0 : i32
    return %c0_i32, %c0_i32_0 : i32, i32
  }
  func.func @transform_9(%arg0: i32) -> (i32, i32) {
    %c0_i32 = arith.constant 0 : i32
    %c0_i32_0 = arith.constant 0 : i32
    %c0_i32_1 = arith.constant 0 : i32
    return %c0_i32, %c0_i32_0 : i32, i32
  }
  func.func @transform_10(%arg0: i32) -> (i32, i32) {
    %c0_i32 = arith.constant 0 : i32
    %c0_i32_0 = arith.constant 0 : i32
    %c0_i32_1 = arith.constant 0 : i32
    return %c0_i32, %c0_i32_0 : i32, i32
  }
  func.func @transform_11(%arg0: i32) -> (i32, i32, i32) {
    %c0_i32 = arith.constant 0 : i32
    %c0_i32_0 = arith.constant 0 : i32
    %c0_i32_1 = arith.constant 0 : i32
    return %c0_i32, %arg0, %c0_i32_0 : i32, i32, i32
  }
}

</mosaic_0001>

<bundles_post_ra>
// kernel: gru_model_forward.1
= control target key start
LH: loop header
LB: loop body
LE: loop exit
PB: predicated region body
PF: predicated region fallthrough
CT: control target
= control target key end

     0   :  { %16 = vsyncpa [#allocation5], 0  ;;  %s9990_s0 = inlined_call_operand.vmem [shape: f32[8,8,128], index: 0, kind: input, shape index: {}]   ;;  %s9991_s1 = inlined_call_operand.hbm [shape: f32[128,384], index: 1, kind: input, shape index: {}]   ;;  %s9992_s2 = inlined_call_operand.hbm [shape: f32[128,384], index: 2, kind: input, shape index: {}]   ;;  %s9993_s3 = inlined_call_operand.vmem [shape: f32[1,384], index: 3, kind: input, shape index: {}]   ;;  %s9994_s4 = inlined_call_operand.hbm [shape: f32[1,128], index: 4, kind: input, shape index: {}]   ;;  %s9995_s5 = inlined_call_operand.hbm [shape: f32[128,384], index: 5, kind: input, shape index: {}]   ;;  %s9996_s6 = inlined_call_operand.hbm [shape: f32[128,384], index: 6, kind: input, shape index: {}]   ;;  %s9997_s7 = inlined_call_operand.hbm [shape: f32[1,384], index: 7, kind: input, shape index: {}]   ;;  %s9998_s8 = inlined_call_operand.hbm [shape: f32[1,128], index: 8, kind: input, shape index: {}]   ;;  %s9999_s9 = inlined_call_operand.vmem [shape: f32[128,128], index: 9, kind: input, shape index: {}]   ;;  %s10000_s10 = inlined_call_operand.hbm [shape: f32[1,128], index: 10, kind: input, shape index: {}]   ;;  %s10001_s11 = inlined_call_operand.vmem [shape: f32[8,8,128], index: 11, kind: output, shape index: {}]  }
   0x1   :  { %17 = vsyncpa [#allocation7], 0 }
   0x2   :  { %18 = vsyncpa [#allocation10], 0 }
   0x3   :  { %19 = vsyncpa [#allocation13], 0 }
   0x4   :  { %20 = vsyncpa [#allocation16], 0  ;;  %s6763_s17 = smov [#allocation6]   ;;  %s6764_s19 = smov [#allocation9]  }
   0x5   :  { %s40_s18 = sshll.u32 %s6763_s17, 4  ;;  %s64_s20 = sshll.u32 %s6764_s19, 4  ;;  %s41_s18 = int_to_ptr.vmem [resolvable:$true] %s40_s18  ;;  %s65_s20 = int_to_ptr.vmem [resolvable:$true] %s64_s20 }
   0x6   :  { %s6601_s21 = scalar_lea.vmem %s41_s18, 6144  ;;  %p6606_p1 = scmp.lt.s32.totalorder %s41_s18, %s41_s18 }
   0x7   :  { %p6602_p0 = scmp.ne.s32.totalorder %s41_s18, %s6601_s21  ;;  %p6607_p2 = scmp.lt.s32.totalorder %s6601_s21, %s6601_s21 }
   0x9   :  { %p6608_p3 = por %p6607_p2, %p6606_p1 }
   0xb   :  { %p6609_p4 = pnand %p6608_p3, %p6602_p0 }
   0xd   :  { %6612 = shalt.err (!%p6609_p4)
}
   0xe   :  { %s6765_s22 = smov 384   ;;  %s6766_s23 = smov 24  }
   0xf   :  { %46 = dma.hbm_to_vmem [thread:$0]  %s9992_s2, 6144, %s41_s18, [#allocation7], %s6765_s22, %s6765_s22, %s6766_s23  }
  0x10   :  { %s6621_s26 = scalar_lea.vmem %s65_s20, 6144  ;;  %p6626_p6 = scmp.lt.s32.totalorder %s65_s20, %s65_s20 }
  0x11   :  { %p6622_p5 = scmp.ne.s32.totalorder %s65_s20, %s6621_s26  ;;  %p6627_p7 = scmp.lt.s32.totalorder %s6621_s26, %s6621_s26 }
  0x13   :  { %p6628_p8 = por %p6627_p7, %p6626_p6 }
  0x15   :  { %p6629_p9 = pnand %p6628_p8, %p6622_p5 }
  0x17   :  { %6632 = shalt.err (!%p6629_p9)
}
  0x18   :  { %70 = dma.hbm_to_vmem [thread:$0]  %s9995_s5, 6144, %s65_s20, [#allocation10], %s6765_s22, %s6765_s22, %s6766_s23  }
  0x19   :  { %s6767_s29 = smov [#allocation12]   ;;  %s6768_s12 = smov [#allocation4]  }
  0x1a   :  { %s89_s30 = sshll.u32 %s6767_s29, 4  ;;  %s28_s13 = sshll.u32 %s6768_s12, 4  ;;  %s90_s30 = int_to_ptr.vmem [resolvable:$true] %s89_s30  ;;  %s29_s13 = int_to_ptr.vmem [resolvable:$true] %s28_s13 }
  0x1b   :  { %s6641_s2 = scalar_lea.vmem %s90_s30, 48  ;;  %s6645_s14 = scalar_lea.vmem %s90_s30, 64 }
  0x1c   :  { %p6642_p10 = scmp.ne.s32.totalorder %s90_s30, %s6641_s2  ;;  %p6646_p11 = scmp.lt.s32.totalorder %s90_s30, %s90_s30 }
  0x1d   :  { %p6647_p12 = scmp.lt.s32.totalorder %s6645_s14, %s6641_s2 }
  0x1f   :  { %p6648_p13 = por %p6647_p12, %p6646_p11 }
  0x21   :  { %p6649_p0 = pnand %p6648_p13, %p6642_p10 }
  0x23   :  { %6652 = shalt.err (!%p6649_p0)
}
  0x24   :  { %92 = dma.hbm_to_vmem [thread:$0]  %s9997_s7, 48, %s90_s30, [#allocation13]  }
  0x25   :  { %s6661_s17 = scalar_lea.vmem %s29_s13, 6144  ;;  %p6666_p2 = scmp.lt.s32.totalorder %s29_s13, %s29_s13 }
  0x26   :  { %p6662_p1 = scmp.ne.s32.totalorder %s29_s13, %s6661_s17  ;;  %p6667_p3 = scmp.lt.s32.totalorder %s6661_s17, %s6661_s17 }
  0x28   :  { %p6668_p4 = por %p6667_p3, %p6666_p2 }
  0x2a   :  { %p6669_p5 = pnand %p6668_p4, %p6662_p1 }
  0x2c   :  { %6672 = shalt.err (!%p6669_p5)
}
  0x2d   :  { %34 = dma.hbm_to_vmem [thread:$0]  %s9991_s1, 6144, %s29_s13, [#allocation5], %s6765_s22, %s6765_s22, %s6766_s23  }
  0x2e   :  { %s6769_s19 = smov [#allocation8]   ;;  %s6770_s21 = smov [#allocation11]  }
  0x2f   :  { %s55_s20 = sshll.u32 %s6769_s19, 4  ;;  %s76_s24 = sshll.u32 %s6770_s21, 4  ;;  %s56_s20 = int_to_ptr.vmem [resolvable:$true] %s55_s20  ;;  %s77_s24 = int_to_ptr.vmem [resolvable:$true] %s76_s24 }
  0x30   :  { %s6681_s7 = scalar_lea.vmem %s56_s20, 16  ;;  %s6685_s25 = scalar_lea.vmem %s56_s20, 32 }
  0x31   :  { %p6682_p6 = scmp.ne.s32.totalorder %s56_s20, %s6681_s7  ;;  %p6686_p7 = scmp.lt.s32.totalorder %s56_s20, %s56_s20 }
  0x32   :  { %p6687_p8 = scmp.lt.s32.totalorder %s6685_s25, %s6681_s7 }
  0x34   :  { %p6688_p9 = por %p6687_p8, %p6686_p7 }
  0x36   :  { %p6689_p10 = pnand %p6688_p9, %p6682_p6 }
  0x38   :  { %6692 = shalt.err (!%p6689_p10)
}
  0x39   :  { %58 = dma.hbm_to_vmem [thread:$0]  %s9994_s4, 16, %s56_s20, [#allocation7]  }
  0x3a   :  { %s6701_s28 = scalar_lea.vmem %s77_s24, 6144  ;;  %p6706_p12 = scmp.lt.s32.totalorder %s77_s24, %s77_s24 }
  0x3b   :  { %p6702_p11 = scmp.ne.s32.totalorder %s77_s24, %s6701_s28  ;;  %p6707_p13 = scmp.lt.s32.totalorder %s6701_s28, %s6701_s28 }
  0x3d   :  { %p6708_p0 = por %p6707_p13, %p6706_p12 }
  0x3f   :  { %p6709_p1 = pnand %p6708_p0, %p6702_p11 }
  0x41   :  { %6712 = shalt.err (!%p6709_p1)
}
  0x42   :  { %82 = dma.hbm_to_vmem [thread:$0]  %s9996_s6, 6144, %s77_s24, [#allocation10], %s6765_s22, %s6765_s22, %s6766_s23  }
  0x43   :  { %s6771_s30 = smov [#allocation14]   ;;  %s6772_s13 = smov [#allocation15]  }
  0x44   :  { %s99_s12 = sshll.u32 %s6771_s30, 4  ;;  %s111_s2 = sshll.u32 %s6772_s13, 4  ;;  %s100_s12 = int_to_ptr.vmem [resolvable:$true] %s99_s12  ;;  %s112_s2 = int_to_ptr.vmem [resolvable:$true] %s111_s2 }
  0x45   :  { %s6721_s4 = scalar_lea.vmem %s100_s12, 16  ;;  %s6725_s14 = scalar_lea.vmem %s100_s12, 32 }
  0x46   :  { %p6722_p2 = scmp.ne.s32.totalorder %s100_s12, %s6721_s4  ;;  %p6726_p3 = scmp.lt.s32.totalorder %s100_s12, %s100_s12 }
  0x47   :  { %p6727_p4 = scmp.lt.s32.totalorder %s6725_s14, %s6721_s4 }
  0x49   :  { %p6728_p5 = por %p6727_p4, %p6726_p3 }
  0x4b   :  { %p6729_p6 = pnand %p6728_p5, %p6722_p2 }
  0x4d   :  { %6732 = shalt.err (!%p6729_p6)
}
  0x4e   :  { %102 = dma.hbm_to_vmem [thread:$0]  %s9998_s8, 16, %s100_s12, [#allocation13]  }
  0x4f   :  { %s6741_s17 = scalar_lea.vmem %s112_s2, 16  ;;  %s6745_s6 = scalar_lea.vmem %s112_s2, 32 }
  0x50   :  { %p6742_p7 = scmp.ne.s32.totalorder %s112_s2, %s6741_s17  ;;  %p6746_p8 = scmp.lt.s32.totalorder %s112_s2, %s112_s2 }
  0x51   :  { %p6747_p9 = scmp.lt.s32.totalorder %s6745_s6, %s6741_s17 }
  0x53   :  { %p6748_p10 = por %p6747_p9, %p6746_p8 }
  0x55   :  { %p6749_p11 = pnand %p6748_p10, %p6742_p7 }
  0x57   :  { %6752 = shalt.err (!%p6749_p11)
}
  0x58   :  { %114 = dma.hbm_to_vmem [thread:$0]  %s10000_s10, 16, %s112_s2, [#allocation16]  }
  0x59   :  { %6753 = dma.done.wait [#allocation5], 6144  }
  0x5a   :  { %6754 = vsyncadd [#allocation5], 4294961152 }
  0x5b   :  { %6755 = dma.done.wait [#allocation7], 6160  }
  0x5c   :  { %6756 = vsyncadd [#allocation7], 4294961136 }
  0x5d   :  { %6757 = dma.done.wait [#allocation10], 12288  }
  0x5e   :  { %6758 = vsyncadd [#allocation10], 4294955008 }
  0x5f   :  { %6759 = dma.done.wait [#allocation13], 64  }
  0x60   :  { %6760 = vsyncadd [#allocation13], 4294967232 }
  0x61   :  { %6761 = dma.done.wait [#allocation16], 16  }
  0x62   :  { %6762 = vsyncadd [#allocation16], 4294967280  ;;  %v10088_v0 = vmov 0.0   ;;  %v185_v1 = vld [vmem:[#allocation4 + $0x170] sm:$0xff]  ;;  %v184_v2 = vld [vmem:[#allocation4 + $0x168] sm:$0xff]  ;;  %vm6774_vm0 = vmmov 0  }
  0x63   :  { %435 = vmatprep.mubr.f32.mxu1 %v10088_v0  ;;  %680 = vmatprep.mubr.f32.mxu0 %v10088_v0  ;;  %v182_v3 = vld [vmem:[#allocation4 + $0x158] sm:$0xff]  ;;  %v6873_v4 = vld [vmem:[#allocation6 + $0x170] sm:$0xff]  ;;  %v6875_v6 = vld [vmem:[#allocation6 + $0x168] sm:$0xff] }
  0x64   :  { %371 = vmatprep.subr.mxu1 %v185_v1  ;;  %v181_v5 = vld [vmem:[#allocation4 + $0x150] sm:$0xff]  ;;  %616 = vmatprep.subr.mxu0 %v6873_v4  ;;  %v179_v7 = vld [vmem:[#allocation4 + $0x140] sm:$0xff]  ;;  %v6878_v8 = vld [vmem:[#allocation6 + $0x158] sm:$0xff] }
  0x65   :  { %372 = vmatpush1.msra.mxu1 %v184_v2  ;;  %617 = vmatpush1.msra.mxu0 %v6875_v6  ;;  %v178_v9 = vld [vmem:[#allocation4 + $0x138] sm:$0xff]  ;;  %v6881_v10 = vld [vmem:[#allocation6 + $0x150] sm:$0xff]  ;;  %v6883_v11 = vld [vmem:[#allocation6 + $0x140] sm:$0xff] }
  0x66   :  { %373 = vmatprep.subr.mxu1 %v182_v3  ;;  %618 = vmatprep.subr.mxu0 %v6878_v8  ;;  %v176_v12 = vld [vmem:[#allocation4 + $0x128] sm:$0xff]  ;;  %v6886_v13 = vld [vmem:[#allocation6 + $0x138] sm:$0xff]  ;;  %v175_v14 = vld [vmem:[#allocation4 + $0x120] sm:$0xff] }
  0x67   :  { %374 = vmatpush1.msra.mxu1 %v181_v5  ;;  %619 = vmatpush1.msra.mxu0 %v6881_v10  ;;  %v6889_v15 = vld [vmem:[#allocation6 + $0x128] sm:$0xff]  ;;  %v173_v16 = vld [vmem:[#allocation4 + $0x110] sm:$0xff]  ;;  %v6892_v17 = vld [vmem:[#allocation6 + $0x120] sm:$0xff] }
  0x68   :  { %375 = vmatprep.subr.mxu1 %v179_v7  ;;  %620 = vmatprep.subr.mxu0 %v6883_v11  ;;  %v172_v18 = vld [vmem:[#allocation4 + $0x108] sm:$0xff]  ;;  %v6895_v19 = vld [vmem:[#allocation6 + $0x110] sm:$0xff]  ;;  %v170_v20 = vld [vmem:[#allocation4 + $0xf8] sm:$0xff] }
  0x69   :  { %376 = vmatpush1.msra.mxu1 %v178_v9  ;;  %621 = vmatpush1.msra.mxu0 %v6886_v13  ;;  %v6898_v21 = vld [vmem:[#allocation6 + $0x108] sm:$0xff]  ;;  %v169_v22 = vld [vmem:[#allocation4 + $0xf0] sm:$0xff]  ;;  %v6901_v23 = vld [vmem:[#allocation6 + $0xf8] sm:$0xff] }
  0x6a   :  { %377 = vmatprep.subr.mxu1 %v176_v12  ;;  %622 = vmatprep.subr.mxu0 %v6889_v15  ;;  %v167_v24 = vld [vmem:[#allocation4 + $0xe0] sm:$0xff]  ;;  %v6904_v25 = vld [vmem:[#allocation6 + $0xf0] sm:$0xff]  ;;  %v166_v26 = vld [vmem:[#allocation4 + $0xd8] sm:$0xff] }
  0x6b   :  { %378 = vmatpush1.msra.mxu1 %v175_v14  ;;  %623 = vmatpush1.msra.mxu0 %v6892_v17  ;;  %v6907_v27 = vld [vmem:[#allocation6 + $0xe0] sm:$0xff]  ;;  %v164_v28 = vld [vmem:[#allocation4 + $0xc8] sm:$0xff]  ;;  %v6910_v29 = vld [vmem:[#allocation6 + $0xd8] sm:$0xff] }
  0x6c   :  { %379 = vmatprep.subr.mxu1 %v173_v16  ;;  %624 = vmatprep.subr.mxu0 %v6895_v19  ;;  %v163_v30 = vld [vmem:[#allocation4 + $0xc0] sm:$0xff]  ;;  %v6913_v31 = vld [vmem:[#allocation6 + $0xc8] sm:$0xff]  ;;  %v161_v32 = vld [vmem:[#allocation4 + $0xb0] sm:$0xff] }
  0x6d   :  { %380 = vmatpush1.msra.mxu1 %v172_v18  ;;  %625 = vmatpush1.msra.mxu0 %v6898_v21  ;;  %v6916_v33 = vld [vmem:[#allocation6 + $0xc0] sm:$0xff]  ;;  %v160_v34 = vld [vmem:[#allocation4 + $0xa8] sm:$0xff]  ;;  %v6919_v35 = vld [vmem:[#allocation6 + $0xb0] sm:$0xff] }
  0x6e   :  { %381 = vmatprep.subr.mxu1 %v170_v20  ;;  %626 = vmatprep.subr.mxu0 %v6901_v23  ;;  %v158_v36 = vld [vmem:[#allocation4 + $0x98] sm:$0xff]  ;;  %v6922_v37 = vld [vmem:[#allocation6 + $0xa8] sm:$0xff]  ;;  %v157_v38 = vld [vmem:[#allocation4 + $0x90] sm:$0xff] }
  0x6f   :  { %382 = vmatpush1.msra.mxu1 %v169_v22  ;;  %627 = vmatpush1.msra.mxu0 %v6904_v25  ;;  %v6925_v39 = vld [vmem:[#allocation6 + $0x98] sm:$0xff]  ;;  %v155_v40 = vld [vmem:[#allocation4 + $0x80] sm:$0xff]  ;;  %v6928_v41 = vld [vmem:[#allocation6 + $0x90] sm:$0xff] }
  0x70   :  { %383 = vmatprep.subr.mxu1 %v167_v24  ;;  %628 = vmatprep.subr.mxu0 %v6907_v27  ;;  %v154_v42 = vld [vmem:[#allocation4 + $0x78] sm:$0xff]  ;;  %v6931_v43 = vld [vmem:[#allocation6 + $0x80] sm:$0xff]  ;;  %v152_v44 = vld [vmem:[#allocation4 + $0x68] sm:$0xff] }
  0x71   :  { %384 = vmatpush1.msra.mxu1 %v166_v26  ;;  %629 = vmatpush1.msra.mxu0 %v6910_v29  ;;  %v6934_v45 = vld [vmem:[#allocation6 + $0x78] sm:$0xff]  ;;  %v151_v46 = vld [vmem:[#allocation4 + $0x60] sm:$0xff]  ;;  %v6937_v47 = vld [vmem:[#allocation6 + $0x68] sm:$0xff] }
  0x72   :  { %385 = vmatprep.subr.mxu1 %v164_v28  ;;  %630 = vmatprep.subr.mxu0 %v6913_v31  ;;  %v149_v48 = vld [vmem:[#allocation4 + $0x50] sm:$0xff]  ;;  %v6940_v49 = vld [vmem:[#allocation6 + $0x60] sm:$0xff]  ;;  %v148_v50 = vld [vmem:[#allocation4 + $0x48] sm:$0xff] }
  0x73   :  { %386 = vmatpush1.msra.mxu1 %v163_v30  ;;  %631 = vmatpush1.msra.mxu0 %v6916_v33  ;;  %v6943_v51 = vld [vmem:[#allocation6 + $0x50] sm:$0xff]  ;;  %v146_v52 = vld [vmem:[#allocation4 + $0x38] sm:$0xff]  ;;  %v6946_v53 = vld [vmem:[#allocation6 + $0x48] sm:$0xff] }
  0x74   :  { %387 = vmatprep.subr.mxu1 %v161_v32  ;;  %632 = vmatprep.subr.mxu0 %v6919_v35  ;;  %v145_v54 = vld [vmem:[#allocation4 + $0x30] sm:$0xff]  ;;  %v6949_v55 = vld [vmem:[#allocation6 + $0x38] sm:$0xff]  ;;  %v143_v56 = vld [vmem:[#allocation4 + $0x20] sm:$0xff] }
  0x75   :  { %388 = vmatpush1.msra.mxu1 %v160_v34  ;;  %633 = vmatpush1.msra.mxu0 %v6922_v37  ;;  %v6952_v57 = vld [vmem:[#allocation6 + $0x30] sm:$0xff]  ;;  %v142_v58 = vld [vmem:[#allocation4 + $0x18] sm:$0xff]  ;;  %v6955_v59 = vld [vmem:[#allocation6 + $0x20] sm:$0xff] }
  0x76   :  { %389 = vmatprep.subr.mxu1 %v158_v36  ;;  %634 = vmatprep.subr.mxu0 %v6925_v39  ;;  %v140_v60 = vld [vmem:[#allocation4 + $0x8] sm:$0xff]  ;;  %v6958_v61 = vld [vmem:[#allocation6 + $0x18] sm:$0xff]  ;;  %v139_v62 = vld [vmem:[#allocation4] sm:$0xff] }
  0x77   :  { %390 = vmatpush1.msra.mxu1 %v157_v38  ;;  %635 = vmatpush1.msra.mxu0 %v6928_v41  ;;  %v6961_v63 = vld [vmem:[#allocation6 + $0x8] sm:$0xff]  ;;  %v6967_v1 = vld [vmem:[%s9990_s0] sm:$0xff]  ;;  %v186_v2 = vld [vmem:[#allocation4 + $0x178] sm:$0xff] }
  0x78   :  { %391 = vmatprep.subr.mxu1 %v155_v40  ;;  %636 = vmatprep.subr.mxu0 %v6931_v43  ;;  %v6970_v3 = vld [vmem:[#allocation6] sm:$0xff]  ;;  %v6978_v7 = vld [vmem:[%s9990_s0 + $0x8] sm:$0xff]  ;;  %v177_v12 = vld [vmem:[#allocation4 + $0x130] sm:$0xff] }
  0x79   :  { %392 = vmatpush1.msra.mxu1 %v154_v42  ;;  %637 = vmatpush1.msra.mxu0 %v6934_v45  ;;  %v183_v5 = vld [vmem:[#allocation4 + $0x160] sm:$0xff]  ;;  %v180_v9 = vld [vmem:[#allocation4 + $0x148] sm:$0xff]  ;;  %v6987_v14 = vld [vmem:[%s9990_s0 + $0x10] sm:$0xff] }
  0x7a   :  { %393 = vmatprep.subr.mxu1 %v152_v44  ;;  %638 = vmatprep.subr.mxu0 %v6937_v47  ;;  %v174_v16 = vld [vmem:[#allocation4 + $0x118] sm:$0xff]  ;;  %v171_v18 = vld [vmem:[#allocation4 + $0x100] sm:$0xff]  ;;  %v168_v22 = vld [vmem:[#allocation4 + $0xe8] sm:$0xff] }
  0x7b   :  { %394 = vmatpush1.msra.mxu1 %v151_v46  ;;  %639 = vmatpush1.msra.mxu0 %v6940_v49  ;;  %v6996_v20 = vld [vmem:[%s9990_s0 + $0x18] sm:$0xff]  ;;  %v156_v26 = vld [vmem:[#allocation4 + $0x88] sm:$0xff]  ;;  %v153_v28 = vld [vmem:[#allocation4 + $0x70] sm:$0xff] }
  0x7c   :  { %395 = vmatprep.subr.mxu1 %v149_v48  ;;  %640 = vmatprep.subr.mxu0 %v6943_v51  ;;  %v162_v24 = vld [vmem:[#allocation4 + $0xb8] sm:$0xff]  ;;  %v147_v30 = vld [vmem:[#allocation4 + $0x40] sm:$0xff]  ;;  %v141_v32 = vld [vmem:[#allocation4 + $0x10] sm:$0xff] }
  0x7d   :  { %396 = vmatpush1.msra.mxu1 %v148_v50  ;;  %641 = vmatpush1.msra.mxu0 %v6946_v53  ;;  %v7070_v34 = vld [vmem:[#allocation6 + $0xb8] sm:$0xff]  ;;  %v7082_v36 = vld [vmem:[#allocation6 + $0x88] sm:$0xff]  ;;  %v235_v46 = vld [vmem:[%s9993_s3] sm:$0x7] }
  0x7e   :  { %397 = vmatprep.subr.mxu1 %v146_v52  ;;  %642 = vmatprep.subr.mxu0 %v6949_v55  ;;  %v7094_v38 = vld [vmem:[#allocation6 + $0x58] sm:$0xff]  ;;  %v7106_v40 = vld [vmem:[#allocation6 + $0x28] sm:$0xff] }
  0x7f   :  { %398 = vmatpush1.msra.mxu1 %v145_v54  ;;  %643 = vmatpush1.msra.mxu0 %v6952_v57  ;;  %v7152_v42 = vld [vmem:[#allocation9 + $0x170] sm:$0xff] }
  0x80   :  { %399 = vmatprep.subr.mxu1 %v143_v56  ;;  %644 = vmatprep.subr.mxu0 %v6955_v59 }
  0x81   :  { %400 = vmatpush1.msra.mxu1 %v142_v58  ;;  %645 = vmatpush1.msra.mxu0 %v6958_v61 }
  0x82   :  { %401 = vmatprep.subr.mxu1 %v140_v60  ;;  %646 = vmatprep.subr.mxu0 %v6961_v63 }
  0x83   :  { %402 = vmatpush1.msra.mxu1 %v139_v62  ;;  %647 = vmatpush1.msra.mxu0 %v6970_v3 }
  0x84   :  { %436 = vmatmul.mubr.f32.vlgmr.msra.gmra.mxu1 %v6967_v1  ;;  %5055 = vmatprep.subr.mxu1 %v186_v2 }
  0x85   :  { %5056 = vmatpush3.msra.mxu1 %v186_v2  ;;  %681 = vmatmul.mubr.f32.vlgmr.msra.gmra.mxu0 %v10088_v0 }
  0x86   :  { %5057 = vmatprep.subr.mxu1 %v183_v5  ;;  %441 = vmatprep.mubr.f32.mxu1 %v10088_v0 }
  0x87   :  { %5058 = vmatpush3.msra.mxu1 %v183_v5  ;;  %783 = vmatprep.subr.mxu0 %v6873_v4  ;;  %v165_v4 = vld [vmem:[#allocation4 + $0xd0] sm:$0xff] }
  0x88   :  { %442 = vmatmul.mubr.f32.gmra.mxu1 %v6978_v7  ;;  %5059 = vmatprep.subr.mxu1 %v180_v9 }
  0x89   :  { %5060 = vmatpush3.msra.mxu1 %v180_v9  ;;  %447 = vmatprep.mubr.f32.mxu1 %v10088_v0 }
  0x8a   :  { %5061 = vmatprep.subr.mxu1 %v177_v12  ;;  %784 = vmatpush1.msra.mxu0 %v6875_v6  ;;  %v351_v6 = vld [vmem:[%s9990_s0 + $0x20] sm:$0xff] }
  0x8b   :  { %5062 = vmatpush3.msra.mxu1 %v177_v12  ;;  %785 = vmatprep.subr.mxu0 %v6878_v8  ;;  %v159_v8 = vld [vmem:[#allocation4 + $0xa0] sm:$0xff] }
  0x8c   :  { %448 = vmatmul.mubr.f32.gmra.mxu1 %v6987_v14  ;;  %5063 = vmatprep.subr.mxu1 %v174_v16 }
  0x8d   :  { %5064 = vmatpush3.msra.mxu1 %v174_v16  ;;  %453 = vmatprep.mubr.f32.mxu1 %v10088_v0 }
  0x8e   :  { %5065 = vmatprep.subr.mxu1 %v171_v18  ;;  %786 = vmatpush1.msra.mxu0 %v6881_v10  ;;  %v352_v10 = vld [vmem:[%s9990_s0 + $0x28] sm:$0xff] }
  0x8f   :  { %5066 = vmatpush3.msra.mxu1 %v171_v18  ;;  %787 = vmatprep.subr.mxu0 %v6883_v11  ;;  %v353_v11 = vld [vmem:[%s9990_s0 + $0x30] sm:$0xff] }
  0x90   :  { %454 = vmatmul.mubr.f32.gmra.mxu1 %v6996_v20  ;;  %5067 = vmatprep.subr.mxu1 %v168_v22 }
  0x91   :  { %5068 = vmatpush3.msra.mxu1 %v168_v22  ;;  %459 = vmatprep.mubr.f32.mxu1 %v10088_v0 }
  0x92   :  { %5069 = vmatprep.subr.mxu1 %v165_v4  ;;  %788 = vmatpush1.msra.mxu0 %v6886_v13  ;;  %v150_v13 = vld [vmem:[#allocation4 + $0x58] sm:$0xff] }
  0x93   :  { %5070 = vmatpush3.msra.mxu1 %v165_v4  ;;  %789 = vmatprep.subr.mxu0 %v6889_v15  ;;  %v354_v15 = vld [vmem:[%s9990_s0 + $0x38] sm:$0xff] }
  0x94   :  { %460 = vmatmul.mubr.f32.gmra.mxu1 %v351_v6  ;;  %5071 = vmatprep.subr.mxu1 %v162_v24 }
  0x95   :  { %5072 = vmatpush3.msra.mxu1 %v162_v24  ;;  %465 = vmatprep.mubr.f32.mxu1 %v10088_v0 }
  0x96   :  { %5073 = vmatprep.subr.mxu1 %v159_v8  ;;  %790 = vmatpush1.msra.mxu0 %v6892_v17  ;;  %v144_v17 = vld [vmem:[#allocation4 + $0x28] sm:$0xff] }
  0x97   :  { %5074 = vmatpush3.msra.mxu1 %v159_v8  ;;  %791 = vmatprep.subr.mxu0 %v6895_v19  ;;  %v7026_v19 = vld [vmem:[#allocation6 + $0x178] sm:$0xff] }
  0x98   :  { %466 = vmatmul.mubr.f32.gmra.mxu1 %v352_v10  ;;  %5075 = vmatprep.subr.mxu1 %v156_v26 }
  0x99   :  { %5076 = vmatpush3.msra.mxu1 %v156_v26  ;;  %471 = vmatprep.mubr.f32.mxu1 %v10088_v0 }
  0x9a   :  { %5077 = vmatprep.subr.mxu1 %v153_v28  ;;  %792 = vmatpush1.msra.mxu0 %v6898_v21  ;;  %v7032_v21 = vld [vmem:[#allocation6 + $0x160] sm:$0xff] }
  0x9b   :  { %5078 = vmatpush3.msra.mxu1 %v153_v28  ;;  %793 = vmatprep.subr.mxu0 %v6901_v23  ;;  %v7037_v23 = vld [vmem:[#allocation6 + $0x148] sm:$0xff] }
  0x9c   :  { %472 = vmatmul.mubr.f32.gmra.mxu1 %v353_v11  ;;  %5079 = vmatprep.subr.mxu1 %v150_v13 }
  0x9d   :  { %5080 = vmatpush3.msra.mxu1 %v150_v13  ;;  %477 = vmatprep.mubr.f32.mxu1 %v10088_v0 }
  0x9e   :  { %5081 = vmatprep.subr.mxu1 %v147_v30  ;;  %794 = vmatpush1.msra.mxu0 %v6904_v25  ;;  %v7043_v25 = vld [vmem:[#allocation6 + $0x130] sm:$0xff] }
  0x9f   :  { %5082 = vmatpush3.msra.mxu1 %v147_v30  ;;  %795 = vmatprep.subr.mxu0 %v6907_v27  ;;  %v7048_v27 = vld [vmem:[#allocation6 + $0x118] sm:$0xff] }
  0xa0   :  { %478 = vmatmul.mubr.f32.gmra.mxu1 %v354_v15  ;;  %5083 = vmatprep.subr.mxu1 %v144_v17 }
  0xa1   :  { %5084 = vmatpush3.msra.mxu1 %v144_v17  ;;  %5087 = vmatprep.mubr.f32.mxu1 %v6967_v1 }
  0xa2   :  { %5085 = vmatprep.subr.mxu1 %v141_v32  ;;  %796 = vmatpush1.msra.mxu0 %v6910_v29  ;;  %v7054_v29 = vld [vmem:[#allocation6 + $0x100] sm:$0xff] }
  0xa3   :  { %5086 = vmatpush3.msra.mxu1 %v141_v32  ;;  %797 = vmatprep.subr.mxu0 %v6913_v31  ;;  %v7058_v31 = vld [vmem:[#allocation6 + $0xe8] sm:$0xff] }
  0xa4   :  { %5088 = vmatmul.mubr.f32.vlgmr.msra.gmra.mxu1 %v6978_v7  ;;  %5099 = vmatprep.subr.mxu1 %v10088_v0 }
  0xa5   :  { %5100 = vmatpush3.msra.mxu1 %v7026_v19  ;;  %5090 = vmatprep.mubr.f32.mxu1 %v6987_v14 }
  0xa6   :  { %5101 = vmatprep.subr.mxu1 %v10088_v0  ;;  %798 = vmatpush1.msra.mxu0 %v6916_v33  ;;  %v7064_v33 = vld [vmem:[#allocation6 + $0xd0] sm:$0xff] }
  0xa7   :  { %5102 = vmatpush3.msra.mxu1 %v7032_v21  ;;  %799 = vmatprep.subr.mxu0 %v6919_v35  ;;  %v7076_v35 = vld [vmem:[#allocation6 + $0xa0] sm:$0xff] }
  0xa8   :  { %5103 = vmatprep.subr.mxu1 %v10088_v0  ;;  %5091 = vmatmul.mubr.f32.gmra.mxu1 %v6996_v20 }
  0xa9   :  { %5104 = vmatpush3.msra.mxu1 %v7037_v23  ;;  %5093 = vmatprep.mubr.f32.mxu1 %v351_v6 }
  0xaa   :  { %5105 = vmatprep.subr.mxu1 %v10088_v0  ;;  %800 = vmatpush1.msra.mxu0 %v6922_v37  ;;  %v7088_v37 = vld [vmem:[#allocation6 + $0x70] sm:$0xff] }
  0xab   :  { %5106 = vmatpush3.msra.mxu1 %v7043_v25  ;;  %801 = vmatprep.subr.mxu0 %v6925_v39  ;;  %v7100_v39 = vld [vmem:[#allocation6 + $0x40] sm:$0xff] }
  0xac   :  { %5107 = vmatprep.subr.mxu1 %v10088_v0  ;;  %5094 = vmatmul.mubr.f32.gmra.mxu1 %v352_v10 }
  0xad   :  { %5108 = vmatpush3.msra.mxu1 %v7048_v27  ;;  %5096 = vmatprep.mubr.f32.mxu1 %v353_v11 }
  0xae   :  { %5109 = vmatprep.subr.mxu1 %v10088_v0  ;;  %802 = vmatpush1.msra.mxu0 %v6928_v41  ;;  %v7111_v41 = vld [vmem:[#allocation6 + $0x10] sm:$0xff] }
  0xaf   :  { %5110 = vmatpush3.msra.mxu1 %v7054_v29  ;;  %803 = vmatprep.subr.mxu0 %v6931_v43  ;;  %v356_v43 = vlaneseq }
  0xb0   :  { %5111 = vmatprep.subr.mxu1 %v10088_v0  ;;  %5097 = vmatmul.mubr.f32.gmra.mxu1 %v354_v15 }
  0xb1   :  { %5112 = vmatpush3.msra.mxu1 %v7058_v31  ;;  %5131 = vmatprep.mubr.msk.f32.mxu1 %vm6774_vm0, %v10088_v0  ;;  %v7155_v44 = vshrl.u32 %v356_v43, 7 }
  0xb2   :  { %5113 = vmatprep.subr.mxu1 %v10088_v0  ;;  %804 = vmatpush1.msra.mxu0 %v6934_v45 }
  0xb3   :  { %5114 = vmatpush3.msra.mxu1 %v7064_v33  ;;  %805 = vmatprep.subr.mxu0 %v6937_v47  ;;  %v10004_v45 = vsub.s32 0, %v7155_v44  ;;  %v10003_v48 = vsub.s32 1, %v7155_v44  ;;  %v10002_v6 = vsub.s32 2, %v7155_v44 }
  0xb4   :  { %5115 = vmatprep.subr.mxu1 %v10088_v0  ;;  %806 = vmatpush1.msra.mxu0 %v6940_v49 }
  0xb5   :  { %5116 = vmatpush3.msra.mxu1 %v7070_v34  ;;  %807 = vmatprep.subr.mxu0 %v6943_v51  ;;  %v359_v50 = vrot.slane %v235_v46, %v10004_v45  ;;  %v363_v52 = vrot.slane %v235_v46, %v10003_v48  ;;  %v367_v11 = vrot.slane %v235_v46, %v10002_v6  ;;  %v7276_v6 = vld [vmem:[#allocation9 + $0xe8] sm:$0xff]  ;;  %v7284_v45 = vld [vmem:[#allocation9 + $0xc0] sm:$0xff] }
  0xb6   :  { %5117 = vmatprep.subr.mxu1 %v10088_v0  ;;  %808 = vmatpush1.msra.mxu0 %v6946_v53  ;;  %v7280_v48 = vld [vmem:[#allocation9 + $0xc8] sm:$0xff] }
  0xb7   :  { %5118 = vmatpush3.msra.mxu1 %v7076_v35  ;;  %809 = vmatprep.subr.mxu0 %v6949_v55 }
  0xb8   :  { %5119 = vmatprep.subr.mxu1 %v10088_v0  ;;  %810 = vmatpush1.msra.mxu0 %v6952_v57 }
  0xb9   :  { %5120 = vmatpush3.msra.mxu1 %v7082_v36  ;;  %811 = vmatprep.subr.mxu0 %v6955_v59 }
  0xba   :  { %5121 = vmatprep.subr.mxu1 %v10088_v0  ;;  %812 = vmatpush1.msra.mxu0 %v6958_v61 }
  0xbb   :  { %5122 = vmatpush3.msra.mxu1 %v7088_v37  ;;  %813 = vmatprep.subr.mxu0 %v6961_v63 }
  0xbc   :  { %5123 = vmatprep.subr.mxu1 %v10088_v0  ;;  %814 = vmatpush1.msra.mxu0 %v6970_v3 }
  0xbd   :  { %5124 = vmatpush3.msra.mxu1 %v7094_v38  ;;  %847 = vmatprep.mubr.f32.mxu0 %v10088_v0 }
  0xbe   :  { %5125 = vmatprep.subr.mxu1 %v10088_v0  ;;  %962 = vmatprep.subr.mxu0 %v7152_v42 }
  0xbf   :  { %5126 = vmatpush3.msra.mxu1 %v7100_v39 }
  0xc0   :  { %5127 = vmatprep.subr.mxu1 %v10088_v0 }
  0xc1   :  { %5128 = vmatpush3.msra.mxu1 %v7106_v40 }
  0xc2   :  { %5129 = vmatprep.subr.mxu1 %v10088_v0 }
  0xc3   :  { %5130 = vmatpush3.msra.mxu1 %v7111_v41 }
  0xc4   :  { %5132 = vmatmul.mubr.f32.vlgmr.msra.gmra.mxu1 %v10088_v0  ;;  %5134 = vmatprep.subr.mxu1 %v10088_v0 }
  0xc5   :  { %5135 = vmatpush3.msra.mxu1 %v7026_v19  ;;  %5166 = vmatprep.mubr.msk.f32.mxu1 %vm6774_vm0, %v10088_v0 }
  0xc6   :  { %5136 = vmatprep.subr.mxu1 %v10088_v0 }
  0xc7   :  { %5137 = vmatpush3.msra.mxu1 %v7032_v21 }
  0xc8   :  { %5138 = vmatprep.subr.mxu1 %v10088_v0 }
  0xc9   :  { %5139 = vmatpush3.msra.mxu1 %v7037_v23 }
  0xca   :  { %5140 = vmatprep.subr.mxu1 %v10088_v0 }
  0xcb   :  { %5141 = vmatpush3.msra.mxu1 %v7043_v25 }
  0xcc   :  { %5142 = vmatprep.subr.mxu1 %v10088_v0 }
  0xcd   :  { %5143 = vmatpush3.msra.mxu1 %v7048_v27 }
  0xce   :  { %5144 = vmatprep.subr.mxu1 %v10088_v0 }
  0xcf   :  { %5145 = vmatpush3.msra.mxu1 %v7054_v29 }
  0xd0   :  { %5146 = vmatprep.subr.mxu1 %v10088_v0 }
  0xd1   :  { %5147 = vmatpush3.msra.mxu1 %v7058_v31 }
  0xd2   :  { %5148 = vmatprep.subr.mxu1 %v10088_v0 }
  0xd3   :  { %5149 = vmatpush3.msra.mxu1 %v7064_v33 }
  0xd4   :  { %5150 = vmatprep.subr.mxu1 %v10088_v0 }
  0xd5   :  { %5151 = vmatpush3.msra.mxu1 %v7070_v34 }
  0xd6   :  { %5152 = vmatprep.subr.mxu1 %v10088_v0 }
  0xd7   :  { %5153 = vmatpush3.msra.mxu1 %v7076_v35 }
  0xd8   :  { %5154 = vmatprep.subr.mxu1 %v10088_v0 }
  0xd9   :  { %5155 = vmatpush3.msra.mxu1 %v7082_v36 }
  0xda   :  { %5156 = vmatprep.subr.mxu1 %v10088_v0 }
  0xdb   :  { %5157 = vmatpush3.msra.mxu1 %v7088_v37 }
  0xdc   :  { %5158 = vmatprep.subr.mxu1 %v10088_v0 }
  0xdd   :  { %5159 = vmatpush3.msra.mxu1 %v7094_v38 }
  0xde   :  { %5160 = vmatprep.subr.mxu1 %v10088_v0 }
  0xdf   :  { %5161 = vmatpush3.msra.mxu1 %v7100_v39 }
  0xe0   :  { %5162 = vmatprep.subr.mxu1 %v10088_v0 }
  0xe1   :  { %5163 = vmatpush3.msra.mxu1 %v7106_v40 }
  0xe2   :  { %5164 = vmatprep.subr.mxu1 %v10088_v0 }
  0xe3   :  { %5165 = vmatpush3.msra.mxu1 %v7111_v41 }
  0xe4   :  { %5169 = vmatprep.subr.mxu1 %v10088_v0 }
 0x144   :  { %v437_v47 = vpop.f32.mrf.mxu1 }
 0x145   :  { %v438_v9 = vadd.f32 %v437_v47, %v359_v50  ;;  %v682_v14 = vpop.f32.mrf.mxu0 }
 0x146   :  { %v439_v49 = vpop.f32.mrf.mxu1 }
 0x147   :  { %v757_v22 = vadd.f32 %v682_v14, %v438_v9  ;;  %v440_v43 = vadd.f32 %v439_v49, %v363_v52  ;;  %v684_v47 = vpop.f32.mrf.mxu0 }
 0x148   :  { %v443_v51 = vpop.f32.mrf.mxu1 }
 0x149   :  { %v7166_v53 = vadd.f32 %v443_v51, %v359_v50  ;;  %v4566_v26 = vmul.f32 -1.442695, %v757_v22  ;;  %v7211_v22 = vld [vmem:[#allocation8] ss:$0 sm:$0xff] }
 0x14a   :  { %v445_v54 = vpop.f32.mrf.mxu1 }
 0x14b   :  { %v7168_v55 = vadd.f32 %v445_v54, %v363_v52  ;;  %5995 = vpow2.f32 %v4566_v26 }
 0x14c   :  { %v449_v56 = vpop.f32.mrf.mxu1 }
 0x14d   :  { %v7170_v57 = vadd.f32 %v449_v56, %v359_v50 }
 0x14e   :  { %v451_v58 = vpop.f32.mrf.mxu1 }
 0x14f   :  { %10320 = vst [vmem:[#allocation22_spill] sm:$0xff] %v7170_v57  ;;  %v7172_v59 = vadd.f32 %v451_v58, %v363_v52  ;;  %v764_v58 = vadd.f32 %v684_v47, %v440_v43  ;;  %v7344_v57 = vld [vmem:[#allocation9 + $0x30] sm:$0xff] }
 0x150   :  { %v455_v60 = vpop.f32.mrf.mxu1  ;;  %10346 = vst [vmem:[#allocation48_spill] sm:$0xff] %v7344_v57 }
 0x151   :  { %10321 = vst [vmem:[#allocation23_spill] sm:$0xff] %v7172_v59  ;;  %v7174_v61 = vadd.f32 %v455_v60, %v359_v50  ;;  %v7340_v59 = vld [vmem:[#allocation9 + $0x38] sm:$0xff] }
 0x152   :  { %v457_v62 = vpop.f32.mrf.mxu1  ;;  %10345 = vst [vmem:[#allocation47_spill] sm:$0xff] %v7340_v59 }
 0x153   :  { %10322 = vst [vmem:[#allocation24_spill] sm:$0xff] %v7174_v61  ;;  %v7176_v63 = vadd.f32 %v457_v62, %v363_v52  ;;  %v7334_v61 = vld [vmem:[#allocation9 + $0x48] sm:$0xff] }
 0x154   :  { %v461_v1 = vpop.f32.mrf.mxu1  ;;  %10343 = vst [vmem:[#allocation45_spill] sm:$0xff] %v7334_v61 }
 0x155   :  { %10323 = vst [vmem:[#allocation25_spill] sm:$0xff] %v7176_v63  ;;  %v7178_v2 = vadd.f32 %v461_v1, %v359_v50  ;;  %v4567_v1 = vmul.f32 -1.442695, %v764_v58  ;;  %v7330_v63 = vld [vmem:[#allocation9 + $0x50] sm:$0xff] }
 0x156   :  { %v463_v3 = vpop.f32.mrf.mxu1  ;;  %10342 = vst [vmem:[#allocation44_spill] sm:$0xff] %v7330_v63 }
 0x157   :  { %10324 = vst [vmem:[#allocation26_spill] sm:$0xff] %v7178_v2  ;;  %v7180_v5 = vadd.f32 %v463_v3, %v363_v52  ;;  %5997 = vpow2.f32 %v4567_v1  ;;  %v7324_v2 = vld [vmem:[#allocation9 + $0x60] sm:$0xff] }
 0x158   :  { %v467_v7 = vpop.f32.mrf.mxu1  ;;  %v5996_v14 = vpop.eup %5995  ;;  %10340 = vst [vmem:[#allocation42_spill] sm:$0xff] %v7324_v2 }
 0x159   :  { %10325 = vst [vmem:[#allocation27_spill] sm:$0xff] %v7180_v5  ;;  %v7182_v12 = vadd.f32 %v467_v7, %v359_v50  ;;  %v7320_v5 = vld [vmem:[#allocation9 + $0x68] sm:$0xff] }
 0x15a   :  { %v469_v16 = vpop.f32.mrf.mxu1  ;;  %10339 = vst [vmem:[#allocation41_spill] sm:$0xff] %v7320_v5 }
 0x15b   :  { %10326 = vst [vmem:[#allocation28_spill] sm:$0xff] %v7182_v12  ;;  %v7184_v18 = vadd.f32 %v469_v16, %v363_v52  ;;  %v761_v16 = vadd.f32 1.0, %v5996_v14  ;;  %v7216_v14 = vld [vmem:[#allocation9 + $0x168] sm:$0xff]  ;;  %v7314_v12 = vld [vmem:[#allocation9 + $0x78] sm:$0xff] }
 0x15c   :  { %v473_v20 = vpop.f32.mrf.mxu1 }
 0x15d   :  { %10327 = vst [vmem:[#allocation29_spill] sm:$0xff] %v7184_v18  ;;  %v7186_v4 = vadd.f32 %v473_v20, %v359_v50  ;;  %5999 = vrcp.f32 %v761_v16  ;;  %v7220_v16 = vld [vmem:[#allocation9 + $0x158] sm:$0xff]  ;;  %v7310_v18 = vld [vmem:[#allocation9 + $0x80] sm:$0xff] }
 0x15e   :  { %v475_v24 = vpop.f32.mrf.mxu1 }
 0x15f   :  { %10328 = vst [vmem:[#allocation30_spill] sm:$0xff] %v7186_v4  ;;  %v7189_v8 = vadd.f32 %v475_v24, %v363_v52  ;;  %v7304_v4 = vld [vmem:[#allocation9 + $0x90] sm:$0xff] }
 0x160   :  { %v479_v10 = vpop.f32.mrf.mxu1 }
 0x161   :  { %10329 = vst [vmem:[#allocation31_spill] sm:$0xff] %v7189_v8  ;;  %v7191_v28 = vadd.f32 %v479_v10, %v359_v50  ;;  %v7300_v8 = vld [vmem:[#allocation9 + $0x98] sm:$0xff] }
 0x162   :  { %v481_v13 = vpop.f32.mrf.mxu1 }
 0x163   :  { %10330 = vst [vmem:[#allocation32_spill] sm:$0xff] %v7191_v28  ;;  %v7195_v30 = vadd.f32 %v481_v13, %v363_v52  ;;  %v7294_v28 = vld [vmem:[#allocation9 + $0xa8] sm:$0xff] }
 0x164   :  { %v5089_v15 = vpop.f32.mrf.mxu1  ;;  %v5998_v20 = vpop.eup %5997 }
 0x165   :  { %10331 = vst [vmem:[#allocation33_spill] sm:$0xff] %v7195_v30  ;;  %v7197_v17 = vadd.f32 %v5089_v15, %v367_v11  ;;  %v768_v24 = vadd.f32 1.0, %v5998_v20  ;;  %v7230_v20 = vld [vmem:[#allocation9 + $0x140] sm:$0xff]  ;;  %v7290_v30 = vld [vmem:[#allocation9 + $0xb0] sm:$0xff] }
 0x166   :  { %v550_v32 = vpop.f32.mrf.mxu1 }
 0x167   :  { %6001 = vrcp.f32 %v768_v24  ;;  %v551_v43 = vadd.f32 %v550_v32, %v367_v11  ;;  %v7226_v32 = vld [vmem:[#allocation9 + $0x160] sm:$0xff]  ;;  %v7234_v24 = vld [vmem:[#allocation9 + $0x138] sm:$0xff] }
 0x168   :  { %v5092_v51 = vpop.f32.mrf.mxu1 }
 0x169   :  { %v7199_v54 = vadd.f32 %v5092_v51, %v367_v11 }
 0x16a   :  { %v560_v56 = vpop.f32.mrf.mxu1  ;;  %v6000_v13 = vpop.eup %5999 }
 0x16b   :  { %10332 = vst [vmem:[#allocation34_spill] sm:$0xff] %v7199_v54  ;;  %v7201_v50 = vadd.f32 %v560_v56, %v367_v11  ;;  %v7326_v54 = vld [vmem:[#allocation9 + $0x70] sm:$0xff] }
 0x16c   :  { %v5095_v60 = vpop.f32.mrf.mxu1  ;;  %10341 = vst [vmem:[#allocation43_spill] sm:$0xff] %v7326_v54 }
 0x16d   :  { %10333 = vst [vmem:[#allocation35_spill] sm:$0xff] %v7201_v50  ;;  %v7203_v62 = vadd.f32 %v5095_v60, %v367_v11  ;;  %v7336_v50 = vld [vmem:[#allocation9 + $0x58] sm:$0xff] }
 0x16e   :  { %v570_v46 = vpop.f32.mrf.mxu1  ;;  %10344 = vst [vmem:[#allocation46_spill] sm:$0xff] %v7336_v50 }
 0x16f   :  { %10334 = vst [vmem:[#allocation36_spill] sm:$0xff] %v7203_v62  ;;  %v7205_v3 = vadd.f32 %v570_v46, %v367_v11  ;;  %v7306_v62 = vld [vmem:[#allocation9 + $0xa0] sm:$0xff] }
 0x170   :  { %v5098_v7 = vpop.f32.mrf.mxu1 }
 0x171   :  { %10335 = vst [vmem:[#allocation37_spill] sm:$0xff] %v7205_v3  ;;  %v7207_v9 = vadd.f32 %v5098_v7, %v367_v11  ;;  %v7316_v3 = vld [vmem:[#allocation9 + $0x88] sm:$0xff] }
 0x172   :  { %v580_v49 = vpop.f32.mrf.mxu1  ;;  %10338 = vst [vmem:[#allocation40_spill] sm:$0xff] %v7316_v3 }
 0x173   :  { %10336 = vst [vmem:[#allocation38_spill] sm:$0xff] %v7207_v9  ;;  %v7209_v52 = vadd.f32 %v580_v49, %v367_v11  ;;  %v7218_v49 = vld [vmem:[#allocation9 + $0x178] sm:$0xff]  ;;  %v7224_v11 = vld [vmem:[#allocation9 + $0x150] sm:$0xff] }
 0x174   :  { %v6002_v56 = vpop.eup %6001  ;;  %v7286_v9 = vld [vmem:[#allocation9 + $0xd0] sm:$0xff] }
 0x175   :  { %10337 = vst [vmem:[#allocation39_spill] sm:$0xff] %v7209_v52  ;;  %v775_v58 = vsub.f32 1.0, %v6002_v56  ;;  %v777_v1 = vmul.f32 0.0, %v6002_v56  ;;  %v7260_v56 = vld [vmem:[#allocation9 + $0xf8] sm:$0xff] }
 0x176   :  { %v7296_v52 = vld [vmem:[#allocation9 + $0xb8] sm:$0xff] }
 0x184   :  { %v753_v10 = vpop.f32.mrf.mxu1 }
 0x185   :  { %v771_v26 = vadd.f32 %v7211_v22, %v753_v10  ;;  %v7236_v10 = vld [vmem:[#allocation9 + $0x148] sm:$0xff] }
 0x186   :  { %v5133_v15 = vpop.f32.mrf.mxu1 }
 0x187   :  { %v772_v47 = vmul.f32 %v6000_v13, %v771_v26  ;;  %v7240_v26 = vld [vmem:[#allocation9 + $0x128] sm:$0xff]  ;;  %v7244_v13 = vld [vmem:[#allocation9 + $0x120] sm:$0xff]  ;;  %v7246_v15 = vld [vmem:[#allocation9 + $0x130] sm:$0xff] }
 0x189   :  { %v773_v51 = vadd.f32 %v772_v47, %v551_v43  ;;  %v7250_v43 = vld [vmem:[#allocation9 + $0x110] sm:$0xff]  ;;  %v7254_v47 = vld [vmem:[#allocation9 + $0x108] sm:$0xff] }
 0x18b   :  { %6003 = vtanh.f32 %v773_v51  ;;  %v7256_v51 = vld [vmem:[#allocation9 + $0x118] sm:$0xff] }
 0x198   :  { %v6004_v60 = vpop.eup %6003 }
 0x199   :  { %v776_v46 = vmul.f32 %v6004_v60, %v775_v58  ;;  %v7264_v58 = vld [vmem:[#allocation9 + $0xf0] sm:$0xff]  ;;  %v7266_v60 = vld [vmem:[#allocation9 + $0x100] sm:$0xff] }
 0x19b   :  { %v7214_v7 = vadd.f32 %v777_v1, %v776_v46  ;;  %v7270_v46 = vld [vmem:[#allocation9 + $0xe0] sm:$0xff]  ;;  %v7274_v1 = vld [vmem:[#allocation9 + $0xd8] sm:$0xff] }
 0x19d   :  { %848 = vmatmul.mubr.f32.vlgmr.msra.gmra.mxu0 %v7214_v7  ;;  %5167 = vmatmul.mubr.f32.vlgmr.msra.gmra.mxu1 %v7214_v7 }
 0x19e   :  { %963 = vmatpush1.msra.mxu0 %v7216_v14  ;;  %5170 = vmatpush3.msra.mxu1 %v7218_v49 }
 0x19f   :  { %964 = vmatprep.subr.mxu0 %v7220_v16  ;;  %5171 = vmatprep.subr.mxu1 %v10088_v0 }
 0x1a0   :  { %965 = vmatpush1.msra.mxu0 %v7224_v11  ;;  %5172 = vmatpush3.msra.mxu1 %v7226_v32 }
 0x1a1   :  { %966 = vmatprep.subr.mxu0 %v7230_v20  ;;  %5173 = vmatprep.subr.mxu1 %v10088_v0 }
 0x1a2   :  { %967 = vmatpush1.msra.mxu0 %v7234_v24  ;;  %5174 = vmatpush3.msra.mxu1 %v7236_v10 }
 0x1a3   :  { %968 = vmatprep.subr.mxu0 %v7240_v26  ;;  %5175 = vmatprep.subr.mxu1 %v10088_v0 }
 0x1a4   :  { %969 = vmatpush1.msra.mxu0 %v7244_v13  ;;  %5176 = vmatpush3.msra.mxu1 %v7246_v15 }
 0x1a5   :  { %970 = vmatprep.subr.mxu0 %v7250_v43  ;;  %5177 = vmatprep.subr.mxu1 %v10088_v0 }
 0x1a6   :  { %971 = vmatpush1.msra.mxu0 %v7254_v47  ;;  %5178 = vmatpush3.msra.mxu1 %v7256_v51 }
 0x1a7   :  { %972 = vmatprep.subr.mxu0 %v7260_v56  ;;  %5179 = vmatprep.subr.mxu1 %v10088_v0 }
 0x1a8   :  { %973 = vmatpush1.msra.mxu0 %v7264_v58  ;;  %5180 = vmatpush3.msra.mxu1 %v7266_v60 }
 0x1a9   :  { %974 = vmatprep.subr.mxu0 %v7270_v46  ;;  %5181 = vmatprep.subr.mxu1 %v10088_v0 }
 0x1aa   :  { %975 = vmatpush1.msra.mxu0 %v7274_v1  ;;  %5182 = vmatpush3.msra.mxu1 %v7276_v6 }
 0x1ab   :  { %976 = vmatprep.subr.mxu0 %v7280_v48  ;;  %5183 = vmatprep.subr.mxu1 %v10088_v0 }
 0x1ac   :  { %977 = vmatpush1.msra.mxu0 %v7284_v45  ;;  %5184 = vmatpush3.msra.mxu1 %v7286_v9 }
 0x1ad   :  { %978 = vmatprep.subr.mxu0 %v7290_v30  ;;  %5185 = vmatprep.subr.mxu1 %v10088_v0 }
 0x1ae   :  { %979 = vmatpush1.msra.mxu0 %v7294_v28  ;;  %5186 = vmatpush3.msra.mxu1 %v7296_v52 }
 0x1af   :  { %980 = vmatprep.subr.mxu0 %v7300_v8  ;;  %5187 = vmatprep.subr.mxu1 %v10088_v0 }
 0x1b0   :  { %981 = vmatpush1.msra.mxu0 %v7304_v4  ;;  %5188 = vmatpush3.msra.mxu1 %v7306_v62 }
 0x1b1   :  { %982 = vmatprep.subr.mxu0 %v7310_v18  ;;  %5189 = vmatprep.subr.mxu1 %v10088_v0 }
 0x1b2   :  { %983 = vmatpush1.msra.mxu0 %v7314_v12  ;;  %5190 = vmatpush3.msra.mxu1 %v7316_v3  ;;  %v7346_v3 = vld [vmem:[#allocation9 + $0x40] sm:$0xff] }
 0x1b3   :  { %984 = vmatprep.subr.mxu0 %v7320_v5  ;;  %5191 = vmatprep.subr.mxu1 %v10088_v0  ;;  %10347 = vst [vmem:[#allocation49_spill] sm:$0xff] %v7346_v3  ;;  %v7350_v5 = vld [vmem:[#allocation9 + $0x20] sm:$0xff] }
 0x1b4   :  { %985 = vmatpush1.msra.mxu0 %v7324_v2  ;;  %5192 = vmatpush3.msra.mxu1 %v7326_v54  ;;  %10348 = vst [vmem:[#allocation50_spill] sm:$0xff] %v7350_v5  ;;  %v7354_v54 = vld [vmem:[#allocation9 + $0x18] sm:$0xff]  ;;  %v7356_v2 = vld [vmem:[#allocation9 + $0x28] sm:$0xff] }
 0x1b5   :  { %986 = vmatprep.subr.mxu0 %v7330_v63  ;;  %5193 = vmatprep.subr.mxu1 %v10088_v0  ;;  %10349 = vst [vmem:[#allocation51_spill] sm:$0xff] %v7354_v54  ;;  %10350 = vst [vmem:[#allocation52_spill] sm:$0xff] %v7356_v2  ;;  %v7360_v63 = vld [vmem:[#allocation9 + $0x8] sm:$0xff] }
 0x1b6   :  { %987 = vmatpush1.msra.mxu0 %v7334_v61  ;;  %5194 = vmatpush3.msra.mxu1 %v7336_v50  ;;  %10351 = vst [vmem:[#allocation53_spill] sm:$0xff] %v7360_v63  ;;  %v7364_v50 = vld [vmem:[#allocation9] sm:$0xff]  ;;  %v7405_v61 = vld [vmem:[#allocation11 + $0x148] sm:$0xff] }
 0x1b7   :  { %988 = vmatprep.subr.mxu0 %v7340_v59  ;;  %5195 = vmatprep.subr.mxu1 %v10088_v0  ;;  %10352 = vst [vmem:[#allocation54_spill] sm:$0xff] %v7364_v50  ;;  %v7368_v59 = vld [vmem:[#allocation9 + $0x10] sm:$0xff]  ;;  %10363 = vst [vmem:[#allocation65_spill] sm:$0xff] %v7405_v61 }
 0x1b8   :  { %989 = vmatpush1.msra.mxu0 %v7344_v57  ;;  %5196 = vmatpush3.msra.mxu1 %v7346_v3  ;;  %10353 = vst [vmem:[#allocation55_spill] sm:$0xff] %v7368_v59  ;;  %v7374_v3 = vld [vmem:[#allocation11 + $0x170] sm:$0xff]  ;;  %v7398_v57 = vld [vmem:[#allocation11 + $0x138] sm:$0xff] }
 0x1b9   :  { %990 = vmatprep.subr.mxu0 %v7350_v5  ;;  %5197 = vmatprep.subr.mxu1 %v10088_v0  ;;  %10354 = vst [vmem:[#allocation56_spill] sm:$0xff] %v7374_v3  ;;  %v7395_v5 = vld [vmem:[#allocation11 + $0x160] sm:$0xff]  ;;  %10361 = vst [vmem:[#allocation63_spill] sm:$0xff] %v7398_v57 }
 0x1ba   :  { %991 = vmatpush1.msra.mxu0 %v7354_v54  ;;  %5198 = vmatpush3.msra.mxu1 %v7356_v2  ;;  %v7379_v54 = vld [vmem:[#allocation11 + $0x168] sm:$0xff]  ;;  %v7385_v2 = vld [vmem:[#allocation11 + $0x178] sm:$0xff]  ;;  %10360 = vst [vmem:[#allocation62_spill] sm:$0xff] %v7395_v5 }
 0x1bb   :  { %992 = vmatprep.subr.mxu0 %v7360_v63  ;;  %5199 = vmatprep.subr.mxu1 %v10088_v0  ;;  %10355 = vst [vmem:[#allocation57_spill] sm:$0xff] %v7379_v54  ;;  %v7383_v63 = vld [vmem:[#allocation11 + $0x158] sm:$0xff]  ;;  %10357 = vst [vmem:[#allocation59_spill] sm:$0xff] %v7385_v2 }
 0x1bc   :  { %993 = vmatpush1.msra.mxu0 %v7364_v50  ;;  %1026 = vmatprep.mubr.f32.mxu0 %v10088_v0  ;;  %10356 = vst [vmem:[#allocation58_spill] sm:$0xff] %v7383_v63  ;;  %v7388_v50 = vld [vmem:[#allocation11 + $0x150] sm:$0xff] }
 0x1bd   :  { %5200 = vmatpush3.msra.mxu1 %v7368_v59  ;;  %5201 = vmatprep.mubr.msk.f32.mxu1 %vm6774_vm0, %v10088_v0  ;;  %10358 = vst [vmem:[#allocation60_spill] sm:$0xff] %v7388_v50  ;;  %v7392_v59 = vld [vmem:[#allocation11 + $0x140] sm:$0xff] }
 0x1be   :  { %1027 = vmatmul.mubr.f32.vlgmr.msra.gmra.mxu0 %v7214_v7  ;;  %5202 = vmatmul.mubr.f32.vlgmr.msra.gmra.mxu1 %v7214_v7  ;;  %10359 = vst [vmem:[#allocation61_spill] sm:$0xff] %v7392_v59 }
 0x1bf   :  { %1103 = vmatprep.subr.mxu0 %v7374_v3  ;;  %5204 = vmatprep.subr.mxu1 %v10088_v0  ;;  %v7402_v3 = vld [vmem:[#allocation11 + $0x128] sm:$0xff] }
 0x1c0   :  { %1104 = vmatpush1.msra.mxu0 %v7379_v54  ;;  %1167 = vmatprep.mubr.f32.mxu0 %v10088_v0  ;;  %10362 = vst [vmem:[#allocation64_spill] sm:$0xff] %v7402_v3  ;;  %v7408_v54 = vld [vmem:[#allocation11 + $0x120] sm:$0xff] }
 0x1c1   :  { %1105 = vmatprep.subr.mxu0 %v7383_v63  ;;  %5205 = vmatpush3.msra.mxu1 %v7385_v2  ;;  %10364 = vst [vmem:[#allocation66_spill] sm:$0xff] %v7408_v54  ;;  %v7412_v63 = vld [vmem:[#allocation11 + $0x110] sm:$0xff] }
 0x1c2   :  { %1106 = vmatpush1.msra.mxu0 %v7388_v50  ;;  %5206 = vmatprep.subr.mxu1 %v10088_v0  ;;  %10365 = vst [vmem:[#allocation67_spill] sm:$0xff] %v7412_v63  ;;  %v7415_v2 = vld [vmem:[#allocation11 + $0x130] sm:$0xff]  ;;  %v7418_v50 = vld [vmem:[#allocation11 + $0x108] sm:$0xff] }
 0x1c3   :  { %1107 = vmatprep.subr.mxu0 %v7392_v59  ;;  %5207 = vmatpush3.msra.mxu1 %v7395_v5  ;;  %10366 = vst [vmem:[#allocation68_spill] sm:$0xff] %v7415_v2  ;;  %10367 = vst [vmem:[#allocation69_spill] sm:$0xff] %v7418_v50  ;;  %v7422_v59 = vld [vmem:[#allocation11 + $0xf8] sm:$0xff] }
 0x1c4   :  { %1108 = vmatpush1.msra.mxu0 %v7398_v57  ;;  %5208 = vmatprep.subr.mxu1 %v10088_v0  ;;  %10368 = vst [vmem:[#allocation70_spill] sm:$0xff] %v7422_v59  ;;  %v7425_v5 = vld [vmem:[#allocation11 + $0x118] sm:$0xff]  ;;  %v7428_v57 = vld [vmem:[#allocation11 + $0xf0] sm:$0xff] }
 0x1c5   :  { %1109 = vmatprep.subr.mxu0 %v7402_v3  ;;  %5209 = vmatpush3.msra.mxu1 %v7405_v61  ;;  %10369 = vst [vmem:[#allocation71_spill] sm:$0xff] %v7425_v5  ;;  %10370 = vst [vmem:[#allocation72_spill] sm:$0xff] %v7428_v57  ;;  %v7432_v3 = vld [vmem:[#allocation11 + $0xe0] sm:$0xff] }
 0x1c6   :  { %1110 = vmatpush1.msra.mxu0 %v7408_v54  ;;  %5210 = vmatprep.subr.mxu1 %v10088_v0  ;;  %10371 = vst [vmem:[#allocation73_spill] sm:$0xff] %v7432_v3  ;;  %v7435_v61 = vld [vmem:[#allocation11 + $0x100] sm:$0xff]  ;;  %v7438_v54 = vld [vmem:[#allocation11 + $0xd8] sm:$0xff] }
 0x1c7   :  { %1111 = vmatprep.subr.mxu0 %v7412_v63  ;;  %5211 = vmatpush3.msra.mxu1 %v7415_v2  ;;  %10372 = vst [vmem:[#allocation74_spill] sm:$0xff] %v7435_v61  ;;  %10373 = vst [vmem:[#allocation75_spill] sm:$0xff] %v7438_v54  ;;  %v7442_v63 = vld [vmem:[#allocation11 + $0xc8] sm:$0xff] }
 0x1c8   :  { %1112 = vmatpush1.msra.mxu0 %v7418_v50  ;;  %5212 = vmatprep.subr.mxu1 %v10088_v0  ;;  %10374 = vst [vmem:[#allocation76_spill] sm:$0xff] %v7442_v63  ;;  %v7445_v2 = vld [vmem:[#allocation11 + $0xe8] sm:$0xff]  ;;  %v7448_v50 = vld [vmem:[#allocation11 + $0xc0] sm:$0xff] }
 0x1c9   :  { %1113 = vmatprep.subr.mxu0 %v7422_v59  ;;  %5213 = vmatpush3.msra.mxu1 %v7425_v5  ;;  %10375 = vst [vmem:[#allocation77_spill] sm:$0xff] %v7445_v2  ;;  %10376 = vst [vmem:[#allocation78_spill] sm:$0xff] %v7448_v50  ;;  %v7452_v59 = vld [vmem:[#allocation11 + $0xb0] sm:$0xff] }
 0x1ca   :  { %1114 = vmatpush1.msra.mxu0 %v7428_v57  ;;  %5214 = vmatprep.subr.mxu1 %v10088_v0  ;;  %10377 = vst [vmem:[#allocation79_spill] sm:$0xff] %v7452_v59  ;;  %v7455_v5 = vld [vmem:[#allocation11 + $0xd0] sm:$0xff]  ;;  %v7458_v57 = vld [vmem:[#allocation11 + $0xa8] sm:$0xff] }
 0x1cb   :  { %1115 = vmatprep.subr.mxu0 %v7432_v3  ;;  %5215 = vmatpush3.msra.mxu1 %v7435_v61  ;;  %10378 = vst [vmem:[#allocation80_spill] sm:$0xff] %v7455_v5  ;;  %10379 = vst [vmem:[#allocation81_spill] sm:$0xff] %v7458_v57  ;;  %v7462_v3 = vld [vmem:[#allocation11 + $0x98] sm:$0xff] }
 0x1cc   :  { %1116 = vmatpush1.msra.mxu0 %v7438_v54  ;;  %5216 = vmatprep.subr.mxu1 %v10088_v0  ;;  %10380 = vst [vmem:[#allocation82_spill] sm:$0xff] %v7462_v3  ;;  %v7465_v61 = vld [vmem:[#allocation11 + $0xb8] sm:$0xff]  ;;  %v7468_v54 = vld [vmem:[#allocation11 + $0x90] sm:$0xff] }
 0x1cd   :  { %1117 = vmatprep.subr.mxu0 %v7442_v63  ;;  %5217 = vmatpush3.msra.mxu1 %v7445_v2  ;;  %10381 = vst [vmem:[#allocation83_spill] sm:$0xff] %v7465_v61  ;;  %10382 = vst [vmem:[#allocation84_spill] sm:$0xff] %v7468_v54  ;;  %v7472_v63 = vld [vmem:[#allocation11 + $0x80] sm:$0xff] }
 0x1ce   :  { %1118 = vmatpush1.msra.mxu0 %v7448_v50  ;;  %5218 = vmatprep.subr.mxu1 %v10088_v0  ;;  %10383 = vst [vmem:[#allocation85_spill] sm:$0xff] %v7472_v63  ;;  %v7475_v2 = vld [vmem:[#allocation11 + $0xa0] sm:$0xff]  ;;  %v7478_v50 = vld [vmem:[#allocation11 + $0x78] sm:$0xff] }
 0x1cf   :  { %1119 = vmatprep.subr.mxu0 %v7452_v59  ;;  %5219 = vmatpush3.msra.mxu1 %v7455_v5  ;;  %10384 = vst [vmem:[#allocation86_spill] sm:$0xff] %v7475_v2  ;;  %10385 = vst [vmem:[#allocation87_spill] sm:$0xff] %v7478_v50  ;;  %v7482_v59 = vld [vmem:[#allocation11 + $0x68] sm:$0xff] }
 0x1d0   :  { %1120 = vmatpush1.msra.mxu0 %v7458_v57  ;;  %5220 = vmatprep.subr.mxu1 %v10088_v0  ;;  %10386 = vst [vmem:[#allocation88_spill] sm:$0xff] %v7482_v59  ;;  %v7485_v5 = vld [vmem:[#allocation11 + $0x88] sm:$0xff]  ;;  %v7488_v57 = vld [vmem:[#allocation11 + $0x60] sm:$0xff] }
 0x1d1   :  { %1121 = vmatprep.subr.mxu0 %v7462_v3  ;;  %5221 = vmatpush3.msra.mxu1 %v7465_v61  ;;  %10387 = vst [vmem:[#allocation89_spill] sm:$0xff] %v7485_v5  ;;  %10388 = vst [vmem:[#allocation90_spill] sm:$0xff] %v7488_v57  ;;  %v7492_v3 = vld [vmem:[#allocation11 + $0x50] sm:$0xff] }
 0x1d2   :  { %1122 = vmatpush1.msra.mxu0 %v7468_v54  ;;  %5222 = vmatprep.subr.mxu1 %v10088_v0  ;;  %10389 = vst [vmem:[#allocation91_spill] sm:$0xff] %v7492_v3  ;;  %v7495_v61 = vld [vmem:[#allocation11 + $0x70] sm:$0xff]  ;;  %v7498_v54 = vld [vmem:[#allocation11 + $0x48] sm:$0xff] }
 0x1d3   :  { %1123 = vmatprep.subr.mxu0 %v7472_v63  ;;  %5223 = vmatpush3.msra.mxu1 %v7475_v2  ;;  %10390 = vst [vmem:[#allocation92_spill] sm:$0xff] %v7495_v61  ;;  %10391 = vst [vmem:[#allocation93_spill] sm:$0xff] %v7498_v54  ;;  %v7502_v63 = vld [vmem:[#allocation11 + $0x38] sm:$0xff] }
 0x1d4   :  { %1124 = vmatpush1.msra.mxu0 %v7478_v50  ;;  %5224 = vmatprep.subr.mxu1 %v10088_v0  ;;  %10392 = vst [vmem:[#allocation94_spill] sm:$0xff] %v7502_v63  ;;  %v7505_v2 = vld [vmem:[#allocation11 + $0x58] sm:$0xff]  ;;  %v7508_v50 = vld [vmem:[#allocation11 + $0x30] sm:$0xff] }
 0x1d5   :  { %1125 = vmatprep.subr.mxu0 %v7482_v59  ;;  %5225 = vmatpush3.msra.mxu1 %v7485_v5  ;;  %v7512_v59 = vld [vmem:[#allocation11 + $0x20] sm:$0xff] }
 0x1d6   :  { %1126 = vmatpush1.msra.mxu0 %v7488_v57  ;;  %5226 = vmatprep.subr.mxu1 %v10088_v0  ;;  %v7515_v5 = vld [vmem:[#allocation11 + $0x40] sm:$0xff]  ;;  %v7518_v57 = vld [vmem:[#allocation11 + $0x18] sm:$0xff] }
 0x1d7   :  { %1127 = vmatprep.subr.mxu0 %v7492_v3  ;;  %5227 = vmatpush3.msra.mxu1 %v7495_v61  ;;  %10393 = vst [vmem:[#allocation95_spill] sm:$0xff] %v7518_v57  ;;  %v7522_v3 = vld [vmem:[#allocation11 + $0x8] sm:$0xff] }
 0x1d8   :  { %1128 = vmatpush1.msra.mxu0 %v7498_v54  ;;  %5228 = vmatprep.subr.mxu1 %v10088_v0  ;;  %10394 = vst [vmem:[#allocation96_spill] sm:$0xff] %v7522_v3  ;;  %v7525_v61 = vld [vmem:[#allocation11 + $0x28] sm:$0xff]  ;;  %v7528_v54 = vld [vmem:[#allocation11] sm:$0xff] }
 0x1d9   :  { %1129 = vmatprep.subr.mxu0 %v7502_v63  ;;  %5229 = vmatpush3.msra.mxu1 %v7505_v2  ;;  %10395 = vst [vmem:[#allocation97_spill] sm:$0xff] %v7528_v54  ;;  %v7533_v63 = vld [vmem:[#allocation11 + $0x10] sm:$0xff] }
 0x1da   :  { %1130 = vmatpush1.msra.mxu0 %v7508_v50  ;;  %5230 = vmatprep.subr.mxu1 %v10088_v0  ;;  %10396 = vst [vmem:[#allocation98_spill] sm:$0xff] %v7533_v63 }
 0x1db   :  { %1131 = vmatprep.subr.mxu0 %v7512_v59  ;;  %5231 = vmatpush3.msra.mxu1 %v7515_v5 }
 0x1dc   :  { %1132 = vmatpush1.msra.mxu0 %v7518_v57  ;;  %5232 = vmatprep.subr.mxu1 %v10088_v0  ;;  %v7543_v57 = vld [vmem:[#allocation6 + $0x170] sm:$0xff] }
 0x1dd   :  { %1133 = vmatprep.subr.mxu0 %v7522_v3  ;;  %5233 = vmatpush3.msra.mxu1 %v7525_v61  ;;  %10397 = vst [vmem:[#allocation99_spill] sm:$0xff] %v7543_v57  ;;  %v7548_v3 = vld [vmem:[#allocation6 + $0x168] sm:$0xff] }
 0x1de   :  { %1134 = vmatpush1.msra.mxu0 %v7528_v54  ;;  %5234 = vmatprep.subr.mxu1 %v10088_v0  ;;  %10398 = vst [vmem:[#allocation100_spill] sm:$0xff] %v7548_v3  ;;  %v7552_v54 = vld [vmem:[#allocation6 + $0x158] sm:$0xff] }
 0x1df   :  { %1168 = vmatmul.mubr.f32.vlgmr.msra.gmra.mxu0 %v10088_v0  ;;  %5235 = vmatpush3.msra.mxu1 %v7533_v63  ;;  %v7556_v63 = vld [vmem:[#allocation6 + $0x150] sm:$0xff] }
 0x1e0   :  { %5236 = vmatprep.mubr.msk.f32.mxu1 %vm6774_vm0, %v10088_v0  ;;  %1271 = vmatprep.subr.mxu0 %v7543_v57  ;;  %10399 = vst [vmem:[#allocation101_spill] sm:$0xff] %v7556_v63  ;;  %v7560_v57 = vld [vmem:[#allocation6 + $0x140] sm:$0xff] }
 0x1e1   :  { %5237 = vmatmul.mubr.f32.vlgmr.msra.gmra.mxu1 %v10088_v0  ;;  %5239 = vmatprep.subr.mxu1 %v10088_v0 }
 0x1e2   :  { %1272 = vmatpush1.msra.mxu0 %v7548_v3  ;;  %5240 = vmatpush3.msra.mxu1 %v7026_v19  ;;  %v7564_v3 = vld [vmem:[#allocation6 + $0x138] sm:$0xff]  ;;  %v7568_v19 = vld [vmem:[#allocation6 + $0x128] sm:$0xff] }
 0x1e3   :  { %1273 = vmatprep.subr.mxu0 %v7552_v54  ;;  %5241 = vmatprep.subr.mxu1 %v10088_v0  ;;  %10400 = vst [vmem:[#allocation102_spill] sm:$0xff] %v7564_v3 }
 0x1e4   :  { %1274 = vmatpush1.msra.mxu0 %v7556_v63  ;;  %5242 = vmatpush3.msra.mxu1 %v7032_v21  ;;  %v7572_v63 = vld [vmem:[#allocation6 + $0x120] sm:$0xff]  ;;  %v7576_v21 = vld [vmem:[#allocation6 + $0x110] sm:$0xff] }
 0x1e5   :  { %1275 = vmatprep.subr.mxu0 %v7560_v57  ;;  %5243 = vmatprep.subr.mxu1 %v10088_v0  ;;  %10401 = vst [vmem:[#allocation103_spill] sm:$0xff] %v7572_v63 }
 0x1e6   :  { %1276 = vmatpush1.msra.mxu0 %v7564_v3  ;;  %5244 = vmatpush3.msra.mxu1 %v7037_v23  ;;  %v7580_v3 = vld [vmem:[#allocation6 + $0x108] sm:$0xff]  ;;  %v7584_v23 = vld [vmem:[#allocation6 + $0xf8] sm:$0xff] }
 0x1e7   :  { %1277 = vmatprep.subr.mxu0 %v7568_v19  ;;  %5245 = vmatprep.subr.mxu1 %v10088_v0  ;;  %10402 = vst [vmem:[#allocation104_spill] sm:$0xff] %v7580_v3 }
 0x1e8   :  { %1278 = vmatpush1.msra.mxu0 %v7572_v63  ;;  %5246 = vmatpush3.msra.mxu1 %v7043_v25  ;;  %v7588_v63 = vld [vmem:[#allocation6 + $0xf0] sm:$0xff]  ;;  %v7592_v25 = vld [vmem:[#allocation6 + $0xe0] sm:$0xff] }
 0x1e9   :  { %1279 = vmatprep.subr.mxu0 %v7576_v21  ;;  %5247 = vmatprep.subr.mxu1 %v10088_v0  ;;  %10403 = vst [vmem:[#allocation105_spill] sm:$0xff] %v7588_v63 }
 0x1ea   :  { %1280 = vmatpush1.msra.mxu0 %v7580_v3  ;;  %5248 = vmatpush3.msra.mxu1 %v7048_v27  ;;  %v7596_v3 = vld [vmem:[#allocation6 + $0xd8] sm:$0xff]  ;;  %v7600_v27 = vld [vmem:[#allocation6 + $0xc8] sm:$0xff] }
 0x1eb   :  { %1281 = vmatprep.subr.mxu0 %v7584_v23  ;;  %5249 = vmatprep.subr.mxu1 %v10088_v0  ;;  %10404 = vst [vmem:[#allocation106_spill] sm:$0xff] %v7596_v3  ;;  %10405 = vst [vmem:[#allocation107_spill] sm:$0xff] %v7600_v27 }
 0x1ec   :  { %1282 = vmatpush1.msra.mxu0 %v7588_v63  ;;  %5250 = vmatpush3.msra.mxu1 %v7054_v29  ;;  %v7604_v63 = vld [vmem:[#allocation6 + $0xc0] sm:$0xff]  ;;  %v7608_v29 = vld [vmem:[#allocation6 + $0xb0] sm:$0xff] }
 0x1ed   :  { %1283 = vmatprep.subr.mxu0 %v7592_v25  ;;  %5251 = vmatprep.subr.mxu1 %v10088_v0  ;;  %10406 = vst [vmem:[#allocation108_spill] sm:$0xff] %v7604_v63  ;;  %10407 = vst [vmem:[#allocation109_spill] sm:$0xff] %v7608_v29 }
 0x1ee   :  { %1284 = vmatpush1.msra.mxu0 %v7596_v3  ;;  %5252 = vmatpush3.msra.mxu1 %v7058_v31  ;;  %v7612_v3 = vld [vmem:[#allocation6 + $0xa8] sm:$0xff]  ;;  %v7616_v31 = vld [vmem:[#allocation6 + $0x98] sm:$0xff] }
 0x1ef   :  { %1285 = vmatprep.subr.mxu0 %v7600_v27  ;;  %5253 = vmatprep.subr.mxu1 %v10088_v0  ;;  %10408 = vst [vmem:[#allocation110_spill] sm:$0xff] %v7612_v3  ;;  %10409 = vst [vmem:[#allocation111_spill] sm:$0xff] %v7616_v31 }
 0x1f0   :  { %1286 = vmatpush1.msra.mxu0 %v7604_v63  ;;  %5254 = vmatpush3.msra.mxu1 %v7064_v33  ;;  %v7620_v63 = vld [vmem:[#allocation6 + $0x90] sm:$0xff]  ;;  %v7624_v33 = vld [vmem:[#allocation6 + $0x80] sm:$0xff] }
 0x1f1   :  { %1287 = vmatprep.subr.mxu0 %v7608_v29  ;;  %5255 = vmatprep.subr.mxu1 %v10088_v0  ;;  %10410 = vst [vmem:[#allocation112_spill] sm:$0xff] %v7620_v63  ;;  %10411 = vst [vmem:[#allocation113_spill] sm:$0xff] %v7624_v33 }
 0x1f2   :  { %1288 = vmatpush1.msra.mxu0 %v7612_v3  ;;  %5256 = vmatpush3.msra.mxu1 %v7070_v34  ;;  %v7628_v3 = vld [vmem:[#allocation6 + $0x78] sm:$0xff]  ;;  %v7632_v34 = vld [vmem:[#allocation6 + $0x68] sm:$0xff] }
 0x1f3   :  { %1289 = vmatprep.subr.mxu0 %v7616_v31  ;;  %5257 = vmatprep.subr.mxu1 %v10088_v0  ;;  %10412 = vst [vmem:[#allocation114_spill] sm:$0xff] %v7628_v3  ;;  %10413 = vst [vmem:[#allocation115_spill] sm:$0xff] %v7632_v34 }
 0x1f4   :  { %1290 = vmatpush1.msra.mxu0 %v7620_v63  ;;  %5258 = vmatpush3.msra.mxu1 %v7076_v35  ;;  %v7636_v63 = vld [vmem:[#allocation6 + $0x60] sm:$0xff]  ;;  %v7640_v35 = vld [vmem:[#allocation6 + $0x50] sm:$0xff] }
 0x1f5   :  { %1291 = vmatprep.subr.mxu0 %v7624_v33  ;;  %5259 = vmatprep.subr.mxu1 %v10088_v0  ;;  %10414 = vst [vmem:[#allocation116_spill] sm:$0xff] %v7636_v63  ;;  %10415 = vst [vmem:[#allocation117_spill] sm:$0xff] %v7640_v35 }
 0x1f6   :  { %1292 = vmatpush1.msra.mxu0 %v7628_v3  ;;  %5260 = vmatpush3.msra.mxu1 %v7082_v36  ;;  %v7644_v3 = vld [vmem:[#allocation6 + $0x48] sm:$0xff]  ;;  %v7648_v36 = vld [vmem:[#allocation6 + $0x38] sm:$0xff] }
 0x1f7   :  { %1293 = vmatprep.subr.mxu0 %v7632_v34  ;;  %5261 = vmatprep.subr.mxu1 %v10088_v0  ;;  %10416 = vst [vmem:[#allocation118_spill] sm:$0xff] %v7644_v3  ;;  %10417 = vst [vmem:[#allocation119_spill] sm:$0xff] %v7648_v36 }
 0x1f8   :  { %1294 = vmatpush1.msra.mxu0 %v7636_v63  ;;  %5262 = vmatpush3.msra.mxu1 %v7088_v37  ;;  %v7652_v63 = vld [vmem:[#allocation6 + $0x30] sm:$0xff]  ;;  %v7656_v37 = vld [vmem:[#allocation6 + $0x20] sm:$0xff] }
 0x1f9   :  { %1295 = vmatprep.subr.mxu0 %v7640_v35  ;;  %5263 = vmatprep.subr.mxu1 %v10088_v0  ;;  %10418 = vst [vmem:[#allocation120_spill] sm:$0xff] %v7652_v63  ;;  %10419 = vst [vmem:[#allocation121_spill] sm:$0xff] %v7656_v37 }
 0x1fa   :  { %1296 = vmatpush1.msra.mxu0 %v7644_v3  ;;  %5264 = vmatpush3.msra.mxu1 %v7094_v38  ;;  %v7660_v3 = vld [vmem:[#allocation6 + $0x18] sm:$0xff]  ;;  %v7664_v38 = vld [vmem:[#allocation6 + $0x8] sm:$0xff] }
 0x1fb   :  { %1297 = vmatprep.subr.mxu0 %v7648_v36  ;;  %5265 = vmatprep.subr.mxu1 %v10088_v0  ;;  %10420 = vst [vmem:[#allocation122_spill] sm:$0xff] %v7660_v3  ;;  %10421 = vst [vmem:[#allocation123_spill] sm:$0xff] %v7664_v38 }
 0x1fc   :  { %1298 = vmatpush1.msra.mxu0 %v7652_v63  ;;  %5266 = vmatpush3.msra.mxu1 %v7100_v39  ;;  %v7668_v63 = vld [vmem:[#allocation6] sm:$0xff] }
 0x1fd   :  { %1299 = vmatprep.subr.mxu0 %v7656_v37  ;;  %5267 = vmatprep.subr.mxu1 %v10088_v0  ;;  %10422 = vst [vmem:[#allocation124_spill] sm:$0xff] %v7668_v63 }
 0x1fe   :  { %1300 = vmatpush1.msra.mxu0 %v7660_v3  ;;  %5268 = vmatpush3.msra.mxu1 %v7106_v40 }
 0x1ff   :  { %1301 = vmatprep.subr.mxu0 %v7664_v38  ;;  %5269 = vmatprep.subr.mxu1 %v10088_v0 }
 0x200   :  { %1302 = vmatpush1.msra.mxu0 %v7668_v63  ;;  %5270 = vmatpush3.msra.mxu1 %v7111_v41 }
 0x201   :  { %1335 = vmatprep.mubr.f32.mxu0 %v10088_v0  ;;  %5271 = vmatprep.mubr.msk.f32.mxu1 %vm6774_vm0, %v10088_v0 }
 0x202   :  { %1434 = vmatprep.subr.mxu0 %v7152_v42  ;;  %5274 = vmatprep.subr.mxu1 %v10088_v0 }
 0x25d   :  { %v849_v39 = vpop.f32.mrf.mxu0  ;;  %v920_v40 = vpop.f32.mrf.mxu1 }
 0x25e   :  { %v924_v38 = vadd.f32 %v849_v39, %v7166_v53  ;;  %v938_v42 = vadd.f32 %v7211_v22, %v920_v40  ;;  %v7688_v22 = vld [vmem:[#allocation12] sm:$0x7]  ;;  %v10447_v39 = vld [vmem:[#allocation58_spill] sm:$0xff] }
 0x25f   :  { %v5168_v3 = vpop.f32.mrf.mxu1  ;;  %v851_v36 = vpop.f32.mrf.mxu0 }
 0x260   :  { %v4568_v37 = vmul.f32 -1.442695, %v924_v38  ;;  %v931_v63 = vadd.f32 %v851_v36, %v7168_v55  ;;  %v10446_v38 = vld [vmem:[#allocation59_spill] sm:$0xff] }
 0x262   :  { %6005 = vpow2.f32 %v4568_v37  ;;  %v4569_v41 = vmul.f32 -1.442695, %v931_v63 }
 0x264   :  { %6007 = vpow2.f32 %v4569_v41  ;;  %v10448_v41 = vld [vmem:[#allocation60_spill] sm:$0xff] }
 0x26f   :  { %v6006_v35 = vpop.eup %6005 }
 0x270   :  { %v928_v34 = vadd.f32 1.0, %v6006_v35 }
 0x271   :  { %v6008_v33 = vpop.eup %6007 }
 0x272   :  { %6009 = vrcp.f32 %v928_v34  ;;  %v935_v31 = vadd.f32 1.0, %v6008_v33  ;;  %v10445_v33 = vld [vmem:[#allocation57_spill] sm:$0xff] }
 0x274   :  { %6011 = vrcp.f32 %v935_v31  ;;  %v10444_v31 = vld [vmem:[#allocation56_spill] sm:$0xff] }
 0x27e   :  { %v7680_v0 = vpop.f32.mrf.mxu1 }
 0x27f   :  { %v6010_v29 = vpop.eup %6009 }
 0x280   :  { %v939_v27 = vmul.f32 %v6010_v29, %v938_v42  ;;  %v5203_v53 = vpop.f32.mrf.mxu1  ;;  %v10449_v42 = vld [vmem:[#allocation62_spill] sm:$0xff] }
 0x281   :  { %v6012_v37 = vpop.eup %6011  ;;  %v7779_v53 = vld [vmem:[#allocation14] ss:$0 sm:$0xff] }
 0x282   :  { %v940_v3 = vadd.f32 %v939_v27, %v7197_v17  ;;  %v942_v55 = vsub.f32 1.0, %v6012_v37  ;;  %v944_v35 = vmul.f32 %v6012_v37, %v7214_v7  ;;  %v10423_v17 = vmov 0.0   ;;  %v1028_v27 = vpop.f32.mrf.mxu0  ;;  %v10451_v37 = vld [vmem:[#allocation63_spill] sm:$0xff] }
 0x283   :  { %v10424_v7 = vsub.s32 0, %v7155_v44 }
 0x284   :  { %6013 = vtanh.f32 %v940_v3  ;;  %v10450_v3 = vld [vmem:[#allocation61_spill] sm:$0xff] }
 0x285   :  { %v7699_v29 = vrot.slane %v7688_v22, %v10424_v7  ;;  %v10455_v7 = vld [vmem:[#allocation64_spill] sm:$0xff] }
 0x287   :  { %10425 = vst [vmem:[#allocation125_spill] sm:$0xff] %v7699_v29 }
 0x291   :  { %v6014_v63 = vpop.eup %6013 }
 0x292   :  { %v943_v36 = vmul.f32 %v6014_v63, %v942_v55  ;;  %v10452_v55 = vld [vmem:[#allocation65_spill] sm:$0xff]  ;;  %v10453_v63 = vsub.s32 2, %v7155_v44 }
 0x294   :  { %v7684_v34 = vadd.f32 %v944_v35, %v943_v36  ;;  %v7788_v36 = vrot.slane %v7688_v22, %v10453_v63  ;;  %v10493_v63 = vld [vmem:[#allocation102_spill] sm:$0xff] }
 0x296   :  { %1336 = vmatmul.mubr.f32.vlgmr.msra.gmra.mxu0 %v7684_v34  ;;  %5272 = vmatmul.mubr.f32.vlgmr.msra.gmra.mxu1 %v7684_v34 }
 0x297   :  { %1435 = vmatpush1.msra.mxu0 %v7216_v14  ;;  %5275 = vmatpush3.msra.mxu1 %v7218_v49  ;;  %v1030_v14 = vpop.f32.mrf.mxu0  ;;  %v1029_v49 = vadd.f32 %v1028_v27, %v7699_v29 }
 0x298   :  { %1436 = vmatprep.subr.mxu0 %v7220_v16  ;;  %5276 = vmatprep.subr.mxu1 %v10423_v17 }
 0x299   :  { %1437 = vmatpush1.msra.mxu0 %v7224_v11  ;;  %5277 = vmatpush3.msra.mxu1 %v7226_v32  ;;  %v10426_v11 = vsub.s32 1, %v7155_v44 }
 0x29a   :  { %1438 = vmatprep.subr.mxu0 %v7230_v20  ;;  %5278 = vmatprep.subr.mxu1 %v10423_v17 }
 0x29b   :  { %1439 = vmatpush1.msra.mxu0 %v7234_v24  ;;  %5279 = vmatpush3.msra.mxu1 %v7236_v10  ;;  %v7717_v32 = vrot.slane %v7688_v22, %v10426_v11  ;;  %v10459_v11 = vld [vmem:[#allocation69_spill] sm:$0xff]  ;;  %v10460_v22 = vld [vmem:[#allocation71_spill] sm:$0xff] }
 0x29c   :  { %1440 = vmatprep.subr.mxu0 %v7240_v26  ;;  %5280 = vmatprep.subr.mxu1 %v10423_v17 }
 0x29d   :  { %1441 = vmatpush1.msra.mxu0 %v7244_v13  ;;  %5281 = vmatpush3.msra.mxu1 %v7246_v15  ;;  %10427 = vst [vmem:[#allocation126_spill] sm:$0xff] %v7717_v32  ;;  %v1031_v15 = vadd.f32 %v1030_v14, %v7717_v32  ;;  %v10456_v14 = vld [vmem:[#allocation66_spill] sm:$0xff] }
 0x29e   :  { %1442 = vmatprep.subr.mxu0 %v7250_v43  ;;  %5282 = vmatprep.subr.mxu1 %v10423_v17 }
 0x29f   :  { %v1169_v16 = vpop.f32.mrf.mxu0  ;;  %1443 = vmatpush1.msra.mxu0 %v7254_v47  ;;  %5283 = vmatpush3.msra.mxu1 %v7256_v51  ;;  %v10438_v51 = vld [vmem:[#allocation50_spill] sm:$0xff] }
 0x2a0   :  { %v1244_v20 = vadd.f32 %v1169_v16, %v1029_v49  ;;  %1444 = vmatprep.subr.mxu0 %v7260_v56  ;;  %5284 = vmatprep.subr.mxu1 %v10423_v17  ;;  %v10439_v56 = vld [vmem:[#allocation51_spill] sm:$0xff]  ;;  %v10457_v49 = vld [vmem:[#allocation68_spill] sm:$0xff] }
 0x2a1   :  { %1445 = vmatpush1.msra.mxu0 %v7264_v58  ;;  %5285 = vmatpush3.msra.mxu1 %v7266_v60  ;;  %v7723_v24 = vpop.f32.mrf.mxu1  ;;  %v1171_v26 = vpop.f32.mrf.mxu0  ;;  %v10440_v58 = vld [vmem:[#allocation52_spill] sm:$0xff]  ;;  %v10441_v60 = vld [vmem:[#allocation53_spill] sm:$0xff]  ;;  %v10458_v16 = vld [vmem:[#allocation67_spill] sm:$0xff] }
 0x2a2   :  { %v4570_v10 = vmul.f32 -1.442695, %v1244_v20  ;;  %1446 = vmatprep.subr.mxu0 %v7270_v46  ;;  %5286 = vmatprep.subr.mxu1 %v10423_v17  ;;  %v1251_v43 = vadd.f32 %v1171_v26, %v1031_v15  ;;  %v10442_v46 = vld [vmem:[#allocation54_spill] sm:$0xff]  ;;  %v1258_v27 = vadd.f32 %v7779_v53, %v7723_v24  ;;  %v1100_v20 = vadd.f32 %v7680_v0, %v7788_v36  ;;  %v10462_v26 = vld [vmem:[#allocation72_spill] sm:$0xff] }
 0x2a3   :  { %1447 = vmatpush1.msra.mxu0 %v7274_v1  ;;  %5287 = vmatpush3.msra.mxu1 %v7276_v6  ;;  %v5238_v13 = vpop.f32.mrf.mxu1  ;;  %v10429_v6 = vld [vmem:[#allocation41_spill] sm:$0xff]  ;;  %v10443_v1 = vld [vmem:[#allocation55_spill] sm:$0xff]  ;;  %v10467_v0 = vld [vmem:[#allocation76_spill] sm:$0xff] }
 0x2a4   :  { %6015 = vpow2.f32 %v4570_v10  ;;  %1448 = vmatprep.subr.mxu0 %v7280_v48  ;;  %5288 = vmatprep.subr.mxu1 %v10423_v17  ;;  %v10428_v48 = vld [vmem:[#allocation40_spill] sm:$0xff]  ;;  %v10461_v10 = vld [vmem:[#allocation70_spill] sm:$0xff] }
 0x2a5   :  { %1449 = vmatpush1.msra.mxu0 %v7284_v45  ;;  %5289 = vmatpush3.msra.mxu1 %v7286_v9  ;;  %v4571_v45 = vmul.f32 -1.442695, %v1251_v43  ;;  %v10436_v9 = vld [vmem:[#allocation48_spill] sm:$0xff]  ;;  %10454 = vst [vmem:[#allocation40_spill] sm:$0xff] %v7788_v36  ;;  %v10463_v13 = vld [vmem:[#allocation74_spill] sm:$0xff]  ;;  %v10464_v43 = vld [vmem:[#allocation73_spill] sm:$0xff] }
 0x2a6   :  { %1450 = vmatprep.subr.mxu0 %v7290_v30  ;;  %5290 = vmatprep.subr.mxu1 %v10423_v17  ;;  %v10434_v30 = vld [vmem:[#allocation46_spill] sm:$0xff] }
 0x2a7   :  { %1451 = vmatpush1.msra.mxu0 %v7294_v28  ;;  %5291 = vmatpush3.msra.mxu1 %v7296_v52  ;;  %v10431_v28 = vld [vmem:[#allocation43_spill] sm:$0xff]  ;;  %6017 = vpow2.f32 %v4571_v45  ;;  %v10437_v52 = vld [vmem:[#allocation49_spill] sm:$0xff] }
 0x2a8   :  { %1452 = vmatprep.subr.mxu0 %v7300_v8  ;;  %5292 = vmatprep.subr.mxu1 %v10423_v17  ;;  %v10430_v8 = vld [vmem:[#allocation42_spill] sm:$0xff]  ;;  %v10465_v45 = vld [vmem:[#allocation75_spill] sm:$0xff] }
 0x2a9   :  { %1453 = vmatpush1.msra.mxu0 %v7304_v4  ;;  %5293 = vmatpush3.msra.mxu1 %v7306_v62  ;;  %v10432_v4 = vld [vmem:[#allocation44_spill] sm:$0xff] }
 0x2aa   :  { %1454 = vmatprep.subr.mxu0 %v7310_v18  ;;  %5294 = vmatprep.subr.mxu1 %v10423_v17  ;;  %v10433_v18 = vld [vmem:[#allocation45_spill] sm:$0xff] }
 0x2ab   :  { %1455 = vmatpush1.msra.mxu0 %v7314_v12  ;;  %5295 = vmatpush3.msra.mxu1 %v10428_v48  ;;  %v10435_v12 = vld [vmem:[#allocation47_spill] sm:$0xff]  ;;  %v10466_v48 = vld [vmem:[#allocation77_spill] sm:$0xff] }
 0x2ac   :  { %1456 = vmatprep.subr.mxu0 %v10429_v6  ;;  %5296 = vmatprep.subr.mxu1 %v10423_v17  ;;  %v10468_v6 = vld [vmem:[#allocation78_spill] sm:$0xff] }
 0x2ad   :  { %1457 = vmatpush1.msra.mxu0 %v10430_v8  ;;  %5297 = vmatpush3.msra.mxu1 %v10431_v28  ;;  %v10469_v8 = vld [vmem:[#allocation80_spill] sm:$0xff]  ;;  %v10470_v28 = vld [vmem:[#allocation79_spill] sm:$0xff] }
 0x2ae   :  { %1458 = vmatprep.subr.mxu0 %v10432_v4  ;;  %5298 = vmatprep.subr.mxu1 %v10423_v17  ;;  %v10471_v4 = vld [vmem:[#allocation81_spill] sm:$0xff] }
 0x2af   :  { %1459 = vmatpush1.msra.mxu0 %v10433_v18  ;;  %5299 = vmatpush3.msra.mxu1 %v10434_v30  ;;  %v10472_v18 = vld [vmem:[#allocation83_spill] sm:$0xff]  ;;  %v10473_v30 = vld [vmem:[#allocation82_spill] sm:$0xff] }
 0x2b0   :  { %1460 = vmatprep.subr.mxu0 %v10435_v12  ;;  %5300 = vmatprep.subr.mxu1 %v10423_v17  ;;  %v10474_v12 = vld [vmem:[#allocation84_spill] sm:$0xff] }
 0x2b1   :  { %v6016_v62 = vpop.eup %6015  ;;  %1461 = vmatpush1.msra.mxu0 %v10436_v9  ;;  %5301 = vmatpush3.msra.mxu1 %v10437_v52  ;;  %v10476_v9 = vld [vmem:[#allocation85_spill] sm:$0xff]  ;;  %v10477_v52 = vld [vmem:[#allocation87_spill] sm:$0xff] }
 0x2b2   :  { %v1248_v47 = vadd.f32 1.0, %v6016_v62  ;;  %1462 = vmatprep.subr.mxu0 %v10438_v51  ;;  %5302 = vmatprep.subr.mxu1 %v10423_v17  ;;  %v10475_v62 = vld [vmem:[#allocation86_spill] sm:$0xff]  ;;  %v10479_v51 = vld [vmem:[#allocation88_spill] sm:$0xff] }
 0x2b3   :  { %1463 = vmatpush1.msra.mxu0 %v10439_v56  ;;  %5303 = vmatpush3.msra.mxu1 %v10440_v58  ;;  %v10480_v58 = vld [vmem:[#allocation90_spill] sm:$0xff] }
 0x2b4   :  { %6019 = vrcp.f32 %v1248_v47  ;;  %1464 = vmatprep.subr.mxu0 %v10441_v60  ;;  %5304 = vmatprep.subr.mxu1 %v10423_v17  ;;  %v6018_v40 = vpop.eup %6017  ;;  %v10478_v47 = vld [vmem:[#allocation89_spill] sm:$0xff]  ;;  %v10481_v60 = vld [vmem:[#allocation92_spill] sm:$0xff] }
 0x2b5   :  { %1465 = vmatpush1.msra.mxu0 %v10442_v46  ;;  %1498 = vmatprep.mubr.f32.mxu0 %v10423_v17  ;;  %v1255_v35 = vadd.f32 1.0, %v6018_v40  ;;  %v10482_v46 = vld [vmem:[#allocation91_spill] sm:$0xff] }
 0x2b6   :  { %5305 = vmatpush3.msra.mxu1 %v10443_v1  ;;  %5306 = vmatprep.mubr.msk.f32.mxu1 %vm6774_vm0, %v10423_v17  ;;  %v10483_v1 = vld [vmem:[#allocation93_spill] sm:$0xff] }
 0x2b7   :  { %1499 = vmatmul.mubr.f32.vlgmr.msra.gmra.mxu0 %v7684_v34  ;;  %5307 = vmatmul.mubr.f32.vlgmr.msra.gmra.mxu1 %v7684_v34  ;;  %6021 = vrcp.f32 %v1255_v35  ;;  %v7868_v35 = vld [vmem:[#allocation6 + $0x148] sm:$0xff] }
 0x2b8   :  { %1575 = vmatprep.subr.mxu0 %v10444_v31  ;;  %5309 = vmatprep.subr.mxu1 %v10423_v17  ;;  %v10484_v31 = vld [vmem:[#allocation94_spill] sm:$0xff] }
 0x2b9   :  { %1576 = vmatpush1.msra.mxu0 %v10445_v33  ;;  %5310 = vmatpush3.msra.mxu1 %v10446_v38 }
 0x2ba   :  { %1577 = vmatprep.subr.mxu0 %v10447_v39  ;;  %5311 = vmatprep.subr.mxu1 %v10423_v17 }
 0x2bb   :  { %1578 = vmatpush1.msra.mxu0 %v10448_v41  ;;  %5312 = vmatpush3.msra.mxu1 %v10449_v42  ;;  %v10485_v41 = vld [vmem:[#allocation95_spill] sm:$0xff] }
 0x2bc   :  { %1579 = vmatprep.subr.mxu0 %v10450_v3  ;;  %5313 = vmatprep.subr.mxu1 %v10423_v17  ;;  %v10488_v3 = vld [vmem:[#allocation97_spill] sm:$0xff] }
 0x2bd   :  { %1580 = vmatpush1.msra.mxu0 %v10451_v37  ;;  %5314 = vmatpush3.msra.mxu1 %v10452_v55  ;;  %v10492_v37 = vld [vmem:[#allocation101_spill] sm:$0xff] }
 0x2be   :  { %1581 = vmatprep.subr.mxu0 %v10455_v7  ;;  %5315 = vmatprep.subr.mxu1 %v10423_v17  ;;  %v7862_v55 = vld [vmem:[#allocation6 + $0x160] sm:$0xff]  ;;  %v7880_v7 = vld [vmem:[#allocation6 + $0x118] sm:$0xff] }
 0x2bf   :  { %1582 = vmatpush1.msra.mxu0 %v10456_v14  ;;  %5316 = vmatpush3.msra.mxu1 %v10457_v49  ;;  %v7886_v14 = vld [vmem:[#allocation6 + $0x100] sm:$0xff]  ;;  %v7892_v49 = vld [vmem:[#allocation6 + $0xe8] sm:$0xff] }
 0x2c0   :  { %1583 = vmatprep.subr.mxu0 %v10458_v16  ;;  %5317 = vmatprep.subr.mxu1 %v10423_v17  ;;  %v10498_v16 = vld [vmem:[#allocation107_spill] sm:$0xff] }
 0x2c1   :  { %v6020_v44 = vpop.eup %6019  ;;  %1584 = vmatpush1.msra.mxu0 %v10459_v11  ;;  %5318 = vmatpush3.msra.mxu1 %v10460_v22  ;;  %v10500_v11 = vld [vmem:[#allocation109_spill] sm:$0xff]  ;;  %v7904_v22 = vld [vmem:[#allocation6 + $0xb8] sm:$0xff] }
 0x2c2   :  { %v1259_v24 = vmul.f32 %v6020_v44, %v1258_v27  ;;  %1585 = vmatprep.subr.mxu0 %v10461_v10  ;;  %5319 = vmatprep.subr.mxu1 %v10423_v17  ;;  %v7874_v27 = vld [vmem:[#allocation6 + $0x130] sm:$0xff]  ;;  %v7910_v10 = vld [vmem:[#allocation6 + $0xa0] sm:$0xff] }
 0x2c3   :  { %1586 = vmatpush1.msra.mxu0 %v10462_v26  ;;  %5320 = vmatpush3.msra.mxu1 %v10463_v13  ;;  %v7898_v44 = vld [vmem:[#allocation6 + $0xd0] sm:$0xff]  ;;  %v10504_v26 = vld [vmem:[#allocation113_spill] sm:$0xff] }
 0x2c4   :  { %v1260_v15 = vadd.f32 %v1259_v24, %v1100_v20  ;;  %1587 = vmatprep.subr.mxu0 %v10464_v43  ;;  %5321 = vmatprep.subr.mxu1 %v10423_v17  ;;  %v6022_v56 = vpop.eup %6021  ;;  %v10502_v20 = vld [vmem:[#allocation111_spill] sm:$0xff]  ;;  %v10503_v24 = vld [vmem:[#allocation112_spill] sm:$0xff]  ;;  %v10505_v13 = vld [vmem:[#allocation114_spill] sm:$0xff] }
 0x2c5   :  { %1588 = vmatpush1.msra.mxu0 %v10465_v45  ;;  %5322 = vmatpush3.msra.mxu1 %v10466_v48  ;;  %v1262_v33 = vsub.f32 1.0, %v6022_v56  ;;  %v1264_v40 = vmul.f32 0.0, %v6022_v56  ;;  %v10506_v43 = vld [vmem:[#allocation115_spill] sm:$0xff]  ;;  %v10507_v45 = vld [vmem:[#allocation116_spill] sm:$0xff] }
 0x2c6   :  { %6023 = vtanh.f32 %v1260_v15  ;;  %1589 = vmatprep.subr.mxu0 %v10467_v0  ;;  %5323 = vmatprep.subr.mxu1 %v10423_v17  ;;  %v7916_v15 = vld [vmem:[#allocation6 + $0x88] sm:$0xff]  ;;  %v7922_v48 = vld [vmem:[#allocation6 + $0x70] sm:$0xff] }
 0x2c7   :  { %1590 = vmatpush1.msra.mxu0 %v10468_v6  ;;  %5324 = vmatpush3.msra.mxu1 %v10469_v8  ;;  %v10508_v0 = vld [vmem:[#allocation117_spill] sm:$0xff]  ;;  %v10509_v6 = vld [vmem:[#allocation118_spill] sm:$0xff]  ;;  %v7928_v8 = vld [vmem:[#allocation6 + $0x58] sm:$0xff] }
 0x2c8   :  { %1591 = vmatprep.subr.mxu0 %v10470_v28  ;;  %5325 = vmatprep.subr.mxu1 %v10423_v17  ;;  %v10510_v28 = vld [vmem:[#allocation119_spill] sm:$0xff] }
 0x2c9   :  { %1592 = vmatpush1.msra.mxu0 %v10471_v4  ;;  %5326 = vmatpush3.msra.mxu1 %v10472_v18  ;;  %v10511_v4 = vld [vmem:[#allocation120_spill] sm:$0xff] }
 0x2ca   :  { %1593 = vmatprep.subr.mxu0 %v10473_v30  ;;  %5327 = vmatprep.subr.mxu1 %v10423_v17  ;;  %v7934_v18 = vld [vmem:[#allocation6 + $0x40] sm:$0xff] }
 0x2cb   :  { %1594 = vmatpush1.msra.mxu0 %v10474_v12  ;;  %5328 = vmatpush3.msra.mxu1 %v10475_v62  ;;  %v10512_v30 = vld [vmem:[#allocation121_spill] sm:$0xff]  ;;  %v10513_v12 = vld [vmem:[#allocation122_spill] sm:$0xff] }
 0x2cc   :  { %1595 = vmatprep.subr.mxu0 %v10476_v9  ;;  %5329 = vmatprep.subr.mxu1 %v10423_v17  ;;  %v7940_v62 = vld [vmem:[#allocation6 + $0x28] sm:$0xff]  ;;  %v10514_v9 = vld [vmem:[#allocation123_spill] sm:$0xff] }
 0x2cd   :  { %1596 = vmatpush1.msra.mxu0 %v10477_v52  ;;  %5330 = vmatpush3.msra.mxu1 %v10478_v47  ;;  %v10515_v52 = vld [vmem:[#allocation124_spill] sm:$0xff]  ;;  %v7946_v47 = vld [vmem:[#allocation6 + $0x10] sm:$0xff] }
 0x2ce   :  { %1597 = vmatprep.subr.mxu0 %v10479_v51  ;;  %5331 = vmatprep.subr.mxu1 %v10423_v17  ;;  %v7952_v51 = vld [vmem:[#allocation9 + $0x170] sm:$0xff] }
 0x2cf   :  { %1598 = vmatpush1.msra.mxu0 %v10480_v58  ;;  %5332 = vmatpush3.msra.mxu1 %v10481_v60  ;;  %v10516_v60 = vld [vmem:[#allocation22_spill] sm:$0xff] }
 0x2d0   :  { %1599 = vmatprep.subr.mxu0 %v10482_v46  ;;  %5333 = vmatprep.subr.mxu1 %v10423_v17 }
 0x2d1   :  { %1600 = vmatpush1.msra.mxu0 %v10483_v1  ;;  %5334 = vmatpush3.msra.mxu1 %v7505_v2  ;;  %v10486_v2 = vld [vmem:[#allocation96_spill] sm:$0xff] }
 0x2d2   :  { %1601 = vmatprep.subr.mxu0 %v10484_v31  ;;  %5335 = vmatprep.subr.mxu1 %v10423_v17 }
 0x2d3   :  { %v6024_v38 = vpop.eup %6023  ;;  %1602 = vmatpush1.msra.mxu0 %v7508_v50  ;;  %5336 = vmatpush3.msra.mxu1 %v7515_v5  ;;  %v10489_v5 = vld [vmem:[#allocation98_spill] sm:$0xff]  ;;  %v7856_v50 = vld [vmem:[#allocation6 + $0x178] sm:$0xff] }
 0x2d4   :  { %1603 = vmatprep.subr.mxu0 %v7512_v59  ;;  %5337 = vmatprep.subr.mxu1 %v10423_v17  ;;  %v1263_v39 = vmul.f32 %v6024_v38, %v1262_v33  ;;  %v10490_v59 = vld [vmem:[#allocation99_spill] sm:$0xff] }
 0x2d5   :  { %1604 = vmatpush1.msra.mxu0 %v10485_v41  ;;  %5338 = vmatpush3.msra.mxu1 %v7525_v61  ;;  %v10491_v61 = vld [vmem:[#allocation100_spill] sm:$0xff]  ;;  %v10517_v38 = vld [vmem:[#allocation23_spill] sm:$0xff] }
 0x2d6   :  { %1605 = vmatprep.subr.mxu0 %v10486_v2  ;;  %5339 = vmatprep.subr.mxu1 %v10423_v17  ;;  %v7844_v42 = vadd.f32 %v1264_v40, %v1263_v39 }
 0x2d7   :  { %1606 = vmatpush1.msra.mxu0 %v10488_v3  ;;  %1639 = vmatprep.mubr.f32.mxu0 %v10423_v17 }
 0x2d8   :  { %10487 = vst [vmem:[#allocation41_spill] sm:$0xff] %v7844_v42  ;;  %5340 = vmatpush3.msra.mxu1 %v10489_v5  ;;  %5341 = vmatprep.mubr.msk.f32.mxu1 %vm6774_vm0, %v10423_v17 }
 0x2d9   :  { %1640 = vmatmul.mubr.f32.vlgmr.msra.gmra.mxu0 %v7844_v42  ;;  %5342 = vmatmul.mubr.f32.vlgmr.msra.gmra.mxu1 %v7844_v42 }
 0x2da   :  { %1744 = vmatprep.subr.mxu0 %v10490_v59  ;;  %5344 = vmatprep.subr.mxu1 %v10423_v17  ;;  %v7958_v59 = vld [vmem:[#allocation8] ss:$0 sm:$0xff] }
 0x2db   :  { %1745 = vmatpush1.msra.mxu0 %v10491_v61  ;;  %5345 = vmatpush3.msra.mxu1 %v7856_v50 }
 0x2dc   :  { %1746 = vmatprep.subr.mxu0 %v7552_v54  ;;  %5346 = vmatprep.subr.mxu1 %v10423_v17  ;;  %v10494_v54 = vld [vmem:[#allocation103_spill] sm:$0xff] }
 0x2dd   :  { %1747 = vmatpush1.msra.mxu0 %v10492_v37  ;;  %5347 = vmatpush3.msra.mxu1 %v7862_v55 }
 0x2de   :  { %1748 = vmatprep.subr.mxu0 %v7560_v57  ;;  %5348 = vmatprep.subr.mxu1 %v10423_v17  ;;  %v10495_v57 = vld [vmem:[#allocation104_spill] sm:$0xff] }
 0x2df   :  { %1749 = vmatpush1.msra.mxu0 %v10493_v63  ;;  %5349 = vmatpush3.msra.mxu1 %v7868_v35 }
 0x2e0   :  { %1750 = vmatprep.subr.mxu0 %v7568_v19  ;;  %5350 = vmatprep.subr.mxu1 %v10423_v17  ;;  %v10496_v19 = vld [vmem:[#allocation105_spill] sm:$0xff] }
 0x2e1   :  { %1751 = vmatpush1.msra.mxu0 %v10494_v54  ;;  %5351 = vmatpush3.msra.mxu1 %v7874_v27 }
 0x2e2   :  { %1752 = vmatprep.subr.mxu0 %v7576_v21  ;;  %5352 = vmatprep.subr.mxu1 %v10423_v17  ;;  %v10497_v21 = vld [vmem:[#allocation106_spill] sm:$0xff] }
 0x2e3   :  { %1753 = vmatpush1.msra.mxu0 %v10495_v57  ;;  %5353 = vmatpush3.msra.mxu1 %v7880_v7 }
 0x2e4   :  { %1754 = vmatprep.subr.mxu0 %v7584_v23  ;;  %5354 = vmatprep.subr.mxu1 %v10423_v17  ;;  %v10499_v23 = vld [vmem:[#allocation108_spill] sm:$0xff] }
 0x2e5   :  { %1755 = vmatpush1.msra.mxu0 %v10496_v19  ;;  %5355 = vmatpush3.msra.mxu1 %v7886_v14  ;;  %v10518_v19 = vld [vmem:[#allocation35_spill] sm:$0xff] }
 0x2e6   :  { %1756 = vmatprep.subr.mxu0 %v7592_v25  ;;  %5356 = vmatprep.subr.mxu1 %v10423_v17  ;;  %v10501_v25 = vld [vmem:[#allocation110_spill] sm:$0xff] }
 0x2e7   :  { %1757 = vmatpush1.msra.mxu0 %v10497_v21  ;;  %5357 = vmatpush3.msra.mxu1 %v7892_v49 }
 0x2e8   :  { %1758 = vmatprep.subr.mxu0 %v10498_v16  ;;  %5358 = vmatprep.subr.mxu1 %v10423_v17 }
 0x2e9   :  { %1759 = vmatpush1.msra.mxu0 %v10499_v23  ;;  %5359 = vmatpush3.msra.mxu1 %v7898_v44 }
 0x2ea   :  { %1760 = vmatprep.subr.mxu0 %v10500_v11  ;;  %5360 = vmatprep.subr.mxu1 %v10423_v17 }
 0x2eb   :  { %1761 = vmatpush1.msra.mxu0 %v10501_v25  ;;  %5361 = vmatpush3.msra.mxu1 %v7904_v22 }
 0x2ec   :  { %1762 = vmatprep.subr.mxu0 %v10502_v20  ;;  %5362 = vmatprep.subr.mxu1 %v10423_v17 }
 0x2ed   :  { %1763 = vmatpush1.msra.mxu0 %v10503_v24  ;;  %5363 = vmatpush3.msra.mxu1 %v7910_v10 }
 0x2ee   :  { %1764 = vmatprep.subr.mxu0 %v10504_v26  ;;  %5364 = vmatprep.subr.mxu1 %v10423_v17  ;;  %v7969_v26 = vld [vmem:[#allocation9 + $0x168] sm:$0xff] }
 0x2ef   :  { %1765 = vmatpush1.msra.mxu0 %v10505_v13  ;;  %5365 = vmatpush3.msra.mxu1 %v7916_v15  ;;  %v7972_v13 = vld [vmem:[#allocation9 + $0x178] sm:$0xff] }
 0x2f0   :  { %1766 = vmatprep.subr.mxu0 %v10506_v43  ;;  %5366 = vmatprep.subr.mxu1 %v10423_v17  ;;  %v7975_v43 = vld [vmem:[#allocation9 + $0x158] sm:$0xff] }
 0x2f1   :  { %1767 = vmatpush1.msra.mxu0 %v10507_v45  ;;  %5367 = vmatpush3.msra.mxu1 %v7922_v48  ;;  %v7982_v45 = vld [vmem:[#allocation9 + $0x160] sm:$0xff] }
 0x2f2   :  { %1768 = vmatprep.subr.mxu0 %v10508_v0  ;;  %5368 = vmatprep.subr.mxu1 %v10423_v17 }
 0x2f3   :  { %1769 = vmatpush1.msra.mxu0 %v10509_v6  ;;  %5369 = vmatpush3.msra.mxu1 %v7928_v8  ;;  %v7985_v6 = vld [vmem:[#allocation9 + $0x140] sm:$0xff] }
 0x2f4   :  { %1770 = vmatprep.subr.mxu0 %v10510_v28  ;;  %5370 = vmatprep.subr.mxu1 %v10423_v17  ;;  %v7989_v28 = vld [vmem:[#allocation9 + $0x138] sm:$0xff] }
 0x2f5   :  { %1771 = vmatpush1.msra.mxu0 %v10511_v4  ;;  %5371 = vmatpush3.msra.mxu1 %v7934_v18  ;;  %v7992_v4 = vld [vmem:[#allocation9 + $0x148] sm:$0xff] }
 0x2f6   :  { %1772 = vmatprep.subr.mxu0 %v10512_v30  ;;  %5372 = vmatprep.subr.mxu1 %v10423_v17  ;;  %v7995_v30 = vld [vmem:[#allocation9 + $0x128] sm:$0xff] }
 0x2f7   :  { %1773 = vmatpush1.msra.mxu0 %v10513_v12  ;;  %5373 = vmatpush3.msra.mxu1 %v7940_v62  ;;  %v7999_v12 = vld [vmem:[#allocation9 + $0x120] sm:$0xff] }
 0x2f8   :  { %1774 = vmatprep.subr.mxu0 %v10514_v9  ;;  %5374 = vmatprep.subr.mxu1 %v10423_v17  ;;  %v8002_v9 = vld [vmem:[#allocation9 + $0x130] sm:$0xff] }
 0x2f9   :  { %1775 = vmatpush1.msra.mxu0 %v10515_v52  ;;  %5375 = vmatpush3.msra.mxu1 %v7946_v47 }
 0x2fa   :  { %1808 = vmatprep.mubr.f32.mxu0 %v10423_v17  ;;  %5376 = vmatprep.mubr.msk.f32.mxu1 %vm6774_vm0, %v10423_v17 }
 0x2fb   :  { %1907 = vmatprep.subr.mxu0 %v7952_v51  ;;  %5379 = vmatprep.subr.mxu1 %v10423_v17 }
 0x356   :  { %v1337_v56 = vpop.f32.mrf.mxu0  ;;  %v1408_v58 = vpop.f32.mrf.mxu1 }
 0x357   :  { %v1412_v46 = vadd.f32 %v1337_v56, %v10516_v60  ;;  %v1426_v61 = vadd.f32 %v7958_v59, %v1408_v58  ;;  %v8005_v56 = vld [vmem:[#allocation9 + $0x110] sm:$0xff]  ;;  %v8010_v60 = vld [vmem:[#allocation9 + $0x108] sm:$0xff] }
 0x358   :  { %v5273_v1 = vpop.f32.mrf.mxu1  ;;  %v1339_v33 = vpop.f32.mrf.mxu0 }
 0x359   :  { %v4572_v31 = vmul.f32 -1.442695, %v1412_v46  ;;  %v1419_v39 = vadd.f32 %v1339_v33, %v10517_v38  ;;  %v8013_v46 = vld [vmem:[#allocation9 + $0x118] sm:$0xff] }
 0x35a   :  { %v8018_v33 = vld [vmem:[#allocation9 + $0xf8] sm:$0xff] }
 0x35b   :  { %6025 = vpow2.f32 %v4572_v31  ;;  %v4573_v40 = vmul.f32 -1.442695, %v1419_v39  ;;  %v8022_v39 = vld [vmem:[#allocation9 + $0xf0] sm:$0xff] }
 0x35d   :  { %6027 = vpow2.f32 %v4573_v40  ;;  %v8025_v40 = vld [vmem:[#allocation9 + $0x100] sm:$0xff] }
 0x368   :  { %v6026_v41 = vpop.eup %6025 }
 0x369   :  { %v1416_v2 = vadd.f32 1.0, %v6026_v41 }
 0x36a   :  { %v6028_v3 = vpop.eup %6027 }
 0x36b   :  { %6029 = vrcp.f32 %v1416_v2  ;;  %v1423_v5 = vadd.f32 1.0, %v6028_v3  ;;  %v8028_v2 = vld [vmem:[#allocation9 + $0xe0] sm:$0xff] }
 0x36d   :  { %6031 = vrcp.f32 %v1423_v5  ;;  %v8032_v5 = vld [vmem:[#allocation9 + $0xd8] sm:$0xff] }
 0x377   :  { %v7961_v37 = vpop.f32.mrf.mxu1  ;;  %v1500_v0 = vpop.f32.mrf.mxu0 }
 0x378   :  { %v6030_v63 = vpop.eup %6029  ;;  %v1501_v58 = vadd.f32 %v1500_v0, %v7699_v29  ;;  %v8063_v0 = vld [vmem:[#allocation9 + $0x90] sm:$0xff] }
 0x379   :  { %v1427_v54 = vmul.f32 %v6030_v63, %v1426_v61  ;;  %v5308_v57 = vpop.f32.mrf.mxu1  ;;  %v1502_v52 = vpop.f32.mrf.mxu0  ;;  %v8035_v61 = vld [vmem:[#allocation9 + $0xe8] sm:$0xff] }
 0x37a   :  { %v6032_v16 = vpop.eup %6031  ;;  %v1503_v57 = vadd.f32 %v1502_v52, %v7717_v32  ;;  %v8066_v52 = vld [vmem:[#allocation9 + $0xa0] sm:$0xff] }
 0x37b   :  { %v1428_v21 = vadd.f32 %v1427_v54, %v10518_v19  ;;  %v1430_v23 = vsub.f32 1.0, %v6032_v16  ;;  %v1432_v20 = vmul.f32 %v6032_v16, %v7684_v34  ;;  %v7979_v34 = vld [vmem:[#allocation9 + $0x150] sm:$0xff]  ;;  %v8038_v54 = vld [vmem:[#allocation9 + $0xc8] sm:$0xff]  ;;  %v8043_v19 = vld [vmem:[#allocation9 + $0xc0] sm:$0xff] }
 0x37c   :  { %v8049_v16 = vld [vmem:[#allocation9 + $0xb0] sm:$0xff] }
 0x37d   :  { %6033 = vtanh.f32 %v1428_v21  ;;  %v8046_v21 = vld [vmem:[#allocation9 + $0xd0] sm:$0xff] }
 0x38a   :  { %v6034_v11 = vpop.eup %6033 }
 0x38b   :  { %v1431_v25 = vmul.f32 %v6034_v11, %v1430_v23  ;;  %v8053_v11 = vld [vmem:[#allocation9 + $0xa8] sm:$0xff] }
 0x38d   :  { %v7965_v24 = vadd.f32 %v1432_v20, %v1431_v25  ;;  %v8056_v25 = vld [vmem:[#allocation9 + $0xb8] sm:$0xff] }
 0x38e   :  { %v8059_v20 = vld [vmem:[#allocation9 + $0x98] sm:$0xff] }
 0x38f   :  { %1809 = vmatmul.mubr.f32.vlgmr.msra.gmra.mxu0 %v7965_v24  ;;  %5377 = vmatmul.mubr.f32.vlgmr.msra.gmra.mxu1 %v7965_v24 }
 0x390   :  { %1908 = vmatpush1.msra.mxu0 %v7969_v26  ;;  %5380 = vmatpush3.msra.mxu1 %v7972_v13 }
 0x391   :  { %1909 = vmatprep.subr.mxu0 %v7975_v43  ;;  %5381 = vmatprep.subr.mxu1 %v10423_v17 }
 0x392   :  { %1910 = vmatpush1.msra.mxu0 %v7979_v34  ;;  %5382 = vmatpush3.msra.mxu1 %v7982_v45 }
 0x393   :  { %1911 = vmatprep.subr.mxu0 %v7985_v6  ;;  %5383 = vmatprep.subr.mxu1 %v10423_v17 }
 0x394   :  { %1912 = vmatpush1.msra.mxu0 %v7989_v28  ;;  %5384 = vmatpush3.msra.mxu1 %v7992_v4 }
 0x395   :  { %1913 = vmatprep.subr.mxu0 %v7995_v30  ;;  %5385 = vmatprep.subr.mxu1 %v10423_v17 }
 0x396   :  { %1914 = vmatpush1.msra.mxu0 %v7999_v12  ;;  %5386 = vmatpush3.msra.mxu1 %v8002_v9 }
 0x397   :  { %1915 = vmatprep.subr.mxu0 %v8005_v56  ;;  %5387 = vmatprep.subr.mxu1 %v10423_v17 }
 0x398   :  { %1916 = vmatpush1.msra.mxu0 %v8010_v60  ;;  %5388 = vmatpush3.msra.mxu1 %v8013_v46 }
 0x399   :  { %v1641_v1 = vpop.f32.mrf.mxu0  ;;  %v8016_v31 = vpop.f32.mrf.mxu1  ;;  %1917 = vmatprep.subr.mxu0 %v8018_v33  ;;  %5389 = vmatprep.subr.mxu1 %v10423_v17 }
 0x39a   :  { %v1716_v38 = vadd.f32 %v1641_v1, %v1501_v58  ;;  %1918 = vmatpush1.msra.mxu0 %v8022_v39  ;;  %5390 = vmatpush3.msra.mxu1 %v8025_v40  ;;  %v8069_v58 = vld [vmem:[#allocation9 + $0x80] sm:$0xff] }
 0x39b   :  { %v5343_v41 = vpop.f32.mrf.mxu1  ;;  %1919 = vmatprep.subr.mxu0 %v8028_v2  ;;  %5391 = vmatprep.subr.mxu1 %v10423_v17  ;;  %v1643_v63 = vpop.f32.mrf.mxu0  ;;  %10519 = vst [vmem:[#allocation42_spill] sm:$0xff] %v8069_v58 }
 0x39c   :  { %v4574_v3 = vmul.f32 -1.442695, %v1716_v38  ;;  %1920 = vmatpush1.msra.mxu0 %v8032_v5  ;;  %5392 = vmatpush3.msra.mxu1 %v8035_v61  ;;  %v1723_v23 = vadd.f32 %v1643_v63, %v1503_v57  ;;  %v8073_v38 = vld [vmem:[#allocation9 + $0x78] sm:$0xff]  ;;  %v8076_v41 = vld [vmem:[#allocation9 + $0x88] sm:$0xff]  ;;  %v8083_v63 = vld [vmem:[#allocation9 + $0x60] sm:$0xff] }
 0x39d   :  { %1921 = vmatprep.subr.mxu0 %v8038_v54  ;;  %5393 = vmatprep.subr.mxu1 %v10423_v17  ;;  %10520 = vst [vmem:[#allocation43_spill] sm:$0xff] %v8073_v38  ;;  %10521 = vst [vmem:[#allocation44_spill] sm:$0xff] %v8076_v41  ;;  %v8086_v57 = vld [vmem:[#allocation9 + $0x70] sm:$0xff] }
 0x39e   :  { %6035 = vpow2.f32 %v4574_v3  ;;  %1922 = vmatpush1.msra.mxu0 %v8043_v19  ;;  %5394 = vmatpush3.msra.mxu1 %v8046_v21  ;;  %v4575_v1 = vmul.f32 -1.442695, %v1723_v23  ;;  %v8079_v3 = vld [vmem:[#allocation9 + $0x68] sm:$0xff]  ;;  %10523 = vst [vmem:[#allocation46_spill] sm:$0xff] %v8083_v63  ;;  %10524 = vst [vmem:[#allocation47_spill] sm:$0xff] %v8086_v57  ;;  %v8089_v23 = vld [vmem:[#allocation9 + $0x50] sm:$0xff] }
 0x39f   :  { %1923 = vmatprep.subr.mxu0 %v8049_v16  ;;  %5395 = vmatprep.subr.mxu1 %v10423_v17  ;;  %10522 = vst [vmem:[#allocation45_spill] sm:$0xff] %v8079_v3  ;;  %10525 = vst [vmem:[#allocation48_spill] sm:$0xff] %v8089_v23 }
 0x3a0   :  { %1924 = vmatpush1.msra.mxu0 %v8053_v11  ;;  %5396 = vmatpush3.msra.mxu1 %v8056_v25  ;;  %6037 = vpow2.f32 %v4575_v1 }
 0x3a1   :  { %1925 = vmatprep.subr.mxu0 %v8059_v20  ;;  %5397 = vmatprep.subr.mxu1 %v10423_v17 }
 0x3a2   :  { %1926 = vmatpush1.msra.mxu0 %v8063_v0  ;;  %5398 = vmatpush3.msra.mxu1 %v8066_v52 }
 0x3a3   :  { %1927 = vmatprep.subr.mxu0 %v8069_v58  ;;  %5399 = vmatprep.subr.mxu1 %v10423_v17  ;;  %v8186_v58 = vld [vmem:[#allocation11 + $0xf8] sm:$0xff] }
 0x3a4   :  { %1928 = vmatpush1.msra.mxu0 %v8073_v38  ;;  %5400 = vmatpush3.msra.mxu1 %v8076_v41  ;;  %v8093_v41 = vld [vmem:[#allocation9 + $0x48] sm:$0xff]  ;;  %v8113_v38 = vld [vmem:[#allocation9 + $0x18] sm:$0xff]  ;;  %10552 = vst [vmem:[#allocation75_spill] sm:$0xff] %v8186_v58 }
 0x3a5   :  { %1929 = vmatprep.subr.mxu0 %v8079_v3  ;;  %5401 = vmatprep.subr.mxu1 %v10423_v17  ;;  %10526 = vst [vmem:[#allocation49_spill] sm:$0xff] %v8093_v41  ;;  %v8096_v3 = vld [vmem:[#allocation9 + $0x58] sm:$0xff]  ;;  %10532 = vst [vmem:[#allocation55_spill] sm:$0xff] %v8113_v38 }
 0x3a6   :  { %1930 = vmatpush1.msra.mxu0 %v8083_v63  ;;  %5402 = vmatpush3.msra.mxu1 %v8086_v57  ;;  %10527 = vst [vmem:[#allocation50_spill] sm:$0xff] %v8096_v3  ;;  %v8099_v63 = vld [vmem:[#allocation9 + $0x38] sm:$0xff]  ;;  %v8103_v57 = vld [vmem:[#allocation9 + $0x30] sm:$0xff] }
 0x3a7   :  { %1931 = vmatprep.subr.mxu0 %v8089_v23  ;;  %5403 = vmatprep.subr.mxu1 %v10423_v17  ;;  %10528 = vst [vmem:[#allocation51_spill] sm:$0xff] %v8099_v63  ;;  %10529 = vst [vmem:[#allocation52_spill] sm:$0xff] %v8103_v57  ;;  %v8106_v23 = vld [vmem:[#allocation9 + $0x40] sm:$0xff] }
 0x3a8   :  { %1932 = vmatpush1.msra.mxu0 %v8093_v41  ;;  %5404 = vmatpush3.msra.mxu1 %v8096_v3  ;;  %10530 = vst [vmem:[#allocation53_spill] sm:$0xff] %v8106_v23  ;;  %v8109_v41 = vld [vmem:[#allocation9 + $0x20] sm:$0xff] }
 0x3a9   :  { %1933 = vmatprep.subr.mxu0 %v8099_v63  ;;  %5405 = vmatprep.subr.mxu1 %v10423_v17  ;;  %10531 = vst [vmem:[#allocation54_spill] sm:$0xff] %v8109_v41  ;;  %v8116_v63 = vld [vmem:[#allocation9 + $0x28] sm:$0xff] }
 0x3aa   :  { %1934 = vmatpush1.msra.mxu0 %v8103_v57  ;;  %5406 = vmatpush3.msra.mxu1 %v8106_v23  ;;  %10533 = vst [vmem:[#allocation56_spill] sm:$0xff] %v8116_v63  ;;  %v8119_v57 = vld [vmem:[#allocation9 + $0x8] sm:$0xff]  ;;  %v8123_v23 = vld [vmem:[#allocation9] sm:$0xff] }
 0x3ab   :  { %v6036_v1 = vpop.eup %6035  ;;  %1935 = vmatprep.subr.mxu0 %v8109_v41  ;;  %5407 = vmatprep.subr.mxu1 %v10423_v17  ;;  %10534 = vst [vmem:[#allocation57_spill] sm:$0xff] %v8119_v57  ;;  %10535 = vst [vmem:[#allocation59_spill] sm:$0xff] %v8123_v23  ;;  %v8168_v41 = vld [vmem:[#allocation11 + $0x120] sm:$0xff] }
 0x3ac   :  { %v1720_v3 = vadd.f32 1.0, %v6036_v1  ;;  %1936 = vmatpush1.msra.mxu0 %v8113_v38  ;;  %5408 = vmatpush3.msra.mxu1 %v8116_v63  ;;  %v8127_v1 = vld [vmem:[#allocation9 + $0x10] sm:$0xff]  ;;  %10547 = vst [vmem:[#allocation71_spill] sm:$0xff] %v8168_v41 }
 0x3ad   :  { %1937 = vmatprep.subr.mxu0 %v8119_v57  ;;  %5409 = vmatprep.subr.mxu1 %v10423_v17  ;;  %10536 = vst [vmem:[#allocation58_spill] sm:$0xff] %v8127_v1  ;;  %v8134_v57 = vld [vmem:[#allocation11 + $0x170] sm:$0xff]  ;;  %v6038_v38 = vpop.eup %6037 }
 0x3ae   :  { %6039 = vrcp.f32 %v1720_v3  ;;  %1938 = vmatpush1.msra.mxu0 %v8123_v23  ;;  %1971 = vmatprep.mubr.f32.mxu0 %v10423_v17  ;;  %10537 = vst [vmem:[#allocation60_spill] sm:$0xff] %v8134_v57  ;;  %v8138_v3 = vld [vmem:[#allocation11 + $0x168] sm:$0xff]  ;;  %v8141_v23 = vld [vmem:[#allocation11 + $0x178] sm:$0xff]  ;;  %v8148_v63 = vld [vmem:[#allocation11 + $0x150] sm:$0xff] }
 0x3af   :  { %5410 = vmatpush3.msra.mxu1 %v8127_v1  ;;  %5411 = vmatprep.mubr.msk.f32.mxu1 %vm6774_vm0, %v10423_v17  ;;  %10538 = vst [vmem:[#allocation62_spill] sm:$0xff] %v8138_v3  ;;  %10539 = vst [vmem:[#allocation61_spill] sm:$0xff] %v8141_v23  ;;  %v8144_v1 = vld [vmem:[#allocation11 + $0x158] sm:$0xff] }
 0x3b0   :  { %1972 = vmatmul.mubr.f32.vlgmr.msra.gmra.mxu0 %v7965_v24  ;;  %5412 = vmatmul.mubr.f32.vlgmr.msra.gmra.mxu1 %v7965_v24  ;;  %10540 = vst [vmem:[#allocation63_spill] sm:$0xff] %v8144_v1  ;;  %10541 = vst [vmem:[#allocation65_spill] sm:$0xff] %v8148_v63 }
 0x3b1   :  { %2048 = vmatprep.subr.mxu0 %v8134_v57  ;;  %5414 = vmatprep.subr.mxu1 %v10423_v17  ;;  %v8151_v57 = vld [vmem:[#allocation11 + $0x160] sm:$0xff] }
 0x3b2   :  { %2049 = vmatpush1.msra.mxu0 %v8138_v3  ;;  %5415 = vmatpush3.msra.mxu1 %v8141_v23  ;;  %10542 = vst [vmem:[#allocation64_spill] sm:$0xff] %v8151_v57  ;;  %v8154_v3 = vld [vmem:[#allocation11 + $0x140] sm:$0xff]  ;;  %v8158_v23 = vld [vmem:[#allocation11 + $0x138] sm:$0xff] }
 0x3b3   :  { %2050 = vmatprep.subr.mxu0 %v8144_v1  ;;  %5416 = vmatprep.subr.mxu1 %v10423_v17  ;;  %10543 = vst [vmem:[#allocation66_spill] sm:$0xff] %v8154_v3  ;;  %10544 = vst [vmem:[#allocation68_spill] sm:$0xff] %v8158_v23  ;;  %v8161_v1 = vld [vmem:[#allocation11 + $0x148] sm:$0xff] }
 0x3b4   :  { %2051 = vmatpush1.msra.mxu0 %v8148_v63  ;;  %5417 = vmatpush3.msra.mxu1 %v8151_v57  ;;  %10545 = vst [vmem:[#allocation67_spill] sm:$0xff] %v8161_v1  ;;  %v8164_v63 = vld [vmem:[#allocation11 + $0x128] sm:$0xff]  ;;  %v1727_v57 = vadd.f32 1.0, %v6038_v38  ;;  %v8183_v38 = vld [vmem:[#allocation11 + $0x118] sm:$0xff] }
 0x3b5   :  { %2052 = vmatprep.subr.mxu0 %v8154_v3  ;;  %5418 = vmatprep.subr.mxu1 %v10423_v17  ;;  %10546 = vst [vmem:[#allocation69_spill] sm:$0xff] %v8164_v63  ;;  %v8171_v3 = vld [vmem:[#allocation11 + $0x130] sm:$0xff]  ;;  %10551 = vst [vmem:[#allocation73_spill] sm:$0xff] %v8183_v38 }
 0x3b6   :  { %2053 = vmatpush1.msra.mxu0 %v8158_v23  ;;  %5419 = vmatpush3.msra.mxu1 %v8161_v1  ;;  %10548 = vst [vmem:[#allocation70_spill] sm:$0xff] %v8171_v3  ;;  %v8174_v23 = vld [vmem:[#allocation11 + $0x110] sm:$0xff]  ;;  %v8180_v1 = vld [vmem:[#allocation11 + $0x108] sm:$0xff]  ;;  %6041 = vrcp.f32 %v1727_v57 }
 0x3b7   :  { %2054 = vmatprep.subr.mxu0 %v8164_v63  ;;  %5420 = vmatprep.subr.mxu1 %v10423_v17  ;;  %10549 = vst [vmem:[#allocation72_spill] sm:$0xff] %v8174_v23  ;;  %v1730_v63 = vadd.f32 %v7779_v53, %v8016_v31  ;;  %10550 = vst [vmem:[#allocation74_spill] sm:$0xff] %v8180_v1  ;;  %v8192_v53 = vld [vmem:[#allocation11 + $0xf0] sm:$0xff]  ;;  %v8195_v31 = vld [vmem:[#allocation11 + $0x100] sm:$0xff] }
 0x3b8   :  { %2055 = vmatpush1.msra.mxu0 %v8168_v41  ;;  %5421 = vmatpush3.msra.mxu1 %v8171_v3  ;;  %10553 = vst [vmem:[#allocation77_spill] sm:$0xff] %v8195_v31  ;;  %v8215_v57 = vld [vmem:[#allocation11 + $0xd0] sm:$0xff] }
 0x3b9   :  { %2056 = vmatprep.subr.mxu0 %v8174_v23  ;;  %5422 = vmatprep.subr.mxu1 %v10423_v17  ;;  %v1572_v23 = vadd.f32 %v7961_v37, %v7788_v36  ;;  %v8205_v37 = vld [vmem:[#allocation11 + $0xe8] sm:$0xff]  ;;  %10559 = vst [vmem:[#allocation83_spill] sm:$0xff] %v8215_v57 }
 0x3ba   :  { %2057 = vmatpush1.msra.mxu0 %v8180_v1  ;;  %5423 = vmatpush3.msra.mxu1 %v8183_v38  ;;  %v8198_v38 = vld [vmem:[#allocation11 + $0xe0] sm:$0xff]  ;;  %v8202_v1 = vld [vmem:[#allocation11 + $0xd8] sm:$0xff]  ;;  %10556 = vst [vmem:[#allocation80_spill] sm:$0xff] %v8205_v37 }
 0x3bb   :  { %v6040_v41 = vpop.eup %6039  ;;  %2058 = vmatprep.subr.mxu0 %v8186_v58  ;;  %5424 = vmatprep.subr.mxu1 %v10423_v17  ;;  %10554 = vst [vmem:[#allocation76_spill] sm:$0xff] %v8198_v38  ;;  %10555 = vst [vmem:[#allocation78_spill] sm:$0xff] %v8202_v1 }
 0x3bc   :  { %v1731_v3 = vmul.f32 %v6040_v41, %v1730_v63  ;;  %2059 = vmatpush1.msra.mxu0 %v8192_v53  ;;  %5425 = vmatpush3.msra.mxu1 %v8195_v31  ;;  %v8208_v41 = vld [vmem:[#allocation11 + $0xc8] sm:$0xff]  ;;  %v8212_v63 = vld [vmem:[#allocation11 + $0xc0] sm:$0xff]  ;;  %v8299_v31 = vld [vmem:[#allocation11 + $0x10] sm:$0xff] }
 0x3bd   :  { %2060 = vmatprep.subr.mxu0 %v8198_v38  ;;  %5426 = vmatprep.subr.mxu1 %v10423_v17  ;;  %10557 = vst [vmem:[#allocation79_spill] sm:$0xff] %v8208_v41  ;;  %10558 = vst [vmem:[#allocation81_spill] sm:$0xff] %v8212_v63 }
 0x3be   :  { %v1732_v58 = vadd.f32 %v1731_v3, %v1572_v23  ;;  %2061 = vmatpush1.msra.mxu0 %v8202_v1  ;;  %5427 = vmatpush3.msra.mxu1 %v8205_v37  ;;  %v8218_v23 = vld [vmem:[#allocation11 + $0xb0] sm:$0xff]  ;;  %v8222_v3 = vld [vmem:[#allocation11 + $0xa8] sm:$0xff]  ;;  %v8278_v1 = vld [vmem:[#allocation11 + $0x20] sm:$0xff] }
 0x3bf   :  { %2062 = vmatprep.subr.mxu0 %v8208_v41  ;;  %5428 = vmatprep.subr.mxu1 %v10423_v17  ;;  %10560 = vst [vmem:[#allocation82_spill] sm:$0xff] %v8218_v23  ;;  %10561 = vst [vmem:[#allocation84_spill] sm:$0xff] %v8222_v3  ;;  %v8225_v41 = vld [vmem:[#allocation11 + $0xb8] sm:$0xff] }
 0x3c0   :  { %6043 = vtanh.f32 %v1732_v58  ;;  %2063 = vmatpush1.msra.mxu0 %v8212_v63  ;;  %5429 = vmatpush3.msra.mxu1 %v8215_v57  ;;  %10562 = vst [vmem:[#allocation86_spill] sm:$0xff] %v8225_v41  ;;  %v8228_v58 = vld [vmem:[#allocation11 + $0x98] sm:$0xff]  ;;  %v8232_v57 = vld [vmem:[#allocation11 + $0x90] sm:$0xff]  ;;  %v8238_v63 = vld [vmem:[#allocation11 + $0x80] sm:$0xff] }
 0x3c1   :  { %2064 = vmatprep.subr.mxu0 %v8218_v23  ;;  %5430 = vmatprep.subr.mxu1 %v10423_v17  ;;  %10563 = vst [vmem:[#allocation85_spill] sm:$0xff] %v8228_v58  ;;  %10564 = vst [vmem:[#allocation87_spill] sm:$0xff] %v8232_v57  ;;  %v8235_v23 = vld [vmem:[#allocation11 + $0xa0] sm:$0xff] }
 0x3c2   :  { %2065 = vmatpush1.msra.mxu0 %v8222_v3  ;;  %5431 = vmatpush3.msra.mxu1 %v8225_v41  ;;  %10565 = vst [vmem:[#allocation89_spill] sm:$0xff] %v8235_v23  ;;  %10566 = vst [vmem:[#allocation88_spill] sm:$0xff] %v8238_v63  ;;  %v8242_v41 = vld [vmem:[#allocation11 + $0x78] sm:$0xff]  ;;  %v8248_v3 = vld [vmem:[#allocation11 + $0x68] sm:$0xff] }
 0x3c3   :  { %2066 = vmatprep.subr.mxu0 %v8228_v58  ;;  %5432 = vmatprep.subr.mxu1 %v10423_v17  ;;  %10567 = vst [vmem:[#allocation90_spill] sm:$0xff] %v8242_v41  ;;  %v8245_v58 = vld [vmem:[#allocation11 + $0x88] sm:$0xff]  ;;  %10569 = vst [vmem:[#allocation91_spill] sm:$0xff] %v8248_v3 }
 0x3c4   :  { %2067 = vmatpush1.msra.mxu0 %v8232_v57  ;;  %5433 = vmatpush3.msra.mxu1 %v8235_v23  ;;  %10568 = vst [vmem:[#allocation92_spill] sm:$0xff] %v8245_v58  ;;  %v8252_v23 = vld [vmem:[#allocation11 + $0x60] sm:$0xff]  ;;  %v6042_v57 = vpop.eup %6041  ;;  %10578 = vst [vmem:[#allocation101_spill] sm:$0xff] %v8278_v1 }
 0x3c5   :  { %2068 = vmatprep.subr.mxu0 %v8238_v63  ;;  %5434 = vmatprep.subr.mxu1 %v10423_v17  ;;  %10570 = vst [vmem:[#allocation93_spill] sm:$0xff] %v8252_v23  ;;  %v8255_v63 = vld [vmem:[#allocation11 + $0x70] sm:$0xff]  ;;  %v1734_v37 = vsub.f32 1.0, %v6042_v57  ;;  %v1736_v38 = vmul.f32 %v6042_v57, %v7844_v42  ;;  %v8310_v57 = vld [vmem:[#allocation6 + $0x168] sm:$0xff] }
 0x3c6   :  { %2069 = vmatpush1.msra.mxu0 %v8242_v41  ;;  %5435 = vmatpush3.msra.mxu1 %v8245_v58  ;;  %10571 = vst [vmem:[#allocation94_spill] sm:$0xff] %v8255_v63  ;;  %v8258_v41 = vld [vmem:[#allocation11 + $0x50] sm:$0xff]  ;;  %v8262_v58 = vld [vmem:[#allocation11 + $0x48] sm:$0xff] }
 0x3c7   :  { %2070 = vmatprep.subr.mxu0 %v8248_v3  ;;  %5436 = vmatprep.subr.mxu1 %v10423_v17  ;;  %10572 = vst [vmem:[#allocation95_spill] sm:$0xff] %v8258_v41  ;;  %10573 = vst [vmem:[#allocation96_spill] sm:$0xff] %v8262_v58  ;;  %v8265_v3 = vld [vmem:[#allocation11 + $0x58] sm:$0xff] }
 0x3c8   :  { %2071 = vmatpush1.msra.mxu0 %v8252_v23  ;;  %5437 = vmatpush3.msra.mxu1 %v8255_v63  ;;  %10574 = vst [vmem:[#allocation97_spill] sm:$0xff] %v8265_v3  ;;  %v8268_v23 = vld [vmem:[#allocation11 + $0x38] sm:$0xff]  ;;  %v8272_v63 = vld [vmem:[#allocation11 + $0x30] sm:$0xff] }
 0x3c9   :  { %2072 = vmatprep.subr.mxu0 %v8258_v41  ;;  %5438 = vmatprep.subr.mxu1 %v10423_v17  ;;  %10575 = vst [vmem:[#allocation98_spill] sm:$0xff] %v8268_v23  ;;  %10576 = vst [vmem:[#allocation99_spill] sm:$0xff] %v8272_v63  ;;  %v8275_v41 = vld [vmem:[#allocation11 + $0x40] sm:$0xff]  ;;  %v8326_v42 = vld [vmem:[#allocation6 + $0x138] sm:$0xff] }
 0x3ca   :  { %2073 = vmatpush1.msra.mxu0 %v8262_v58  ;;  %5439 = vmatpush3.msra.mxu1 %v8265_v3  ;;  %10577 = vst [vmem:[#allocation100_spill] sm:$0xff] %v8275_v41  ;;  %v8282_v3 = vld [vmem:[#allocation11 + $0x18] sm:$0xff]  ;;  %10582 = vst [vmem:[#allocation105_spill] sm:$0xff] %v8326_v42 }
 0x3cb   :  { %2074 = vmatprep.subr.mxu0 %v8268_v23  ;;  %5440 = vmatprep.subr.mxu1 %v10423_v17  ;;  %10579 = vst [vmem:[#allocation102_spill] sm:$0xff] %v8282_v3  ;;  %v8285_v23 = vld [vmem:[#allocation11 + $0x28] sm:$0xff] }
 0x3cc   :  { %2075 = vmatpush1.msra.mxu0 %v8272_v63  ;;  %5441 = vmatpush3.msra.mxu1 %v8275_v41  ;;  %v8289_v41 = vld [vmem:[#allocation11 + $0x8] sm:$0xff] }
 0x3cd   :  { %v6044_v58 = vpop.eup %6043  ;;  %2076 = vmatprep.subr.mxu0 %v8278_v1  ;;  %5442 = vmatprep.subr.mxu1 %v10423_v17  ;;  %v8293_v1 = vld [vmem:[#allocation11] sm:$0xff] }
 0x3ce   :  { %2077 = vmatpush1.msra.mxu0 %v8282_v3  ;;  %5443 = vmatpush3.msra.mxu1 %v8285_v23  ;;  %v1735_v63 = vmul.f32 %v6044_v58, %v1734_v37  ;;  %v8306_v37 = vld [vmem:[#allocation6 + $0x170] sm:$0xff]  ;;  %v8322_v58 = vld [vmem:[#allocation6 + $0x140] sm:$0xff] }
 0x3cf   :  { %2078 = vmatprep.subr.mxu0 %v8289_v41  ;;  %5444 = vmatprep.subr.mxu1 %v10423_v17 }
 0x3d0   :  { %2079 = vmatpush1.msra.mxu0 %v8293_v1  ;;  %2112 = vmatprep.mubr.f32.mxu0 %v10423_v17  ;;  %v8297_v3 = vadd.f32 %v1736_v38, %v1735_v63  ;;  %v8314_v38 = vld [vmem:[#allocation6 + $0x158] sm:$0xff]  ;;  %v8318_v63 = vld [vmem:[#allocation6 + $0x150] sm:$0xff] }
 0x3d1   :  { %5445 = vmatpush3.msra.mxu1 %v8299_v31  ;;  %5446 = vmatprep.mubr.msk.f32.mxu1 %vm6774_vm0, %v10423_v17  ;;  %10581 = vst [vmem:[#allocation104_spill] sm:$0xff] %v8318_v63 }
 0x3d2   :  { %10580 = vst [vmem:[#allocation103_spill] sm:$0xff] %v8297_v3  ;;  %2113 = vmatmul.mubr.f32.vlgmr.msra.gmra.mxu0 %v8297_v3  ;;  %5447 = vmatmul.mubr.f32.vlgmr.msra.gmra.mxu1 %v8297_v3 }
 0x3d3   :  { %2217 = vmatprep.subr.mxu0 %v8306_v37  ;;  %5449 = vmatprep.subr.mxu1 %v10423_v17 }
 0x3d4   :  { %2218 = vmatpush1.msra.mxu0 %v8310_v57  ;;  %5450 = vmatpush3.msra.mxu1 %v7856_v50  ;;  %v8330_v50 = vld [vmem:[#allocation6 + $0x128] sm:$0xff] }
 0x3d5   :  { %2219 = vmatprep.subr.mxu0 %v8314_v38  ;;  %5451 = vmatprep.subr.mxu1 %v10423_v17 }
 0x3d6   :  { %2220 = vmatpush1.msra.mxu0 %v8318_v63  ;;  %5452 = vmatpush3.msra.mxu1 %v7862_v55  ;;  %v8334_v63 = vld [vmem:[#allocation6 + $0x120] sm:$0xff]  ;;  %v8338_v55 = vld [vmem:[#allocation6 + $0x110] sm:$0xff] }
 0x3d7   :  { %2221 = vmatprep.subr.mxu0 %v8322_v58  ;;  %5453 = vmatprep.subr.mxu1 %v10423_v17  ;;  %10583 = vst [vmem:[#allocation106_spill] sm:$0xff] %v8334_v63  ;;  %10584 = vst [vmem:[#allocation107_spill] sm:$0xff] %v8338_v55 }
 0x3d8   :  { %2222 = vmatpush1.msra.mxu0 %v8326_v42  ;;  %5454 = vmatpush3.msra.mxu1 %v7868_v35  ;;  %v8342_v42 = vld [vmem:[#allocation6 + $0x108] sm:$0xff]  ;;  %v8346_v35 = vld [vmem:[#allocation6 + $0xf8] sm:$0xff] }
 0x3d9   :  { %2223 = vmatprep.subr.mxu0 %v8330_v50  ;;  %5455 = vmatprep.subr.mxu1 %v10423_v17  ;;  %10585 = vst [vmem:[#allocation108_spill] sm:$0xff] %v8342_v42  ;;  %10586 = vst [vmem:[#allocation109_spill] sm:$0xff] %v8346_v35 }
 0x3da   :  { %2224 = vmatpush1.msra.mxu0 %v8334_v63  ;;  %5456 = vmatpush3.msra.mxu1 %v7874_v27  ;;  %v8350_v63 = vld [vmem:[#allocation6 + $0xf0] sm:$0xff]  ;;  %v8354_v27 = vld [vmem:[#allocation6 + $0xe0] sm:$0xff] }
 0x3db   :  { %2225 = vmatprep.subr.mxu0 %v8338_v55  ;;  %5457 = vmatprep.subr.mxu1 %v10423_v17  ;;  %10587 = vst [vmem:[#allocation110_spill] sm:$0xff] %v8350_v63  ;;  %10588 = vst [vmem:[#allocation111_spill] sm:$0xff] %v8354_v27 }
 0x3dc   :  { %2226 = vmatpush1.msra.mxu0 %v8342_v42  ;;  %5458 = vmatpush3.msra.mxu1 %v7880_v7  ;;  %v8358_v42 = vld [vmem:[#allocation6 + $0xd8] sm:$0xff]  ;;  %v8362_v7 = vld [vmem:[#allocation6 + $0xc8] sm:$0xff] }
 0x3dd   :  { %2227 = vmatprep.subr.mxu0 %v8346_v35  ;;  %5459 = vmatprep.subr.mxu1 %v10423_v17  ;;  %10589 = vst [vmem:[#allocation112_spill] sm:$0xff] %v8358_v42  ;;  %10590 = vst [vmem:[#allocation113_spill] sm:$0xff] %v8362_v7 }
 0x3de   :  { %2228 = vmatpush1.msra.mxu0 %v8350_v63  ;;  %5460 = vmatpush3.msra.mxu1 %v7886_v14  ;;  %v8366_v63 = vld [vmem:[#allocation6 + $0xc0] sm:$0xff]  ;;  %v8370_v14 = vld [vmem:[#allocation6 + $0xb0] sm:$0xff] }
 0x3df   :  { %2229 = vmatprep.subr.mxu0 %v8354_v27  ;;  %5461 = vmatprep.subr.mxu1 %v10423_v17  ;;  %10591 = vst [vmem:[#allocation114_spill] sm:$0xff] %v8366_v63  ;;  %10592 = vst [vmem:[#allocation115_spill] sm:$0xff] %v8370_v14 }
 0x3e0   :  { %2230 = vmatpush1.msra.mxu0 %v8358_v42  ;;  %5462 = vmatpush3.msra.mxu1 %v7892_v49  ;;  %v8374_v42 = vld [vmem:[#allocation6 + $0xa8] sm:$0xff]  ;;  %v8378_v49 = vld [vmem:[#allocation6 + $0x98] sm:$0xff] }
 0x3e1   :  { %2231 = vmatprep.subr.mxu0 %v8362_v7  ;;  %5463 = vmatprep.subr.mxu1 %v10423_v17  ;;  %10593 = vst [vmem:[#allocation116_spill] sm:$0xff] %v8374_v42  ;;  %10594 = vst [vmem:[#allocation117_spill] sm:$0xff] %v8378_v49 }
 0x3e2   :  { %2232 = vmatpush1.msra.mxu0 %v8366_v63  ;;  %5464 = vmatpush3.msra.mxu1 %v7898_v44  ;;  %v8382_v63 = vld [vmem:[#allocation6 + $0x90] sm:$0xff]  ;;  %v8386_v44 = vld [vmem:[#allocation6 + $0x80] sm:$0xff] }
 0x3e3   :  { %2233 = vmatprep.subr.mxu0 %v8370_v14  ;;  %5465 = vmatprep.subr.mxu1 %v10423_v17  ;;  %10595 = vst [vmem:[#allocation118_spill] sm:$0xff] %v8382_v63  ;;  %10596 = vst [vmem:[#allocation119_spill] sm:$0xff] %v8386_v44 }
 0x3e4   :  { %2234 = vmatpush1.msra.mxu0 %v8374_v42  ;;  %5466 = vmatpush3.msra.mxu1 %v7904_v22  ;;  %v8390_v42 = vld [vmem:[#allocation6 + $0x78] sm:$0xff]  ;;  %v8394_v22 = vld [vmem:[#allocation6 + $0x68] sm:$0xff] }
 0x3e5   :  { %2235 = vmatprep.subr.mxu0 %v8378_v49  ;;  %5467 = vmatprep.subr.mxu1 %v10423_v17  ;;  %10597 = vst [vmem:[#allocation120_spill] sm:$0xff] %v8390_v42  ;;  %10598 = vst [vmem:[#allocation121_spill] sm:$0xff] %v8394_v22 }
 0x3e6   :  { %2236 = vmatpush1.msra.mxu0 %v8382_v63  ;;  %5468 = vmatpush3.msra.mxu1 %v7910_v10  ;;  %v8398_v63 = vld [vmem:[#allocation6 + $0x60] sm:$0xff]  ;;  %v8402_v10 = vld [vmem:[#allocation6 + $0x50] sm:$0xff] }
 0x3e7   :  { %2237 = vmatprep.subr.mxu0 %v8386_v44  ;;  %5469 = vmatprep.subr.mxu1 %v10423_v17  ;;  %10599 = vst [vmem:[#allocation122_spill] sm:$0xff] %v8398_v63  ;;  %10600 = vst [vmem:[#allocation123_spill] sm:$0xff] %v8402_v10 }
 0x3e8   :  { %2238 = vmatpush1.msra.mxu0 %v8390_v42  ;;  %5470 = vmatpush3.msra.mxu1 %v7916_v15  ;;  %v8406_v42 = vld [vmem:[#allocation6 + $0x48] sm:$0xff]  ;;  %v8410_v15 = vld [vmem:[#allocation6 + $0x38] sm:$0xff] }
 0x3e9   :  { %2239 = vmatprep.subr.mxu0 %v8394_v22  ;;  %5471 = vmatprep.subr.mxu1 %v10423_v17  ;;  %10601 = vst [vmem:[#allocation124_spill] sm:$0xff] %v8406_v42  ;;  %10602 = vst [vmem:[#allocation22_spill] sm:$0xff] %v8410_v15 }
 0x3ea   :  { %2240 = vmatpush1.msra.mxu0 %v8398_v63  ;;  %5472 = vmatpush3.msra.mxu1 %v7922_v48  ;;  %v8414_v63 = vld [vmem:[#allocation6 + $0x30] sm:$0xff]  ;;  %v8418_v48 = vld [vmem:[#allocation6 + $0x20] sm:$0xff] }
 0x3eb   :  { %2241 = vmatprep.subr.mxu0 %v8402_v10  ;;  %5473 = vmatprep.subr.mxu1 %v10423_v17  ;;  %10603 = vst [vmem:[#allocation23_spill] sm:$0xff] %v8414_v63  ;;  %10604 = vst [vmem:[#allocation35_spill] sm:$0xff] %v8418_v48 }
 0x3ec   :  { %2242 = vmatpush1.msra.mxu0 %v8406_v42  ;;  %5474 = vmatpush3.msra.mxu1 %v7928_v8  ;;  %v8422_v42 = vld [vmem:[#allocation6 + $0x18] sm:$0xff]  ;;  %v8426_v8 = vld [vmem:[#allocation6 + $0x8] sm:$0xff] }
 0x3ed   :  { %2243 = vmatprep.subr.mxu0 %v8410_v15  ;;  %5475 = vmatprep.subr.mxu1 %v10423_v17  ;;  %10605 = vst [vmem:[#allocation127_spill] sm:$0xff] %v8422_v42  ;;  %10606 = vst [vmem:[#allocation128_spill] sm:$0xff] %v8426_v8 }
 0x3ee   :  { %2244 = vmatpush1.msra.mxu0 %v8414_v63  ;;  %5476 = vmatpush3.msra.mxu1 %v7934_v18  ;;  %v8430_v63 = vld [vmem:[#allocation6] sm:$0xff] }
 0x3ef   :  { %2245 = vmatprep.subr.mxu0 %v8418_v48  ;;  %5477 = vmatprep.subr.mxu1 %v10423_v17  ;;  %10607 = vst [vmem:[#allocation129_spill] sm:$0xff] %v8430_v63 }
 0x3f0   :  { %2246 = vmatpush1.msra.mxu0 %v8422_v42  ;;  %5478 = vmatpush3.msra.mxu1 %v7940_v62 }
 0x3f1   :  { %2247 = vmatprep.subr.mxu0 %v8426_v8  ;;  %5479 = vmatprep.subr.mxu1 %v10423_v17  ;;  %v10608_v8 = vld [vmem:[#allocation24_spill] sm:$0xff] }
 0x3f2   :  { %2248 = vmatpush1.msra.mxu0 %v8430_v63  ;;  %5480 = vmatpush3.msra.mxu1 %v7946_v47  ;;  %v10609_v63 = vld [vmem:[#allocation25_spill] sm:$0xff] }
 0x3f3   :  { %2281 = vmatprep.mubr.f32.mxu0 %v10423_v17  ;;  %5481 = vmatprep.mubr.msk.f32.mxu1 %vm6774_vm0, %v10423_v17 }
 0x3f4   :  { %2380 = vmatprep.subr.mxu0 %v7952_v51  ;;  %5484 = vmatprep.subr.mxu1 %v10423_v17 }
 0x44f   :  { %v1810_v18 = vpop.f32.mrf.mxu0  ;;  %v1881_v62 = vpop.f32.mrf.mxu1 }
 0x450   :  { %v1885_v42 = vadd.f32 %v1810_v18, %v10608_v8  ;;  %v1899_v51 = vadd.f32 %v7958_v59, %v1881_v62  ;;  %v10632_v18 = vld [vmem:[#allocation63_spill] sm:$0xff]  ;;  %v10633_v62 = vld [vmem:[#allocation65_spill] sm:$0xff] }
 0x451   :  { %v5378_v48 = vpop.f32.mrf.mxu1  ;;  %v1812_v10 = vpop.f32.mrf.mxu0 }
 0x452   :  { %v4576_v15 = vmul.f32 -1.442695, %v1885_v42  ;;  %v1892_v22 = vadd.f32 %v1812_v10, %v10609_v63  ;;  %v10610_v42 = vld [vmem:[#allocation34_spill] sm:$0xff] }
 0x454   :  { %6045 = vpow2.f32 %v4576_v15  ;;  %v4577_v47 = vmul.f32 -1.442695, %v1892_v22 }
 0x456   :  { %6047 = vpow2.f32 %v4577_v47  ;;  %v10634_v47 = vld [vmem:[#allocation64_spill] sm:$0xff] }
 0x461   :  { %v6046_v44 = vpop.eup %6045 }
 0x462   :  { %v1889_v49 = vadd.f32 1.0, %v6046_v44 }
 0x463   :  { %v6048_v14 = vpop.eup %6047 }
 0x464   :  { %6049 = vrcp.f32 %v1889_v49  ;;  %v1896_v7 = vadd.f32 1.0, %v6048_v14  ;;  %v10631_v14 = vld [vmem:[#allocation61_spill] sm:$0xff] }
 0x466   :  { %6051 = vrcp.f32 %v1896_v7  ;;  %v10630_v7 = vld [vmem:[#allocation62_spill] sm:$0xff] }
 0x470   :  { %v8442_v27 = vpop.f32.mrf.mxu1  ;;  %v1973_v59 = vpop.f32.mrf.mxu0 }
 0x471   :  { %v6050_v35 = vpop.eup %6049 }
 0x472   :  { %v1900_v55 = vmul.f32 %v6050_v35, %v1899_v51  ;;  %v5413_v48 = vpop.f32.mrf.mxu1  ;;  %v10629_v35 = vld [vmem:[#allocation60_spill] sm:$0xff] }
 0x473   :  { %v6052_v15 = vpop.eup %6051  ;;  %v10635_v48 = vld [vmem:[#allocation66_spill] sm:$0xff] }
 0x474   :  { %v1901_v8 = vadd.f32 %v1900_v55, %v10610_v42  ;;  %v1903_v63 = vsub.f32 1.0, %v6052_v15  ;;  %v1905_v44 = vmul.f32 %v6052_v15, %v7965_v24  ;;  %v1975_v24 = vpop.f32.mrf.mxu0  ;;  %v10628_v55 = vld [vmem:[#allocation58_spill] sm:$0xff]  ;;  %v10636_v42 = vld [vmem:[#allocation68_spill] sm:$0xff]  ;;  %v10638_v15 = vld [vmem:[#allocation69_spill] sm:$0xff] }
 0x476   :  { %6053 = vtanh.f32 %v1901_v8  ;;  %v10637_v8 = vld [vmem:[#allocation67_spill] sm:$0xff] }
 0x483   :  { %v6054_v22 = vpop.eup %6053 }
 0x484   :  { %v1904_v10 = vmul.f32 %v6054_v22, %v1903_v63  ;;  %v10639_v22 = vld [vmem:[#allocation71_spill] sm:$0xff] }
 0x486   :  { %v8446_v49 = vadd.f32 %v1905_v44, %v1904_v10  ;;  %v10640_v10 = vld [vmem:[#allocation70_spill] sm:$0xff]  ;;  %v10641_v44 = vld [vmem:[#allocation72_spill] sm:$0xff] }
 0x488   :  { %2282 = vmatmul.mubr.f32.vlgmr.msra.gmra.mxu0 %v8446_v49  ;;  %5482 = vmatmul.mubr.f32.vlgmr.msra.gmra.mxu1 %v8446_v49 }
 0x489   :  { %2381 = vmatpush1.msra.mxu0 %v7969_v26  ;;  %5485 = vmatpush3.msra.mxu1 %v7972_v13  ;;  %v1974_v26 = vadd.f32 %v1973_v59, %v7699_v29  ;;  %v8539_v59 = vld [vmem:[#allocation14] ss:$0 sm:$0xff] }
 0x48a   :  { %2382 = vmatprep.subr.mxu0 %v7975_v43  ;;  %5486 = vmatprep.subr.mxu1 %v10423_v17 }
 0x48b   :  { %2383 = vmatpush1.msra.mxu0 %v7979_v34  ;;  %5487 = vmatpush3.msra.mxu1 %v7982_v45 }
 0x48c   :  { %2384 = vmatprep.subr.mxu0 %v7985_v6  ;;  %5488 = vmatprep.subr.mxu1 %v10423_v17 }
 0x48d   :  { %2385 = vmatpush1.msra.mxu0 %v7989_v28  ;;  %5489 = vmatpush3.msra.mxu1 %v7992_v4  ;;  %v1976_v4 = vadd.f32 %v1975_v24, %v7717_v32 }
 0x48e   :  { %2386 = vmatprep.subr.mxu0 %v7995_v30  ;;  %5490 = vmatprep.subr.mxu1 %v10423_v17 }
 0x48f   :  { %2387 = vmatpush1.msra.mxu0 %v7999_v12  ;;  %5491 = vmatpush3.msra.mxu1 %v8002_v9  ;;  %v10611_v12 = vld [vmem:[#allocation42_spill] sm:$0xff] }
 0x490   :  { %2388 = vmatprep.subr.mxu0 %v8005_v56  ;;  %5492 = vmatprep.subr.mxu1 %v10423_v17  ;;  %v10612_v56 = vld [vmem:[#allocation43_spill] sm:$0xff] }
 0x491   :  { %2389 = vmatpush1.msra.mxu0 %v8010_v60  ;;  %5493 = vmatpush3.msra.mxu1 %v8013_v46  ;;  %v10613_v60 = vld [vmem:[#allocation44_spill] sm:$0xff]  ;;  %v10614_v46 = vld [vmem:[#allocation45_spill] sm:$0xff] }
 0x492   :  { %v2114_v13 = vpop.f32.mrf.mxu0  ;;  %v8469_v43 = vpop.f32.mrf.mxu1  ;;  %2390 = vmatprep.subr.mxu0 %v8018_v33  ;;  %5494 = vmatprep.subr.mxu1 %v10423_v17  ;;  %v10615_v33 = vld [vmem:[#allocation46_spill] sm:$0xff] }
 0x493   :  { %v2189_v34 = vadd.f32 %v2114_v13, %v1974_v26  ;;  %2391 = vmatpush1.msra.mxu0 %v8022_v39  ;;  %5495 = vmatpush3.msra.mxu1 %v8025_v40  ;;  %v10616_v39 = vld [vmem:[#allocation47_spill] sm:$0xff]  ;;  %v10617_v40 = vld [vmem:[#allocation48_spill] sm:$0xff]  ;;  %v2203_v24 = vadd.f32 %v8539_v59, %v8469_v43  ;;  %v10642_v26 = vld [vmem:[#allocation74_spill] sm:$0xff] }
 0x494   :  { %v5448_v45 = vpop.f32.mrf.mxu1  ;;  %2392 = vmatprep.subr.mxu0 %v8028_v2  ;;  %5496 = vmatprep.subr.mxu1 %v10423_v17  ;;  %v2116_v28 = vpop.f32.mrf.mxu0  ;;  %v10618_v2 = vld [vmem:[#allocation49_spill] sm:$0xff] }
 0x495   :  { %v4578_v6 = vmul.f32 -1.442695, %v2189_v34  ;;  %2393 = vmatpush1.msra.mxu0 %v8032_v5  ;;  %5497 = vmatpush3.msra.mxu1 %v8035_v61  ;;  %v2196_v30 = vadd.f32 %v2116_v28, %v1976_v4  ;;  %v10619_v5 = vld [vmem:[#allocation50_spill] sm:$0xff]  ;;  %v10620_v61 = vld [vmem:[#allocation51_spill] sm:$0xff]  ;;  %v10643_v13 = vld [vmem:[#allocation73_spill] sm:$0xff] }
 0x496   :  { %2394 = vmatprep.subr.mxu0 %v8038_v54  ;;  %5498 = vmatprep.subr.mxu1 %v10423_v17  ;;  %v10621_v54 = vld [vmem:[#allocation52_spill] sm:$0xff]  ;;  %v10644_v45 = vld [vmem:[#allocation75_spill] sm:$0xff]  ;;  %v10645_v4 = vld [vmem:[#allocation77_spill] sm:$0xff] }
 0x497   :  { %6055 = vpow2.f32 %v4578_v6  ;;  %2395 = vmatpush1.msra.mxu0 %v8043_v19  ;;  %5499 = vmatpush3.msra.mxu1 %v8046_v21  ;;  %v4579_v9 = vmul.f32 -1.442695, %v2196_v30  ;;  %v10622_v19 = vld [vmem:[#allocation53_spill] sm:$0xff]  ;;  %v2045_v6 = vadd.f32 %v8442_v27, %v7788_v36  ;;  %v10646_v30 = vld [vmem:[#allocation76_spill] sm:$0xff] }
 0x498   :  { %2396 = vmatprep.subr.mxu0 %v8049_v16  ;;  %5500 = vmatprep.subr.mxu1 %v10423_v17  ;;  %v10623_v16 = vld [vmem:[#allocation54_spill] sm:$0xff]  ;;  %v10650_v27 = vld [vmem:[#allocation81_spill] sm:$0xff] }
 0x499   :  { %2397 = vmatpush1.msra.mxu0 %v8053_v11  ;;  %5501 = vmatpush3.msra.mxu1 %v8056_v25  ;;  %6057 = vpow2.f32 %v4579_v9  ;;  %v10624_v25 = vld [vmem:[#allocation55_spill] sm:$0xff]  ;;  %v10648_v9 = vld [vmem:[#allocation80_spill] sm:$0xff] }
 0x49a   :  { %2398 = vmatprep.subr.mxu0 %v8059_v20  ;;  %5502 = vmatprep.subr.mxu1 %v10423_v17  ;;  %v10625_v20 = vld [vmem:[#allocation56_spill] sm:$0xff] }
 0x49b   :  { %2399 = vmatpush1.msra.mxu0 %v8063_v0  ;;  %5503 = vmatpush3.msra.mxu1 %v8066_v52  ;;  %v10626_v0 = vld [vmem:[#allocation57_spill] sm:$0xff]  ;;  %v10627_v52 = vld [vmem:[#allocation59_spill] sm:$0xff] }
 0x49c   :  { %2400 = vmatprep.subr.mxu0 %v10611_v12  ;;  %5504 = vmatprep.subr.mxu1 %v10423_v17  ;;  %v10647_v12 = vld [vmem:[#allocation78_spill] sm:$0xff] }
 0x49d   :  { %2401 = vmatpush1.msra.mxu0 %v10612_v56  ;;  %5505 = vmatpush3.msra.mxu1 %v10613_v60  ;;  %v10649_v56 = vld [vmem:[#allocation79_spill] sm:$0xff] }
 0x49e   :  { %2402 = vmatprep.subr.mxu0 %v10614_v46  ;;  %5506 = vmatprep.subr.mxu1 %v10423_v17  ;;  %v10651_v60 = vld [vmem:[#allocation83_spill] sm:$0xff]  ;;  %v10653_v46 = vld [vmem:[#allocation84_spill] sm:$0xff] }
 0x49f   :  { %2403 = vmatpush1.msra.mxu0 %v10615_v33  ;;  %5507 = vmatpush3.msra.mxu1 %v10616_v39  ;;  %v10654_v33 = vld [vmem:[#allocation86_spill] sm:$0xff]  ;;  %v10655_v39 = vld [vmem:[#allocation85_spill] sm:$0xff] }
 0x4a0   :  { %2404 = vmatprep.subr.mxu0 %v10617_v40  ;;  %5508 = vmatprep.subr.mxu1 %v10423_v17  ;;  %v10656_v40 = vld [vmem:[#allocation87_spill] sm:$0xff] }
 0x4a1   :  { %2405 = vmatpush1.msra.mxu0 %v10618_v2  ;;  %5509 = vmatpush3.msra.mxu1 %v10619_v5  ;;  %v10657_v2 = vld [vmem:[#allocation89_spill] sm:$0xff]  ;;  %v10658_v5 = vld [vmem:[#allocation88_spill] sm:$0xff] }
 0x4a2   :  { %2406 = vmatprep.subr.mxu0 %v10620_v61  ;;  %5510 = vmatprep.subr.mxu1 %v10423_v17  ;;  %v10659_v61 = vld [vmem:[#allocation90_spill] sm:$0xff] }
 0x4a3   :  { %2407 = vmatpush1.msra.mxu0 %v10621_v54  ;;  %5511 = vmatpush3.msra.mxu1 %v10622_v19  ;;  %v10660_v54 = vld [vmem:[#allocation92_spill] sm:$0xff]  ;;  %v10661_v19 = vld [vmem:[#allocation91_spill] sm:$0xff] }
 0x4a4   :  { %v6056_v21 = vpop.eup %6055  ;;  %2408 = vmatprep.subr.mxu0 %v10623_v16  ;;  %5512 = vmatprep.subr.mxu1 %v10423_v17  ;;  %v10663_v16 = vld [vmem:[#allocation94_spill] sm:$0xff] }
 0x4a5   :  { %v2193_v11 = vadd.f32 1.0, %v6056_v21  ;;  %2409 = vmatpush1.msra.mxu0 %v10624_v25  ;;  %5513 = vmatpush3.msra.mxu1 %v10625_v20  ;;  %v10662_v21 = vld [vmem:[#allocation93_spill] sm:$0xff]  ;;  %v10664_v25 = vld [vmem:[#allocation95_spill] sm:$0xff]  ;;  %v10665_v20 = vld [vmem:[#allocation96_spill] sm:$0xff] }
 0x4a6   :  { %2410 = vmatprep.subr.mxu0 %v10626_v0  ;;  %5514 = vmatprep.subr.mxu1 %v10423_v17  ;;  %v6058_v51 = vpop.eup %6057  ;;  %v10666_v0 = vld [vmem:[#allocation97_spill] sm:$0xff] }
 0x4a7   :  { %6059 = vrcp.f32 %v2193_v11  ;;  %2411 = vmatpush1.msra.mxu0 %v10627_v52  ;;  %2444 = vmatprep.mubr.f32.mxu0 %v10423_v17  ;;  %v2200_v63 = vadd.f32 1.0, %v6058_v51  ;;  %v10667_v52 = vld [vmem:[#allocation98_spill] sm:$0xff] }
 0x4a8   :  { %5515 = vmatpush3.msra.mxu1 %v10628_v55  ;;  %5516 = vmatprep.mubr.msk.f32.mxu1 %vm6774_vm0, %v10423_v17  ;;  %v10668_v55 = vld [vmem:[#allocation99_spill] sm:$0xff] }
 0x4a9   :  { %2445 = vmatmul.mubr.f32.vlgmr.msra.gmra.mxu0 %v8446_v49  ;;  %5517 = vmatmul.mubr.f32.vlgmr.msra.gmra.mxu1 %v8446_v49  ;;  %6061 = vrcp.f32 %v2200_v63  ;;  %v8632_v63 = vld [vmem:[#allocation6 + $0x100] sm:$0xff] }
 0x4aa   :  { %2521 = vmatprep.subr.mxu0 %v10629_v35  ;;  %5519 = vmatprep.subr.mxu1 %v10423_v17  ;;  %v10669_v35 = vld [vmem:[#allocation100_spill] sm:$0xff] }
 0x4ab   :  { %2522 = vmatpush1.msra.mxu0 %v10630_v7  ;;  %5520 = vmatpush3.msra.mxu1 %v10631_v14 }
 0x4ac   :  { %2523 = vmatprep.subr.mxu0 %v10632_v18  ;;  %5521 = vmatprep.subr.mxu1 %v10423_v17  ;;  %v10670_v18 = vld [vmem:[#allocation101_spill] sm:$0xff] }
 0x4ad   :  { %2524 = vmatpush1.msra.mxu0 %v10633_v62  ;;  %5522 = vmatpush3.msra.mxu1 %v10634_v47  ;;  %v10671_v62 = vld [vmem:[#allocation102_spill] sm:$0xff] }
 0x4ae   :  { %2525 = vmatprep.subr.mxu0 %v10635_v48  ;;  %5523 = vmatprep.subr.mxu1 %v10423_v17 }
 0x4af   :  { %2526 = vmatpush1.msra.mxu0 %v10636_v42  ;;  %5524 = vmatpush3.msra.mxu1 %v10637_v8  ;;  %v10676_v42 = vld [vmem:[#allocation107_spill] sm:$0xff] }
 0x4b0   :  { %2527 = vmatprep.subr.mxu0 %v10638_v15  ;;  %5525 = vmatprep.subr.mxu1 %v10423_v17  ;;  %v8626_v8 = vld [vmem:[#allocation6 + $0x118] sm:$0xff]  ;;  %v10678_v15 = vld [vmem:[#allocation109_spill] sm:$0xff] }
 0x4b1   :  { %2528 = vmatpush1.msra.mxu0 %v10639_v22  ;;  %5526 = vmatpush3.msra.mxu1 %v10640_v10  ;;  %v10680_v22 = vld [vmem:[#allocation111_spill] sm:$0xff]  ;;  %v10681_v10 = vld [vmem:[#allocation112_spill] sm:$0xff] }
 0x4b2   :  { %2529 = vmatprep.subr.mxu0 %v10641_v44  ;;  %5527 = vmatprep.subr.mxu1 %v10423_v17  ;;  %v8638_v44 = vld [vmem:[#allocation6 + $0xe8] sm:$0xff] }
 0x4b3   :  { %2530 = vmatpush1.msra.mxu0 %v10642_v26  ;;  %5528 = vmatpush3.msra.mxu1 %v10643_v13  ;;  %v10683_v26 = vld [vmem:[#allocation114_spill] sm:$0xff] }
 0x4b4   :  { %v6060_v34 = vpop.eup %6059  ;;  %2531 = vmatprep.subr.mxu0 %v10644_v45  ;;  %5529 = vmatprep.subr.mxu1 %v10423_v17  ;;  %v8644_v13 = vld [vmem:[#allocation6 + $0xd0] sm:$0xff]  ;;  %v10685_v45 = vld [vmem:[#allocation116_spill] sm:$0xff] }
 0x4b5   :  { %v2204_v28 = vmul.f32 %v6060_v34, %v2203_v24  ;;  %2532 = vmatpush1.msra.mxu0 %v8192_v53  ;;  %5530 = vmatpush3.msra.mxu1 %v10645_v4  ;;  %v10652_v53 = vld [vmem:[#allocation82_spill] sm:$0xff]  ;;  %v10682_v24 = vld [vmem:[#allocation113_spill] sm:$0xff]  ;;  %v10684_v34 = vld [vmem:[#allocation115_spill] sm:$0xff] }
 0x4b6   :  { %2533 = vmatprep.subr.mxu0 %v10646_v30  ;;  %5531 = vmatprep.subr.mxu1 %v10423_v17  ;;  %v6062_v11 = vpop.eup %6061  ;;  %v10687_v4 = vld [vmem:[#allocation118_spill] sm:$0xff]  ;;  %v8656_v30 = vld [vmem:[#allocation6 + $0xa0] sm:$0xff] }
 0x4b7   :  { %v2205_v43 = vadd.f32 %v2204_v28, %v2045_v6  ;;  %2534 = vmatpush1.msra.mxu0 %v10647_v12  ;;  %5532 = vmatpush3.msra.mxu1 %v10648_v9  ;;  %v2207_v7 = vsub.f32 1.0, %v6062_v11  ;;  %v2209_v51 = vmul.f32 %v6062_v11, %v8297_v3  ;;  %v8650_v6 = vld [vmem:[#allocation6 + $0xb8] sm:$0xff]  ;;  %v10686_v28 = vld [vmem:[#allocation117_spill] sm:$0xff] }
 0x4b8   :  { %2535 = vmatprep.subr.mxu0 %v10649_v56  ;;  %5533 = vmatprep.subr.mxu1 %v10423_v17  ;;  %v10689_v12 = vld [vmem:[#allocation120_spill] sm:$0xff]  ;;  %v8662_v9 = vld [vmem:[#allocation6 + $0x88] sm:$0xff]  ;;  %v8698_v11 = vld [vmem:[#allocation9 + $0x170] sm:$0xff] }
 0x4b9   :  { %6063 = vtanh.f32 %v2205_v43  ;;  %2536 = vmatpush1.msra.mxu0 %v10650_v27  ;;  %5534 = vmatpush3.msra.mxu1 %v10651_v60  ;;  %v10688_v43 = vld [vmem:[#allocation119_spill] sm:$0xff]  ;;  %v10690_v56 = vld [vmem:[#allocation121_spill] sm:$0xff]  ;;  %v10691_v27 = vld [vmem:[#allocation122_spill] sm:$0xff] }
 0x4ba   :  { %2537 = vmatprep.subr.mxu0 %v10652_v53  ;;  %5535 = vmatprep.subr.mxu1 %v10423_v17  ;;  %v8668_v60 = vld [vmem:[#allocation6 + $0x70] sm:$0xff] }
 0x4bb   :  { %2538 = vmatpush1.msra.mxu0 %v10653_v46  ;;  %5536 = vmatpush3.msra.mxu1 %v10654_v33  ;;  %v10692_v53 = vld [vmem:[#allocation123_spill] sm:$0xff]  ;;  %v10693_v46 = vld [vmem:[#allocation124_spill] sm:$0xff] }
 0x4bc   :  { %2539 = vmatprep.subr.mxu0 %v10655_v39  ;;  %5537 = vmatprep.subr.mxu1 %v10423_v17  ;;  %v8674_v33 = vld [vmem:[#allocation6 + $0x58] sm:$0xff]  ;;  %v10694_v39 = vld [vmem:[#allocation22_spill] sm:$0xff] }
 0x4bd   :  { %2540 = vmatpush1.msra.mxu0 %v10656_v40  ;;  %5538 = vmatpush3.msra.mxu1 %v10657_v2  ;;  %v10695_v40 = vld [vmem:[#allocation23_spill] sm:$0xff]  ;;  %v8680_v2 = vld [vmem:[#allocation6 + $0x40] sm:$0xff] }
 0x4be   :  { %2541 = vmatprep.subr.mxu0 %v10658_v5  ;;  %5539 = vmatprep.subr.mxu1 %v10423_v17  ;;  %v10696_v5 = vld [vmem:[#allocation35_spill] sm:$0xff] }
 0x4bf   :  { %2542 = vmatpush1.msra.mxu0 %v10659_v61  ;;  %5540 = vmatpush3.msra.mxu1 %v10660_v54  ;;  %v10697_v61 = vld [vmem:[#allocation127_spill] sm:$0xff]  ;;  %v8686_v54 = vld [vmem:[#allocation6 + $0x28] sm:$0xff] }
 0x4c0   :  { %2543 = vmatprep.subr.mxu0 %v10661_v19  ;;  %5541 = vmatprep.subr.mxu1 %v10423_v17  ;;  %v10698_v19 = vld [vmem:[#allocation128_spill] sm:$0xff]  ;;  %v8832_v3 = vld [vmem:[#allocation9 + $0x70] sm:$0xff] }
 0x4c1   :  { %2544 = vmatpush1.msra.mxu0 %v10662_v21  ;;  %5542 = vmatpush3.msra.mxu1 %v10663_v16  ;;  %v10699_v21 = vld [vmem:[#allocation129_spill] sm:$0xff]  ;;  %v8692_v16 = vld [vmem:[#allocation6 + $0x10] sm:$0xff]  ;;  %10708 = vst [vmem:[#allocation45_spill] sm:$0xff] %v8832_v3 }
 0x4c2   :  { %2545 = vmatprep.subr.mxu0 %v10664_v25  ;;  %5543 = vmatprep.subr.mxu1 %v10423_v17 }
 0x4c3   :  { %2546 = vmatpush1.msra.mxu0 %v10665_v20  ;;  %5544 = vmatpush3.msra.mxu1 %v10666_v0  ;;  %v10700_v0 = vld [vmem:[#allocation26_spill] sm:$0xff] }
 0x4c4   :  { %2547 = vmatprep.subr.mxu0 %v10667_v52  ;;  %5545 = vmatprep.subr.mxu1 %v10423_v17 }
 0x4c5   :  { %2548 = vmatpush1.msra.mxu0 %v10668_v55  ;;  %5546 = vmatpush3.msra.mxu1 %v10669_v35 }
 0x4c6   :  { %v6064_v14 = vpop.eup %6063  ;;  %2549 = vmatprep.subr.mxu0 %v10670_v18  ;;  %5547 = vmatprep.subr.mxu1 %v10423_v17 }
 0x4c7   :  { %2550 = vmatpush1.msra.mxu0 %v10671_v62  ;;  %5548 = vmatpush3.msra.mxu1 %v8285_v23  ;;  %v2208_v47 = vmul.f32 %v6064_v14, %v2207_v7  ;;  %v10674_v23 = vld [vmem:[#allocation105_spill] sm:$0xff]  ;;  %v10701_v14 = vld [vmem:[#allocation27_spill] sm:$0xff] }
 0x4c8   :  { %2551 = vmatprep.subr.mxu0 %v8289_v41  ;;  %5549 = vmatprep.subr.mxu1 %v10423_v17  ;;  %v8608_v41 = vld [vmem:[#allocation6 + $0x160] sm:$0xff] }
 0x4c9   :  { %2552 = vmatpush1.msra.mxu0 %v8293_v1  ;;  %2585 = vmatprep.mubr.f32.mxu0 %v10423_v17  ;;  %v8592_v48 = vadd.f32 %v2209_v51, %v2208_v47  ;;  %v8602_v1 = vld [vmem:[#allocation6 + $0x178] sm:$0xff] }
 0x4ca   :  { %5550 = vmatpush3.msra.mxu1 %v8299_v31  ;;  %5551 = vmatprep.mubr.msk.f32.mxu1 %vm6774_vm0, %v10423_v17  ;;  %v10673_v31 = vld [vmem:[#allocation104_spill] sm:$0xff] }
 0x4cb   :  { %10672 = vst [vmem:[#allocation24_spill] sm:$0xff] %v8592_v48  ;;  %2586 = vmatmul.mubr.f32.vlgmr.msra.gmra.mxu0 %v8592_v48  ;;  %5552 = vmatmul.mubr.f32.vlgmr.msra.gmra.mxu1 %v8592_v48 }
 0x4cc   :  { %2690 = vmatprep.subr.mxu0 %v8306_v37  ;;  %5554 = vmatprep.subr.mxu1 %v10423_v17  ;;  %v8614_v37 = vld [vmem:[#allocation6 + $0x148] sm:$0xff] }
 0x4cd   :  { %2691 = vmatpush1.msra.mxu0 %v8310_v57  ;;  %5555 = vmatpush3.msra.mxu1 %v8602_v1  ;;  %v10675_v57 = vld [vmem:[#allocation106_spill] sm:$0xff] }
 0x4ce   :  { %2692 = vmatprep.subr.mxu0 %v8314_v38  ;;  %5556 = vmatprep.subr.mxu1 %v10423_v17  ;;  %v8620_v38 = vld [vmem:[#allocation6 + $0x130] sm:$0xff] }
 0x4cf   :  { %2693 = vmatpush1.msra.mxu0 %v10673_v31  ;;  %5557 = vmatpush3.msra.mxu1 %v8608_v41 }
 0x4d0   :  { %2694 = vmatprep.subr.mxu0 %v8322_v58  ;;  %5558 = vmatprep.subr.mxu1 %v10423_v17  ;;  %v10677_v58 = vld [vmem:[#allocation108_spill] sm:$0xff] }
 0x4d1   :  { %2695 = vmatpush1.msra.mxu0 %v10674_v23  ;;  %5559 = vmatpush3.msra.mxu1 %v8614_v37 }
 0x4d2   :  { %2696 = vmatprep.subr.mxu0 %v8330_v50  ;;  %5560 = vmatprep.subr.mxu1 %v10423_v17  ;;  %v10679_v50 = vld [vmem:[#allocation110_spill] sm:$0xff] }
 0x4d3   :  { %2697 = vmatpush1.msra.mxu0 %v10675_v57  ;;  %5561 = vmatpush3.msra.mxu1 %v8620_v38  ;;  %v8704_v57 = vld [vmem:[#allocation8] ss:$0 sm:$0xff] }
 0x4d4   :  { %2698 = vmatprep.subr.mxu0 %v10676_v42  ;;  %5562 = vmatprep.subr.mxu1 %v10423_v17 }
 0x4d5   :  { %2699 = vmatpush1.msra.mxu0 %v10677_v58  ;;  %5563 = vmatpush3.msra.mxu1 %v8626_v8 }
 0x4d6   :  { %2700 = vmatprep.subr.mxu0 %v10678_v15  ;;  %5564 = vmatprep.subr.mxu1 %v10423_v17 }
 0x4d7   :  { %2701 = vmatpush1.msra.mxu0 %v10679_v50  ;;  %5565 = vmatpush3.msra.mxu1 %v8632_v63 }
 0x4d8   :  { %2702 = vmatprep.subr.mxu0 %v10680_v22  ;;  %5566 = vmatprep.subr.mxu1 %v10423_v17 }
 0x4d9   :  { %2703 = vmatpush1.msra.mxu0 %v10681_v10  ;;  %5567 = vmatpush3.msra.mxu1 %v8638_v44  ;;  %v10702_v10 = vld [vmem:[#allocation37_spill] sm:$0xff] }
 0x4da   :  { %2704 = vmatprep.subr.mxu0 %v10682_v24  ;;  %5568 = vmatprep.subr.mxu1 %v10423_v17 }
 0x4db   :  { %2705 = vmatpush1.msra.mxu0 %v10683_v26  ;;  %5569 = vmatpush3.msra.mxu1 %v8644_v13 }
 0x4dc   :  { %2706 = vmatprep.subr.mxu0 %v10684_v34  ;;  %5570 = vmatprep.subr.mxu1 %v10423_v17 }
 0x4dd   :  { %2707 = vmatpush1.msra.mxu0 %v10685_v45  ;;  %5571 = vmatpush3.msra.mxu1 %v8650_v6 }
 0x4de   :  { %2708 = vmatprep.subr.mxu0 %v10686_v28  ;;  %5572 = vmatprep.subr.mxu1 %v10423_v17 }
 0x4df   :  { %2709 = vmatpush1.msra.mxu0 %v10687_v4  ;;  %5573 = vmatpush3.msra.mxu1 %v8656_v30 }
 0x4e0   :  { %2710 = vmatprep.subr.mxu0 %v10688_v43  ;;  %5574 = vmatprep.subr.mxu1 %v10423_v17 }
 0x4e1   :  { %2711 = vmatpush1.msra.mxu0 %v10689_v12  ;;  %5575 = vmatpush3.msra.mxu1 %v8662_v9  ;;  %v8715_v12 = vld [vmem:[#allocation9 + $0x168] sm:$0xff] }
 0x4e2   :  { %2712 = vmatprep.subr.mxu0 %v10690_v56  ;;  %5576 = vmatprep.subr.mxu1 %v10423_v17  ;;  %v8718_v56 = vld [vmem:[#allocation9 + $0x178] sm:$0xff] }
 0x4e3   :  { %2713 = vmatpush1.msra.mxu0 %v10691_v27  ;;  %5577 = vmatpush3.msra.mxu1 %v8668_v60  ;;  %v8721_v27 = vld [vmem:[#allocation9 + $0x158] sm:$0xff] }
 0x4e4   :  { %2714 = vmatprep.subr.mxu0 %v10692_v53  ;;  %5578 = vmatprep.subr.mxu1 %v10423_v17  ;;  %v8728_v53 = vld [vmem:[#allocation9 + $0x160] sm:$0xff] }
 0x4e5   :  { %2715 = vmatpush1.msra.mxu0 %v10693_v46  ;;  %5579 = vmatpush3.msra.mxu1 %v8674_v33 }
 0x4e6   :  { %2716 = vmatprep.subr.mxu0 %v10694_v39  ;;  %5580 = vmatprep.subr.mxu1 %v10423_v17  ;;  %v8731_v39 = vld [vmem:[#allocation9 + $0x140] sm:$0xff] }
 0x4e7   :  { %2717 = vmatpush1.msra.mxu0 %v10695_v40  ;;  %5581 = vmatpush3.msra.mxu1 %v8680_v2  ;;  %v8735_v40 = vld [vmem:[#allocation9 + $0x138] sm:$0xff] }
 0x4e8   :  { %2718 = vmatprep.subr.mxu0 %v10696_v5  ;;  %5582 = vmatprep.subr.mxu1 %v10423_v17  ;;  %v8738_v5 = vld [vmem:[#allocation9 + $0x148] sm:$0xff] }
 0x4e9   :  { %2719 = vmatpush1.msra.mxu0 %v10697_v61  ;;  %5583 = vmatpush3.msra.mxu1 %v8686_v54  ;;  %v8741_v61 = vld [vmem:[#allocation9 + $0x128] sm:$0xff] }
 0x4ea   :  { %2720 = vmatprep.subr.mxu0 %v10698_v19  ;;  %5584 = vmatprep.subr.mxu1 %v10423_v17  ;;  %v8745_v19 = vld [vmem:[#allocation9 + $0x120] sm:$0xff] }
 0x4eb   :  { %2721 = vmatpush1.msra.mxu0 %v10699_v21  ;;  %5585 = vmatpush3.msra.mxu1 %v8692_v16  ;;  %v8748_v21 = vld [vmem:[#allocation9 + $0x130] sm:$0xff] }
 0x4ec   :  { %2754 = vmatprep.mubr.f32.mxu0 %v10423_v17  ;;  %5586 = vmatprep.mubr.msk.f32.mxu1 %vm6774_vm0, %v10423_v17 }
 0x4ed   :  { %2853 = vmatprep.subr.mxu0 %v8698_v11  ;;  %5589 = vmatprep.subr.mxu1 %v10423_v17 }
 0x548   :  { %v2283_v25 = vpop.f32.mrf.mxu0  ;;  %v2354_v20 = vpop.f32.mrf.mxu1 }
 0x549   :  { %v2358_v52 = vadd.f32 %v2283_v25, %v10700_v0  ;;  %v2372_v42 = vadd.f32 %v8704_v57, %v2354_v20  ;;  %v8751_v20 = vld [vmem:[#allocation9 + $0x110] sm:$0xff] }
 0x54a   :  { %v5483_v55 = vpop.f32.mrf.mxu1  ;;  %v2285_v7 = vpop.f32.mrf.mxu0 }
 0x54b   :  { %v4580_v35 = vmul.f32 -1.442695, %v2358_v52  ;;  %v2365_v18 = vadd.f32 %v2285_v7, %v10701_v14  ;;  %v8756_v52 = vld [vmem:[#allocation9 + $0x108] sm:$0xff]  ;;  %v8759_v55 = vld [vmem:[#allocation9 + $0x118] sm:$0xff] }
 0x54c   :  { %v8764_v14 = vld [vmem:[#allocation9 + $0xf8] sm:$0xff] }
 0x54d   :  { %6065 = vpow2.f32 %v4580_v35  ;;  %v4581_v62 = vmul.f32 -1.442695, %v2365_v18 }
 0x54f   :  { %6067 = vpow2.f32 %v4581_v62  ;;  %v8768_v62 = vld [vmem:[#allocation9 + $0xf0] sm:$0xff] }
 0x55a   :  { %v6066_v47 = vpop.eup %6065 }
 0x55b   :  { %v2362_v51 = vadd.f32 1.0, %v6066_v47  ;;  %v8771_v47 = vld [vmem:[#allocation9 + $0x100] sm:$0xff] }
 0x55c   :  { %v6068_v31 = vpop.eup %6067 }
 0x55d   :  { %6069 = vrcp.f32 %v2362_v51  ;;  %v2369_v23 = vadd.f32 1.0, %v6068_v31  ;;  %v8774_v31 = vld [vmem:[#allocation9 + $0xe0] sm:$0xff] }
 0x55f   :  { %6071 = vrcp.f32 %v2369_v23 }
 0x569   :  { %v8707_v58 = vpop.f32.mrf.mxu1  ;;  %v2446_v46 = vpop.f32.mrf.mxu0 }
 0x56a   :  { %v6070_v15 = vpop.eup %6069  ;;  %v2447_v0 = vadd.f32 %v2446_v46, %v7699_v29  ;;  %v8805_v46 = vld [vmem:[#allocation9 + $0x98] sm:$0xff] }
 0x56b   :  { %v2373_v50 = vmul.f32 %v6070_v15, %v2372_v42  ;;  %v5518_v22 = vpop.f32.mrf.mxu1  ;;  %v2448_v25 = vpop.f32.mrf.mxu0  ;;  %v8778_v42 = vld [vmem:[#allocation9 + $0xd8] sm:$0xff]  ;;  %v8781_v15 = vld [vmem:[#allocation9 + $0xe8] sm:$0xff] }
 0x56c   :  { %v6072_v26 = vpop.eup %6071  ;;  %v8784_v22 = vld [vmem:[#allocation9 + $0xc8] sm:$0xff] }
 0x56d   :  { %v2374_v24 = vadd.f32 %v2373_v50, %v10702_v10  ;;  %v2376_v34 = vsub.f32 1.0, %v6072_v26  ;;  %v2378_v4 = vmul.f32 %v6072_v26, %v8446_v49  ;;  %v8725_v49 = vld [vmem:[#allocation9 + $0x150] sm:$0xff]  ;;  %v2449_v10 = vadd.f32 %v2448_v25, %v7717_v32 }
 0x56e   :  { %v8792_v26 = vld [vmem:[#allocation9 + $0xd0] sm:$0xff] }
 0x56f   :  { %6073 = vtanh.f32 %v2374_v24  ;;  %v8789_v24 = vld [vmem:[#allocation9 + $0xc0] sm:$0xff]  ;;  %v8809_v25 = vld [vmem:[#allocation9 + $0x90] sm:$0xff] }
 0x57c   :  { %v6074_v45 = vpop.eup %6073 }
 0x57d   :  { %v2377_v28 = vmul.f32 %v6074_v45, %v2376_v34  ;;  %v8795_v34 = vld [vmem:[#allocation9 + $0xb0] sm:$0xff] }
 0x57f   :  { %v8711_v43 = vadd.f32 %v2378_v4, %v2377_v28  ;;  %v8799_v28 = vld [vmem:[#allocation9 + $0xa8] sm:$0xff]  ;;  %v8802_v4 = vld [vmem:[#allocation9 + $0xb8] sm:$0xff] }
 0x581   :  { %2755 = vmatmul.mubr.f32.vlgmr.msra.gmra.mxu0 %v8711_v43  ;;  %5587 = vmatmul.mubr.f32.vlgmr.msra.gmra.mxu1 %v8711_v43 }
 0x582   :  { %2854 = vmatpush1.msra.mxu0 %v8715_v12  ;;  %5590 = vmatpush3.msra.mxu1 %v8718_v56 }
 0x583   :  { %2855 = vmatprep.subr.mxu0 %v8721_v27  ;;  %5591 = vmatprep.subr.mxu1 %v10423_v17 }
 0x584   :  { %2856 = vmatpush1.msra.mxu0 %v8725_v49  ;;  %5592 = vmatpush3.msra.mxu1 %v8728_v53 }
 0x585   :  { %2857 = vmatprep.subr.mxu0 %v8731_v39  ;;  %5593 = vmatprep.subr.mxu1 %v10423_v17 }
 0x586   :  { %2858 = vmatpush1.msra.mxu0 %v8735_v40  ;;  %5594 = vmatpush3.msra.mxu1 %v8738_v5 }
 0x587   :  { %2859 = vmatprep.subr.mxu0 %v8741_v61  ;;  %5595 = vmatprep.subr.mxu1 %v10423_v17 }
 0x588   :  { %2860 = vmatpush1.msra.mxu0 %v8745_v19  ;;  %5596 = vmatpush3.msra.mxu1 %v8748_v21 }
 0x589   :  { %2861 = vmatprep.subr.mxu0 %v8751_v20  ;;  %5597 = vmatprep.subr.mxu1 %v10423_v17 }
 0x58a   :  { %2862 = vmatpush1.msra.mxu0 %v8756_v52  ;;  %5598 = vmatpush3.msra.mxu1 %v8759_v55 }
 0x58b   :  { %v2587_v35 = vpop.f32.mrf.mxu0  ;;  %v8762_v7 = vpop.f32.mrf.mxu1  ;;  %2863 = vmatprep.subr.mxu0 %v8764_v14  ;;  %5599 = vmatprep.subr.mxu1 %v10423_v17 }
 0x58c   :  { %v2662_v18 = vadd.f32 %v2587_v35, %v2447_v0  ;;  %2864 = vmatpush1.msra.mxu0 %v8768_v62  ;;  %5600 = vmatpush3.msra.mxu1 %v8771_v47  ;;  %v8812_v0 = vld [vmem:[#allocation9 + $0xa0] sm:$0xff] }
 0x58d   :  { %v5553_v51 = vpop.f32.mrf.mxu1  ;;  %2865 = vmatprep.subr.mxu0 %v8774_v31  ;;  %5601 = vmatprep.subr.mxu1 %v10423_v17  ;;  %v2589_v50 = vpop.f32.mrf.mxu0  ;;  %v8815_v35 = vld [vmem:[#allocation9 + $0x80] sm:$0xff] }
 0x58e   :  { %v4582_v23 = vmul.f32 -1.442695, %v2662_v18  ;;  %2866 = vmatpush1.msra.mxu0 %v8778_v42  ;;  %5602 = vmatpush3.msra.mxu1 %v8781_v15  ;;  %v2669_v45 = vadd.f32 %v2589_v50, %v2449_v10  ;;  %10703 = vst [vmem:[#allocation25_spill] sm:$0xff] %v8815_v35  ;;  %v8819_v51 = vld [vmem:[#allocation9 + $0x78] sm:$0xff]  ;;  %v8825_v50 = vld [vmem:[#allocation9 + $0x68] sm:$0xff]  ;;  %v8829_v10 = vld [vmem:[#allocation9 + $0x60] sm:$0xff] }
 0x58f   :  { %2867 = vmatprep.subr.mxu0 %v8784_v22  ;;  %5603 = vmatprep.subr.mxu1 %v10423_v17  ;;  %10704 = vst [vmem:[#allocation34_spill] sm:$0xff] %v8819_v51  ;;  %10706 = vst [vmem:[#allocation43_spill] sm:$0xff] %v8825_v50 }
 0x590   :  { %6075 = vpow2.f32 %v4582_v23  ;;  %2868 = vmatpush1.msra.mxu0 %v8789_v24  ;;  %5604 = vmatpush3.msra.mxu1 %v8792_v26  ;;  %v4583_v18 = vmul.f32 -1.442695, %v2669_v45  ;;  %v8822_v23 = vld [vmem:[#allocation9 + $0x88] sm:$0xff]  ;;  %10707 = vst [vmem:[#allocation44_spill] sm:$0xff] %v8829_v10  ;;  %v8835_v45 = vld [vmem:[#allocation9 + $0x50] sm:$0xff] }
 0x591   :  { %2869 = vmatprep.subr.mxu0 %v8795_v34  ;;  %5605 = vmatprep.subr.mxu1 %v10423_v17  ;;  %10705 = vst [vmem:[#allocation42_spill] sm:$0xff] %v8822_v23  ;;  %10709 = vst [vmem:[#allocation46_spill] sm:$0xff] %v8835_v45 }
 0x592   :  { %2870 = vmatpush1.msra.mxu0 %v8799_v28  ;;  %5606 = vmatpush3.msra.mxu1 %v8802_v4  ;;  %6077 = vpow2.f32 %v4583_v18 }
 0x593   :  { %2871 = vmatprep.subr.mxu0 %v8805_v46  ;;  %5607 = vmatprep.subr.mxu1 %v10423_v17 }
 0x594   :  { %2872 = vmatpush1.msra.mxu0 %v8809_v25  ;;  %5608 = vmatpush3.msra.mxu1 %v8812_v0 }
 0x595   :  { %2873 = vmatprep.subr.mxu0 %v8815_v35  ;;  %5609 = vmatprep.subr.mxu1 %v10423_v17  ;;  %v8932_v35 = vld [vmem:[#allocation11 + $0xf8] sm:$0xff] }
 0x596   :  { %2874 = vmatpush1.msra.mxu0 %v8819_v51  ;;  %5610 = vmatpush3.msra.mxu1 %v8822_v23  ;;  %v8839_v23 = vld [vmem:[#allocation9 + $0x48] sm:$0xff]  ;;  %v8859_v51 = vld [vmem:[#allocation9 + $0x18] sm:$0xff]  ;;  %10736 = vst [vmem:[#allocation74_spill] sm:$0xff] %v8932_v35 }
 0x597   :  { %2875 = vmatprep.subr.mxu0 %v8825_v50  ;;  %5611 = vmatprep.subr.mxu1 %v10423_v17  ;;  %10710 = vst [vmem:[#allocation47_spill] sm:$0xff] %v8839_v23  ;;  %v8842_v50 = vld [vmem:[#allocation9 + $0x58] sm:$0xff]  ;;  %10716 = vst [vmem:[#allocation53_spill] sm:$0xff] %v8859_v51 }
 0x598   :  { %2876 = vmatpush1.msra.mxu0 %v8829_v10  ;;  %5612 = vmatpush3.msra.mxu1 %v8832_v3  ;;  %10711 = vst [vmem:[#allocation48_spill] sm:$0xff] %v8842_v50  ;;  %v8845_v10 = vld [vmem:[#allocation9 + $0x38] sm:$0xff]  ;;  %v8849_v3 = vld [vmem:[#allocation9 + $0x30] sm:$0xff] }
 0x599   :  { %2877 = vmatprep.subr.mxu0 %v8835_v45  ;;  %5613 = vmatprep.subr.mxu1 %v10423_v17  ;;  %10712 = vst [vmem:[#allocation49_spill] sm:$0xff] %v8845_v10  ;;  %10713 = vst [vmem:[#allocation50_spill] sm:$0xff] %v8849_v3  ;;  %v8852_v45 = vld [vmem:[#allocation9 + $0x40] sm:$0xff] }
 0x59a   :  { %2878 = vmatpush1.msra.mxu0 %v8839_v23  ;;  %5614 = vmatpush3.msra.mxu1 %v8842_v50  ;;  %10714 = vst [vmem:[#allocation51_spill] sm:$0xff] %v8852_v45  ;;  %v8855_v23 = vld [vmem:[#allocation9 + $0x20] sm:$0xff] }
 0x59b   :  { %2879 = vmatprep.subr.mxu0 %v8845_v10  ;;  %5615 = vmatprep.subr.mxu1 %v10423_v17  ;;  %10715 = vst [vmem:[#allocation52_spill] sm:$0xff] %v8855_v23  ;;  %v8862_v10 = vld [vmem:[#allocation9 + $0x28] sm:$0xff] }
 0x59c   :  { %2880 = vmatpush1.msra.mxu0 %v8849_v3  ;;  %5616 = vmatpush3.msra.mxu1 %v8852_v45  ;;  %10717 = vst [vmem:[#allocation54_spill] sm:$0xff] %v8862_v10  ;;  %v8865_v3 = vld [vmem:[#allocation9 + $0x8] sm:$0xff]  ;;  %v8869_v45 = vld [vmem:[#allocation9] sm:$0xff] }
 0x59d   :  { %v6076_v18 = vpop.eup %6075  ;;  %2881 = vmatprep.subr.mxu0 %v8855_v23  ;;  %5617 = vmatprep.subr.mxu1 %v10423_v17  ;;  %10718 = vst [vmem:[#allocation55_spill] sm:$0xff] %v8865_v3  ;;  %10719 = vst [vmem:[#allocation56_spill] sm:$0xff] %v8869_v45  ;;  %v8914_v23 = vld [vmem:[#allocation11 + $0x120] sm:$0xff] }
 0x59e   :  { %v2666_v50 = vadd.f32 1.0, %v6076_v18  ;;  %2882 = vmatpush1.msra.mxu0 %v8859_v51  ;;  %5618 = vmatpush3.msra.mxu1 %v8862_v10  ;;  %v8873_v18 = vld [vmem:[#allocation9 + $0x10] sm:$0xff]  ;;  %10731 = vst [vmem:[#allocation67_spill] sm:$0xff] %v8914_v23 }
 0x59f   :  { %2883 = vmatprep.subr.mxu0 %v8865_v3  ;;  %5619 = vmatprep.subr.mxu1 %v10423_v17  ;;  %10720 = vst [vmem:[#allocation57_spill] sm:$0xff] %v8873_v18  ;;  %v8880_v3 = vld [vmem:[#allocation11 + $0x170] sm:$0xff]  ;;  %v6078_v51 = vpop.eup %6077 }
 0x5a0   :  { %6079 = vrcp.f32 %v2666_v50  ;;  %2884 = vmatpush1.msra.mxu0 %v8869_v45  ;;  %2917 = vmatprep.mubr.f32.mxu0 %v10423_v17  ;;  %10721 = vst [vmem:[#allocation59_spill] sm:$0xff] %v8880_v3  ;;  %v8884_v50 = vld [vmem:[#allocation11 + $0x168] sm:$0xff]  ;;  %v8887_v45 = vld [vmem:[#allocation11 + $0x178] sm:$0xff]  ;;  %v8894_v10 = vld [vmem:[#allocation11 + $0x150] sm:$0xff] }
 0x5a1   :  { %5620 = vmatpush3.msra.mxu1 %v8873_v18  ;;  %5621 = vmatprep.mubr.msk.f32.mxu1 %vm6774_vm0, %v10423_v17  ;;  %10722 = vst [vmem:[#allocation58_spill] sm:$0xff] %v8884_v50  ;;  %10723 = vst [vmem:[#allocation60_spill] sm:$0xff] %v8887_v45  ;;  %v8890_v18 = vld [vmem:[#allocation11 + $0x158] sm:$0xff] }
 0x5a2   :  { %2918 = vmatmul.mubr.f32.vlgmr.msra.gmra.mxu0 %v8711_v43  ;;  %5622 = vmatmul.mubr.f32.vlgmr.msra.gmra.mxu1 %v8711_v43  ;;  %10724 = vst [vmem:[#allocation62_spill] sm:$0xff] %v8890_v18  ;;  %10725 = vst [vmem:[#allocation61_spill] sm:$0xff] %v8894_v10 }
 0x5a3   :  { %2994 = vmatprep.subr.mxu0 %v8880_v3  ;;  %5624 = vmatprep.subr.mxu1 %v10423_v17  ;;  %v8897_v3 = vld [vmem:[#allocation11 + $0x160] sm:$0xff] }
 0x5a4   :  { %2995 = vmatpush1.msra.mxu0 %v8884_v50  ;;  %5625 = vmatpush3.msra.mxu1 %v8887_v45  ;;  %10726 = vst [vmem:[#allocation63_spill] sm:$0xff] %v8897_v3  ;;  %v8900_v50 = vld [vmem:[#allocation11 + $0x140] sm:$0xff]  ;;  %v8904_v45 = vld [vmem:[#allocation11 + $0x138] sm:$0xff] }
 0x5a5   :  { %2996 = vmatprep.subr.mxu0 %v8890_v18  ;;  %5626 = vmatprep.subr.mxu1 %v10423_v17  ;;  %10727 = vst [vmem:[#allocation65_spill] sm:$0xff] %v8900_v50  ;;  %10728 = vst [vmem:[#allocation64_spill] sm:$0xff] %v8904_v45  ;;  %v8907_v18 = vld [vmem:[#allocation11 + $0x148] sm:$0xff] }
 0x5a6   :  { %2997 = vmatpush1.msra.mxu0 %v8894_v10  ;;  %5627 = vmatpush3.msra.mxu1 %v8897_v3  ;;  %10729 = vst [vmem:[#allocation66_spill] sm:$0xff] %v8907_v18  ;;  %v8910_v10 = vld [vmem:[#allocation11 + $0x128] sm:$0xff]  ;;  %v2673_v3 = vadd.f32 1.0, %v6078_v51  ;;  %v8929_v51 = vld [vmem:[#allocation11 + $0x118] sm:$0xff] }
 0x5a7   :  { %2998 = vmatprep.subr.mxu0 %v8900_v50  ;;  %5628 = vmatprep.subr.mxu1 %v10423_v17  ;;  %10730 = vst [vmem:[#allocation68_spill] sm:$0xff] %v8910_v10  ;;  %v8917_v50 = vld [vmem:[#allocation11 + $0x130] sm:$0xff]  ;;  %10735 = vst [vmem:[#allocation72_spill] sm:$0xff] %v8929_v51 }
 0x5a8   :  { %2999 = vmatpush1.msra.mxu0 %v8904_v45  ;;  %5629 = vmatpush3.msra.mxu1 %v8907_v18  ;;  %10732 = vst [vmem:[#allocation69_spill] sm:$0xff] %v8917_v50  ;;  %v8920_v45 = vld [vmem:[#allocation11 + $0x110] sm:$0xff]  ;;  %v8926_v18 = vld [vmem:[#allocation11 + $0x108] sm:$0xff]  ;;  %6081 = vrcp.f32 %v2673_v3 }
 0x5a9   :  { %3000 = vmatprep.subr.mxu0 %v8910_v10  ;;  %5630 = vmatprep.subr.mxu1 %v10423_v17  ;;  %10733 = vst [vmem:[#allocation71_spill] sm:$0xff] %v8920_v45  ;;  %v2676_v10 = vadd.f32 %v8539_v59, %v8762_v7  ;;  %10734 = vst [vmem:[#allocation70_spill] sm:$0xff] %v8926_v18  ;;  %v8938_v59 = vld [vmem:[#allocation11 + $0xf0] sm:$0xff]  ;;  %v8941_v7 = vld [vmem:[#allocation11 + $0x100] sm:$0xff] }
 0x5aa   :  { %3001 = vmatpush1.msra.mxu0 %v8914_v23  ;;  %5631 = vmatpush3.msra.mxu1 %v8917_v50  ;;  %10737 = vst [vmem:[#allocation73_spill] sm:$0xff] %v8941_v7  ;;  %v8951_v3 = vld [vmem:[#allocation11 + $0xe8] sm:$0xff] }
 0x5ab   :  { %3002 = vmatprep.subr.mxu0 %v8920_v45  ;;  %5632 = vmatprep.subr.mxu1 %v10423_v17  ;;  %v2518_v45 = vadd.f32 %v8707_v58, %v7788_v36  ;;  %10740 = vst [vmem:[#allocation76_spill] sm:$0xff] %v8951_v3  ;;  %v8954_v58 = vld [vmem:[#allocation11 + $0xc8] sm:$0xff] }
 0x5ac   :  { %3003 = vmatpush1.msra.mxu0 %v8926_v18  ;;  %5633 = vmatpush3.msra.mxu1 %v8929_v51  ;;  %v8944_v51 = vld [vmem:[#allocation11 + $0xe0] sm:$0xff]  ;;  %v8948_v18 = vld [vmem:[#allocation11 + $0xd8] sm:$0xff]  ;;  %10741 = vst [vmem:[#allocation78_spill] sm:$0xff] %v8954_v58 }
 0x5ad   :  { %v6080_v23 = vpop.eup %6079  ;;  %3004 = vmatprep.subr.mxu0 %v8932_v35  ;;  %5634 = vmatprep.subr.mxu1 %v10423_v17  ;;  %10738 = vst [vmem:[#allocation75_spill] sm:$0xff] %v8944_v51  ;;  %10739 = vst [vmem:[#allocation77_spill] sm:$0xff] %v8948_v18 }
 0x5ae   :  { %v2677_v50 = vmul.f32 %v6080_v23, %v2676_v10  ;;  %3005 = vmatpush1.msra.mxu0 %v8938_v59  ;;  %5635 = vmatpush3.msra.mxu1 %v8941_v7  ;;  %v8958_v23 = vld [vmem:[#allocation11 + $0xc0] sm:$0xff]  ;;  %v8961_v10 = vld [vmem:[#allocation11 + $0xd0] sm:$0xff] }
 0x5af   :  { %3006 = vmatprep.subr.mxu0 %v8944_v51  ;;  %5636 = vmatprep.subr.mxu1 %v10423_v17  ;;  %10742 = vst [vmem:[#allocation80_spill] sm:$0xff] %v8958_v23  ;;  %10743 = vst [vmem:[#allocation79_spill] sm:$0xff] %v8961_v10  ;;  %v9045_v7 = vld [vmem:[#allocation11 + $0x10] sm:$0xff] }
 0x5b0   :  { %v2678_v35 = vadd.f32 %v2677_v50, %v2518_v45  ;;  %3007 = vmatpush1.msra.mxu0 %v8948_v18  ;;  %5637 = vmatpush3.msra.mxu1 %v8951_v3  ;;  %v8964_v45 = vld [vmem:[#allocation11 + $0xb0] sm:$0xff]  ;;  %v8968_v50 = vld [vmem:[#allocation11 + $0xa8] sm:$0xff]  ;;  %v9024_v18 = vld [vmem:[#allocation11 + $0x20] sm:$0xff] }
 0x5b1   :  { %3008 = vmatprep.subr.mxu0 %v8954_v58  ;;  %5638 = vmatprep.subr.mxu1 %v10423_v17  ;;  %10744 = vst [vmem:[#allocation81_spill] sm:$0xff] %v8964_v45  ;;  %10745 = vst [vmem:[#allocation83_spill] sm:$0xff] %v8968_v50  ;;  %v8971_v58 = vld [vmem:[#allocation11 + $0xb8] sm:$0xff] }
 0x5b2   :  { %6083 = vtanh.f32 %v2678_v35  ;;  %3009 = vmatpush1.msra.mxu0 %v8958_v23  ;;  %5639 = vmatpush3.msra.mxu1 %v8961_v10  ;;  %10746 = vst [vmem:[#allocation82_spill] sm:$0xff] %v8971_v58  ;;  %v8974_v35 = vld [vmem:[#allocation11 + $0x98] sm:$0xff]  ;;  %v8978_v10 = vld [vmem:[#allocation11 + $0x90] sm:$0xff]  ;;  %v8984_v23 = vld [vmem:[#allocation11 + $0x80] sm:$0xff] }
 0x5b3   :  { %3010 = vmatprep.subr.mxu0 %v8964_v45  ;;  %5640 = vmatprep.subr.mxu1 %v10423_v17  ;;  %10747 = vst [vmem:[#allocation84_spill] sm:$0xff] %v8974_v35  ;;  %10748 = vst [vmem:[#allocation86_spill] sm:$0xff] %v8978_v10  ;;  %v8981_v45 = vld [vmem:[#allocation11 + $0xa0] sm:$0xff] }
 0x5b4   :  { %3011 = vmatpush1.msra.mxu0 %v8968_v50  ;;  %5641 = vmatpush3.msra.mxu1 %v8971_v58  ;;  %10749 = vst [vmem:[#allocation85_spill] sm:$0xff] %v8981_v45  ;;  %10750 = vst [vmem:[#allocation87_spill] sm:$0xff] %v8984_v23  ;;  %v8988_v58 = vld [vmem:[#allocation11 + $0x78] sm:$0xff]  ;;  %v8994_v50 = vld [vmem:[#allocation11 + $0x68] sm:$0xff] }
 0x5b5   :  { %3012 = vmatprep.subr.mxu0 %v8974_v35  ;;  %5642 = vmatprep.subr.mxu1 %v10423_v17  ;;  %10751 = vst [vmem:[#allocation89_spill] sm:$0xff] %v8988_v58  ;;  %v8991_v35 = vld [vmem:[#allocation11 + $0x88] sm:$0xff]  ;;  %10753 = vst [vmem:[#allocation90_spill] sm:$0xff] %v8994_v50 }
 0x5b6   :  { %3013 = vmatpush1.msra.mxu0 %v8978_v10  ;;  %5643 = vmatpush3.msra.mxu1 %v8981_v45  ;;  %10752 = vst [vmem:[#allocation88_spill] sm:$0xff] %v8991_v35  ;;  %v8998_v45 = vld [vmem:[#allocation11 + $0x60] sm:$0xff]  ;;  %v6082_v10 = vpop.eup %6081  ;;  %10762 = vst [vmem:[#allocation99_spill] sm:$0xff] %v9024_v18 }
 0x5b7   :  { %3014 = vmatprep.subr.mxu0 %v8984_v23  ;;  %5644 = vmatprep.subr.mxu1 %v10423_v17  ;;  %10754 = vst [vmem:[#allocation92_spill] sm:$0xff] %v8998_v45  ;;  %v9001_v23 = vld [vmem:[#allocation11 + $0x70] sm:$0xff]  ;;  %v2680_v3 = vsub.f32 1.0, %v6082_v10  ;;  %v2682_v51 = vmul.f32 %v6082_v10, %v8592_v48  ;;  %v9056_v10 = vld [vmem:[#allocation6 + $0x168] sm:$0xff] }
 0x5b8   :  { %3015 = vmatpush1.msra.mxu0 %v8988_v58  ;;  %5645 = vmatpush3.msra.mxu1 %v8991_v35  ;;  %10755 = vst [vmem:[#allocation91_spill] sm:$0xff] %v9001_v23  ;;  %v9004_v58 = vld [vmem:[#allocation11 + $0x50] sm:$0xff]  ;;  %v9008_v35 = vld [vmem:[#allocation11 + $0x48] sm:$0xff] }
 0x5b9   :  { %3016 = vmatprep.subr.mxu0 %v8994_v50  ;;  %5646 = vmatprep.subr.mxu1 %v10423_v17  ;;  %10756 = vst [vmem:[#allocation93_spill] sm:$0xff] %v9004_v58  ;;  %10757 = vst [vmem:[#allocation94_spill] sm:$0xff] %v9008_v35  ;;  %v9011_v50 = vld [vmem:[#allocation11 + $0x58] sm:$0xff] }
 0x5ba   :  { %3017 = vmatpush1.msra.mxu0 %v8998_v45  ;;  %5647 = vmatpush3.msra.mxu1 %v9001_v23  ;;  %10758 = vst [vmem:[#allocation95_spill] sm:$0xff] %v9011_v50  ;;  %v9014_v45 = vld [vmem:[#allocation11 + $0x38] sm:$0xff]  ;;  %v9018_v23 = vld [vmem:[#allocation11 + $0x30] sm:$0xff] }
 0x5bb   :  { %3018 = vmatprep.subr.mxu0 %v9004_v58  ;;  %5648 = vmatprep.subr.mxu1 %v10423_v17  ;;  %10759 = vst [vmem:[#allocation96_spill] sm:$0xff] %v9014_v45  ;;  %10760 = vst [vmem:[#allocation97_spill] sm:$0xff] %v9018_v23  ;;  %v9021_v58 = vld [vmem:[#allocation11 + $0x40] sm:$0xff]  ;;  %v9072_v48 = vld [vmem:[#allocation6 + $0x138] sm:$0xff] }
 0x5bc   :  { %3019 = vmatpush1.msra.mxu0 %v9008_v35  ;;  %5649 = vmatpush3.msra.mxu1 %v9011_v50  ;;  %10761 = vst [vmem:[#allocation98_spill] sm:$0xff] %v9021_v58  ;;  %v9028_v50 = vld [vmem:[#allocation11 + $0x18] sm:$0xff]  ;;  %10766 = vst [vmem:[#allocation104_spill] sm:$0xff] %v9072_v48 }
 0x5bd   :  { %3020 = vmatprep.subr.mxu0 %v9014_v45  ;;  %5650 = vmatprep.subr.mxu1 %v10423_v17  ;;  %10763 = vst [vmem:[#allocation100_spill] sm:$0xff] %v9028_v50  ;;  %v9031_v45 = vld [vmem:[#allocation11 + $0x28] sm:$0xff] }
 0x5be   :  { %3021 = vmatpush1.msra.mxu0 %v9018_v23  ;;  %5651 = vmatpush3.msra.mxu1 %v9021_v58  ;;  %v9035_v58 = vld [vmem:[#allocation11 + $0x8] sm:$0xff] }
 0x5bf   :  { %v6084_v35 = vpop.eup %6083  ;;  %3022 = vmatprep.subr.mxu0 %v9024_v18  ;;  %5652 = vmatprep.subr.mxu1 %v10423_v17  ;;  %v9039_v18 = vld [vmem:[#allocation11] sm:$0xff] }
 0x5c0   :  { %3023 = vmatpush1.msra.mxu0 %v9028_v50  ;;  %5653 = vmatpush3.msra.mxu1 %v9031_v45  ;;  %v2681_v23 = vmul.f32 %v6084_v35, %v2680_v3  ;;  %v9052_v3 = vld [vmem:[#allocation6 + $0x170] sm:$0xff]  ;;  %v9068_v35 = vld [vmem:[#allocation6 + $0x140] sm:$0xff] }
 0x5c1   :  { %3024 = vmatprep.subr.mxu0 %v9035_v58  ;;  %5654 = vmatprep.subr.mxu1 %v10423_v17 }
 0x5c2   :  { %3025 = vmatpush1.msra.mxu0 %v9039_v18  ;;  %3058 = vmatprep.mubr.f32.mxu0 %v10423_v17  ;;  %v9043_v50 = vadd.f32 %v2682_v51, %v2681_v23  ;;  %v9060_v51 = vld [vmem:[#allocation6 + $0x158] sm:$0xff]  ;;  %v9064_v23 = vld [vmem:[#allocation6 + $0x150] sm:$0xff] }
 0x5c3   :  { %5655 = vmatpush3.msra.mxu1 %v9045_v7  ;;  %5656 = vmatprep.mubr.msk.f32.mxu1 %vm6774_vm0, %v10423_v17  ;;  %10765 = vst [vmem:[#allocation102_spill] sm:$0xff] %v9064_v23 }
 0x5c4   :  { %10764 = vst [vmem:[#allocation101_spill] sm:$0xff] %v9043_v50  ;;  %3059 = vmatmul.mubr.f32.vlgmr.msra.gmra.mxu0 %v9043_v50  ;;  %5657 = vmatmul.mubr.f32.vlgmr.msra.gmra.mxu1 %v9043_v50 }
 0x5c5   :  { %3163 = vmatprep.subr.mxu0 %v9052_v3  ;;  %5659 = vmatprep.subr.mxu1 %v10423_v17 }
 0x5c6   :  { %3164 = vmatpush1.msra.mxu0 %v9056_v10  ;;  %5660 = vmatpush3.msra.mxu1 %v8602_v1  ;;  %v9076_v1 = vld [vmem:[#allocation6 + $0x128] sm:$0xff] }
 0x5c7   :  { %3165 = vmatprep.subr.mxu0 %v9060_v51  ;;  %5661 = vmatprep.subr.mxu1 %v10423_v17 }
 0x5c8   :  { %3166 = vmatpush1.msra.mxu0 %v9064_v23  ;;  %5662 = vmatpush3.msra.mxu1 %v8608_v41  ;;  %v9080_v23 = vld [vmem:[#allocation6 + $0x120] sm:$0xff]  ;;  %v9084_v41 = vld [vmem:[#allocation6 + $0x110] sm:$0xff] }
 0x5c9   :  { %3167 = vmatprep.subr.mxu0 %v9068_v35  ;;  %5663 = vmatprep.subr.mxu1 %v10423_v17  ;;  %10767 = vst [vmem:[#allocation105_spill] sm:$0xff] %v9080_v23  ;;  %10768 = vst [vmem:[#allocation106_spill] sm:$0xff] %v9084_v41 }
 0x5ca   :  { %3168 = vmatpush1.msra.mxu0 %v9072_v48  ;;  %5664 = vmatpush3.msra.mxu1 %v8614_v37  ;;  %v9088_v48 = vld [vmem:[#allocation6 + $0x108] sm:$0xff]  ;;  %v9092_v37 = vld [vmem:[#allocation6 + $0xf8] sm:$0xff] }
 0x5cb   :  { %3169 = vmatprep.subr.mxu0 %v9076_v1  ;;  %5665 = vmatprep.subr.mxu1 %v10423_v17  ;;  %10769 = vst [vmem:[#allocation107_spill] sm:$0xff] %v9088_v48  ;;  %10770 = vst [vmem:[#allocation108_spill] sm:$0xff] %v9092_v37 }
 0x5cc   :  { %3170 = vmatpush1.msra.mxu0 %v9080_v23  ;;  %5666 = vmatpush3.msra.mxu1 %v8620_v38  ;;  %v9096_v23 = vld [vmem:[#allocation6 + $0xf0] sm:$0xff]  ;;  %v9100_v38 = vld [vmem:[#allocation6 + $0xe0] sm:$0xff] }
 0x5cd   :  { %3171 = vmatprep.subr.mxu0 %v9084_v41  ;;  %5667 = vmatprep.subr.mxu1 %v10423_v17  ;;  %10771 = vst [vmem:[#allocation109_spill] sm:$0xff] %v9096_v23  ;;  %10772 = vst [vmem:[#allocation110_spill] sm:$0xff] %v9100_v38 }
 0x5ce   :  { %3172 = vmatpush1.msra.mxu0 %v9088_v48  ;;  %5668 = vmatpush3.msra.mxu1 %v8626_v8  ;;  %v9104_v48 = vld [vmem:[#allocation6 + $0xd8] sm:$0xff]  ;;  %v9108_v8 = vld [vmem:[#allocation6 + $0xc8] sm:$0xff] }
 0x5cf   :  { %3173 = vmatprep.subr.mxu0 %v9092_v37  ;;  %5669 = vmatprep.subr.mxu1 %v10423_v17  ;;  %10773 = vst [vmem:[#allocation111_spill] sm:$0xff] %v9104_v48  ;;  %10774 = vst [vmem:[#allocation112_spill] sm:$0xff] %v9108_v8 }
 0x5d0   :  { %3174 = vmatpush1.msra.mxu0 %v9096_v23  ;;  %5670 = vmatpush3.msra.mxu1 %v8632_v63  ;;  %v9112_v23 = vld [vmem:[#allocation6 + $0xc0] sm:$0xff]  ;;  %v9116_v63 = vld [vmem:[#allocation6 + $0xb0] sm:$0xff] }
 0x5d1   :  { %3175 = vmatprep.subr.mxu0 %v9100_v38  ;;  %5671 = vmatprep.subr.mxu1 %v10423_v17  ;;  %10775 = vst [vmem:[#allocation113_spill] sm:$0xff] %v9112_v23  ;;  %10776 = vst [vmem:[#allocation114_spill] sm:$0xff] %v9116_v63 }
 0x5d2   :  { %3176 = vmatpush1.msra.mxu0 %v9104_v48  ;;  %5672 = vmatpush3.msra.mxu1 %v8638_v44  ;;  %v9120_v48 = vld [vmem:[#allocation6 + $0xa8] sm:$0xff]  ;;  %v9124_v44 = vld [vmem:[#allocation6 + $0x98] sm:$0xff] }
 0x5d3   :  { %3177 = vmatprep.subr.mxu0 %v9108_v8  ;;  %5673 = vmatprep.subr.mxu1 %v10423_v17  ;;  %10777 = vst [vmem:[#allocation115_spill] sm:$0xff] %v9120_v48  ;;  %10778 = vst [vmem:[#allocation116_spill] sm:$0xff] %v9124_v44 }
 0x5d4   :  { %3178 = vmatpush1.msra.mxu0 %v9112_v23  ;;  %5674 = vmatpush3.msra.mxu1 %v8644_v13  ;;  %v9128_v23 = vld [vmem:[#allocation6 + $0x90] sm:$0xff]  ;;  %v9132_v13 = vld [vmem:[#allocation6 + $0x80] sm:$0xff] }
 0x5d5   :  { %3179 = vmatprep.subr.mxu0 %v9116_v63  ;;  %5675 = vmatprep.subr.mxu1 %v10423_v17  ;;  %10779 = vst [vmem:[#allocation117_spill] sm:$0xff] %v9128_v23  ;;  %10780 = vst [vmem:[#allocation118_spill] sm:$0xff] %v9132_v13 }
 0x5d6   :  { %3180 = vmatpush1.msra.mxu0 %v9120_v48  ;;  %5676 = vmatpush3.msra.mxu1 %v8650_v6  ;;  %v9136_v48 = vld [vmem:[#allocation6 + $0x78] sm:$0xff]  ;;  %v9140_v6 = vld [vmem:[#allocation6 + $0x68] sm:$0xff] }
 0x5d7   :  { %3181 = vmatprep.subr.mxu0 %v9124_v44  ;;  %5677 = vmatprep.subr.mxu1 %v10423_v17  ;;  %10781 = vst [vmem:[#allocation119_spill] sm:$0xff] %v9136_v48  ;;  %10782 = vst [vmem:[#allocation120_spill] sm:$0xff] %v9140_v6 }
 0x5d8   :  { %3182 = vmatpush1.msra.mxu0 %v9128_v23  ;;  %5678 = vmatpush3.msra.mxu1 %v8656_v30  ;;  %v9144_v23 = vld [vmem:[#allocation6 + $0x60] sm:$0xff]  ;;  %v9148_v30 = vld [vmem:[#allocation6 + $0x50] sm:$0xff] }
 0x5d9   :  { %3183 = vmatprep.subr.mxu0 %v9132_v13  ;;  %5679 = vmatprep.subr.mxu1 %v10423_v17  ;;  %10783 = vst [vmem:[#allocation121_spill] sm:$0xff] %v9144_v23  ;;  %10784 = vst [vmem:[#allocation122_spill] sm:$0xff] %v9148_v30 }
 0x5da   :  { %3184 = vmatpush1.msra.mxu0 %v9136_v48  ;;  %5680 = vmatpush3.msra.mxu1 %v8662_v9  ;;  %v9152_v48 = vld [vmem:[#allocation6 + $0x48] sm:$0xff]  ;;  %v9156_v9 = vld [vmem:[#allocation6 + $0x38] sm:$0xff] }
 0x5db   :  { %3185 = vmatprep.subr.mxu0 %v9140_v6  ;;  %5681 = vmatprep.subr.mxu1 %v10423_v17  ;;  %10785 = vst [vmem:[#allocation123_spill] sm:$0xff] %v9152_v48  ;;  %10786 = vst [vmem:[#allocation124_spill] sm:$0xff] %v9156_v9 }
 0x5dc   :  { %3186 = vmatpush1.msra.mxu0 %v9144_v23  ;;  %5682 = vmatpush3.msra.mxu1 %v8668_v60  ;;  %v9160_v23 = vld [vmem:[#allocation6 + $0x30] sm:$0xff]  ;;  %v9164_v60 = vld [vmem:[#allocation6 + $0x20] sm:$0xff] }
 0x5dd   :  { %3187 = vmatprep.subr.mxu0 %v9148_v30  ;;  %5683 = vmatprep.subr.mxu1 %v10423_v17  ;;  %10787 = vst [vmem:[#allocation22_spill] sm:$0xff] %v9160_v23  ;;  %10788 = vst [vmem:[#allocation23_spill] sm:$0xff] %v9164_v60 }
 0x5de   :  { %3188 = vmatpush1.msra.mxu0 %v9152_v48  ;;  %5684 = vmatpush3.msra.mxu1 %v8674_v33  ;;  %v9168_v48 = vld [vmem:[#allocation6 + $0x18] sm:$0xff]  ;;  %v9172_v33 = vld [vmem:[#allocation6 + $0x8] sm:$0xff] }
 0x5df   :  { %3189 = vmatprep.subr.mxu0 %v9156_v9  ;;  %5685 = vmatprep.subr.mxu1 %v10423_v17  ;;  %10789 = vst [vmem:[#allocation35_spill] sm:$0xff] %v9168_v48  ;;  %10790 = vst [vmem:[#allocation127_spill] sm:$0xff] %v9172_v33 }
 0x5e0   :  { %3190 = vmatpush1.msra.mxu0 %v9160_v23  ;;  %5686 = vmatpush3.msra.mxu1 %v8680_v2  ;;  %v9176_v23 = vld [vmem:[#allocation6] sm:$0xff] }
 0x5e1   :  { %3191 = vmatprep.subr.mxu0 %v9164_v60  ;;  %5687 = vmatprep.subr.mxu1 %v10423_v17  ;;  %10791 = vst [vmem:[#allocation128_spill] sm:$0xff] %v9176_v23 }
 0x5e2   :  { %3192 = vmatpush1.msra.mxu0 %v9168_v48  ;;  %5688 = vmatpush3.msra.mxu1 %v8686_v54 }
 0x5e3   :  { %3193 = vmatprep.subr.mxu0 %v9172_v33  ;;  %5689 = vmatprep.subr.mxu1 %v10423_v17  ;;  %v10792_v33 = vld [vmem:[#allocation28_spill] sm:$0xff] }
 0x5e4   :  { %3194 = vmatpush1.msra.mxu0 %v9176_v23  ;;  %5690 = vmatpush3.msra.mxu1 %v8692_v16  ;;  %v10793_v23 = vld [vmem:[#allocation29_spill] sm:$0xff] }
 0x5e5   :  { %3227 = vmatprep.mubr.f32.mxu0 %v10423_v17  ;;  %5691 = vmatprep.mubr.msk.f32.mxu1 %vm6774_vm0, %v10423_v17 }
 0x5e6   :  { %3326 = vmatprep.subr.mxu0 %v8698_v11  ;;  %5694 = vmatprep.subr.mxu1 %v10423_v17 }
 0x641   :  { %v2756_v2 = vpop.f32.mrf.mxu0  ;;  %v2827_v54 = vpop.f32.mrf.mxu1 }
 0x642   :  { %v2831_v48 = vadd.f32 %v2756_v2, %v10792_v33  ;;  %v2845_v11 = vadd.f32 %v8704_v57, %v2827_v54  ;;  %v10816_v2 = vld [vmem:[#allocation62_spill] sm:$0xff]  ;;  %v10817_v54 = vld [vmem:[#allocation61_spill] sm:$0xff] }
 0x643   :  { %v5588_v60 = vpop.f32.mrf.mxu1  ;;  %v2758_v30 = vpop.f32.mrf.mxu0 }
 0x644   :  { %v4584_v9 = vmul.f32 -1.442695, %v2831_v48  ;;  %v2838_v6 = vadd.f32 %v2758_v30, %v10793_v23  ;;  %v10794_v48 = vld [vmem:[#allocation36_spill] sm:$0xff] }
 0x646   :  { %6085 = vpow2.f32 %v4584_v9  ;;  %v4585_v16 = vmul.f32 -1.442695, %v2838_v6 }
 0x648   :  { %6087 = vpow2.f32 %v4585_v16  ;;  %v10818_v16 = vld [vmem:[#allocation63_spill] sm:$0xff] }
 0x653   :  { %v6086_v13 = vpop.eup %6085 }
 0x654   :  { %v2835_v44 = vadd.f32 1.0, %v6086_v13 }
 0x655   :  { %v6088_v63 = vpop.eup %6087 }
 0x656   :  { %6089 = vrcp.f32 %v2835_v44  ;;  %v2842_v8 = vadd.f32 1.0, %v6088_v63  ;;  %v10815_v63 = vld [vmem:[#allocation60_spill] sm:$0xff] }
 0x658   :  { %6091 = vrcp.f32 %v2842_v8  ;;  %v10814_v8 = vld [vmem:[#allocation58_spill] sm:$0xff] }
 0x662   :  { %v9188_v38 = vpop.f32.mrf.mxu1  ;;  %v2919_v57 = vpop.f32.mrf.mxu0 }
 0x663   :  { %v6090_v37 = vpop.eup %6089 }
 0x664   :  { %v2846_v41 = vmul.f32 %v6090_v37, %v2845_v11  ;;  %v5623_v60 = vpop.f32.mrf.mxu1  ;;  %v10813_v37 = vld [vmem:[#allocation59_spill] sm:$0xff] }
 0x665   :  { %v6092_v9 = vpop.eup %6091  ;;  %v10819_v60 = vld [vmem:[#allocation65_spill] sm:$0xff] }
 0x666   :  { %v2847_v33 = vadd.f32 %v2846_v41, %v10794_v48  ;;  %v2849_v23 = vsub.f32 1.0, %v6092_v9  ;;  %v2851_v13 = vmul.f32 %v6092_v9, %v8711_v43  ;;  %v2921_v43 = vpop.f32.mrf.mxu0  ;;  %v10812_v41 = vld [vmem:[#allocation57_spill] sm:$0xff]  ;;  %v10820_v48 = vld [vmem:[#allocation64_spill] sm:$0xff] }
 0x667   :  { %v10822_v9 = vld [vmem:[#allocation68_spill] sm:$0xff] }
 0x668   :  { %6093 = vtanh.f32 %v2847_v33  ;;  %v10821_v33 = vld [vmem:[#allocation66_spill] sm:$0xff] }
 0x675   :  { %v6094_v6 = vpop.eup %6093 }
 0x676   :  { %v2850_v30 = vmul.f32 %v6094_v6, %v2849_v23  ;;  %v10823_v6 = vld [vmem:[#allocation67_spill] sm:$0xff] }
 0x678   :  { %v9192_v44 = vadd.f32 %v2851_v13, %v2850_v30  ;;  %v10824_v30 = vld [vmem:[#allocation69_spill] sm:$0xff]  ;;  %v10825_v13 = vld [vmem:[#allocation71_spill] sm:$0xff] }
 0x67a   :  { %3228 = vmatmul.mubr.f32.vlgmr.msra.gmra.mxu0 %v9192_v44  ;;  %5692 = vmatmul.mubr.f32.vlgmr.msra.gmra.mxu1 %v9192_v44 }
 0x67b   :  { %3327 = vmatpush1.msra.mxu0 %v8715_v12  ;;  %5695 = vmatpush3.msra.mxu1 %v8718_v56  ;;  %v2920_v12 = vadd.f32 %v2919_v57, %v7699_v29  ;;  %v9285_v57 = vld [vmem:[#allocation14] ss:$0 sm:$0xff] }
 0x67c   :  { %3328 = vmatprep.subr.mxu0 %v8721_v27  ;;  %5696 = vmatprep.subr.mxu1 %v10423_v17 }
 0x67d   :  { %3329 = vmatpush1.msra.mxu0 %v8725_v49  ;;  %5697 = vmatpush3.msra.mxu1 %v8728_v53 }
 0x67e   :  { %3330 = vmatprep.subr.mxu0 %v8731_v39  ;;  %5698 = vmatprep.subr.mxu1 %v10423_v17 }
 0x67f   :  { %3331 = vmatpush1.msra.mxu0 %v8735_v40  ;;  %5699 = vmatpush3.msra.mxu1 %v8738_v5  ;;  %v2922_v5 = vadd.f32 %v2921_v43, %v7717_v32 }
 0x680   :  { %3332 = vmatprep.subr.mxu0 %v8741_v61  ;;  %5700 = vmatprep.subr.mxu1 %v10423_v17 }
 0x681   :  { %3333 = vmatpush1.msra.mxu0 %v8745_v19  ;;  %5701 = vmatpush3.msra.mxu1 %v8748_v21  ;;  %v10795_v19 = vld [vmem:[#allocation25_spill] sm:$0xff] }
 0x682   :  { %3334 = vmatprep.subr.mxu0 %v8751_v20  ;;  %5702 = vmatprep.subr.mxu1 %v10423_v17  ;;  %v10796_v20 = vld [vmem:[#allocation34_spill] sm:$0xff] }
 0x683   :  { %3335 = vmatpush1.msra.mxu0 %v8756_v52  ;;  %5703 = vmatpush3.msra.mxu1 %v8759_v55  ;;  %v10797_v52 = vld [vmem:[#allocation42_spill] sm:$0xff]  ;;  %v10798_v55 = vld [vmem:[#allocation43_spill] sm:$0xff] }
 0x684   :  { %v3060_v56 = vpop.f32.mrf.mxu0  ;;  %v9215_v27 = vpop.f32.mrf.mxu1  ;;  %3336 = vmatprep.subr.mxu0 %v8764_v14  ;;  %5704 = vmatprep.subr.mxu1 %v10423_v17  ;;  %v10799_v14 = vld [vmem:[#allocation44_spill] sm:$0xff] }
 0x685   :  { %v3135_v49 = vadd.f32 %v3060_v56, %v2920_v12  ;;  %3337 = vmatpush1.msra.mxu0 %v8768_v62  ;;  %5705 = vmatpush3.msra.mxu1 %v8771_v47  ;;  %v10800_v62 = vld [vmem:[#allocation45_spill] sm:$0xff]  ;;  %v10801_v47 = vld [vmem:[#allocation46_spill] sm:$0xff]  ;;  %v3149_v43 = vadd.f32 %v9285_v57, %v9215_v27  ;;  %v10827_v56 = vld [vmem:[#allocation72_spill] sm:$0xff] }
 0x686   :  { %v5658_v53 = vpop.f32.mrf.mxu1  ;;  %3338 = vmatprep.subr.mxu0 %v8774_v31  ;;  %5706 = vmatprep.subr.mxu1 %v10423_v17  ;;  %v3062_v40 = vpop.f32.mrf.mxu0  ;;  %v10802_v31 = vld [vmem:[#allocation47_spill] sm:$0xff]  ;;  %v10826_v12 = vld [vmem:[#allocation70_spill] sm:$0xff] }
 0x687   :  { %v4586_v39 = vmul.f32 -1.442695, %v3135_v49  ;;  %3339 = vmatpush1.msra.mxu0 %v8778_v42  ;;  %5707 = vmatpush3.msra.mxu1 %v8781_v15  ;;  %v3142_v61 = vadd.f32 %v3062_v40, %v2922_v5  ;;  %v10803_v42 = vld [vmem:[#allocation48_spill] sm:$0xff]  ;;  %v10804_v15 = vld [vmem:[#allocation49_spill] sm:$0xff]  ;;  %v10828_v53 = vld [vmem:[#allocation74_spill] sm:$0xff] }
 0x688   :  { %3340 = vmatprep.subr.mxu0 %v8784_v22  ;;  %5708 = vmatprep.subr.mxu1 %v10423_v17  ;;  %v10805_v22 = vld [vmem:[#allocation50_spill] sm:$0xff]  ;;  %v10829_v5 = vld [vmem:[#allocation73_spill] sm:$0xff] }
 0x689   :  { %6095 = vpow2.f32 %v4586_v39  ;;  %3341 = vmatpush1.msra.mxu0 %v8789_v24  ;;  %5709 = vmatpush3.msra.mxu1 %v8792_v26  ;;  %v4587_v21 = vmul.f32 -1.442695, %v3142_v61  ;;  %v10806_v24 = vld [vmem:[#allocation51_spill] sm:$0xff]  ;;  %v2991_v39 = vadd.f32 %v9188_v38, %v7788_v36  ;;  %v10834_v38 = vld [vmem:[#allocation80_spill] sm:$0xff] }
 0x68a   :  { %3342 = vmatprep.subr.mxu0 %v8795_v34  ;;  %5710 = vmatprep.subr.mxu1 %v10423_v17  ;;  %v10807_v34 = vld [vmem:[#allocation52_spill] sm:$0xff]  ;;  %v10830_v61 = vld [vmem:[#allocation75_spill] sm:$0xff] }
 0x68b   :  { %3343 = vmatpush1.msra.mxu0 %v8799_v28  ;;  %5711 = vmatpush3.msra.mxu1 %v8802_v4  ;;  %6097 = vpow2.f32 %v4587_v21  ;;  %v10808_v4 = vld [vmem:[#allocation53_spill] sm:$0xff]  ;;  %v10832_v21 = vld [vmem:[#allocation76_spill] sm:$0xff] }
 0x68c   :  { %3344 = vmatprep.subr.mxu0 %v8805_v46  ;;  %5712 = vmatprep.subr.mxu1 %v10423_v17  ;;  %v10809_v46 = vld [vmem:[#allocation54_spill] sm:$0xff] }
 0x68d   :  { %3345 = vmatpush1.msra.mxu0 %v8809_v25  ;;  %5713 = vmatpush3.msra.mxu1 %v8812_v0  ;;  %v10810_v25 = vld [vmem:[#allocation55_spill] sm:$0xff]  ;;  %v10811_v0 = vld [vmem:[#allocation56_spill] sm:$0xff] }
 0x68e   :  { %3346 = vmatprep.subr.mxu0 %v10795_v19  ;;  %5714 = vmatprep.subr.mxu1 %v10423_v17  ;;  %v10831_v19 = vld [vmem:[#allocation77_spill] sm:$0xff] }
 0x68f   :  { %3347 = vmatpush1.msra.mxu0 %v10796_v20  ;;  %5715 = vmatpush3.msra.mxu1 %v10797_v52  ;;  %v10833_v20 = vld [vmem:[#allocation78_spill] sm:$0xff]  ;;  %v10835_v52 = vld [vmem:[#allocation79_spill] sm:$0xff] }
 0x690   :  { %3348 = vmatprep.subr.mxu0 %v10798_v55  ;;  %5716 = vmatprep.subr.mxu1 %v10423_v17  ;;  %v10837_v55 = vld [vmem:[#allocation83_spill] sm:$0xff] }
 0x691   :  { %3349 = vmatpush1.msra.mxu0 %v10799_v14  ;;  %5717 = vmatpush3.msra.mxu1 %v10800_v62  ;;  %v10838_v14 = vld [vmem:[#allocation82_spill] sm:$0xff]  ;;  %v10839_v62 = vld [vmem:[#allocation84_spill] sm:$0xff] }
 0x692   :  { %3350 = vmatprep.subr.mxu0 %v10801_v47  ;;  %5718 = vmatprep.subr.mxu1 %v10423_v17  ;;  %v10840_v47 = vld [vmem:[#allocation86_spill] sm:$0xff] }
 0x693   :  { %3351 = vmatpush1.msra.mxu0 %v10802_v31  ;;  %5719 = vmatpush3.msra.mxu1 %v10803_v42  ;;  %v10841_v31 = vld [vmem:[#allocation85_spill] sm:$0xff]  ;;  %v10842_v42 = vld [vmem:[#allocation87_spill] sm:$0xff] }
 0x694   :  { %3352 = vmatprep.subr.mxu0 %v10804_v15  ;;  %5720 = vmatprep.subr.mxu1 %v10423_v17  ;;  %v10843_v15 = vld [vmem:[#allocation89_spill] sm:$0xff] }
 0x695   :  { %3353 = vmatpush1.msra.mxu0 %v10805_v22  ;;  %5721 = vmatpush3.msra.mxu1 %v10806_v24  ;;  %v10844_v22 = vld [vmem:[#allocation88_spill] sm:$0xff]  ;;  %v10845_v24 = vld [vmem:[#allocation90_spill] sm:$0xff] }
 0x696   :  { %v6096_v26 = vpop.eup %6095  ;;  %3354 = vmatprep.subr.mxu0 %v10807_v34  ;;  %5722 = vmatprep.subr.mxu1 %v10423_v17  ;;  %v10847_v34 = vld [vmem:[#allocation91_spill] sm:$0xff] }
 0x697   :  { %v3139_v28 = vadd.f32 1.0, %v6096_v26  ;;  %3355 = vmatpush1.msra.mxu0 %v10808_v4  ;;  %5723 = vmatpush3.msra.mxu1 %v10809_v46  ;;  %v10846_v26 = vld [vmem:[#allocation92_spill] sm:$0xff]  ;;  %v10848_v4 = vld [vmem:[#allocation93_spill] sm:$0xff]  ;;  %v10849_v46 = vld [vmem:[#allocation94_spill] sm:$0xff] }
 0x698   :  { %3356 = vmatprep.subr.mxu0 %v10810_v25  ;;  %5724 = vmatprep.subr.mxu1 %v10423_v17  ;;  %v6098_v11 = vpop.eup %6097  ;;  %v10850_v25 = vld [vmem:[#allocation95_spill] sm:$0xff] }
 0x699   :  { %6099 = vrcp.f32 %v3139_v28  ;;  %3357 = vmatpush1.msra.mxu0 %v10811_v0  ;;  %3390 = vmatprep.mubr.f32.mxu0 %v10423_v17  ;;  %v3146_v23 = vadd.f32 1.0, %v6098_v11  ;;  %v10851_v0 = vld [vmem:[#allocation96_spill] sm:$0xff] }
 0x69a   :  { %5725 = vmatpush3.msra.mxu1 %v10812_v41  ;;  %5726 = vmatprep.mubr.msk.f32.mxu1 %vm6774_vm0, %v10423_v17  ;;  %v10852_v41 = vld [vmem:[#allocation97_spill] sm:$0xff] }
 0x69b   :  { %3391 = vmatmul.mubr.f32.vlgmr.msra.gmra.mxu0 %v9192_v44  ;;  %5727 = vmatmul.mubr.f32.vlgmr.msra.gmra.mxu1 %v9192_v44  ;;  %6101 = vrcp.f32 %v3146_v23  ;;  %v10862_v23 = vld [vmem:[#allocation109_spill] sm:$0xff] }
 0x69c   :  { %3467 = vmatprep.subr.mxu0 %v10813_v37  ;;  %5729 = vmatprep.subr.mxu1 %v10423_v17  ;;  %v10853_v37 = vld [vmem:[#allocation98_spill] sm:$0xff] }
 0x69d   :  { %3468 = vmatpush1.msra.mxu0 %v10814_v8  ;;  %5730 = vmatpush3.msra.mxu1 %v10815_v63 }
 0x69e   :  { %3469 = vmatprep.subr.mxu0 %v10816_v2  ;;  %5731 = vmatprep.subr.mxu1 %v10423_v17  ;;  %v10854_v2 = vld [vmem:[#allocation99_spill] sm:$0xff] }
 0x69f   :  { %3470 = vmatpush1.msra.mxu0 %v10817_v54  ;;  %5732 = vmatpush3.msra.mxu1 %v10818_v16  ;;  %v10855_v54 = vld [vmem:[#allocation100_spill] sm:$0xff] }
 0x6a0   :  { %3471 = vmatprep.subr.mxu0 %v10819_v60  ;;  %5733 = vmatprep.subr.mxu1 %v10423_v17 }
 0x6a1   :  { %3472 = vmatpush1.msra.mxu0 %v10820_v48  ;;  %5734 = vmatpush3.msra.mxu1 %v10821_v33  ;;  %v10859_v48 = vld [vmem:[#allocation106_spill] sm:$0xff]  ;;  %v10860_v33 = vld [vmem:[#allocation107_spill] sm:$0xff] }
 0x6a2   :  { %3473 = vmatprep.subr.mxu0 %v10822_v9  ;;  %5735 = vmatprep.subr.mxu1 %v10423_v17  ;;  %v10861_v9 = vld [vmem:[#allocation108_spill] sm:$0xff] }
 0x6a3   :  { %3474 = vmatpush1.msra.mxu0 %v10823_v6  ;;  %5736 = vmatpush3.msra.mxu1 %v10824_v30  ;;  %v10863_v6 = vld [vmem:[#allocation110_spill] sm:$0xff]  ;;  %v10864_v30 = vld [vmem:[#allocation111_spill] sm:$0xff] }
 0x6a4   :  { %3475 = vmatprep.subr.mxu0 %v10825_v13  ;;  %5737 = vmatprep.subr.mxu1 %v10423_v17  ;;  %v6485_v13 = vld [vmem:[#allocation6 + $0xe8] sm:$0xff] }
 0x6a5   :  { %3476 = vmatpush1.msra.mxu0 %v10826_v12  ;;  %5738 = vmatpush3.msra.mxu1 %v10827_v56  ;;  %v10866_v12 = vld [vmem:[#allocation113_spill] sm:$0xff]  ;;  %v6486_v56 = vld [vmem:[#allocation6 + $0xd0] sm:$0xff] }
 0x6a6   :  { %v6100_v49 = vpop.eup %6099  ;;  %3477 = vmatprep.subr.mxu0 %v10828_v53  ;;  %5739 = vmatprep.subr.mxu1 %v10423_v17  ;;  %v10868_v53 = vld [vmem:[#allocation115_spill] sm:$0xff] }
 0x6a7   :  { %v3150_v40 = vmul.f32 %v6100_v49, %v3149_v43  ;;  %3478 = vmatpush1.msra.mxu0 %v8938_v59  ;;  %5740 = vmatpush3.msra.mxu1 %v10829_v5  ;;  %v10836_v59 = vld [vmem:[#allocation81_spill] sm:$0xff]  ;;  %v10865_v43 = vld [vmem:[#allocation112_spill] sm:$0xff]  ;;  %v10867_v49 = vld [vmem:[#allocation114_spill] sm:$0xff] }
 0x6a8   :  { %3479 = vmatprep.subr.mxu0 %v10830_v61  ;;  %5741 = vmatprep.subr.mxu1 %v10423_v17  ;;  %v6102_v28 = vpop.eup %6101  ;;  %v10870_v5 = vld [vmem:[#allocation117_spill] sm:$0xff] }
 0x6a9   :  { %v3151_v27 = vadd.f32 %v3150_v40, %v2991_v39  ;;  %3480 = vmatpush1.msra.mxu0 %v10831_v19  ;;  %5742 = vmatpush3.msra.mxu1 %v10832_v21  ;;  %v3153_v8 = vsub.f32 1.0, %v6102_v28  ;;  %v3155_v11 = vmul.f32 %v6102_v28, %v9043_v50  ;;  %v6487_v39 = vld [vmem:[#allocation6 + $0xb8] sm:$0xff]  ;;  %v6488_v61 = vld [vmem:[#allocation6 + $0xa0] sm:$0xff]  ;;  %v6489_v21 = vld [vmem:[#allocation6 + $0x88] sm:$0xff] }
 0x6aa   :  { %3481 = vmatprep.subr.mxu0 %v10833_v20  ;;  %5743 = vmatprep.subr.mxu1 %v10423_v17  ;;  %v10869_v40 = vld [vmem:[#allocation116_spill] sm:$0xff]  ;;  %v10872_v19 = vld [vmem:[#allocation119_spill] sm:$0xff]  ;;  %v9595_v50 = vld [vmem:[#allocation11 + $0x160] sm:$0xff] }
 0x6ab   :  { %6103 = vtanh.f32 %v3151_v27  ;;  %3482 = vmatpush1.msra.mxu0 %v10834_v38  ;;  %5744 = vmatpush3.msra.mxu1 %v10835_v52  ;;  %v10871_v27 = vld [vmem:[#allocation118_spill] sm:$0xff]  ;;  %v10873_v20 = vld [vmem:[#allocation120_spill] sm:$0xff]  ;;  %v10874_v38 = vld [vmem:[#allocation121_spill] sm:$0xff]  ;;  %10891 = vst [vmem:[#allocation29_spill] sm:$0xff] %v9595_v50 }
 0x6ac   :  { %3483 = vmatprep.subr.mxu0 %v10836_v59  ;;  %5745 = vmatprep.subr.mxu1 %v10423_v17  ;;  %v6490_v52 = vld [vmem:[#allocation6 + $0x70] sm:$0xff] }
 0x6ad   :  { %3484 = vmatpush1.msra.mxu0 %v10837_v55  ;;  %5746 = vmatpush3.msra.mxu1 %v10838_v14  ;;  %v10875_v59 = vld [vmem:[#allocation122_spill] sm:$0xff]  ;;  %v10876_v55 = vld [vmem:[#allocation123_spill] sm:$0xff] }
 0x6ae   :  { %3485 = vmatprep.subr.mxu0 %v10839_v62  ;;  %5747 = vmatprep.subr.mxu1 %v10423_v17  ;;  %v6491_v14 = vld [vmem:[#allocation6 + $0x58] sm:$0xff] }
 0x6af   :  { %3486 = vmatpush1.msra.mxu0 %v10840_v47  ;;  %5748 = vmatpush3.msra.mxu1 %v10841_v31  ;;  %v10877_v62 = vld [vmem:[#allocation124_spill] sm:$0xff]  ;;  %v10878_v47 = vld [vmem:[#allocation22_spill] sm:$0xff]  ;;  %v9396_v28 = vld [vmem:[#allocation9 + $0x170] sm:$0xff] }
 0x6b0   :  { %3487 = vmatprep.subr.mxu0 %v10842_v42  ;;  %5749 = vmatprep.subr.mxu1 %v10423_v17  ;;  %v6492_v31 = vld [vmem:[#allocation6 + $0x40] sm:$0xff]  ;;  %v10879_v42 = vld [vmem:[#allocation23_spill] sm:$0xff] }
 0x6b1   :  { %3488 = vmatpush1.msra.mxu0 %v10843_v15  ;;  %5750 = vmatpush3.msra.mxu1 %v10844_v22  ;;  %v10880_v15 = vld [vmem:[#allocation35_spill] sm:$0xff]  ;;  %v6493_v22 = vld [vmem:[#allocation6 + $0x28] sm:$0xff] }
 0x6b2   :  { %3489 = vmatprep.subr.mxu0 %v10845_v24  ;;  %5751 = vmatprep.subr.mxu1 %v10423_v17  ;;  %v10881_v24 = vld [vmem:[#allocation127_spill] sm:$0xff] }
 0x6b3   :  { %3490 = vmatpush1.msra.mxu0 %v10846_v26  ;;  %5752 = vmatpush3.msra.mxu1 %v10847_v34  ;;  %v10882_v26 = vld [vmem:[#allocation128_spill] sm:$0xff]  ;;  %v6494_v34 = vld [vmem:[#allocation6 + $0x10] sm:$0xff] }
 0x6b4   :  { %3491 = vmatprep.subr.mxu0 %v10848_v4  ;;  %5753 = vmatprep.subr.mxu1 %v10423_v17 }
 0x6b5   :  { %3492 = vmatpush1.msra.mxu0 %v10849_v46  ;;  %5754 = vmatpush3.msra.mxu1 %v10850_v25  ;;  %v10883_v25 = vld [vmem:[#allocation30_spill] sm:$0xff] }
 0x6b6   :  { %3493 = vmatprep.subr.mxu0 %v10851_v0  ;;  %5755 = vmatprep.subr.mxu1 %v10423_v17 }
 0x6b7   :  { %3494 = vmatpush1.msra.mxu0 %v10852_v41  ;;  %5756 = vmatpush3.msra.mxu1 %v10853_v37 }
 0x6b8   :  { %v6104_v63 = vpop.eup %6103  ;;  %3495 = vmatprep.subr.mxu0 %v10854_v2  ;;  %5757 = vmatprep.subr.mxu1 %v10423_v17 }
 0x6b9   :  { %3496 = vmatpush1.msra.mxu0 %v10855_v54  ;;  %5758 = vmatpush3.msra.mxu1 %v9031_v45  ;;  %v3154_v16 = vmul.f32 %v6104_v63, %v3153_v8  ;;  %v10857_v45 = vld [vmem:[#allocation104_spill] sm:$0xff]  ;;  %v10884_v63 = vld [vmem:[#allocation31_spill] sm:$0xff] }
 0x6ba   :  { %3497 = vmatprep.subr.mxu0 %v9035_v58  ;;  %5759 = vmatprep.subr.mxu1 %v10423_v17  ;;  %v6480_v58 = vld [vmem:[#allocation6 + $0x160] sm:$0xff] }
 0x6bb   :  { %3498 = vmatpush1.msra.mxu0 %v9039_v18  ;;  %3531 = vmatprep.mubr.f32.mxu0 %v10423_v17  ;;  %v9338_v60 = vadd.f32 %v3155_v11, %v3154_v16  ;;  %v6479_v18 = vld [vmem:[#allocation6 + $0x178] sm:$0xff] }
 0x6bc   :  { %5760 = vmatpush3.msra.mxu1 %v9045_v7  ;;  %5761 = vmatprep.mubr.msk.f32.mxu1 %vm6774_vm0, %v10423_v17  ;;  %v10856_v7 = vld [vmem:[#allocation102_spill] sm:$0xff] }
 0x6bd   :  { %3532 = vmatmul.mubr.f32.vlgmr.msra.gmra.mxu0 %v9338_v60  ;;  %5762 = vmatmul.mubr.f32.vlgmr.msra.gmra.mxu1 %v9338_v60 }
 0x6be   :  { %3636 = vmatprep.subr.mxu0 %v9052_v3  ;;  %5764 = vmatprep.subr.mxu1 %v10423_v17  ;;  %v6481_v3 = vld [vmem:[#allocation6 + $0x148] sm:$0xff] }
 0x6bf   :  { %3637 = vmatpush1.msra.mxu0 %v9056_v10  ;;  %5765 = vmatpush3.msra.mxu1 %v6479_v18  ;;  %v10858_v10 = vld [vmem:[#allocation105_spill] sm:$0xff] }
 0x6c0   :  { %3638 = vmatprep.subr.mxu0 %v9060_v51  ;;  %5766 = vmatprep.subr.mxu1 %v10423_v17  ;;  %v6482_v51 = vld [vmem:[#allocation6 + $0x130] sm:$0xff] }
 0x6c1   :  { %3639 = vmatpush1.msra.mxu0 %v10856_v7  ;;  %5767 = vmatpush3.msra.mxu1 %v6480_v58  ;;  %v9402_v58 = vld [vmem:[#allocation8] ss:$0 sm:$0xff] }
 0x6c2   :  { %3640 = vmatprep.subr.mxu0 %v9068_v35  ;;  %5768 = vmatprep.subr.mxu1 %v10423_v17  ;;  %v6483_v35 = vld [vmem:[#allocation6 + $0x118] sm:$0xff] }
 0x6c3   :  { %3641 = vmatpush1.msra.mxu0 %v10857_v45  ;;  %5769 = vmatpush3.msra.mxu1 %v6481_v3 }
 0x6c4   :  { %3642 = vmatprep.subr.mxu0 %v9076_v1  ;;  %5770 = vmatprep.subr.mxu1 %v10423_v17  ;;  %v6484_v1 = vld [vmem:[#allocation6 + $0x100] sm:$0xff] }
 0x6c5   :  { %3643 = vmatpush1.msra.mxu0 %v10858_v10  ;;  %5771 = vmatpush3.msra.mxu1 %v6482_v51 }
 0x6c6   :  { %3644 = vmatprep.subr.mxu0 %v10859_v48  ;;  %5772 = vmatprep.subr.mxu1 %v10423_v17 }
 0x6c7   :  { %3645 = vmatpush1.msra.mxu0 %v10860_v33  ;;  %5773 = vmatpush3.msra.mxu1 %v6483_v35  ;;  %v10885_v33 = vld [vmem:[#allocation39_spill] sm:$0xff] }
 0x6c8   :  { %3646 = vmatprep.subr.mxu0 %v10861_v9  ;;  %5774 = vmatprep.subr.mxu1 %v10423_v17 }
 0x6c9   :  { %3647 = vmatpush1.msra.mxu0 %v10862_v23  ;;  %5775 = vmatpush3.msra.mxu1 %v6484_v1 }
 0x6ca   :  { %3648 = vmatprep.subr.mxu0 %v10863_v6  ;;  %5776 = vmatprep.subr.mxu1 %v10423_v17 }
 0x6cb   :  { %3649 = vmatpush1.msra.mxu0 %v10864_v30  ;;  %5777 = vmatpush3.msra.mxu1 %v6485_v13 }
 0x6cc   :  { %3650 = vmatprep.subr.mxu0 %v10865_v43  ;;  %5778 = vmatprep.subr.mxu1 %v10423_v17  ;;  %v9413_v43 = vld [vmem:[#allocation9 + $0x168] sm:$0xff] }
 0x6cd   :  { %3651 = vmatpush1.msra.mxu0 %v10866_v12  ;;  %5779 = vmatpush3.msra.mxu1 %v6486_v56  ;;  %v9416_v12 = vld [vmem:[#allocation9 + $0x178] sm:$0xff] }
 0x6ce   :  { %3652 = vmatprep.subr.mxu0 %v10867_v49  ;;  %5780 = vmatprep.subr.mxu1 %v10423_v17  ;;  %v9419_v56 = vld [vmem:[#allocation9 + $0x158] sm:$0xff]  ;;  %v9426_v49 = vld [vmem:[#allocation9 + $0x160] sm:$0xff] }
 0x6cf   :  { %3653 = vmatpush1.msra.mxu0 %v10868_v53  ;;  %5781 = vmatpush3.msra.mxu1 %v6487_v39  ;;  %v9429_v39 = vld [vmem:[#allocation9 + $0x140] sm:$0xff] }
 0x6d0   :  { %3654 = vmatprep.subr.mxu0 %v10869_v40  ;;  %5782 = vmatprep.subr.mxu1 %v10423_v17  ;;  %v9433_v40 = vld [vmem:[#allocation9 + $0x138] sm:$0xff] }
 0x6d1   :  { %3655 = vmatpush1.msra.mxu0 %v10870_v5  ;;  %5783 = vmatpush3.msra.mxu1 %v6488_v61  ;;  %v9436_v5 = vld [vmem:[#allocation9 + $0x148] sm:$0xff] }
 0x6d2   :  { %3656 = vmatprep.subr.mxu0 %v10871_v27  ;;  %5784 = vmatprep.subr.mxu1 %v10423_v17  ;;  %v9439_v61 = vld [vmem:[#allocation9 + $0x128] sm:$0xff]  ;;  %v9443_v27 = vld [vmem:[#allocation9 + $0x120] sm:$0xff] }
 0x6d3   :  { %3657 = vmatpush1.msra.mxu0 %v10872_v19  ;;  %5785 = vmatpush3.msra.mxu1 %v6489_v21  ;;  %v9446_v19 = vld [vmem:[#allocation9 + $0x130] sm:$0xff] }
 0x6d4   :  { %3658 = vmatprep.subr.mxu0 %v10873_v20  ;;  %5786 = vmatprep.subr.mxu1 %v10423_v17  ;;  %v9449_v20 = vld [vmem:[#allocation9 + $0x110] sm:$0xff] }
 0x6d5   :  { %3659 = vmatpush1.msra.mxu0 %v10874_v38  ;;  %5787 = vmatpush3.msra.mxu1 %v6490_v52  ;;  %v9454_v52 = vld [vmem:[#allocation9 + $0x108] sm:$0xff] }
 0x6d6   :  { %3660 = vmatprep.subr.mxu0 %v10875_v59  ;;  %5788 = vmatprep.subr.mxu1 %v10423_v17  ;;  %v9457_v59 = vld [vmem:[#allocation9 + $0x118] sm:$0xff] }
 0x6d7   :  { %3661 = vmatpush1.msra.mxu0 %v10876_v55  ;;  %5789 = vmatpush3.msra.mxu1 %v6491_v14 }
 0x6d8   :  { %3662 = vmatprep.subr.mxu0 %v10877_v62  ;;  %5790 = vmatprep.subr.mxu1 %v10423_v17  ;;  %v9462_v62 = vld [vmem:[#allocation9 + $0xf8] sm:$0xff] }
 0x6d9   :  { %3663 = vmatpush1.msra.mxu0 %v10878_v47  ;;  %5791 = vmatpush3.msra.mxu1 %v6492_v31  ;;  %v9466_v31 = vld [vmem:[#allocation9 + $0xf0] sm:$0xff] }
 0x6da   :  { %3664 = vmatprep.subr.mxu0 %v10879_v42  ;;  %5792 = vmatprep.subr.mxu1 %v10423_v17  ;;  %v9469_v42 = vld [vmem:[#allocation9 + $0x100] sm:$0xff] }
 0x6db   :  { %3665 = vmatpush1.msra.mxu0 %v10880_v15  ;;  %5793 = vmatpush3.msra.mxu1 %v6493_v22  ;;  %v9472_v22 = vld [vmem:[#allocation9 + $0xe0] sm:$0xff] }
 0x6dc   :  { %3666 = vmatprep.subr.mxu0 %v10881_v24  ;;  %5794 = vmatprep.subr.mxu1 %v10423_v17 }
 0x6dd   :  { %3667 = vmatpush1.msra.mxu0 %v10882_v26  ;;  %5795 = vmatpush3.msra.mxu1 %v6494_v34  ;;  %v9476_v26 = vld [vmem:[#allocation9 + $0xd8] sm:$0xff]  ;;  %v9479_v34 = vld [vmem:[#allocation9 + $0xe8] sm:$0xff] }
 0x6de   :  { %3700 = vmatprep.mubr.f32.mxu0 %v10423_v17  ;;  %5796 = vmatprep.mubr.msk.f32.mxu1 %vm6774_vm0, %v10423_v17 }
 0x6df   :  { %3799 = vmatprep.subr.mxu0 %v9396_v28  ;;  %5799 = vmatprep.subr.mxu1 %v10423_v17 }
 0x73a   :  { %v3229_v4 = vpop.f32.mrf.mxu0  ;;  %v3300_v46 = vpop.f32.mrf.mxu1 }
 0x73b   :  { %v3304_v0 = vadd.f32 %v3229_v4, %v10883_v25  ;;  %v3318_v45 = vadd.f32 %v9402_v58, %v3300_v46  ;;  %v9482_v46 = vld [vmem:[#allocation9 + $0xc8] sm:$0xff] }
 0x73c   :  { %v5693_v41 = vpop.f32.mrf.mxu1  ;;  %v3231_v8 = vpop.f32.mrf.mxu0 }
 0x73d   :  { %v4588_v37 = vmul.f32 -1.442695, %v3304_v0  ;;  %v3311_v2 = vadd.f32 %v3231_v8, %v10884_v63  ;;  %v9487_v0 = vld [vmem:[#allocation9 + $0xc0] sm:$0xff]  ;;  %v9490_v41 = vld [vmem:[#allocation9 + $0xd0] sm:$0xff]  ;;  %v9497_v63 = vld [vmem:[#allocation9 + $0xa8] sm:$0xff] }
 0x73f   :  { %6105 = vpow2.f32 %v4588_v37  ;;  %v4589_v54 = vmul.f32 -1.442695, %v3311_v2  ;;  %v9493_v37 = vld [vmem:[#allocation9 + $0xb0] sm:$0xff]  ;;  %v9500_v2 = vld [vmem:[#allocation9 + $0xb8] sm:$0xff] }
 0x741   :  { %6107 = vpow2.f32 %v4589_v54  ;;  %v9503_v54 = vld [vmem:[#allocation9 + $0x98] sm:$0xff] }
 0x74c   :  { %v6106_v16 = vpop.eup %6105 }
 0x74d   :  { %v3308_v11 = vadd.f32 1.0, %v6106_v16  ;;  %v9507_v16 = vld [vmem:[#allocation9 + $0x90] sm:$0xff] }
 0x74e   :  { %v6108_v18 = vpop.eup %6107 }
 0x74f   :  { %6109 = vrcp.f32 %v3308_v11  ;;  %v3315_v7 = vadd.f32 1.0, %v6108_v18  ;;  %v9510_v11 = vld [vmem:[#allocation9 + $0xa0] sm:$0xff] }
 0x750   :  { %v9513_v18 = vld [vmem:[#allocation9 + $0x80] sm:$0xff] }
 0x751   :  { %6111 = vrcp.f32 %v3315_v7 }
 0x75b   :  { %v9405_v3 = vpop.f32.mrf.mxu1  ;;  %v3392_v53 = vpop.f32.mrf.mxu0 }
 0x75c   :  { %v6110_v10 = vpop.eup %6109  ;;  %v3393_v38 = vadd.f32 %v3392_v53, %v7699_v29  ;;  %v9598_v29 = vld [vmem:[#allocation11 + $0x140] sm:$0xff] }
 0x75d   :  { %v3319_v51 = vmul.f32 %v6110_v10, %v3318_v45  ;;  %v5728_v48 = vpop.f32.mrf.mxu1  ;;  %v3394_v21 = vpop.f32.mrf.mxu0  ;;  %v9517_v45 = vld [vmem:[#allocation9 + $0x78] sm:$0xff]  ;;  %v9520_v10 = vld [vmem:[#allocation9 + $0x88] sm:$0xff]  ;;  %10892 = vst [vmem:[#allocation36_spill] sm:$0xff] %v9598_v29 }
 0x75e   :  { %v6112_v9 = vpop.eup %6111  ;;  %v3395_v25 = vadd.f32 %v3394_v21, %v7717_v32  ;;  %v9527_v48 = vld [vmem:[#allocation9 + $0x60] sm:$0xff] }
 0x75f   :  { %v3320_v35 = vadd.f32 %v3319_v51, %v10885_v33  ;;  %v3322_v23 = vsub.f32 1.0, %v6112_v9  ;;  %v3324_v30 = vmul.f32 %v6112_v9, %v9192_v44  ;;  %v9423_v44 = vld [vmem:[#allocation9 + $0x150] sm:$0xff]  ;;  %v9523_v51 = vld [vmem:[#allocation9 + $0x68] sm:$0xff]  ;;  %v9553_v21 = vld [vmem:[#allocation9 + $0x20] sm:$0xff] }
 0x760   :  { %v9530_v33 = vld [vmem:[#allocation9 + $0x70] sm:$0xff]  ;;  %v9537_v9 = vld [vmem:[#allocation9 + $0x48] sm:$0xff] }
 0x761   :  { %6113 = vtanh.f32 %v3320_v35  ;;  %v9533_v35 = vld [vmem:[#allocation9 + $0x50] sm:$0xff] }
 0x76e   :  { %v6114_v1 = vpop.eup %6113 }
 0x76f   :  { %v3323_v6 = vmul.f32 %v6114_v1, %v3322_v23  ;;  %v9540_v23 = vld [vmem:[#allocation9 + $0x58] sm:$0xff] }
 0x770   :  { %v9543_v1 = vld [vmem:[#allocation9 + $0x38] sm:$0xff] }
 0x771   :  { %v9409_v13 = vadd.f32 %v3324_v30, %v3323_v6  ;;  %v9547_v6 = vld [vmem:[#allocation9 + $0x30] sm:$0xff]  ;;  %v9550_v30 = vld [vmem:[#allocation9 + $0x40] sm:$0xff] }
 0x773   :  { %10886 = vst [vmem:[#allocation129_spill] sm:$0xff] %v9409_v13  ;;  %3701 = vmatmul.mubr.f32.vlgmr.msra.gmra.mxu0 %v9409_v13  ;;  %5797 = vmatmul.mubr.f32.vlgmr.msra.gmra.mxu1 %v9409_v13 }
 0x774   :  { %3800 = vmatpush1.msra.mxu0 %v9413_v43  ;;  %5800 = vmatpush3.msra.mxu1 %v9416_v12 }
 0x775   :  { %3801 = vmatprep.subr.mxu0 %v9419_v56  ;;  %5801 = vmatprep.subr.mxu1 %v10423_v17 }
 0x776   :  { %3802 = vmatpush1.msra.mxu0 %v9423_v44  ;;  %5802 = vmatpush3.msra.mxu1 %v9426_v49 }
 0x777   :  { %3803 = vmatprep.subr.mxu0 %v9429_v39  ;;  %5803 = vmatprep.subr.mxu1 %v10423_v17 }
 0x778   :  { %3804 = vmatpush1.msra.mxu0 %v9433_v40  ;;  %5804 = vmatpush3.msra.mxu1 %v9436_v5 }
 0x779   :  { %3805 = vmatprep.subr.mxu0 %v9439_v61  ;;  %5805 = vmatprep.subr.mxu1 %v10423_v17 }
 0x77a   :  { %3806 = vmatpush1.msra.mxu0 %v9443_v27  ;;  %5806 = vmatpush3.msra.mxu1 %v9446_v19 }
 0x77b   :  { %3807 = vmatprep.subr.mxu0 %v9449_v20  ;;  %5807 = vmatprep.subr.mxu1 %v10423_v17 }
 0x77c   :  { %3808 = vmatpush1.msra.mxu0 %v9454_v52  ;;  %5808 = vmatpush3.msra.mxu1 %v9457_v59 }
 0x77d   :  { %v3533_v55 = vpop.f32.mrf.mxu0  ;;  %v9460_v14 = vpop.f32.mrf.mxu1  ;;  %3809 = vmatprep.subr.mxu0 %v9462_v62  ;;  %5809 = vmatprep.subr.mxu1 %v10423_v17 }
 0x77e   :  { %v3608_v47 = vadd.f32 %v3533_v55, %v3393_v38  ;;  %3810 = vmatpush1.msra.mxu0 %v9466_v31  ;;  %5810 = vmatpush3.msra.mxu1 %v9469_v42  ;;  %v9557_v55 = vld [vmem:[#allocation9 + $0x18] sm:$0xff] }
 0x77f   :  { %v5763_v15 = vpop.f32.mrf.mxu1  ;;  %3811 = vmatprep.subr.mxu0 %v9472_v22  ;;  %5811 = vmatprep.subr.mxu1 %v10423_v17  ;;  %v3535_v4 = vpop.f32.mrf.mxu0 }
 0x780   :  { %v4590_v24 = vmul.f32 -1.442695, %v3608_v47  ;;  %3812 = vmatpush1.msra.mxu0 %v9476_v26  ;;  %5812 = vmatpush3.msra.mxu1 %v9479_v34  ;;  %v3615_v8 = vadd.f32 %v3535_v4, %v3395_v25  ;;  %v9560_v47 = vld [vmem:[#allocation9 + $0x28] sm:$0xff]  ;;  %v9571_v4 = vld [vmem:[#allocation9 + $0x10] sm:$0xff] }
 0x781   :  { %3813 = vmatprep.subr.mxu0 %v9482_v46  ;;  %5813 = vmatprep.subr.mxu1 %v10423_v17  ;;  %v9563_v15 = vld [vmem:[#allocation9 + $0x8] sm:$0xff]  ;;  %v9578_v25 = vld [vmem:[#allocation11 + $0x170] sm:$0xff] }
 0x782   :  { %6115 = vpow2.f32 %v4590_v24  ;;  %3814 = vmatpush1.msra.mxu0 %v9487_v0  ;;  %5814 = vmatpush3.msra.mxu1 %v9490_v41  ;;  %v4591_v7 = vmul.f32 -1.442695, %v3615_v8  ;;  %v9567_v24 = vld [vmem:[#allocation9] sm:$0xff]  ;;  %v9582_v8 = vld [vmem:[#allocation11 + $0x168] sm:$0xff] }
 0x783   :  { %3815 = vmatprep.subr.mxu0 %v9493_v37  ;;  %5815 = vmatprep.subr.mxu1 %v10423_v17  ;;  %10887 = vst [vmem:[#allocation26_spill] sm:$0xff] %v9582_v8 }
 0x784   :  { %3816 = vmatpush1.msra.mxu0 %v9497_v63  ;;  %5816 = vmatpush3.msra.mxu1 %v9500_v2  ;;  %6117 = vpow2.f32 %v4591_v7  ;;  %v9585_v7 = vld [vmem:[#allocation11 + $0x178] sm:$0xff] }
 0x785   :  { %3817 = vmatprep.subr.mxu0 %v9503_v54  ;;  %5817 = vmatprep.subr.mxu1 %v10423_v17  ;;  %10888 = vst [vmem:[#allocation27_spill] sm:$0xff] %v9585_v7 }
 0x786   :  { %3818 = vmatpush1.msra.mxu0 %v9507_v16  ;;  %5818 = vmatpush3.msra.mxu1 %v9510_v11 }
 0x787   :  { %3819 = vmatprep.subr.mxu0 %v9513_v18  ;;  %5819 = vmatprep.subr.mxu1 %v10423_v17 }
 0x788   :  { %3820 = vmatpush1.msra.mxu0 %v9517_v45  ;;  %5820 = vmatpush3.msra.mxu1 %v9520_v10 }
 0x789   :  { %3821 = vmatprep.subr.mxu0 %v9523_v51  ;;  %5821 = vmatprep.subr.mxu1 %v10423_v17 }
 0x78a   :  { %3822 = vmatpush1.msra.mxu0 %v9527_v48  ;;  %5822 = vmatpush3.msra.mxu1 %v9530_v33 }
 0x78b   :  { %3823 = vmatprep.subr.mxu0 %v9533_v35  ;;  %5823 = vmatprep.subr.mxu1 %v10423_v17 }
 0x78c   :  { %3824 = vmatpush1.msra.mxu0 %v9537_v9  ;;  %5824 = vmatpush3.msra.mxu1 %v9540_v23 }
 0x78d   :  { %3825 = vmatprep.subr.mxu0 %v9543_v1  ;;  %5825 = vmatprep.subr.mxu1 %v10423_v17 }
 0x78e   :  { %3826 = vmatpush1.msra.mxu0 %v9547_v6  ;;  %5826 = vmatpush3.msra.mxu1 %v9550_v30 }
 0x78f   :  { %v6116_v53 = vpop.eup %6115  ;;  %3827 = vmatprep.subr.mxu0 %v9553_v21  ;;  %5827 = vmatprep.subr.mxu1 %v10423_v17 }
 0x790   :  { %v3612_v38 = vadd.f32 1.0, %v6116_v53  ;;  %3828 = vmatpush1.msra.mxu0 %v9557_v55  ;;  %5828 = vmatpush3.msra.mxu1 %v9560_v47  ;;  %v9588_v53 = vld [vmem:[#allocation11 + $0x158] sm:$0xff] }
 0x791   :  { %3829 = vmatprep.subr.mxu0 %v9563_v15  ;;  %5829 = vmatprep.subr.mxu1 %v10423_v17  ;;  %10889 = vst [vmem:[#allocation37_spill] sm:$0xff] %v9588_v53  ;;  %v6118_v32 = vpop.eup %6117 }
 0x792   :  { %6119 = vrcp.f32 %v3612_v38  ;;  %3830 = vmatpush1.msra.mxu0 %v9567_v24  ;;  %3863 = vmatprep.mubr.f32.mxu0 %v10423_v17  ;;  %v9592_v38 = vld [vmem:[#allocation11 + $0x150] sm:$0xff] }
 0x793   :  { %5830 = vmatpush3.msra.mxu1 %v9571_v4  ;;  %5831 = vmatprep.mubr.msk.f32.mxu1 %vm6774_vm0, %v10423_v17  ;;  %10890 = vst [vmem:[#allocation28_spill] sm:$0xff] %v9592_v38 }
 0x794   :  { %3864 = vmatmul.mubr.f32.vlgmr.msra.gmra.mxu0 %v9409_v13  ;;  %5832 = vmatmul.mubr.f32.vlgmr.msra.gmra.mxu1 %v9409_v13  ;;  %v9630_v13 = vld [vmem:[#allocation11 + $0xf8] sm:$0xff] }
 0x795   :  { %3940 = vmatprep.subr.mxu0 %v9578_v25  ;;  %5834 = vmatprep.subr.mxu1 %v10423_v17  ;;  %10901 = vst [vmem:[#allocation48_spill] sm:$0xff] %v9630_v13 }
 0x796   :  { %3941 = vmatpush1.msra.mxu0 %v9582_v8  ;;  %5835 = vmatpush3.msra.mxu1 %v9585_v7  ;;  %v9602_v7 = vld [vmem:[#allocation11 + $0x138] sm:$0xff]  ;;  %v9612_v8 = vld [vmem:[#allocation11 + $0x120] sm:$0xff] }
 0x797   :  { %3942 = vmatprep.subr.mxu0 %v9588_v53  ;;  %5836 = vmatprep.subr.mxu1 %v10423_v17  ;;  %10893 = vst [vmem:[#allocation25_spill] sm:$0xff] %v9602_v7  ;;  %v9605_v53 = vld [vmem:[#allocation11 + $0x148] sm:$0xff]  ;;  %10896 = vst [vmem:[#allocation43_spill] sm:$0xff] %v9612_v8 }
 0x798   :  { %3943 = vmatpush1.msra.mxu0 %v9592_v38  ;;  %5837 = vmatpush3.msra.mxu1 %v9595_v50  ;;  %10894 = vst [vmem:[#allocation34_spill] sm:$0xff] %v9605_v53  ;;  %v9608_v38 = vld [vmem:[#allocation11 + $0x128] sm:$0xff]  ;;  %v3619_v50 = vadd.f32 1.0, %v6118_v32  ;;  %v9627_v32 = vld [vmem:[#allocation11 + $0x118] sm:$0xff] }
 0x799   :  { %3944 = vmatprep.subr.mxu0 %v9598_v29  ;;  %5838 = vmatprep.subr.mxu1 %v10423_v17  ;;  %10895 = vst [vmem:[#allocation42_spill] sm:$0xff] %v9608_v38  ;;  %v9615_v29 = vld [vmem:[#allocation11 + $0x130] sm:$0xff]  ;;  %10900 = vst [vmem:[#allocation47_spill] sm:$0xff] %v9627_v32 }
 0x79a   :  { %3945 = vmatpush1.msra.mxu0 %v9602_v7  ;;  %5839 = vmatpush3.msra.mxu1 %v9605_v53  ;;  %10897 = vst [vmem:[#allocation44_spill] sm:$0xff] %v9615_v29  ;;  %v9618_v7 = vld [vmem:[#allocation11 + $0x110] sm:$0xff]  ;;  %v9624_v53 = vld [vmem:[#allocation11 + $0x108] sm:$0xff]  ;;  %6121 = vrcp.f32 %v3619_v50 }
 0x79b   :  { %3946 = vmatprep.subr.mxu0 %v9608_v38  ;;  %5840 = vmatprep.subr.mxu1 %v10423_v17  ;;  %10898 = vst [vmem:[#allocation45_spill] sm:$0xff] %v9618_v7  ;;  %v3622_v38 = vadd.f32 %v9285_v57, %v9460_v14  ;;  %10899 = vst [vmem:[#allocation46_spill] sm:$0xff] %v9624_v53  ;;  %v9636_v57 = vld [vmem:[#allocation11 + $0xf0] sm:$0xff]  ;;  %v9639_v14 = vld [vmem:[#allocation11 + $0x100] sm:$0xff] }
 0x79c   :  { %3947 = vmatpush1.msra.mxu0 %v9612_v8  ;;  %5841 = vmatpush3.msra.mxu1 %v9615_v29  ;;  %v9649_v50 = vld [vmem:[#allocation11 + $0xe8] sm:$0xff] }
 0x79d   :  { %3948 = vmatprep.subr.mxu0 %v9618_v7  ;;  %5842 = vmatprep.subr.mxu1 %v10423_v17  ;;  %v3464_v7 = vadd.f32 %v9405_v3, %v7788_v36  ;;  %10904 = vst [vmem:[#allocation51_spill] sm:$0xff] %v9649_v50  ;;  %v9652_v3 = vld [vmem:[#allocation11 + $0xc8] sm:$0xff]  ;;  %v9669_v36 = vld [vmem:[#allocation11 + $0xb8] sm:$0xff] }
 0x79e   :  { %3949 = vmatpush1.msra.mxu0 %v9624_v53  ;;  %5843 = vmatpush3.msra.mxu1 %v9627_v32  ;;  %v9642_v32 = vld [vmem:[#allocation11 + $0xe0] sm:$0xff]  ;;  %v9646_v53 = vld [vmem:[#allocation11 + $0xd8] sm:$0xff]  ;;  %10905 = vst [vmem:[#allocation52_spill] sm:$0xff] %v9652_v3  ;;  %10910 = vst [vmem:[#allocation57_spill] sm:$0xff] %v9669_v36 }
 0x79f   :  { %v6120_v8 = vpop.eup %6119  ;;  %3950 = vmatprep.subr.mxu0 %v9630_v13  ;;  %5844 = vmatprep.subr.mxu1 %v10423_v17  ;;  %10902 = vst [vmem:[#allocation49_spill] sm:$0xff] %v9642_v32  ;;  %10903 = vst [vmem:[#allocation50_spill] sm:$0xff] %v9646_v53 }
 0x7a0   :  { %v3623_v29 = vmul.f32 %v6120_v8, %v3622_v38  ;;  %3951 = vmatpush1.msra.mxu0 %v9636_v57  ;;  %5845 = vmatpush3.msra.mxu1 %v9639_v14  ;;  %v9656_v8 = vld [vmem:[#allocation11 + $0xc0] sm:$0xff]  ;;  %v9666_v38 = vld [vmem:[#allocation11 + $0xa8] sm:$0xff] }
 0x7a1   :  { %3952 = vmatprep.subr.mxu0 %v9642_v32  ;;  %5846 = vmatprep.subr.mxu1 %v10423_v17  ;;  %10906 = vst [vmem:[#allocation53_spill] sm:$0xff] %v9656_v8  ;;  %10909 = vst [vmem:[#allocation56_spill] sm:$0xff] %v9666_v38  ;;  %v9743_v32 = vld [vmem:[#allocation11 + $0x10] sm:$0xff] }
 0x7a2   :  { %v3624_v13 = vadd.f32 %v3623_v29, %v3464_v7  ;;  %3953 = vmatpush1.msra.mxu0 %v9646_v53  ;;  %5847 = vmatpush3.msra.mxu1 %v9649_v50  ;;  %v9659_v29 = vld [vmem:[#allocation11 + $0xd0] sm:$0xff]  ;;  %v9722_v50 = vld [vmem:[#allocation11 + $0x20] sm:$0xff] }
 0x7a3   :  { %3954 = vmatprep.subr.mxu0 %v9652_v3  ;;  %5848 = vmatprep.subr.mxu1 %v10423_v17  ;;  %10907 = vst [vmem:[#allocation54_spill] sm:$0xff] %v9659_v29  ;;  %v9662_v7 = vld [vmem:[#allocation11 + $0xb0] sm:$0xff]  ;;  %10926 = vst [vmem:[#allocation74_spill] sm:$0xff] %v9722_v50 }
 0x7a4   :  { %6123 = vtanh.f32 %v3624_v13  ;;  %3955 = vmatpush1.msra.mxu0 %v9656_v8  ;;  %5849 = vmatpush3.msra.mxu1 %v9659_v29  ;;  %10908 = vst [vmem:[#allocation55_spill] sm:$0xff] %v9662_v7  ;;  %v9672_v13 = vld [vmem:[#allocation11 + $0x98] sm:$0xff]  ;;  %v9676_v29 = vld [vmem:[#allocation11 + $0x90] sm:$0xff]  ;;  %v9682_v8 = vld [vmem:[#allocation11 + $0x80] sm:$0xff] }
 0x7a5   :  { %3956 = vmatprep.subr.mxu0 %v9662_v7  ;;  %5850 = vmatprep.subr.mxu1 %v10423_v17  ;;  %10911 = vst [vmem:[#allocation59_spill] sm:$0xff] %v9672_v13  ;;  %10912 = vst [vmem:[#allocation58_spill] sm:$0xff] %v9676_v29  ;;  %v9679_v7 = vld [vmem:[#allocation11 + $0xa0] sm:$0xff] }
 0x7a6   :  { %3957 = vmatpush1.msra.mxu0 %v9666_v38  ;;  %5851 = vmatpush3.msra.mxu1 %v9669_v36  ;;  %10913 = vst [vmem:[#allocation60_spill] sm:$0xff] %v9679_v7  ;;  %10914 = vst [vmem:[#allocation62_spill] sm:$0xff] %v9682_v8  ;;  %v9686_v36 = vld [vmem:[#allocation11 + $0x78] sm:$0xff]  ;;  %v9692_v38 = vld [vmem:[#allocation11 + $0x68] sm:$0xff] }
 0x7a7   :  { %3958 = vmatprep.subr.mxu0 %v9672_v13  ;;  %5852 = vmatprep.subr.mxu1 %v10423_v17  ;;  %10915 = vst [vmem:[#allocation61_spill] sm:$0xff] %v9686_v36  ;;  %v9689_v13 = vld [vmem:[#allocation11 + $0x88] sm:$0xff]  ;;  %10917 = vst [vmem:[#allocation65_spill] sm:$0xff] %v9692_v38 }
 0x7a8   :  { %3959 = vmatpush1.msra.mxu0 %v9676_v29  ;;  %5853 = vmatpush3.msra.mxu1 %v9679_v7  ;;  %10916 = vst [vmem:[#allocation63_spill] sm:$0xff] %v9689_v13  ;;  %v9696_v7 = vld [vmem:[#allocation11 + $0x60] sm:$0xff]  ;;  %v6122_v29 = vpop.eup %6121 }
 0x7a9   :  { %3960 = vmatprep.subr.mxu0 %v9682_v8  ;;  %5854 = vmatprep.subr.mxu1 %v10423_v17  ;;  %10918 = vst [vmem:[#allocation64_spill] sm:$0xff] %v9696_v7  ;;  %v9699_v8 = vld [vmem:[#allocation11 + $0x70] sm:$0xff]  ;;  %v3626_v3 = vsub.f32 1.0, %v6122_v29  ;;  %v3628_v53 = vmul.f32 %v6122_v29, %v9338_v60  ;;  %v10949_v29 = vld [vmem:[#allocation50_spill] sm:$0xff] }
 0x7aa   :  { %3961 = vmatpush1.msra.mxu0 %v9686_v36  ;;  %5855 = vmatpush3.msra.mxu1 %v9689_v13  ;;  %10919 = vst [vmem:[#allocation66_spill] sm:$0xff] %v9699_v8  ;;  %v9702_v36 = vld [vmem:[#allocation11 + $0x50] sm:$0xff]  ;;  %v9706_v13 = vld [vmem:[#allocation11 + $0x48] sm:$0xff] }
 0x7ab   :  { %3962 = vmatprep.subr.mxu0 %v9692_v38  ;;  %5856 = vmatprep.subr.mxu1 %v10423_v17  ;;  %10920 = vst [vmem:[#allocation68_spill] sm:$0xff] %v9702_v36  ;;  %10921 = vst [vmem:[#allocation67_spill] sm:$0xff] %v9706_v13  ;;  %v9709_v38 = vld [vmem:[#allocation11 + $0x58] sm:$0xff] }
 0x7ac   :  { %3963 = vmatpush1.msra.mxu0 %v9696_v7  ;;  %5857 = vmatpush3.msra.mxu1 %v9699_v8  ;;  %10922 = vst [vmem:[#allocation69_spill] sm:$0xff] %v9709_v38  ;;  %v9712_v7 = vld [vmem:[#allocation11 + $0x38] sm:$0xff]  ;;  %v9716_v8 = vld [vmem:[#allocation11 + $0x30] sm:$0xff] }
 0x7ad   :  { %3964 = vmatprep.subr.mxu0 %v9702_v36  ;;  %5858 = vmatprep.subr.mxu1 %v10423_v17  ;;  %10923 = vst [vmem:[#allocation71_spill] sm:$0xff] %v9712_v7  ;;  %10924 = vst [vmem:[#allocation70_spill] sm:$0xff] %v9716_v8  ;;  %v9719_v36 = vld [vmem:[#allocation11 + $0x40] sm:$0xff] }
 0x7ae   :  { %3965 = vmatpush1.msra.mxu0 %v9706_v13  ;;  %5859 = vmatpush3.msra.mxu1 %v9709_v38  ;;  %10925 = vst [vmem:[#allocation72_spill] sm:$0xff] %v9719_v36  ;;  %v9726_v38 = vld [vmem:[#allocation11 + $0x18] sm:$0xff] }
 0x7af   :  { %3966 = vmatprep.subr.mxu0 %v9712_v7  ;;  %5860 = vmatprep.subr.mxu1 %v10423_v17  ;;  %10927 = vst [vmem:[#allocation73_spill] sm:$0xff] %v9726_v38  ;;  %v9729_v7 = vld [vmem:[#allocation11 + $0x28] sm:$0xff] }
 0x7b0   :  { %3967 = vmatpush1.msra.mxu0 %v9716_v8  ;;  %5861 = vmatpush3.msra.mxu1 %v9719_v36  ;;  %v9733_v36 = vld [vmem:[#allocation11 + $0x8] sm:$0xff] }
 0x7b1   :  { %v6124_v13 = vpop.eup %6123  ;;  %3968 = vmatprep.subr.mxu0 %v9722_v50  ;;  %5862 = vmatprep.subr.mxu1 %v10423_v17  ;;  %v9737_v50 = vld [vmem:[#allocation11] sm:$0xff] }
 0x7b2   :  { %3969 = vmatpush1.msra.mxu0 %v9726_v38  ;;  %5863 = vmatpush3.msra.mxu1 %v9729_v7  ;;  %v3627_v8 = vmul.f32 %v6124_v13, %v3626_v3  ;;  %v10948_v3 = vld [vmem:[#allocation49_spill] sm:$0xff]  ;;  %v10950_v13 = vld [vmem:[#allocation51_spill] sm:$0xff] }
 0x7b3   :  { %3970 = vmatprep.subr.mxu0 %v9733_v36  ;;  %5864 = vmatprep.subr.mxu1 %v10423_v17 }
 0x7b4   :  { %3971 = vmatpush1.msra.mxu0 %v9737_v50  ;;  %4004 = vmatprep.mubr.f32.mxu0 %v10423_v17  ;;  %v9741_v38 = vadd.f32 %v3628_v53, %v3627_v8 }
 0x7b5   :  { %5865 = vmatpush3.msra.mxu1 %v9743_v32  ;;  %5866 = vmatprep.mubr.msk.f32.mxu1 %vm6774_vm0, %v10423_v17 }
 0x7b6   :  { %4005 = vmatmul.mubr.f32.vlgmr.msra.gmra.mxu0 %v9741_v38  ;;  %5867 = vmatmul.mubr.f32.vlgmr.msra.gmra.mxu1 %v9741_v38 }
 0x7b7   :  { %4105 = vmatprep.subr.mxu0 %v9396_v28  ;;  %5869 = vmatprep.subr.mxu1 %v10423_v17 }
 0x7b8   :  { %4106 = vmatpush1.msra.mxu0 %v9413_v43  ;;  %5870 = vmatpush3.msra.mxu1 %v9416_v12  ;;  %v10928_v12 = vld [vmem:[#allocation32_spill] sm:$0xff] }
 0x7b9   :  { %4107 = vmatprep.subr.mxu0 %v9419_v56  ;;  %5871 = vmatprep.subr.mxu1 %v10423_v17 }
 0x7ba   :  { %4108 = vmatpush1.msra.mxu0 %v9423_v44  ;;  %5872 = vmatpush3.msra.mxu1 %v9426_v49 }
 0x7bb   :  { %4109 = vmatprep.subr.mxu0 %v9429_v39  ;;  %5873 = vmatprep.subr.mxu1 %v10423_v17 }
 0x7bc   :  { %4110 = vmatpush1.msra.mxu0 %v9433_v40  ;;  %5874 = vmatpush3.msra.mxu1 %v9436_v5  ;;  %v10929_v40 = vld [vmem:[#allocation33_spill] sm:$0xff] }
 0x7bd   :  { %4111 = vmatprep.subr.mxu0 %v9439_v61  ;;  %5875 = vmatprep.subr.mxu1 %v10423_v17 }
 0x7be   :  { %4112 = vmatpush1.msra.mxu0 %v9443_v27  ;;  %5876 = vmatpush3.msra.mxu1 %v9446_v19 }
 0x7bf   :  { %4113 = vmatprep.subr.mxu0 %v9449_v20  ;;  %5877 = vmatprep.subr.mxu1 %v10423_v17 }
 0x7c0   :  { %4114 = vmatpush1.msra.mxu0 %v9454_v52  ;;  %5878 = vmatpush3.msra.mxu1 %v9457_v59 }
 0x7c1   :  { %4115 = vmatprep.subr.mxu0 %v9462_v62  ;;  %5879 = vmatprep.subr.mxu1 %v10423_v17 }
 0x7c2   :  { %4116 = vmatpush1.msra.mxu0 %v9466_v31  ;;  %5880 = vmatpush3.msra.mxu1 %v9469_v42 }
 0x7c3   :  { %4117 = vmatprep.subr.mxu0 %v9472_v22  ;;  %5881 = vmatprep.subr.mxu1 %v10423_v17 }
 0x7c4   :  { %4118 = vmatpush1.msra.mxu0 %v9476_v26  ;;  %5882 = vmatpush3.msra.mxu1 %v9479_v34  ;;  %v10930_v26 = vld [vmem:[#allocation38_spill] sm:$0xff] }
 0x7c5   :  { %4119 = vmatprep.subr.mxu0 %v9482_v46  ;;  %5883 = vmatprep.subr.mxu1 %v10423_v17 }
 0x7c6   :  { %4120 = vmatpush1.msra.mxu0 %v9487_v0  ;;  %5884 = vmatpush3.msra.mxu1 %v9490_v41 }
 0x7c7   :  { %4121 = vmatprep.subr.mxu0 %v9493_v37  ;;  %5885 = vmatprep.subr.mxu1 %v10423_v17 }
 0x7c8   :  { %4122 = vmatpush1.msra.mxu0 %v9497_v63  ;;  %5886 = vmatpush3.msra.mxu1 %v9500_v2  ;;  %v10931_v63 = vld [vmem:[#allocation129_spill] sm:$0xff] }
 0x7c9   :  { %4123 = vmatprep.subr.mxu0 %v9503_v54  ;;  %5887 = vmatprep.subr.mxu1 %v10423_v17 }
 0x7ca   :  { %4124 = vmatpush1.msra.mxu0 %v9507_v16  ;;  %5888 = vmatpush3.msra.mxu1 %v9510_v11  ;;  %v10932_v16 = vld [vmem:[#allocation26_spill] sm:$0xff]  ;;  %v10934_v11 = vld [vmem:[#allocation37_spill] sm:$0xff] }
 0x7cb   :  { %4125 = vmatprep.subr.mxu0 %v9513_v18  ;;  %5889 = vmatprep.subr.mxu1 %v10423_v17  ;;  %v10935_v18 = vld [vmem:[#allocation28_spill] sm:$0xff] }
 0x7cc   :  { %4126 = vmatpush1.msra.mxu0 %v9517_v45  ;;  %5890 = vmatpush3.msra.mxu1 %v9520_v10  ;;  %v10936_v45 = vld [vmem:[#allocation29_spill] sm:$0xff] }
 0x7cd   :  { %4127 = vmatprep.subr.mxu0 %v9523_v51  ;;  %5891 = vmatprep.subr.mxu1 %v10423_v17  ;;  %v10937_v51 = vld [vmem:[#allocation36_spill] sm:$0xff] }
 0x7ce   :  { %4128 = vmatpush1.msra.mxu0 %v9527_v48  ;;  %5892 = vmatpush3.msra.mxu1 %v9530_v33  ;;  %v10938_v48 = vld [vmem:[#allocation25_spill] sm:$0xff]  ;;  %v10939_v33 = vld [vmem:[#allocation34_spill] sm:$0xff] }
 0x7cf   :  { %4129 = vmatprep.subr.mxu0 %v9533_v35  ;;  %5893 = vmatprep.subr.mxu1 %v10423_v17  ;;  %v10940_v35 = vld [vmem:[#allocation42_spill] sm:$0xff] }
 0x7d0   :  { %4130 = vmatpush1.msra.mxu0 %v9537_v9  ;;  %5894 = vmatpush3.msra.mxu1 %v9540_v23  ;;  %v10941_v9 = vld [vmem:[#allocation43_spill] sm:$0xff]  ;;  %v10942_v23 = vld [vmem:[#allocation44_spill] sm:$0xff] }
 0x7d1   :  { %4131 = vmatprep.subr.mxu0 %v9543_v1  ;;  %5895 = vmatprep.subr.mxu1 %v10423_v17 }
 0x7d2   :  { %4132 = vmatpush1.msra.mxu0 %v9547_v6  ;;  %5896 = vmatpush3.msra.mxu1 %v9550_v30  ;;  %v10943_v6 = vld [vmem:[#allocation45_spill] sm:$0xff] }
 0x7d3   :  { %4133 = vmatprep.subr.mxu0 %v9553_v21  ;;  %5897 = vmatprep.subr.mxu1 %v10423_v17  ;;  %v10944_v30 = vld [vmem:[#allocation125_spill] sm:$0xff] }
 0x7d4   :  { %4134 = vmatpush1.msra.mxu0 %v9557_v55  ;;  %5898 = vmatpush3.msra.mxu1 %v9560_v47  ;;  %v10945_v55 = vld [vmem:[#allocation46_spill] sm:$0xff]  ;;  %v10946_v47 = vld [vmem:[#allocation47_spill] sm:$0xff] }
 0x7d5   :  { %4135 = vmatprep.subr.mxu0 %v9563_v15  ;;  %5899 = vmatprep.subr.mxu1 %v10423_v17 }
 0x7d6   :  { %4136 = vmatpush1.msra.mxu0 %v9567_v24  ;;  %4169 = vmatprep.mubr.f32.mxu0 %v10423_v17 }
 0x7d7   :  { %5900 = vmatpush3.msra.mxu1 %v9571_v4  ;;  %5901 = vmatprep.mubr.msk.f32.mxu1 %vm6774_vm0, %v10423_v17  ;;  %v10947_v4 = vld [vmem:[#allocation48_spill] sm:$0xff] }
 0x7d8   :  { %4246 = vmatprep.subr.mxu0 %v9578_v25  ;;  %5904 = vmatprep.subr.mxu1 %v10423_v17 }
 0x833   :  { %v3702_v28 = vpop.f32.mrf.mxu0  ;;  %v3773_v43 = vpop.f32.mrf.mxu1 }
 0x834   :  { %v3777_v56 = vadd.f32 %v3702_v28, %v10928_v12  ;;  %v3791_v59 = vadd.f32 %v9402_v58, %v3773_v43  ;;  %v10933_v58 = vld [vmem:[#allocation27_spill] sm:$0xff]  ;;  %v10951_v43 = vld [vmem:[#allocation52_spill] sm:$0xff]  ;;  %v10952_v12 = vld [vmem:[#allocation126_spill] sm:$0xff] }
 0x835   :  { %v5798_v44 = vpop.f32.mrf.mxu1  ;;  %v3704_v39 = vpop.f32.mrf.mxu0 }
 0x836   :  { %v4592_v49 = vmul.f32 -1.442695, %v3777_v56  ;;  %v3784_v5 = vadd.f32 %v3704_v39, %v10929_v40  ;;  %v10955_v44 = vld [vmem:[#allocation55_spill] sm:$0xff]  ;;  %v10956_v39 = vld [vmem:[#allocation56_spill] sm:$0xff]  ;;  %v10957_v40 = vld [vmem:[#allocation57_spill] sm:$0xff] }
 0x838   :  { %6125 = vpow2.f32 %v4592_v49  ;;  %v4593_v61 = vmul.f32 -1.442695, %v3784_v5  ;;  %v10958_v5 = vld [vmem:[#allocation59_spill] sm:$0xff] }
 0x83a   :  { %6127 = vpow2.f32 %v4593_v61  ;;  %v10959_v61 = vld [vmem:[#allocation58_spill] sm:$0xff] }
 0x845   :  { %v6126_v27 = vpop.eup %6125 }
 0x846   :  { %v3781_v19 = vadd.f32 1.0, %v6126_v27  ;;  %v10960_v27 = vld [vmem:[#allocation60_spill] sm:$0xff] }
 0x847   :  { %v6128_v20 = vpop.eup %6127 }
 0x848   :  { %6129 = vrcp.f32 %v3781_v19  ;;  %v3788_v52 = vadd.f32 1.0, %v6128_v20  ;;  %v10961_v19 = vld [vmem:[#allocation62_spill] sm:$0xff] }
 0x84a   :  { %6131 = vrcp.f32 %v3788_v52  ;;  %v10962_v52 = vld [vmem:[#allocation61_spill] sm:$0xff] }
 0x854   :  { %v9822_v62 = vpop.f32.mrf.mxu1  ;;  %v3865_v10 = vpop.f32.mrf.mxu0 }
 0x855   :  { %v6130_v31 = vpop.eup %6129  ;;  %v3866_v21 = vadd.f32 %v3865_v10, %v10944_v30  ;;  %v10975_v10 = vld [vmem:[#allocation40_spill] sm:$0xff] }
 0x856   :  { %v3792_v42 = vmul.f32 %v6130_v31, %v3791_v59  ;;  %v5833_v22 = vpop.f32.mrf.mxu1  ;;  %v3867_v1 = vpop.f32.mrf.mxu0  ;;  %v10963_v59 = vld [vmem:[#allocation63_spill] sm:$0xff]  ;;  %v10964_v31 = vld [vmem:[#allocation65_spill] sm:$0xff] }
 0x857   :  { %v6132_v46 = vpop.eup %6131  ;;  %v3868_v56 = vadd.f32 %v3867_v1, %v10952_v12  ;;  %v10966_v22 = vld [vmem:[#allocation66_spill] sm:$0xff] }
 0x858   :  { %v3793_v34 = vadd.f32 %v3792_v42, %v10930_v26  ;;  %v3795_v0 = vsub.f32 1.0, %v6132_v46  ;;  %v3797_v2 = vmul.f32 %v6132_v46, %v10931_v63  ;;  %v10965_v42 = vld [vmem:[#allocation64_spill] sm:$0xff]  ;;  %v10969_v46 = vld [vmem:[#allocation69_spill] sm:$0xff]  ;;  %v4433_v1 = vld [vmem:[%s9999_s9 + $0x70] sm:$0xff] }
 0x859   :  { %v10967_v26 = vld [vmem:[#allocation68_spill] sm:$0xff] }
 0x85a   :  { %6133 = vtanh.f32 %v3793_v34  ;;  %v10968_v34 = vld [vmem:[#allocation67_spill] sm:$0xff] }
 0x867   :  { %v6134_v41 = vpop.eup %6133 }
 0x868   :  { %v3796_v37 = vmul.f32 %v6134_v41, %v3795_v0  ;;  %v10970_v0 = vld [vmem:[#allocation71_spill] sm:$0xff]  ;;  %v10971_v41 = vld [vmem:[#allocation70_spill] sm:$0xff] }
 0x86a   :  { %v3798_v54 = vadd.f32 %v3797_v2, %v3796_v37  ;;  %v10972_v37 = vld [vmem:[#allocation72_spill] sm:$0xff]  ;;  %v10973_v2 = vld [vmem:[#allocation74_spill] sm:$0xff] }
 0x86c   :  { %4170 = vmatmul.mubr.f32.vlgmr.msra.gmra.mxu0 %v3798_v54  ;;  %5902 = vmatmul.mubr.f32.vlgmr.msra.gmra.mxu1 %v3798_v54 }
 0x86d   :  { %4247 = vmatpush1.msra.mxu0 %v10932_v16  ;;  %5905 = vmatpush3.msra.mxu1 %v10933_v58  ;;  %v10974_v16 = vld [vmem:[#allocation73_spill] sm:$0xff]  ;;  %v4434_v58 = vld [vmem:[%s9999_s9 + $0x78] sm:$0xff] }
 0x86e   :  { %4248 = vmatprep.subr.mxu0 %v10934_v11  ;;  %5906 = vmatprep.subr.mxu1 %v10423_v17 }
 0x86f   :  { %4249 = vmatpush1.msra.mxu0 %v10935_v18  ;;  %5907 = vmatpush3.msra.mxu1 %v10936_v45 }
 0x870   :  { %4250 = vmatprep.subr.mxu0 %v10937_v51  ;;  %5908 = vmatprep.subr.mxu1 %v10423_v17  ;;  %v3937_v51 = vadd.f32 %v9822_v62, %v10975_v10  ;;  %v10976_v62 = vld [vmem:[#allocation41_spill] sm:$0xff] }
 0x871   :  { %4251 = vmatpush1.msra.mxu0 %v10938_v48  ;;  %5909 = vmatpush3.msra.mxu1 %v10939_v33 }
 0x872   :  { %4252 = vmatprep.subr.mxu0 %v10940_v35  ;;  %5910 = vmatprep.subr.mxu1 %v10423_v17 }
 0x873   :  { %4253 = vmatpush1.msra.mxu0 %v10941_v9  ;;  %5911 = vmatpush3.msra.mxu1 %v10942_v23 }
 0x874   :  { %4254 = vmatprep.subr.mxu0 %v10943_v6  ;;  %5912 = vmatprep.subr.mxu1 %v10423_v17  ;;  %v4432_v6 = vld [vmem:[%s9999_s9 + $0x68] sm:$0xff] }
 0x875   :  { %4255 = vmatpush1.msra.mxu0 %v10945_v55  ;;  %5913 = vmatpush3.msra.mxu1 %v10946_v47  ;;  %v4430_v55 = vld [vmem:[%s9999_s9 + $0x58] sm:$0xff]  ;;  %v4429_v47 = vld [vmem:[%s9999_s9 + $0x50] sm:$0xff] }
 0x876   :  { %v4006_v15 = vpop.f32.mrf.mxu0  ;;  %v9845_v24 = vpop.f32.mrf.mxu1  ;;  %4256 = vmatprep.subr.mxu0 %v10947_v4  ;;  %5914 = vmatprep.subr.mxu1 %v10423_v17  ;;  %v4426_v4 = vld [vmem:[%s9999_s9 + $0x38] sm:$0xff] }
 0x877   :  { %v4081_v25 = vadd.f32 %v4006_v15, %v3866_v21  ;;  %4257 = vmatpush1.msra.mxu0 %v9636_v57  ;;  %5915 = vmatpush3.msra.mxu1 %v9639_v14  ;;  %v10953_v57 = vld [vmem:[#allocation53_spill] sm:$0xff]  ;;  %v10954_v14 = vld [vmem:[#allocation54_spill] sm:$0xff] }
 0x878   :  { %v5868_v53 = vpop.f32.mrf.mxu1  ;;  %4258 = vmatprep.subr.mxu0 %v10948_v3  ;;  %5916 = vmatprep.subr.mxu1 %v10423_v17  ;;  %v4008_v28 = vpop.f32.mrf.mxu0  ;;  %v4431_v21 = vld [vmem:[%s9999_s9 + $0x60] sm:$0xff]  ;;  %v4428_v15 = vld [vmem:[%s9999_s9 + $0x48] sm:$0xff] }
 0x879   :  { %v4594_v8 = vmul.f32 -1.442695, %v4081_v25  ;;  %4259 = vmatpush1.msra.mxu0 %v10949_v29  ;;  %5917 = vmatpush3.msra.mxu1 %v10950_v13  ;;  %v4088_v49 = vadd.f32 %v4008_v28, %v3868_v56  ;;  %v4425_v25 = vld [vmem:[%s9999_s9 + $0x30] sm:$0xff]  ;;  %v4424_v53 = vld [vmem:[%s9999_s9 + $0x28] sm:$0xff]  ;;  %v4423_v3 = vld [vmem:[%s9999_s9 + $0x20] sm:$0xff] }
 0x87a   :  { %4260 = vmatprep.subr.mxu0 %v10951_v43  ;;  %5918 = vmatprep.subr.mxu1 %v10423_v17  ;;  %v4421_v29 = vld [vmem:[%s9999_s9 + $0x10] sm:$0xff]  ;;  %v4420_v13 = vld [vmem:[%s9999_s9 + $0x8] sm:$0xff]  ;;  %v4419_v28 = vld [vmem:[%s9999_s9] sm:$0xff] }
 0x87b   :  { %6135 = vpow2.f32 %v4594_v8  ;;  %4261 = vmatpush1.msra.mxu0 %v10953_v57  ;;  %5919 = vmatpush3.msra.mxu1 %v10954_v14  ;;  %v4595_v20 = vmul.f32 -1.442695, %v4088_v49  ;;  %v4422_v8 = vld [vmem:[%s9999_s9 + $0x18] sm:$0xff]  ;;  %v10979_v57 = vld [vmem:[#allocation101_spill] sm:$0xff] }
 0x87c   :  { %4262 = vmatprep.subr.mxu0 %v10955_v44  ;;  %5920 = vmatprep.subr.mxu1 %v10423_v17  ;;  %v10977_v43 = vld [vmem:[#allocation103_spill] sm:$0xff]  ;;  %v10978_v56 = vld [vmem:[#allocation24_spill] sm:$0xff] }
 0x87d   :  { %4263 = vmatpush1.msra.mxu0 %v10956_v39  ;;  %5921 = vmatpush3.msra.mxu1 %v10957_v40  ;;  %6137 = vpow2.f32 %v4595_v20 }
 0x87e   :  { %4264 = vmatprep.subr.mxu0 %v10958_v5  ;;  %5922 = vmatprep.subr.mxu1 %v10423_v17 }
 0x87f   :  { %4265 = vmatpush1.msra.mxu0 %v10959_v61  ;;  %5923 = vmatpush3.msra.mxu1 %v10960_v27 }
 0x880   :  { %4266 = vmatprep.subr.mxu0 %v10961_v19  ;;  %5924 = vmatprep.subr.mxu1 %v10423_v17 }
 0x881   :  { %4267 = vmatpush1.msra.mxu0 %v10962_v52  ;;  %5925 = vmatpush3.msra.mxu1 %v10963_v59 }
 0x882   :  { %4268 = vmatprep.subr.mxu0 %v10964_v31  ;;  %5926 = vmatprep.subr.mxu1 %v10423_v17 }
 0x883   :  { %4269 = vmatpush1.msra.mxu0 %v10965_v42  ;;  %5927 = vmatpush3.msra.mxu1 %v10966_v22 }
 0x884   :  { %4270 = vmatprep.subr.mxu0 %v10967_v26  ;;  %5928 = vmatprep.subr.mxu1 %v10423_v17  ;;  %v4598_v26 = vld [vmem:[#allocation15] ss:$0 sm:$0xff] }
 0x885   :  { %4271 = vmatpush1.msra.mxu0 %v10968_v34  ;;  %5929 = vmatpush3.msra.mxu1 %v10969_v46 }
 0x886   :  { %4272 = vmatprep.subr.mxu0 %v10970_v0  ;;  %5930 = vmatprep.subr.mxu1 %v10423_v17 }
 0x887   :  { %4273 = vmatpush1.msra.mxu0 %v10971_v41  ;;  %5931 = vmatpush3.msra.mxu1 %v10972_v37 }
 0x888   :  { %v6136_v63 = vpop.eup %6135  ;;  %4274 = vmatprep.subr.mxu0 %v10973_v2  ;;  %5932 = vmatprep.subr.mxu1 %v10423_v17 }
 0x889   :  { %v4085_v54 = vadd.f32 1.0, %v6136_v63  ;;  %4275 = vmatpush1.msra.mxu0 %v10974_v16  ;;  %5933 = vmatpush3.msra.mxu1 %v9729_v7 }
 0x88a   :  { %4276 = vmatprep.subr.mxu0 %v9733_v36  ;;  %5934 = vmatprep.subr.mxu1 %v10423_v17  ;;  %v6138_v7 = vpop.eup %6137  ;;  %v9898_v36 = vld [vmem:[#allocation14] ss:$0 sm:$0xff] }
 0x88b   :  { %6139 = vrcp.f32 %v4085_v54  ;;  %4277 = vmatpush1.msra.mxu0 %v9737_v50  ;;  %4310 = vmatprep.mubr.f32.mxu0 %v10423_v17  ;;  %v4092_v11 = vadd.f32 1.0, %v6138_v7  ;;  %v4095_v18 = vadd.f32 %v9898_v36, %v9845_v24  ;;  %v4427_v24 = vld [vmem:[%s9999_s9 + $0x40] sm:$0xff] }
 0x88c   :  { %5935 = vmatpush3.msra.mxu1 %v9743_v32  ;;  %5936 = vmatprep.mubr.msk.f32.mxu1 %vm6774_vm0, %v10423_v17 }
 0x88d   :  { %5939 = vmatprep.subr.mxu0 %v4434_v58  ;;  %6141 = vrcp.f32 %v4092_v11 }
 0x898   :  { %v6140_v45 = vpop.eup %6139 }
 0x899   :  { %v4096_v50 = vmul.f32 %v6140_v45, %v4095_v18 }
 0x89a   :  { %v6142_v32 = vpop.eup %6141 }
 0x89b   :  { %v4097_v48 = vadd.f32 %v4096_v50, %v3937_v51  ;;  %v4099_v33 = vsub.f32 1.0, %v6142_v32  ;;  %v4101_v9 = vmul.f32 %v6142_v32, %v9741_v38 }
 0x89d   :  { %6143 = vtanh.f32 %v4097_v48 }
 0x8aa   :  { %v6144_v35 = vpop.eup %6143 }
 0x8ab   :  { %v4100_v17 = vmul.f32 %v6144_v35, %v4099_v33 }
 0x8ad   :  { %v9905_v23 = vadd.f32 %v4101_v9, %v4100_v17 }
 0x8af   :  { %4311 = vmatmul.mubr.f32.vlgmr.msra.gmra.mxu0 %v9905_v23  ;;  %5937 = vmatmul.mubr.f32.vlgmr.msra.gmra.mxu1 %v9905_v23 }
 0x8b0   :  { %5940 = vmatpush3.msra.mxu0 %v4434_v58  ;;  %5971 = vmatprep.mubr.f32.mxu0 %v10976_v62 }
 0x8b1   :  { %5941 = vmatprep.subr.mxu0 %v4433_v1 }
 0x8b2   :  { %5942 = vmatpush3.msra.mxu0 %v4433_v1 }
 0x8b3   :  { %5943 = vmatprep.subr.mxu0 %v4432_v6 }
 0x8b4   :  { %5944 = vmatpush3.msra.mxu0 %v4432_v6 }
 0x8b5   :  { %5945 = vmatprep.subr.mxu0 %v4431_v21 }
 0x8b6   :  { %5946 = vmatpush3.msra.mxu0 %v4431_v21 }
 0x8b7   :  { %5947 = vmatprep.subr.mxu0 %v4430_v55 }
 0x8b8   :  { %5948 = vmatpush3.msra.mxu0 %v4430_v55 }
 0x8b9   :  { %5949 = vmatprep.subr.mxu0 %v4429_v47 }
 0x8ba   :  { %5950 = vmatpush3.msra.mxu0 %v4429_v47 }
 0x8bb   :  { %5951 = vmatprep.subr.mxu0 %v4428_v15 }
 0x8bc   :  { %5952 = vmatpush3.msra.mxu0 %v4428_v15 }
 0x8bd   :  { %5953 = vmatprep.subr.mxu0 %v4427_v24 }
 0x8be   :  { %5954 = vmatpush3.msra.mxu0 %v4427_v24 }
 0x8bf   :  { %5955 = vmatprep.subr.mxu0 %v4426_v4 }
 0x8c0   :  { %5956 = vmatpush3.msra.mxu0 %v4426_v4 }
 0x8c1   :  { %5957 = vmatprep.subr.mxu0 %v4425_v25 }
 0x8c2   :  { %5958 = vmatpush3.msra.mxu0 %v4425_v25 }
 0x8c3   :  { %5959 = vmatprep.subr.mxu0 %v4424_v53 }
 0x8c4   :  { %5960 = vmatpush3.msra.mxu0 %v4424_v53 }
 0x8c5   :  { %5961 = vmatprep.subr.mxu0 %v4423_v3 }
 0x8c6   :  { %5962 = vmatpush3.msra.mxu0 %v4423_v3 }
 0x8c7   :  { %5963 = vmatprep.subr.mxu0 %v4422_v8 }
 0x8c8   :  { %5964 = vmatpush3.msra.mxu0 %v4422_v8 }
 0x8c9   :  { %5965 = vmatprep.subr.mxu0 %v4421_v29 }
 0x8ca   :  { %5966 = vmatpush3.msra.mxu0 %v4421_v29 }
 0x8cb   :  { %5967 = vmatprep.subr.mxu0 %v4420_v13 }
 0x8cc   :  { %5968 = vmatpush3.msra.mxu0 %v4420_v13 }
 0x8cd   :  { %5969 = vmatprep.subr.mxu0 %v4419_v28 }
 0x8ce   :  { %5970 = vmatpush3.msra.mxu0 %v4419_v28 }
 0x8cf   :  { %5972 = vmatmul.mubr.f32.vlgmr.msra.gmra.mxu0 %v10977_v43 }
 0x8d0   :  { %5974 = vmatprep.mubr.f32.mxu0 %v10978_v56 }
 0x8d3   :  { %5975 = vmatmul.mubr.f32.gmra.mxu0 %v10979_v57 }
 0x8d4   :  { %5977 = vmatprep.mubr.f32.mxu0 %v9338_v60 }
 0x8d7   :  { %5978 = vmatmul.mubr.f32.gmra.mxu0 %v9741_v38 }
 0x8d8   :  { %5980 = vmatprep.mubr.f32.mxu0 %v9905_v23 }
 0x92c   :  { %v4242_v14 = vpop.f32.mrf.mxu1  ;;  %v4171_v49 = vpop.f32.mrf.mxu0 }
 0x92d   :  { %v4172_v40 = vadd.f32 %v4171_v49, %v10944_v30  ;;  %v4243_v63 = vadd.f32 %v4242_v14, %v10975_v10 }
 0x92e   :  { %v5903_v44 = vpop.f32.mrf.mxu1  ;;  %v4173_v39 = vpop.f32.mrf.mxu0 }
 0x92f   :  { %v4174_v59 = vadd.f32 %v4173_v39, %v10952_v12 }
 0x96f   :  { %v4312_v5 = vpop.f32.mrf.mxu0  ;;  %v4383_v61 = vpop.f32.mrf.mxu1 }
 0x970   :  { %v4387_v27 = vadd.f32 %v4312_v5, %v4172_v40  ;;  %v4401_v30 = vadd.f32 %v9898_v36, %v4383_v61 }
 0x971   :  { %v5938_v19 = vpop.f32.mrf.mxu1  ;;  %v4314_v52 = vpop.f32.mrf.mxu0 }
 0x972   :  { %v4596_v20 = vmul.f32 -1.442695, %v4387_v27  ;;  %v4394_v60 = vadd.f32 %v4314_v52, %v4174_v59 }
 0x974   :  { %6145 = vpow2.f32 %v4596_v20  ;;  %v4597_v31 = vmul.f32 -1.442695, %v4394_v60 }
 0x976   :  { %6147 = vpow2.f32 %v4597_v31 }
 0x981   :  { %v6146_v38 = vpop.eup %6145 }
 0x982   :  { %v4391_v42 = vadd.f32 1.0, %v6146_v38 }
 0x983   :  { %v6148_v22 = vpop.eup %6147 }
 0x984   :  { %6149 = vrcp.f32 %v4391_v42  ;;  %v4398_v34 = vadd.f32 1.0, %v6148_v22 }
 0x986   :  { %6151 = vrcp.f32 %v4398_v34 }
 0x98f   :  { %v5973_v46 = vpop.f32.mrf.mxu0 }
 0x990   :  { %v4514_v0 = vadd.f32 %v5973_v46, %v4598_v26 }
 0x991   :  { %v6150_v41 = vpop.eup %6149  ;;  %v4508_v37 = vpop.f32.mrf.mxu0 }
 0x992   :  { %v4402_v2 = vmul.f32 %v6150_v41, %v4401_v30  ;;  %4548 = vst [vmem:[%s10001_s11 + $0x8] sm:$0xff] %v4514_v0  ;;  %v4509_v12 = vadd.f32 %v4598_v26, %v4508_v37 }
 0x993   :  { %v5976_v54 = vpop.f32.mrf.mxu0  ;;  %v6152_v51 = vpop.eup %6151 }
 0x994   :  { %v4403_v16 = vadd.f32 %v4402_v2, %v4243_v63  ;;  %4547 = vst [vmem:[%s10001_s11] sm:$0xff] %v4509_v12  ;;  %v4524_v58 = vadd.f32 %v5976_v54, %v4598_v26  ;;  %v4405_v50 = vsub.f32 1.0, %v6152_v51  ;;  %v4407_v33 = vmul.f32 %v6152_v51, %v9905_v23 }
 0x995   :  { %v4518_v7 = vpop.f32.mrf.mxu0 }
 0x996   :  { %6153 = vtanh.f32 %v4403_v16  ;;  %4550 = vst [vmem:[%s10001_s11 + $0x18] sm:$0xff] %v4524_v58  ;;  %v4519_v11 = vadd.f32 %v4598_v26, %v4518_v7 }
 0x997   :  { %v5979_v36 = vpop.f32.mrf.mxu0 }
 0x998   :  { %4549 = vst [vmem:[%s10001_s11 + $0x10] sm:$0xff] %v4519_v11  ;;  %v4534_v18 = vadd.f32 %v5979_v36, %v4598_v26 }
 0x999   :  { %v4528_v45 = vpop.f32.mrf.mxu0 }
 0x99a   :  { %4552 = vst [vmem:[%s10001_s11 + $0x28] sm:$0xff] %v4534_v18  ;;  %v4529_v10 = vadd.f32 %v4598_v26, %v4528_v45 }
 0x99c   :  { %4551 = vst [vmem:[%s10001_s11 + $0x20] sm:$0xff] %v4529_v10 }
 0x9a3   :  { %v6154_v48 = vpop.eup %6153 }
 0x9a4   :  { %v4406_v32 = vmul.f32 %v6154_v48, %v4405_v50 }
 0x9a6   :  { %v4408_v35 = vadd.f32 %v4407_v33, %v4406_v32 }
 0x9a8   :  { %5981 = vmatmul.mubr.f32.gmra.mxu0 %v4408_v35 }
 0xa68   :  { %v5982_v17 = vpop.f32.mrf.mxu0 }
 0xa69   :  { %v4544_v9 = vadd.f32 %v5982_v17, %v4598_v26 }
 0xa6a   :  { %v4538_v1 = vpop.f32.mrf.mxu0 }
 0xa6b   :  { %4554 = vst [vmem:[%s10001_s11 + $0x38] sm:$0xff] %v4544_v9  ;;  %v4539_v62 = vadd.f32 %v4598_v26, %v4538_v1 }
 0xa6d   :  { %4553 = vst [vmem:[%s10001_s11 + $0x30] sm:$0xff] %v4539_v62 }
 0xa6e   :  { %4559 = vsyncpa [#allocation5], 1 }
 0xa6f   :  { %4560 = vsyncpa [#allocation7], 1 }
 0xa70   :  { %4561 = vsyncpa [#allocation10], 1 }
 0xa71   :  { %4562 = vsyncpa [#allocation13], 1 }
 0xa72   :  { %4563 = vsyncpa [#allocation16], 1 }

</bundles_post_ra>
